<compile_context>
chip_gen: v7x
topology: tpu7x:2x2x1
jax: 0.10.0
libtpu: 0.0.40
codegen_flags: <defaults>
</compile_context>

<pallas_src>
import functools

import jax
import jax.numpy as jnp
import numpy as np
from jax.experimental import pallas as pl
from jax.experimental.pallas import tpu as pltpu


# ---------------------------------------------------------------------------
# Pallas kernel: full SASTGCN_block forward, one batch tile resident in VMEM.
# ---------------------------------------------------------------------------
def _sastgcn_kernel(
    x4_ref,        # (bt, N, F, T)    original input
    xflat_ref,     # (bt, N, F*T)     x flattened over (F, T)
    u1_ref,        # (1, N)   temporal attention U1
    u2_ref,        # (F, N)   U2
    u3_ref,        # (1, F)   U3
    be_ref,        # (T, T)   temporal bias
    ve_ref,        # (T, T)   temporal Ve
    w1_ref,        # (1, T)   spatial W1
    w2_ref,        # (F, T)   W2
    w3_ref,        # (1, F)   W3
    bsT_ref,       # (N, N)   spatial bias, transposed
    vsT_ref,       # (N, N)   Vs, transposed
    chebT_ref,     # (K, N, N)        cheb polynomials, each transposed
    thetaCat_ref,  # (F*T, K*Fo*T)    all kron(Theta_k, I_T), concatenated over k
    mtc_ref,       # (Fo*T, Co*To)    folded (1,3) time conv
    mres_ref,      # (F*T, Co*To)     folded (1,1) residual conv
    bias_ref,      # (1, Co*To)       time-conv + residual biases, pre-summed
    pmean_ref,     # (Co*To, To)      LayerNorm channel-pooling matrix (already / Co)
    pT_ref,        # (To, Co*To)      broadcast-back matrix
    gamma_ref,     # (1, Co*To)       LN weight (flattened)
    beta_ref,      # (1, Co*To)       LN bias   (flattened)
    out_ref,       # (bt, N, Co*To)
):
    f32 = jnp.float32
    x4 = x4_ref[...]
    xflat = xflat_ref[...]
    B, N, F, T = x4.shape
    K = chebT_ref.shape[0]
    FoT = mtc_ref.shape[0]

    dot = functools.partial(jnp.einsum, preferred_element_type=f32)

    # ---------------- Temporal attention: E_norm (B, T, T) ----------------
    u1 = u1_ref[0]
    u2 = u2_ref[...]
    u3 = u3_ref[0]
    # rhs_t[b,n,t] = sum_f U3[f] * x[b,n,f,t]
    rhs_t = jnp.sum(x4 * u3[None, None, :, None], axis=2)             # (B,N,T)
    # p_t[b,f,t]  = sum_n U1[n] * x[b,n,f,t]
    p_t = jnp.sum(x4 * u1[None, :, None, None], axis=1)               # (B,F,T)
    # lhs_t[b,t,n'] = sum_f p_t[b,f,t] * U2[f,n']   (F is tiny -> unroll on VPU)
    lhs_t = jnp.zeros((B, T, N), f32)
    for f in range(F):
        lhs_t = lhs_t + p_t[:, f, :, None] * u2[f, :][None, None, :]
    prod_t = dot('btn,bns->bts', lhs_t, rhs_t)                        # (B,T,T)
    sig_t = jax.nn.sigmoid(prod_t + be_ref[...][None])
    ve_b = jnp.broadcast_to(ve_ref[...], (B, T, T))
    e_t = dot('bij,bjk->bik', ve_b, sig_t)                            # (B,T,T)
    m_t = jnp.max(e_t, axis=1, keepdims=True)
    z_t = jnp.exp(e_t - m_t)
    e_norm = z_t / jnp.sum(z_t, axis=1, keepdims=True)                # softmax dim=1

    # -------- Spatial shortcut attention on x_TAt = x @_T E_norm ----------
    # (x_TAt is never materialised: E_norm is folded into both contractions)
    w1 = w1_ref[0]
    w2 = w2_ref[...]
    w3 = w3_ref[0]
    xw3 = jnp.sum(x4 * w3[None, None, :, None], axis=2)               # (B,N,T)
    rhs_s = dot('bnt,bts->bns', xw3, e_norm)                          # (B,N,T)
    w1e = jnp.sum(e_norm * w1[None, None, :], axis=-1)                # (B,T)
    a_s = jnp.sum(x4 * w1e[:, None, None, :], axis=-1)                # (B,N,F)
    w2_b = jnp.broadcast_to(w2, (B, F, T))
    lhs_s = dot('bnf,bft->bnt', a_s, w2_b)                            # (B,N,T)
    # compute product^T directly so the softmax normalisation is lane-wise
    prodT = dot('bmt,bnt->bmn', rhs_s, lhs_s)                         # prodT[b,j,p]=product[b,p,j]
    gT = jax.nn.sigmoid(prodT + bsT_ref[...][None])
    vsT_b = jnp.broadcast_to(vsT_ref[...], (B, N, N))
    ssT = dot('bjp,bpi->bji', gT, vsT_b)                              # ssT[b,j,i] = SS[b,i,j]
    zs = 1.0 - ssT
    ms = jnp.max(zs, axis=-1, keepdims=True)
    es = jnp.exp(zs - ms)
    attT = es / jnp.sum(es, axis=-1, keepdims=True)                   # attT[b,j,i] = att[b,i,j]

    # ------------- Chebyshev graph conv with spatial attention -------------
    # One wide lane-dense matmul for all K filters, then K small mixing matmuls.
    thetaCat_b = jnp.broadcast_to(thetaCat_ref[...], (B,) + thetaCat_ref.shape)
    y_all = dot('bnj,bjc->bnc', xflat, thetaCat_b)                    # (B,N,K*Fo*T)
    acc = jnp.zeros((B, N, FoT), f32)
    for k in range(K):
        a_kT = chebT_ref[k][None] * attT                              # (B,N,N) == (T_k*att)^T
        acc = acc + dot('bnm,bmc->bnc', a_kT, y_all[:, :, k * FoT:(k + 1) * FoT])
    gcn = jnp.maximum(acc, 0.0)                                       # (B,N,Fo*T)

    # ------ folded (1,3) time conv + folded (1,1) residual conv + ReLU -----
    mtc_b = jnp.broadcast_to(mtc_ref[...], (B,) + mtc_ref.shape)
    mres_b = jnp.broadcast_to(mres_ref[...], (B,) + mres_ref.shape)
    tc = dot('bnj,bjc->bnc', gcn, mtc_b)
    res = dot('bnj,bjc->bnc', xflat, mres_b)
    comb = jnp.maximum(tc + res + bias_ref[0][None, None, :], 0.0)    # (B,N,Co*To)

    # ------------- LayerNorm over channels (per (b, n, t_out)) -------------
    pmean_b = jnp.broadcast_to(pmean_ref[...], (B,) + pmean_ref.shape)  # (B,Co*To,To)
    pT_b = jnp.broadcast_to(pT_ref[...], (B,) + pT_ref.shape)           # (B,To,Co*To)
    mean = dot('bnj,bjt->bnt', comb, pmean_b)                           # (B,N,To)
    meanb = dot('bnt,btj->bnj', mean, pT_b)                             # (B,N,Co*To)
    cent = comb - meanb
    var = dot('bnj,bjt->bnt', cent * cent, pmean_b)
    inv = jax.lax.rsqrt(var + 1e-5)
    invb = dot('bnt,btj->bnj', inv, pT_b)
    y = cent * invb * gamma_ref[0][None, None, :] + beta_ref[0][None, None, :]
    out_ref[...] = y.astype(out_ref.dtype)                              # lane-dense (B,N,Co*To)


# ---------------------------------------------------------------------------
# Host-side weight folding (free; keeps the kernel MXU-only and lane-dense).
# ---------------------------------------------------------------------------
def _fold_time_conv(w, b, T, stride):
    """Conv2d(k=(1,3), stride=(1,s), pad=(0,1)) -> dense (Ci*T, Co*To) operator."""
    Co, Ci, _, Kw = w.shape
    To = (T + 2 - Kw) // stride + 1
    M = np.zeros((Ci * T, Co * To), np.float32)
    for co in range(Co):
        for ci in range(Ci):
            for to in range(To):
                for d in range(Kw):
                    t = stride * to + d - 1
                    if 0 <= t < T:
                        M[ci * T + t, co * To + to] += float(w[co, ci, 0, d])
    bflat = np.repeat(np.asarray(b, np.float32), To)[None, :]
    return M, bflat.astype(np.float32), To


def _fold_res_conv(w, b, T, stride):
    """Conv2d(k=(1,1), stride=(1,s)) -> dense (Ci*T, Co*To) operator."""
    Co, Ci, _, _ = w.shape
    To = (T - 1) // stride + 1
    M = np.zeros((Ci * T, Co * To), np.float32)
    for co in range(Co):
        for ci in range(Ci):
            for to in range(To):
                M[ci * T + stride * to, co * To + to] = float(w[co, ci, 0, 0])
    bflat = np.repeat(np.asarray(b, np.float32), To)[None, :]
    return M, bflat.astype(np.float32), To


def _const_spec(shape):
    nd = len(shape)
    return pl.BlockSpec(tuple(shape), lambda i, _nd=nd: (0,) * _nd)


def _batch_spec(bt, rest):
    nz = len(rest)
    return pl.BlockSpec((bt,) + tuple(rest), lambda i, _nz=nz: (i,) + (0,) * _nz)


def sastgcn_block_forward(x, params, *, time_strides=1, batch_tile=None):
    """x: (B, N, F_in, T) fp32 -> (B, N, nb_time_filter, T_out) fp32."""
    B, N, F, T = x.shape
    p = params
    K = p["Theta"].shape[0]
    Co = p["time_w"].shape[0]
    assert p["bs"].shape == (1, N, N)

    bt = B if batch_tile is None else batch_tile
    assert B % bt == 0, "batch_tile must divide the batch size"

    Mtc, btc_flat, To = _fold_time_conv(np.asarray(p["time_w"]),
                                        np.asarray(p["time_b"]), T, time_strides)
    Mres, bres_flat, To_r = _fold_res_conv(np.asarray(p["res_w"]),
                                           np.asarray(p["res_b"]), T, time_strides)
    assert To == To_r
    bias_flat = (btc_flat + bres_flat).astype(np.float32)             # pre-summed conv biases

    eye_t = np.eye(T, dtype=np.float32)
    thetaCat = np.concatenate(
        [np.kron(np.asarray(p["Theta"][k], np.float32), eye_t) for k in range(K)],
        axis=1)                                                        # (F*T, K*Fo*T)
    chebT = np.stack([np.asarray(p["cheb"][k], np.float32).T for k in range(K)])
    Pmean = np.tile(np.eye(To, dtype=np.float32), (Co, 1)) / float(Co)  # (Co*To, To), /Co folded in
    PT = np.ascontiguousarray(np.tile(np.eye(To, dtype=np.float32), (Co, 1)).T)
    gamma_flat = np.repeat(np.asarray(p["ln_gamma"], np.float32), To)[None, :]
    beta_flat = np.repeat(np.asarray(p["ln_beta"], np.float32), To)[None, :]

    xf32 = jnp.asarray(x, jnp.float32)
    x4 = xf32                                                          # (B,N,F,T)
    xflat = xf32.reshape(B, N, F * T)                                  # (B,N,F*T)
    consts = [
        jnp.asarray(p["U1"], jnp.float32).reshape(1, N),
        jnp.asarray(p["U2"], jnp.float32),
        jnp.asarray(p["U3"], jnp.float32).reshape(1, F),
        jnp.asarray(p["be"], jnp.float32).reshape(T, T),
        jnp.asarray(p["Ve"], jnp.float32),
        jnp.asarray(p["W1"], jnp.float32).reshape(1, T),
        jnp.asarray(p["W2"], jnp.float32),
        jnp.asarray(p["W3"], jnp.float32).reshape(1, F),
        jnp.asarray(p["bs"], jnp.float32).reshape(N, N).T,
        jnp.asarray(p["Vs"], jnp.float32).T,
        jnp.asarray(chebT),
        jnp.asarray(thetaCat),
        jnp.asarray(Mtc),
        jnp.asarray(Mres),
        jnp.asarray(bias_flat),
        jnp.asarray(Pmean),
        jnp.asarray(PT),
        jnp.asarray(gamma_flat),
        jnp.asarray(beta_flat),
    ]

    in_specs = ([_batch_spec(bt, (N, F, T)), _batch_spec(bt, (N, F * T))]
                + [_const_spec(a.shape) for a in consts])

    out_flat = pl.pallas_call(
        _sastgcn_kernel,
        out_shape=jax.ShapeDtypeStruct((B, N, Co * To), jnp.float32),
        grid_spec=pltpu.PrefetchScalarGridSpec(
            num_scalar_prefetch=0,
            grid=(B // bt,),                    # independent batch tiles
            in_specs=in_specs,
            out_specs=_batch_spec(bt, (N, Co * To)),
        ),
        compiler_params=pltpu.CompilerParams(dimension_semantics=("parallel",)),
    )(x4, xflat, *consts)
    return out_flat.reshape(B, N, Co, To)


# ---------------------------------------------------------------------------
# Pure-JAX reference (mirrors the PyTorch module op-for-op).
# ---------------------------------------------------------------------------
def _reference(x, p, *, time_strides=1):
    B, N, F, T = x.shape
    # Temporal attention
    xp = jnp.transpose(x, (0, 3, 2, 1))                       # (B,T,F,N)
    lhs = jnp.einsum('btfn,n->btf', xp, p["U1"])
    lhs = jnp.einsum('btf,fn->btn', lhs, p["U2"])
    rhs = jnp.einsum('f,bnft->bnt', p["U3"], x)
    product = jnp.einsum('btn,bns->bts', lhs, rhs)
    E = jnp.einsum('ij,bjk->bik', p["Ve"], jax.nn.sigmoid(product + p["be"]))
    E_norm = jax.nn.softmax(E, axis=1)

    x_TAt = jnp.einsum('brt,bts->brs', x.reshape(B, N * F, T), E_norm).reshape(B, N, F, T)

    # Spatial shortcut attention
    lhs2 = jnp.einsum('bnft,t->bnf', x_TAt, p["W1"])
    lhs2 = jnp.einsum('bnf,ft->bnt', lhs2, p["W2"])
    rhs2 = jnp.einsum('f,bnft->btn', p["W3"], x_TAt)
    product2 = jnp.einsum('bnt,btm->bnm', lhs2, rhs2)
    SS = jnp.einsum('nm,bmk->bnk', p["Vs"], jax.nn.sigmoid(product2 + p["bs"]))
    att = jax.nn.softmax(1.0 - SS, axis=1)

    # Chebyshev graph conv with attention
    K, _, Fo = p["Theta"].shape
    gcn = jnp.zeros((B, N, Fo, T), jnp.float32)
    for k in range(K):
        A = p["cheb"][k][None] * att
        gcn = gcn + jnp.einsum('bmn,bmft,fo->bnot', A, x, p["Theta"][k])
    gcn = jax.nn.relu(gcn)

    # time conv (1,3) + residual (1,1) + ReLU + LayerNorm
    tc = jax.lax.conv_general_dilated(
        jnp.transpose(gcn, (0, 2, 1, 3)), p["time_w"],
        window_strides=(1, time_strides), padding=((0, 0), (1, 1)),
        dimension_numbers=('NCHW', 'OIHW', 'NCHW')) + p["time_b"][None, :, None, None]
    res = jax.lax.conv_general_dilated(
        jnp.transpose(x, (0, 2, 1, 3)), p["res_w"],
        window_strides=(1, time_strides), padding=((0, 0), (0, 0)),
        dimension_numbers=('NCHW', 'OIHW', 'NCHW')) + p["res_b"][None, :, None, None]
    z = jax.nn.relu(res + tc)                                  # (B,Co,N,To)
    z = jnp.transpose(z, (0, 3, 2, 1))                         # (B,To,N,Co)
    mu = jnp.mean(z, axis=-1, keepdims=True)
    var = jnp.mean((z - mu) ** 2, axis=-1, keepdims=True)
    z = (z - mu) * jax.lax.rsqrt(var + 1e-5) * p["ln_gamma"] + p["ln_beta"]
    return jnp.transpose(z, (0, 2, 3, 1))                      # (B,N,Co,T_out)


if __name__ == "__main__":
    # Keep f32 matmuls exact on both sides so kernel and reference agree tightly.
    jax.config.update("jax_default_matmul_precision", "highest")

    B, N, F_in, T = 2, 16, 4, 8           # batch, vertices, in_channels, timesteps
    K, Fo, Co, stride = 3, 32, 32, 1      # cheb order, cheb filters, time filters, stride

    key = jax.random.PRNGKey(0)
    keys = jax.random.split(key, 16)

    x = jax.random.normal(keys[0], (B, N, F_in, T), dtype=jnp.float32)

    # Chebyshev polynomials of a random symmetric "scaled Laplacian".
    Lsym = jax.random.normal(keys[1], (N, N), dtype=jnp.float32) * 0.2
    Lsym = 0.5 * (Lsym + Lsym.T)
    cheb0 = jnp.eye(N, dtype=jnp.float32)
    cheb1 = Lsym
    cheb2 = 2.0 * Lsym @ cheb1 - cheb0
    cheb = jnp.stack([cheb0, cheb1, cheb2])

    params = dict(
        U1=jax.random.normal(keys[2], (N,), jnp.float32) * 0.1,
        U2=jax.random.normal(keys[3], (F_in, N), jnp.float32) * 0.1,
        U3=jax.random.normal(keys[4], (F_in,), jnp.float32) * 0.1,
        be=jax.random.normal(keys[5], (1, T, T), jnp.float32) * 0.1,
        Ve=jax.random.normal(keys[6], (T, T), jnp.float32) * 0.1,
        W1=jax.random.normal(keys[7], (T,), jnp.float32) * 0.1,
        W2=jax.random.normal(keys[8], (F_in, T), jnp.float32) * 0.1,
        W3=jax.random.normal(keys[9], (F_in,), jnp.float32) * 0.1,
        bs=jax.random.normal(keys[10], (1, N, N), jnp.float32) * 0.1,
        Vs=jax.random.normal(keys[11], (N, N), jnp.float32) * 0.1,
        cheb=cheb,
        Theta=jax.random.normal(keys[12], (K, F_in, Fo), jnp.float32) * 0.3,
        time_w=jax.random.normal(keys[13], (Co, Fo, 1, 3), jnp.float32) * 0.3,
        time_b=jax.random.normal(keys[14], (Co,), jnp.float32) * 0.1,
        res_w=jax.random.normal(keys[15], (Co, F_in, 1, 1), jnp.float32) * 0.3,
        res_b=jnp.zeros((Co,), jnp.float32),
        ln_gamma=jnp.ones((Co,), jnp.float32),
        ln_beta=jnp.zeros((Co,), jnp.float32),
    )

    out = sastgcn_block_forward(x, params, time_strides=stride)
    out = jax.block_until_ready(out)

    ref = jax.block_until_ready(_reference(x, params, time_strides=stride))
    assert out.shape == ref.shape == (B, N, Co, T)
    err = float(jnp.max(jnp.abs(out - ref)))
    assert jnp.allclose(out, ref, atol=1e-3, rtol=1e-3), f"mismatch vs reference (max abs err {err})"

    print("KERNEL_OK")
</pallas_src>

<mosaic_0001>
module attributes {stable_mosaic.version = 11 : i64} {
  func.func @_sastgcn_kernel(%arg0: i32, %arg1: memref<2x16x4x8xf32, #tpu.memory_space<vmem>>, %arg2: memref<2x16x32xf32, #tpu.memory_space<vmem>>, %arg3: memref<1x16xf32, #tpu.memory_space<vmem>>, %arg4: memref<4x16xf32, #tpu.memory_space<vmem>>, %arg5: memref<1x4xf32, #tpu.memory_space<vmem>>, %arg6: memref<8x8xf32, #tpu.memory_space<vmem>>, %arg7: memref<8x8xf32, #tpu.memory_space<vmem>>, %arg8: memref<1x8xf32, #tpu.memory_space<vmem>>, %arg9: memref<4x8xf32, #tpu.memory_space<vmem>>, %arg10: memref<1x4xf32, #tpu.memory_space<vmem>>, %arg11: memref<16x16xf32, #tpu.memory_space<vmem>>, %arg12: memref<16x16xf32, #tpu.memory_space<vmem>>, %arg13: memref<3x16x16xf32, #tpu.memory_space<vmem>>, %arg14: memref<32x768xf32, #tpu.memory_space<vmem>>, %arg15: memref<256x256xf32, #tpu.memory_space<vmem>>, %arg16: memref<32x256xf32, #tpu.memory_space<vmem>>, %arg17: memref<1x256xf32, #tpu.memory_space<vmem>>, %arg18: memref<256x8xf32, #tpu.memory_space<vmem>>, %arg19: memref<8x256xf32, #tpu.memory_space<vmem>>, %arg20: memref<1x256xf32, #tpu.memory_space<vmem>>, %arg21: memref<1x256xf32, #tpu.memory_space<vmem>>, %arg22: memref<2x16x256xf32, #tpu.memory_space<vmem>>) attributes {dimension_semantics = [#tpu.dimension_semantics<parallel>], iteration_bounds = array<i64: 1>, scalar_prefetch = 0 : i64, scratch_operands = 0 : i64, tpu.core_type = #tpu.core_type<tc>, window_params = [{transform_indices = @transform_0, window_bounds = array<i64: 2, 16, 4, 8>}, {transform_indices = @transform_1, window_bounds = array<i64: 2, 16, 32>}, {pipeline_mode = #tpu.pipeline_mode<synchronous>, transform_indices = @transform_2, window_bounds = array<i64: 1, 16>}, {pipeline_mode = #tpu.pipeline_mode<synchronous>, transform_indices = @transform_3, window_bounds = array<i64: 4, 16>}, {pipeline_mode = #tpu.pipeline_mode<synchronous>, transform_indices = @transform_4, window_bounds = array<i64: 1, 4>}, {pipeline_mode = #tpu.pipeline_mode<synchronous>, transform_indices = @transform_5, window_bounds = array<i64: 8, 8>}, {pipeline_mode = #tpu.pipeline_mode<synchronous>, transform_indices = @transform_6, window_bounds = array<i64: 8, 8>}, {pipeline_mode = #tpu.pipeline_mode<synchronous>, transform_indices = @transform_7, window_bounds = array<i64: 1, 8>}, {pipeline_mode = #tpu.pipeline_mode<synchronous>, transform_indices = @transform_8, window_bounds = array<i64: 4, 8>}, {pipeline_mode = #tpu.pipeline_mode<synchronous>, transform_indices = @transform_9, window_bounds = array<i64: 1, 4>}, {pipeline_mode = #tpu.pipeline_mode<synchronous>, transform_indices = @transform_10, window_bounds = array<i64: 16, 16>}, {pipeline_mode = #tpu.pipeline_mode<synchronous>, transform_indices = @transform_11, window_bounds = array<i64: 16, 16>}, {pipeline_mode = #tpu.pipeline_mode<synchronous>, transform_indices = @transform_12, window_bounds = array<i64: 3, 16, 16>}, {pipeline_mode = #tpu.pipeline_mode<synchronous>, transform_indices = @transform_13, window_bounds = array<i64: 32, 768>}, {pipeline_mode = #tpu.pipeline_mode<synchronous>, transform_indices = @transform_14, window_bounds = array<i64: 256, 256>}, {pipeline_mode = #tpu.pipeline_mode<synchronous>, transform_indices = @transform_15, window_bounds = array<i64: 32, 256>}, {pipeline_mode = #tpu.pipeline_mode<synchronous>, transform_indices = @transform_16, window_bounds = array<i64: 1, 256>}, {pipeline_mode = #tpu.pipeline_mode<synchronous>, transform_indices = @transform_17, window_bounds = array<i64: 256, 8>}, {pipeline_mode = #tpu.pipeline_mode<synchronous>, transform_indices = @transform_18, window_bounds = array<i64: 8, 256>}, {pipeline_mode = #tpu.pipeline_mode<synchronous>, transform_indices = @transform_19, window_bounds = array<i64: 1, 256>}, {pipeline_mode = #tpu.pipeline_mode<synchronous>, transform_indices = @transform_20, window_bounds = array<i64: 1, 256>}, {transform_indices = @transform_21, window_bounds = array<i64: 2, 16, 256>}]} {
    %c0 = arith.constant 0 : index
    %c0_0 = arith.constant 0 : index
    %c0_1 = arith.constant 0 : index
    %c0_2 = arith.constant 0 : index
    %0 = vector.load %arg1[%c0, %c0_0, %c0_1, %c0_2] : memref<2x16x4x8xf32, #tpu.memory_space<vmem>>, vector<2x16x4x8xf32>
    %c0_3 = arith.constant 0 : index
    %c0_4 = arith.constant 0 : index
    %c0_5 = arith.constant 0 : index
    %1 = vector.load %arg2[%c0_3, %c0_4, %c0_5] : memref<2x16x32xf32, #tpu.memory_space<vmem>>, vector<2x16x32xf32>
    %c0_6 = arith.constant 0 : index
    %c0_7 = arith.constant 0 : index
    %2 = vector.load %arg3[%c0_6, %c0_7] : memref<1x16xf32, #tpu.memory_space<vmem>>, vector<1x16xf32>
    %3 = vector.shape_cast %2 : vector<1x16xf32> to vector<16xf32>
    %c0_8 = arith.constant 0 : index
    %c0_9 = arith.constant 0 : index
    %4 = vector.load %arg4[%c0_8, %c0_9] : memref<4x16xf32, #tpu.memory_space<vmem>>, vector<4x16xf32>
    %c0_10 = arith.constant 0 : index
    %c0_11 = arith.constant 0 : index
    %5 = vector.load %arg5[%c0_10, %c0_11] : memref<1x4xf32, #tpu.memory_space<vmem>>, vector<1x4xf32>
    %6 = vector.shape_cast %5 : vector<1x4xf32> to vector<4xf32>
    %7 = vector.shape_cast %6 : vector<4xf32> to vector<1x1x4x1xf32>
    %8 = vector.broadcast %7 : vector<1x1x4x1xf32> to vector<2x16x4x8xf32>
    %9 = arith.mulf %0, %8 : vector<2x16x4x8xf32>
    %cst = arith.constant dense<0.000000e+00> : vector<2x16x8xf32>
    %10 = vector.multi_reduction <add>, %9, %cst [2] : vector<2x16x4x8xf32> to vector<2x16x8xf32>
    %11 = vector.shape_cast %3 : vector<16xf32> to vector<1x16x1x1xf32>
    %12 = vector.broadcast %11 : vector<1x16x1x1xf32> to vector<2x16x4x8xf32>
    %13 = arith.mulf %0, %12 : vector<2x16x4x8xf32>
    %cst_12 = arith.constant dense<0.000000e+00> : vector<2x4x8xf32>
    %14 = vector.multi_reduction <add>, %13, %cst_12 [1] : vector<2x16x4x8xf32> to vector<2x4x8xf32>
    %cst_13 = arith.constant 0.000000e+00 : f32
    %15 = vector.broadcast %cst_13 : f32 to vector<2x8x16xf32>
    %16 = vector.extract_strided_slice %14 {offsets = [0, 0, 0], sizes = [2, 1, 8], strides = [1, 1, 1]} : vector<2x4x8xf32> to vector<2x1x8xf32>
    %17 = vector.shape_cast %16 : vector<2x1x8xf32> to vector<2x8xf32>
    %18 = vector.shape_cast %17 : vector<2x8xf32> to vector<2x8x1xf32>
    %19 = vector.extract_strided_slice %4 {offsets = [0, 0], sizes = [1, 16], strides = [1, 1]} : vector<4x16xf32> to vector<1x16xf32>
    %20 = vector.shape_cast %19 : vector<1x16xf32> to vector<16xf32>
    %21 = vector.shape_cast %20 : vector<16xf32> to vector<1x1x16xf32>
    %22 = vector.broadcast %18 : vector<2x8x1xf32> to vector<2x8x16xf32>
    %23 = vector.broadcast %21 : vector<1x1x16xf32> to vector<2x8x16xf32>
    %24 = arith.mulf %22, %23 : vector<2x8x16xf32>
    %25 = arith.addf %15, %24 : vector<2x8x16xf32>
    %26 = vector.extract_strided_slice %14 {offsets = [0, 1, 0], sizes = [2, 1, 8], strides = [1, 1, 1]} : vector<2x4x8xf32> to vector<2x1x8xf32>
    %27 = vector.shape_cast %26 : vector<2x1x8xf32> to vector<2x8xf32>
    %28 = vector.shape_cast %27 : vector<2x8xf32> to vector<2x8x1xf32>
    %29 = vector.extract_strided_slice %4 {offsets = [1, 0], sizes = [1, 16], strides = [1, 1]} : vector<4x16xf32> to vector<1x16xf32>
    %30 = vector.shape_cast %29 : vector<1x16xf32> to vector<16xf32>
    %31 = vector.shape_cast %30 : vector<16xf32> to vector<1x1x16xf32>
    %32 = vector.broadcast %28 : vector<2x8x1xf32> to vector<2x8x16xf32>
    %33 = vector.broadcast %31 : vector<1x1x16xf32> to vector<2x8x16xf32>
    %34 = arith.mulf %32, %33 : vector<2x8x16xf32>
    %35 = arith.addf %25, %34 : vector<2x8x16xf32>
    %36 = vector.extract_strided_slice %14 {offsets = [0, 2, 0], sizes = [2, 1, 8], strides = [1, 1, 1]} : vector<2x4x8xf32> to vector<2x1x8xf32>
    %37 = vector.shape_cast %36 : vector<2x1x8xf32> to vector<2x8xf32>
    %38 = vector.shape_cast %37 : vector<2x8xf32> to vector<2x8x1xf32>
    %39 = vector.extract_strided_slice %4 {offsets = [2, 0], sizes = [1, 16], strides = [1, 1]} : vector<4x16xf32> to vector<1x16xf32>
    %40 = vector.shape_cast %39 : vector<1x16xf32> to vector<16xf32>
    %41 = vector.shape_cast %40 : vector<16xf32> to vector<1x1x16xf32>
    %42 = vector.broadcast %38 : vector<2x8x1xf32> to vector<2x8x16xf32>
    %43 = vector.broadcast %41 : vector<1x1x16xf32> to vector<2x8x16xf32>
    %44 = arith.mulf %42, %43 : vector<2x8x16xf32>
    %45 = arith.addf %35, %44 : vector<2x8x16xf32>
    %46 = vector.extract_strided_slice %14 {offsets = [0, 3, 0], sizes = [2, 1, 8], strides = [1, 1, 1]} : vector<2x4x8xf32> to vector<2x1x8xf32>
    %47 = vector.shape_cast %46 : vector<2x1x8xf32> to vector<2x8xf32>
    %48 = vector.shape_cast %47 : vector<2x8xf32> to vector<2x8x1xf32>
    %49 = vector.extract_strided_slice %4 {offsets = [3, 0], sizes = [1, 16], strides = [1, 1]} : vector<4x16xf32> to vector<1x16xf32>
    %50 = vector.shape_cast %49 : vector<1x16xf32> to vector<16xf32>
    %51 = vector.shape_cast %50 : vector<16xf32> to vector<1x1x16xf32>
    %52 = vector.broadcast %48 : vector<2x8x1xf32> to vector<2x8x16xf32>
    %53 = vector.broadcast %51 : vector<1x1x16xf32> to vector<2x8x16xf32>
    %54 = arith.mulf %52, %53 : vector<2x8x16xf32>
    %55 = arith.addf %45, %54 : vector<2x8x16xf32>
    "tpu.trace_start"() <{level = 10 : i32, message = "btn,bns->bts"}> : () -> ()
    %cst_14 = arith.constant dense<0.000000e+00> : vector<2x8x8xf32>
    %56 = tpu.matmul %55, %10, %cst_14 {dimension_numbers = #tpu.dot_dimension_numbers<[2], [1], [1], [2], [0, 0, 0, 1, 1, 2], [0], [0]>, precision = #tpu.contract_precision<fp32>} : vector<2x8x16xf32>, vector<2x16x8xf32>, vector<2x8x8xf32> -> vector<2x8x8xf32>
    "tpu.trace_stop"() : () -> ()
    %c0_15 = arith.constant 0 : index
    %c0_16 = arith.constant 0 : index
    %57 = vector.load %arg6[%c0_15, %c0_16] : memref<8x8xf32, #tpu.memory_space<vmem>>, vector<8x8xf32>
    %58 = vector.shape_cast %57 : vector<8x8xf32> to vector<1x8x8xf32>
    %59 = vector.broadcast %58 : vector<1x8x8xf32> to vector<2x8x8xf32>
    %60 = arith.addf %56, %59 : vector<2x8x8xf32>
    %61 = arith.negf %60 : vector<2x8x8xf32>
    %62 = math.exp %61 : vector<2x8x8xf32>
    %cst_17 = arith.constant 1.000000e+00 : f32
    %63 = vector.broadcast %cst_17 : f32 to vector<2x8x8xf32>
    %64 = arith.addf %63, %62 : vector<2x8x8xf32>
    %65 = arith.divf %63, %64 : vector<2x8x8xf32>
    %c0_18 = arith.constant 0 : index
    %c0_19 = arith.constant 0 : index
    %66 = vector.load %arg7[%c0_18, %c0_19] : memref<8x8xf32, #tpu.memory_space<vmem>>, vector<8x8xf32>
    %67 = vector.shape_cast %66 : vector<8x8xf32> to vector<1x8x8xf32>
    %68 = vector.broadcast %67 : vector<1x8x8xf32> to vector<2x8x8xf32>
    "tpu.trace_start"() <{level = 10 : i32, message = "bij,bjk->bik"}> : () -> ()
    %cst_20 = arith.constant dense<0.000000e+00> : vector<2x8x8xf32>
    %69 = tpu.matmul %68, %65, %cst_20 {dimension_numbers = #tpu.dot_dimension_numbers<[2], [1], [1], [2], [0, 0, 0, 1, 1, 2], [0], [0]>, precision = #tpu.contract_precision<fp32>} : vector<2x8x8xf32>, vector<2x8x8xf32>, vector<2x8x8xf32> -> vector<2x8x8xf32>
    "tpu.trace_stop"() : () -> ()
    %cst_21 = arith.constant dense<0xFF800000> : vector<2x8xf32>
    %70 = vector.multi_reduction <maximumf>, %69, %cst_21 [1] : vector<2x8x8xf32> to vector<2x8xf32>
    %71 = vector.shape_cast %70 : vector<2x8xf32> to vector<2x1x8xf32>
    %72 = vector.broadcast %71 : vector<2x1x8xf32> to vector<2x8x8xf32>
    %73 = arith.subf %69, %72 : vector<2x8x8xf32>
    %74 = math.exp %73 : vector<2x8x8xf32>
    %cst_22 = arith.constant dense<0.000000e+00> : vector<2x8xf32>
    %75 = vector.multi_reduction <add>, %74, %cst_22 [1] : vector<2x8x8xf32> to vector<2x8xf32>
    %76 = vector.shape_cast %75 : vector<2x8xf32> to vector<2x1x8xf32>
    %77 = vector.broadcast %76 : vector<2x1x8xf32> to vector<2x8x8xf32>
    %78 = arith.divf %74, %77 : vector<2x8x8xf32>
    %c0_23 = arith.constant 0 : index
    %c0_24 = arith.constant 0 : index
    %79 = vector.load %arg8[%c0_23, %c0_24] : memref<1x8xf32, #tpu.memory_space<vmem>>, vector<1x8xf32>
    %80 = vector.shape_cast %79 : vector<1x8xf32> to vector<8xf32>
    %c0_25 = arith.constant 0 : index
    %c0_26 = arith.constant 0 : index
    %81 = vector.load %arg9[%c0_25, %c0_26] : memref<4x8xf32, #tpu.memory_space<vmem>>, vector<4x8xf32>
    %c0_27 = arith.constant 0 : index
    %c0_28 = arith.constant 0 : index
    %82 = vector.load %arg10[%c0_27, %c0_28] : memref<1x4xf32, #tpu.memory_space<vmem>>, vector<1x4xf32>
    %83 = vector.shape_cast %82 : vector<1x4xf32> to vector<4xf32>
    %84 = vector.shape_cast %83 : vector<4xf32> to vector<1x1x4x1xf32>
    %85 = vector.broadcast %84 : vector<1x1x4x1xf32> to vector<2x16x4x8xf32>
    %86 = arith.mulf %0, %85 : vector<2x16x4x8xf32>
    %cst_29 = arith.constant dense<0.000000e+00> : vector<2x16x8xf32>
    %87 = vector.multi_reduction <add>, %86, %cst_29 [2] : vector<2x16x4x8xf32> to vector<2x16x8xf32>
    "tpu.trace_start"() <{level = 10 : i32, message = "bnt,bts->bns"}> : () -> ()
    %cst_30 = arith.constant dense<0.000000e+00> : vector<2x16x8xf32>
    %88 = tpu.matmul %87, %78, %cst_30 {dimension_numbers = #tpu.dot_dimension_numbers<[2], [1], [1], [2], [0, 0, 0, 1, 1, 2], [0], [0]>, precision = #tpu.contract_precision<fp32>} : vector<2x16x8xf32>, vector<2x8x8xf32>, vector<2x16x8xf32> -> vector<2x16x8xf32>
    "tpu.trace_stop"() : () -> ()
    %89 = vector.shape_cast %80 : vector<8xf32> to vector<1x1x8xf32>
    %90 = vector.broadcast %89 : vector<1x1x8xf32> to vector<2x8x8xf32>
    %91 = arith.mulf %78, %90 : vector<2x8x8xf32>
    %cst_31 = arith.constant dense<0.000000e+00> : vector<2x8xf32>
    %92 = vector.multi_reduction <add>, %91, %cst_31 [2] : vector<2x8x8xf32> to vector<2x8xf32>
    %93 = vector.shape_cast %92 : vector<2x8xf32> to vector<2x1x1x8xf32>
    %94 = vector.broadcast %93 : vector<2x1x1x8xf32> to vector<2x16x4x8xf32>
    %95 = arith.mulf %0, %94 : vector<2x16x4x8xf32>
    %cst_32 = arith.constant dense<0.000000e+00> : vector<2x16x4xf32>
    %96 = vector.multi_reduction <add>, %95, %cst_32 [3] : vector<2x16x4x8xf32> to vector<2x16x4xf32>
    %97 = vector.shape_cast %81 : vector<4x8xf32> to vector<1x4x8xf32>
    %98 = vector.broadcast %97 : vector<1x4x8xf32> to vector<2x4x8xf32>
    "tpu.trace_start"() <{level = 10 : i32, message = "bnf,bft->bnt"}> : () -> ()
    %cst_33 = arith.constant dense<0.000000e+00> : vector<2x16x8xf32>
    %99 = tpu.matmul %96, %98, %cst_33 {dimension_numbers = #tpu.dot_dimension_numbers<[2], [1], [1], [2], [0, 0, 0, 1, 1, 2], [0], [0]>, precision = #tpu.contract_precision<fp32>} : vector<2x16x4xf32>, vector<2x4x8xf32>, vector<2x16x8xf32> -> vector<2x16x8xf32>
    "tpu.trace_stop"() : () -> ()
    "tpu.trace_start"() <{level = 10 : i32, message = "bmt,bnt->bmn"}> : () -> ()
    %cst_34 = arith.constant dense<0.000000e+00> : vector<2x16x16xf32>
    %100 = tpu.matmul %88, %99, %cst_34 {dimension_numbers = #tpu.dot_dimension_numbers<[2], [2], [1], [1], [0, 0, 0, 1, 1, 1], [0], [0]>, precision = #tpu.contract_precision<fp32>} : vector<2x16x8xf32>, vector<2x16x8xf32>, vector<2x16x16xf32> -> vector<2x16x16xf32>
    "tpu.trace_stop"() : () -> ()
    %c0_35 = arith.constant 0 : index
    %c0_36 = arith.constant 0 : index
    %101 = vector.load %arg11[%c0_35, %c0_36] : memref<16x16xf32, #tpu.memory_space<vmem>>, vector<16x16xf32>
    %102 = vector.shape_cast %101 : vector<16x16xf32> to vector<1x16x16xf32>
    %103 = vector.broadcast %102 : vector<1x16x16xf32> to vector<2x16x16xf32>
    %104 = arith.addf %100, %103 : vector<2x16x16xf32>
    %105 = arith.negf %104 : vector<2x16x16xf32>
    %106 = math.exp %105 : vector<2x16x16xf32>
    %cst_37 = arith.constant 1.000000e+00 : f32
    %107 = vector.broadcast %cst_37 : f32 to vector<2x16x16xf32>
    %108 = arith.addf %107, %106 : vector<2x16x16xf32>
    %109 = arith.divf %107, %108 : vector<2x16x16xf32>
    %c0_38 = arith.constant 0 : index
    %c0_39 = arith.constant 0 : index
    %110 = vector.load %arg12[%c0_38, %c0_39] : memref<16x16xf32, #tpu.memory_space<vmem>>, vector<16x16xf32>
    %111 = vector.shape_cast %110 : vector<16x16xf32> to vector<1x16x16xf32>
    %112 = vector.broadcast %111 : vector<1x16x16xf32> to vector<2x16x16xf32>
    "tpu.trace_start"() <{level = 10 : i32, message = "bjp,bpi->bji"}> : () -> ()
    %cst_40 = arith.constant dense<0.000000e+00> : vector<2x16x16xf32>
    %113 = tpu.matmul %109, %112, %cst_40 {dimension_numbers = #tpu.dot_dimension_numbers<[2], [1], [1], [2], [0, 0, 0, 1, 1, 2], [0], [0]>, precision = #tpu.contract_precision<fp32>} : vector<2x16x16xf32>, vector<2x16x16xf32>, vector<2x16x16xf32> -> vector<2x16x16xf32>
    "tpu.trace_stop"() : () -> ()
    %cst_41 = arith.constant 1.000000e+00 : f32
    %114 = vector.broadcast %cst_41 : f32 to vector<2x16x16xf32>
    %115 = arith.subf %114, %113 : vector<2x16x16xf32>
    %cst_42 = arith.constant dense<0xFF800000> : vector<2x16xf32>
    %116 = vector.multi_reduction <maximumf>, %115, %cst_42 [2] : vector<2x16x16xf32> to vector<2x16xf32>
    %117 = vector.shape_cast %116 : vector<2x16xf32> to vector<2x16x1xf32>
    %118 = vector.broadcast %117 : vector<2x16x1xf32> to vector<2x16x16xf32>
    %119 = arith.subf %115, %118 : vector<2x16x16xf32>
    %120 = math.exp %119 : vector<2x16x16xf32>
    %cst_43 = arith.constant dense<0.000000e+00> : vector<2x16xf32>
    %121 = vector.multi_reduction <add>, %120, %cst_43 [2] : vector<2x16x16xf32> to vector<2x16xf32>
    %122 = vector.shape_cast %121 : vector<2x16xf32> to vector<2x16x1xf32>
    %123 = vector.broadcast %122 : vector<2x16x1xf32> to vector<2x16x16xf32>
    %124 = arith.divf %120, %123 : vector<2x16x16xf32>
    %c0_44 = arith.constant 0 : index
    %c0_45 = arith.constant 0 : index
    %125 = vector.load %arg14[%c0_44, %c0_45] : memref<32x768xf32, #tpu.memory_space<vmem>>, vector<32x768xf32>
    %126 = vector.shape_cast %125 : vector<32x768xf32> to vector<1x32x768xf32>
    %127 = vector.broadcast %126 : vector<1x32x768xf32> to vector<2x32x768xf32>
    "tpu.trace_start"() <{level = 10 : i32, message = "bnj,bjc->bnc"}> : () -> ()
    %cst_46 = arith.constant dense<0.000000e+00> : vector<2x16x768xf32>
    %128 = tpu.matmul %1, %127, %cst_46 {dimension_numbers = #tpu.dot_dimension_numbers<[2], [1], [1], [2], [0, 0, 0, 1, 1, 2], [0], [0]>, precision = #tpu.contract_precision<fp32>} : vector<2x16x32xf32>, vector<2x32x768xf32>, vector<2x16x768xf32> -> vector<2x16x768xf32>
    %cst_47 = arith.constant 0.000000e+00 : f32
    "tpu.trace_stop"() : () -> ()
    %129 = vector.broadcast %cst_47 : f32 to vector<2x16x256xf32>
    %c0_48 = arith.constant 0 : index
    %c0_49 = arith.constant 0 : index
    %c0_50 = arith.constant 0 : index
    %130 = vector.load %arg13[%c0_48, %c0_49, %c0_50] : memref<3x16x16xf32, #tpu.memory_space<vmem>>, vector<1x16x16xf32>
    %131 = vector.shape_cast %130 : vector<1x16x16xf32> to vector<16x16xf32>
    %132 = vector.shape_cast %131 : vector<16x16xf32> to vector<1x16x16xf32>
    %133 = vector.broadcast %132 : vector<1x16x16xf32> to vector<2x16x16xf32>
    %134 = arith.mulf %133, %124 : vector<2x16x16xf32>
    %135 = vector.extract_strided_slice %128 {offsets = [0, 0, 0], sizes = [2, 16, 256], strides = [1, 1, 1]} : vector<2x16x768xf32> to vector<2x16x256xf32>
    "tpu.trace_start"() <{level = 10 : i32, message = "bnm,bmc->bnc"}> : () -> ()
    %cst_51 = arith.constant dense<0.000000e+00> : vector<2x16x256xf32>
    %136 = tpu.matmul %134, %135, %cst_51 {dimension_numbers = #tpu.dot_dimension_numbers<[2], [1], [1], [2], [0, 0, 0, 1, 1, 2], [0], [0]>, precision = #tpu.contract_precision<fp32>} : vector<2x16x16xf32>, vector<2x16x256xf32>, vector<2x16x256xf32> -> vector<2x16x256xf32>
    "tpu.trace_stop"() : () -> ()
    %137 = arith.addf %129, %136 : vector<2x16x256xf32>
    %c1 = arith.constant 1 : index
    %c0_52 = arith.constant 0 : index
    %c0_53 = arith.constant 0 : index
    %138 = vector.load %arg13[%c1, %c0_52, %c0_53] : memref<3x16x16xf32, #tpu.memory_space<vmem>>, vector<1x16x16xf32>
    %139 = vector.shape_cast %138 : vector<1x16x16xf32> to vector<16x16xf32>
    %140 = vector.shape_cast %139 : vector<16x16xf32> to vector<1x16x16xf32>
    %141 = vector.broadcast %140 : vector<1x16x16xf32> to vector<2x16x16xf32>
    %142 = arith.mulf %141, %124 : vector<2x16x16xf32>
    %143 = vector.extract_strided_slice %128 {offsets = [0, 0, 256], sizes = [2, 16, 256], strides = [1, 1, 1]} : vector<2x16x768xf32> to vector<2x16x256xf32>
    "tpu.trace_start"() <{level = 10 : i32, message = "bnm,bmc->bnc"}> : () -> ()
    %cst_54 = arith.constant dense<0.000000e+00> : vector<2x16x256xf32>
    %144 = tpu.matmul %142, %143, %cst_54 {dimension_numbers = #tpu.dot_dimension_numbers<[2], [1], [1], [2], [0, 0, 0, 1, 1, 2], [0], [0]>, precision = #tpu.contract_precision<fp32>} : vector<2x16x16xf32>, vector<2x16x256xf32>, vector<2x16x256xf32> -> vector<2x16x256xf32>
    "tpu.trace_stop"() : () -> ()
    %145 = arith.addf %137, %144 : vector<2x16x256xf32>
    %c2 = arith.constant 2 : index
    %c0_55 = arith.constant 0 : index
    %c0_56 = arith.constant 0 : index
    %146 = vector.load %arg13[%c2, %c0_55, %c0_56] : memref<3x16x16xf32, #tpu.memory_space<vmem>>, vector<1x16x16xf32>
    %147 = vector.shape_cast %146 : vector<1x16x16xf32> to vector<16x16xf32>
    %148 = vector.shape_cast %147 : vector<16x16xf32> to vector<1x16x16xf32>
    %149 = vector.broadcast %148 : vector<1x16x16xf32> to vector<2x16x16xf32>
    %150 = arith.mulf %149, %124 : vector<2x16x16xf32>
    %151 = vector.extract_strided_slice %128 {offsets = [0, 0, 512], sizes = [2, 16, 256], strides = [1, 1, 1]} : vector<2x16x768xf32> to vector<2x16x256xf32>
    "tpu.trace_start"() <{level = 10 : i32, message = "bnm,bmc->bnc"}> : () -> ()
    %cst_57 = arith.constant dense<0.000000e+00> : vector<2x16x256xf32>
    %152 = tpu.matmul %150, %151, %cst_57 {dimension_numbers = #tpu.dot_dimension_numbers<[2], [1], [1], [2], [0, 0, 0, 1, 1, 2], [0], [0]>, precision = #tpu.contract_precision<fp32>} : vector<2x16x16xf32>, vector<2x16x256xf32>, vector<2x16x256xf32> -> vector<2x16x256xf32>
    "tpu.trace_stop"() : () -> ()
    %153 = arith.addf %145, %152 : vector<2x16x256xf32>
    %cst_58 = arith.constant 0.000000e+00 : f32
    %154 = vector.broadcast %cst_58 : f32 to vector<2x16x256xf32>
    %155 = arith.maximumf %153, %154 : vector<2x16x256xf32>
    %c0_59 = arith.constant 0 : index
    %c0_60 = arith.constant 0 : index
    %156 = vector.load %arg15[%c0_59, %c0_60] : memref<256x256xf32, #tpu.memory_space<vmem>>, vector<256x256xf32>
    %157 = vector.shape_cast %156 : vector<256x256xf32> to vector<1x256x256xf32>
    %158 = vector.broadcast %157 : vector<1x256x256xf32> to vector<2x256x256xf32>
    %c0_61 = arith.constant 0 : index
    %c0_62 = arith.constant 0 : index
    %159 = vector.load %arg16[%c0_61, %c0_62] : memref<32x256xf32, #tpu.memory_space<vmem>>, vector<32x256xf32>
    %160 = vector.shape_cast %159 : vector<32x256xf32> to vector<1x32x256xf32>
    %161 = vector.broadcast %160 : vector<1x32x256xf32> to vector<2x32x256xf32>
    "tpu.trace_start"() <{level = 10 : i32, message = "bnj,bjc->bnc"}> : () -> ()
    %cst_63 = arith.constant dense<0.000000e+00> : vector<2x16x256xf32>
    %162 = tpu.matmul %155, %158, %cst_63 {dimension_numbers = #tpu.dot_dimension_numbers<[2], [1], [1], [2], [0, 0, 0, 1, 1, 2], [0], [0]>, precision = #tpu.contract_precision<fp32>} : vector<2x16x256xf32>, vector<2x256x256xf32>, vector<2x16x256xf32> -> vector<2x16x256xf32>
    %cst_64 = arith.constant dense<0.000000e+00> : vector<2x16x256xf32>
    %163 = tpu.matmul %1, %161, %cst_64 {dimension_numbers = #tpu.dot_dimension_numbers<[2], [1], [1], [2], [0, 0, 0, 1, 1, 2], [0], [0]>, precision = #tpu.contract_precision<fp32>} : vector<2x16x32xf32>, vector<2x32x256xf32>, vector<2x16x256xf32> -> vector<2x16x256xf32>
    "tpu.trace_stop"() : () -> ()
    %164 = arith.addf %162, %163 : vector<2x16x256xf32>
    %c0_65 = arith.constant 0 : index
    %c0_66 = arith.constant 0 : index
    %165 = vector.load %arg17[%c0_65, %c0_66] : memref<1x256xf32, #tpu.memory_space<vmem>>, vector<1x256xf32>
    %166 = vector.shape_cast %165 : vector<1x256xf32> to vector<256xf32>
    %167 = vector.shape_cast %166 : vector<256xf32> to vector<1x1x256xf32>
    %168 = vector.broadcast %167 : vector<1x1x256xf32> to vector<2x16x256xf32>
    %169 = arith.addf %164, %168 : vector<2x16x256xf32>
    %cst_67 = arith.constant 0.000000e+00 : f32
    %170 = vector.broadcast %cst_67 : f32 to vector<2x16x256xf32>
    %171 = arith.maximumf %169, %170 : vector<2x16x256xf32>
    %c0_68 = arith.constant 0 : index
    %c0_69 = arith.constant 0 : index
    %172 = vector.load %arg18[%c0_68, %c0_69] : memref<256x8xf32, #tpu.memory_space<vmem>>, vector<256x8xf32>
    %173 = vector.shape_cast %172 : vector<256x8xf32> to vector<1x256x8xf32>
    %174 = vector.broadcast %173 : vector<1x256x8xf32> to vector<2x256x8xf32>
    %c0_70 = arith.constant 0 : index
    %c0_71 = arith.constant 0 : index
    %175 = vector.load %arg19[%c0_70, %c0_71] : memref<8x256xf32, #tpu.memory_space<vmem>>, vector<8x256xf32>
    %176 = vector.shape_cast %175 : vector<8x256xf32> to vector<1x8x256xf32>
    %177 = vector.broadcast %176 : vector<1x8x256xf32> to vector<2x8x256xf32>
    "tpu.trace_start"() <{level = 10 : i32, message = "bnj,bjt->bnt"}> : () -> ()
    %cst_72 = arith.constant dense<0.000000e+00> : vector<2x16x8xf32>
    %178 = tpu.matmul %171, %174, %cst_72 {dimension_numbers = #tpu.dot_dimension_numbers<[2], [1], [1], [2], [0, 0, 0, 1, 1, 2], [0], [0]>, precision = #tpu.contract_precision<fp32>} : vector<2x16x256xf32>, vector<2x256x8xf32>, vector<2x16x8xf32> -> vector<2x16x8xf32>
    "tpu.trace_stop"() : () -> ()
    "tpu.trace_start"() <{level = 10 : i32, message = "bnt,btj->bnj"}> : () -> ()
    %cst_73 = arith.constant dense<0.000000e+00> : vector<2x16x256xf32>
    %179 = tpu.matmul %178, %177, %cst_73 {dimension_numbers = #tpu.dot_dimension_numbers<[2], [1], [1], [2], [0, 0, 0, 1, 1, 2], [0], [0]>, precision = #tpu.contract_precision<fp32>} : vector<2x16x8xf32>, vector<2x8x256xf32>, vector<2x16x256xf32> -> vector<2x16x256xf32>
    "tpu.trace_stop"() : () -> ()
    %180 = arith.subf %171, %179 : vector<2x16x256xf32>
    %181 = arith.mulf %180, %180 : vector<2x16x256xf32>
    "tpu.trace_start"() <{level = 10 : i32, message = "bnj,bjt->bnt"}> : () -> ()
    %cst_74 = arith.constant dense<0.000000e+00> : vector<2x16x8xf32>
    %182 = tpu.matmul %181, %174, %cst_74 {dimension_numbers = #tpu.dot_dimension_numbers<[2], [1], [1], [2], [0, 0, 0, 1, 1, 2], [0], [0]>, precision = #tpu.contract_precision<fp32>} : vector<2x16x256xf32>, vector<2x256x8xf32>, vector<2x16x8xf32> -> vector<2x16x8xf32>
    "tpu.trace_stop"() : () -> ()
    %cst_75 = arith.constant 9.99999974E-6 : f32
    %183 = vector.broadcast %cst_75 : f32 to vector<2x16x8xf32>
    %184 = arith.addf %182, %183 : vector<2x16x8xf32>
    %185 = math.rsqrt %184 : vector<2x16x8xf32>
    "tpu.trace_start"() <{level = 10 : i32, message = "bnt,btj->bnj"}> : () -> ()
    %cst_76 = arith.constant dense<0.000000e+00> : vector<2x16x256xf32>
    %186 = tpu.matmul %185, %177, %cst_76 {dimension_numbers = #tpu.dot_dimension_numbers<[2], [1], [1], [2], [0, 0, 0, 1, 1, 2], [0], [0]>, precision = #tpu.contract_precision<fp32>} : vector<2x16x8xf32>, vector<2x8x256xf32>, vector<2x16x256xf32> -> vector<2x16x256xf32>
    "tpu.trace_stop"() : () -> ()
    %187 = arith.mulf %180, %186 : vector<2x16x256xf32>
    %c0_77 = arith.constant 0 : index
    %c0_78 = arith.constant 0 : index
    %188 = vector.load %arg20[%c0_77, %c0_78] : memref<1x256xf32, #tpu.memory_space<vmem>>, vector<1x256xf32>
    %189 = vector.shape_cast %188 : vector<1x256xf32> to vector<256xf32>
    %190 = vector.shape_cast %189 : vector<256xf32> to vector<1x1x256xf32>
    %191 = vector.broadcast %190 : vector<1x1x256xf32> to vector<2x16x256xf32>
    %192 = arith.mulf %187, %191 : vector<2x16x256xf32>
    %c0_79 = arith.constant 0 : index
    %c0_80 = arith.constant 0 : index
    %193 = vector.load %arg21[%c0_79, %c0_80] : memref<1x256xf32, #tpu.memory_space<vmem>>, vector<1x256xf32>
    %194 = vector.shape_cast %193 : vector<1x256xf32> to vector<256xf32>
    %195 = vector.shape_cast %194 : vector<256xf32> to vector<1x1x256xf32>
    %196 = vector.broadcast %195 : vector<1x1x256xf32> to vector<2x16x256xf32>
    %197 = arith.addf %192, %196 : vector<2x16x256xf32>
    %c0_81 = arith.constant 0 : index
    %c0_82 = arith.constant 0 : index
    %c0_83 = arith.constant 0 : index
    %198 = vector.load %arg22[%c0_81, %c0_82, %c0_83] : memref<2x16x256xf32, #tpu.memory_space<vmem>>, vector<2x16x256xf32>
    tpu.vector_store %arg22[%c0_81, %c0_82, %c0_83], %197 {strides = array<i32>} : memref<2x16x256xf32, #tpu.memory_space<vmem>>, vector<2x16x256xf32>,
    return
  }
  func.func @transform_0(%arg0: i32) -> (i32, i32, i32, i32) {
    %c0_i32 = arith.constant 0 : i32
    %c0_i32_0 = arith.constant 0 : i32
    %c0_i32_1 = arith.constant 0 : i32
    %c0_i32_2 = arith.constant 0 : i32
    return %arg0, %c0_i32, %c0_i32_0, %c0_i32_1 : i32, i32, i32, i32
  }
  func.func @transform_1(%arg0: i32) -> (i32, i32, i32) {
    %c0_i32 = arith.constant 0 : i32
    %c0_i32_0 = arith.constant 0 : i32
    %c0_i32_1 = arith.constant 0 : i32
    return %arg0, %c0_i32, %c0_i32_0 : i32, i32, i32
  }
  func.func @transform_2(%arg0: i32) -> (i32, i32) {
    %c0_i32 = arith.constant 0 : i32
    %c0_i32_0 = arith.constant 0 : i32
    %c0_i32_1 = arith.constant 0 : i32
    return %c0_i32, %c0_i32_0 : i32, i32
  }
  func.func @transform_3(%arg0: i32) -> (i32, i32) {
    %c0_i32 = arith.constant 0 : i32
    %c0_i32_0 = arith.constant 0 : i32
    %c0_i32_1 = arith.constant 0 : i32
    return %c0_i32, %c0_i32_0 : i32, i32
  }
  func.func @transform_4(%arg0: i32) -> (i32, i32) {
    %c0_i32 = arith.constant 0 : i32
    %c0_i32_0 = arith.constant 0 : i32
    %c0_i32_1 = arith.constant 0 : i32
    return %c0_i32, %c0_i32_0 : i32, i32
  }
  func.func @transform_5(%arg0: i32) -> (i32, i32) {
    %c0_i32 = arith.constant 0 : i32
    %c0_i32_0 = arith.constant 0 : i32
    %c0_i32_1 = arith.constant 0 : i32
    return %c0_i32, %c0_i32_0 : i32, i32
  }
  func.func @transform_6(%arg0: i32) -> (i32, i32) {
    %c0_i32 = arith.constant 0 : i32
    %c0_i32_0 = arith.constant 0 : i32
    %c0_i32_1 = arith.constant 0 : i32
    return %c0_i32, %c0_i32_0 : i32, i32
  }
  func.func @transform_7(%arg0: i32) -> (i32, i32) {
    %c0_i32 = arith.constant 0 : i32
    %c0_i32_0 = arith.constant 0 : i32
    %c0_i32_1 = arith.constant 0 : i32
    return %c0_i32, %c0_i32_0 : i32, i32
  }
  func.func @transform_8(%arg0: i32) -> (i32, i32) {
    %c0_i32 = arith.constant 0 : i32
    %c0_i32_0 = arith.constant 0 : i32
    %c0_i32_1 = arith.constant 0 : i32
    return %c0_i32, %c0_i32_0 : i32, i32
  }
  func.func @transform_9(%arg0: i32) -> (i32, i32) {
    %c0_i32 = arith.constant 0 : i32
    %c0_i32_0 = arith.constant 0 : i32
    %c0_i32_1 = arith.constant 0 : i32
    return %c0_i32, %c0_i32_0 : i32, i32
  }
  func.func @transform_10(%arg0: i32) -> (i32, i32) {
    %c0_i32 = arith.constant 0 : i32
    %c0_i32_0 = arith.constant 0 : i32
    %c0_i32_1 = arith.constant 0 : i32
    return %c0_i32, %c0_i32_0 : i32, i32
  }
  func.func @transform_11(%arg0: i32) -> (i32, i32) {
    %c0_i32 = arith.constant 0 : i32
    %c0_i32_0 = arith.constant 0 : i32
    %c0_i32_1 = arith.constant 0 : i32
    return %c0_i32, %c0_i32_0 : i32, i32
  }
  func.func @transform_12(%arg0: i32) -> (i32, i32, i32) {
    %c0_i32 = arith.constant 0 : i32
    %c0_i32_0 = arith.constant 0 : i32
    %c0_i32_1 = arith.constant 0 : i32
    %c0_i32_2 = arith.constant 0 : i32
    return %c0_i32, %c0_i32_0, %c0_i32_1 : i32, i32, i32
  }
  func.func @transform_13(%arg0: i32) -> (i32, i32) {
    %c0_i32 = arith.constant 0 : i32
    %c0_i32_0 = arith.constant 0 : i32
    %c0_i32_1 = arith.constant 0 : i32
    return %c0_i32, %c0_i32_0 : i32, i32
  }
  func.func @transform_14(%arg0: i32) -> (i32, i32) {
    %c0_i32 = arith.constant 0 : i32
    %c0_i32_0 = arith.constant 0 : i32
    %c0_i32_1 = arith.constant 0 : i32
    return %c0_i32, %c0_i32_0 : i32, i32
  }
  func.func @transform_15(%arg0: i32) -> (i32, i32) {
    %c0_i32 = arith.constant 0 : i32
    %c0_i32_0 = arith.constant 0 : i32
    %c0_i32_1 = arith.constant 0 : i32
    return %c0_i32, %c0_i32_0 : i32, i32
  }
  func.func @transform_16(%arg0: i32) -> (i32, i32) {
    %c0_i32 = arith.constant 0 : i32
    %c0_i32_0 = arith.constant 0 : i32
    %c0_i32_1 = arith.constant 0 : i32
    return %c0_i32, %c0_i32_0 : i32, i32
  }
  func.func @transform_17(%arg0: i32) -> (i32, i32) {
    %c0_i32 = arith.constant 0 : i32
    %c0_i32_0 = arith.constant 0 : i32
    %c0_i32_1 = arith.constant 0 : i32
    return %c0_i32, %c0_i32_0 : i32, i32
  }
  func.func @transform_18(%arg0: i32) -> (i32, i32) {
    %c0_i32 = arith.constant 0 : i32
    %c0_i32_0 = arith.constant 0 : i32
    %c0_i32_1 = arith.constant 0 : i32
    return %c0_i32, %c0_i32_0 : i32, i32
  }
  func.func @transform_19(%arg0: i32) -> (i32, i32) {
    %c0_i32 = arith.constant 0 : i32
    %c0_i32_0 = arith.constant 0 : i32
    %c0_i32_1 = arith.constant 0 : i32
    return %c0_i32, %c0_i32_0 : i32, i32
  }
  func.func @transform_20(%arg0: i32) -> (i32, i32) {
    %c0_i32 = arith.constant 0 : i32
    %c0_i32_0 = arith.constant 0 : i32
    %c0_i32_1 = arith.constant 0 : i32
    return %c0_i32, %c0_i32_0 : i32, i32
  }
  func.func @transform_21(%arg0: i32) -> (i32, i32, i32) {
    %c0_i32 = arith.constant 0 : i32
    %c0_i32_0 = arith.constant 0 : i32
    %c0_i32_1 = arith.constant 0 : i32
    return %arg0, %c0_i32, %c0_i32_0 : i32, i32, i32
  }
}

</mosaic_0001>

<bundles_post_ra>
// kernel: tpu_custom_call.1
= control target key start
LH: loop header
LB: loop body
LE: loop exit
PB: predicated region body
PF: predicated region fallthrough
CT: control target
= control target key end

     0   :  { %s35500_s0 = inlined_call_operand.vmem [shape: f32[2,16,4,8], index: 0, kind: input, shape index: {}]   ;;  %s35501_s1 = inlined_call_operand.hbm [shape: f32[2,16,32], index: 1, kind: input, shape index: {}]   ;;  %s35502_s2 = inlined_call_operand.hbm [shape: f32[1,16], index: 2, kind: input, shape index: {}]   ;;  %s35503_s3 = inlined_call_operand.vmem [shape: f32[4,16], index: 3, kind: input, shape index: {}]   ;;  %s35504_s4 = inlined_call_operand.hbm [shape: f32[1,4], index: 4, kind: input, shape index: {}]   ;;  %s35505_s5 = inlined_call_operand.hbm [shape: f32[8,8], index: 5, kind: input, shape index: {}]   ;;  %s35506_s6 = inlined_call_operand.hbm [shape: f32[8,8], index: 6, kind: input, shape index: {}]   ;;  %s35507_s7 = inlined_call_operand.hbm [shape: f32[1,8], index: 7, kind: input, shape index: {}]   ;;  %s35508_s8 = inlined_call_operand.hbm [shape: f32[4,8], index: 8, kind: input, shape index: {}]   ;;  %s35509_s9 = inlined_call_operand.hbm [shape: f32[1,4], index: 9, kind: input, shape index: {}]   ;;  %s35510_s10 = inlined_call_operand.hbm [shape: f32[16,16], index: 10, kind: input, shape index: {}]   ;;  %s35511_s11 = inlined_call_operand.hbm [shape: f32[16,16], index: 11, kind: input, shape index: {}]   ;;  %s35512_s12 = inlined_call_operand.hbm [shape: f32[3,16,16], index: 12, kind: input, shape index: {}]   ;;  %s35513_s13 = inlined_call_operand.hbm [shape: f32[32,768], index: 13, kind: input, shape index: {}]   ;;  %s35514_s14 = inlined_call_operand.vmem [shape: f32[256,256], index: 14, kind: input, shape index: {}]   ;;  %s35515_s15 = inlined_call_operand.hbm [shape: f32[32,256], index: 15, kind: input, shape index: {}]   ;;  %s35516_s16 = inlined_call_operand.hbm [shape: f32[1,256], index: 16, kind: input, shape index: {}]   ;;  %s35517_s17 = inlined_call_operand.vmem [shape: f32[256,8], index: 17, kind: input, shape index: {}]   ;;  %s35518_s18 = inlined_call_operand.vmem [shape: f32[8,256], index: 18, kind: input, shape index: {}]   ;;  %s35519_s19 = inlined_call_operand.hbm [shape: f32[1,256], index: 19, kind: input, shape index: {}]   ;;  %s35520_s20 = inlined_call_operand.vmem [shape: f32[1,256], index: 20, kind: input, shape index: {}]   ;;  %s35521_s21 = inlined_call_operand.hbm [shape: f32[2,16,256], index: 21, kind: output, shape index: {}]  }
   0x1   :  { %36165 = sst [smem:[#allocation179_spill]] %s35500_s0 }
   0x2   :  { %36166 = sst [smem:[#allocation180_spill]] %s35501_s1 }
   0x3   :  { %36167 = sst [smem:[#allocation181_spill]] %s35502_s2 }
   0x4   :  { %36168 = sst [smem:[#allocation182_spill]] %s35503_s3 }
   0x5   :  { %36169 = sst [smem:[#allocation183_spill]] %s35504_s4 }
   0x6   :  { %36170 = sst [smem:[#allocation184_spill]] %s35505_s5 }
   0x7   :  { %26 = vsyncpa [#allocation3], 0 }
   0x8   :  { %27 = vsyncpa [#allocation6], 0 }
   0x9   :  { %28 = vsyncpa [#allocation9], 0 }
   0xa   :  { %29 = vsyncpa [#allocation12], 0 }
   0xb   :  { %30 = vsyncpa [#allocation15], 0 }
   0xc   :  { %31 = vsyncpa [#allocation18], 0 }
   0xd   :  { %32 = vsyncpa [#allocation21], 0 }
   0xe   :  { %33 = vsyncpa [#allocation24], 0 }
   0xf   :  { %34 = vsyncpa [#allocation4], 0  ;;  %s29105_s2 = smov [#allocation5]   ;;  %s29106_s26 = smov [#allocation8]  }
  0x10   :  { %s55_s25 = sshll.u32 %s29105_s2, 4  ;;  %s77_s27 = sshll.u32 %s29106_s26, 4  ;;  %s56_s25 = int_to_ptr.vmem [resolvable:$true] %s55_s25  ;;  %s78_s27 = int_to_ptr.vmem [resolvable:$true] %s77_s27 }
  0x11   :  { %s36171_s29 = sld [smem:[#allocation181_spill]] }
  0x17   :  { %s28735_s0 = scalar_lea.hbm %s36171_s29, 16 }
  0x18   :  { %p28736_p0 = scmp.ne.s32.totalorder %s36171_s29, %s28735_s0  ;;  %p28739_p1 = scmp.lt.u32.totalorder %s28735_s0, %s36171_s29 }
  0x1a   :  { %p28741_p2 = pnand %p28739_p1, %p28736_p0 }
  0x1c   :  { %28744 = shalt.err (!%p28741_p2)
}
  0x1d   :  { %s28745_s23 = scalar_lea.vmem %s56_s25, 16  ;;  %s28749_s1 = scalar_lea.vmem %s56_s25, 32 }
  0x1e   :  { %p28746_p3 = scmp.ne.s32.totalorder %s56_s25, %s28745_s23  ;;  %p28750_p4 = scmp.lt.s32.totalorder %s56_s25, %s56_s25 }
  0x1f   :  { %p28751_p5 = scmp.lt.s32.totalorder %s28749_s1, %s28745_s23 }
  0x21   :  { %p28752_p6 = por %p28751_p5, %p28750_p4 }
  0x23   :  { %p28753_p7 = pnand %p28752_p6, %p28746_p3 }
  0x25   :  { %28756 = shalt.err (!%p28753_p7)
}
  0x26   :  { %58 = dma.hbm_to_vmem [thread:$0]  %s36171_s29, 16, %s56_s25, [#allocation6]  }
  0x27   :  { %s36172_s28 = sld [smem:[#allocation184_spill]] }
  0x2d   :  { %s28757_s4 = scalar_lea.hbm %s36172_s28, 128 }
  0x2e   :  { %p28758_p8 = scmp.ne.s32.totalorder %s36172_s28, %s28757_s4  ;;  %p28761_p9 = scmp.lt.u32.totalorder %s28757_s4, %s36172_s28 }
  0x30   :  { %p28763_p10 = pnand %p28761_p9, %p28758_p8 }
  0x32   :  { %28766 = shalt.err (!%p28763_p10)
}
  0x33   :  { %s28767_s23 = scalar_lea.vmem %s78_s27, 128  ;;  %p28772_p12 = scmp.lt.s32.totalorder %s78_s27, %s78_s27 }
  0x34   :  { %p28768_p11 = scmp.ne.s32.totalorder %s78_s27, %s28767_s23  ;;  %p28773_p13 = scmp.lt.s32.totalorder %s28767_s23, %s28767_s23 }
  0x36   :  { %p28774_p0 = por %p28773_p13, %p28772_p12 }
  0x38   :  { %p28775_p1 = pnand %p28774_p0, %p28768_p11 }
  0x3a   :  { %28778 = shalt.err (!%p28775_p1)
}
  0x3b   :  { %80 = dma.hbm_to_vmem [thread:$0]  %s36172_s28, 128, %s78_s27, [#allocation9]  }
  0x3c   :  { %s29107_s1 = smov [#allocation11]   ;;  %s29108_s2 = smov [#allocation14]  }
  0x3d   :  { %s97_s24 = sshll.u32 %s29107_s1, 4  ;;  %s117_s26 = sshll.u32 %s29108_s2, 4  ;;  %s98_s24 = int_to_ptr.vmem [resolvable:$true] %s97_s24  ;;  %s118_s26 = int_to_ptr.vmem [resolvable:$true] %s117_s26 }
  0x3e   :  { %s28779_s30 = scalar_lea.hbm %s35507_s7, 16 }
  0x3f   :  { %p28780_p2 = scmp.ne.s32.totalorder %s35507_s7, %s28779_s30  ;;  %p28783_p3 = scmp.lt.u32.totalorder %s28779_s30, %s35507_s7 }
  0x41   :  { %p28785_p4 = pnand %p28783_p3, %p28780_p2 }
  0x43   :  { %28788 = shalt.err (!%p28785_p4)
}
  0x44   :  { %s28789_s27 = scalar_lea.vmem %s98_s24, 16  ;;  %s28793_s28 = scalar_lea.vmem %s98_s24, 32 }
  0x45   :  { %p28790_p5 = scmp.ne.s32.totalorder %s98_s24, %s28789_s27  ;;  %p28794_p6 = scmp.lt.s32.totalorder %s98_s24, %s98_s24 }
  0x46   :  { %p28795_p7 = scmp.lt.s32.totalorder %s28793_s28, %s28789_s27 }
  0x48   :  { %p28796_p8 = por %p28795_p7, %p28794_p6 }
  0x4a   :  { %p28797_p9 = pnand %p28796_p8, %p28790_p5 }
  0x4c   :  { %28800 = shalt.err (!%p28797_p9)
}
  0x4d   :  { %100 = dma.hbm_to_vmem [thread:$0]  %s35507_s7, 16, %s98_s24, [#allocation12]  }
  0x4e   :  { %s28801_s3 = scalar_lea.hbm %s35509_s9, 16 }
  0x4f   :  { %p28802_p10 = scmp.ne.s32.totalorder %s35509_s9, %s28801_s3  ;;  %p28805_p11 = scmp.lt.u32.totalorder %s28801_s3, %s35509_s9 }
  0x51   :  { %p28807_p12 = pnand %p28805_p11, %p28802_p10 }
  0x53   :  { %28810 = shalt.err (!%p28807_p12)
}
  0x54   :  { %s28811_s22 = scalar_lea.vmem %s118_s26, 16  ;;  %s28815_s23 = scalar_lea.vmem %s118_s26, 32 }
  0x55   :  { %p28812_p13 = scmp.ne.s32.totalorder %s118_s26, %s28811_s22  ;;  %p28816_p0 = scmp.lt.s32.totalorder %s118_s26, %s118_s26 }
  0x56   :  { %p28817_p1 = scmp.lt.s32.totalorder %s28815_s23, %s28811_s22 }
  0x58   :  { %p28818_p2 = por %p28817_p1, %p28816_p0 }
  0x5a   :  { %p28819_p3 = pnand %p28818_p2, %p28812_p13 }
  0x5c   :  { %28822 = shalt.err (!%p28819_p3)
}
  0x5d   :  { %120 = dma.hbm_to_vmem [thread:$0]  %s35509_s9, 16, %s118_s26, [#allocation15]  }
  0x5e   :  { %s29109_s27 = smov [#allocation17]   ;;  %s29110_s25 = smov [#allocation20]  }
  0x5f   :  { %s138_s28 = sshll.u32 %s29109_s27, 4  ;;  %s162_s29 = sshll.u32 %s29110_s25, 4  ;;  %s139_s28 = int_to_ptr.vmem [resolvable:$true] %s138_s28  ;;  %s29288_s29 = int_to_ptr.vmem [resolvable:$true] %s162_s29 }
  0x60   :  { %s28823_s3 = scalar_lea.hbm %s35511_s11, 256 }
  0x61   :  { %p28824_p4 = scmp.ne.s32.totalorder %s35511_s11, %s28823_s3  ;;  %p28827_p5 = scmp.lt.u32.totalorder %s28823_s3, %s35511_s11 }
  0x63   :  { %p28829_p6 = pnand %p28827_p5, %p28824_p4 }
  0x65   :  { %28832 = shalt.err (!%p28829_p6)
}
  0x66   :  { %s28833_s9 = scalar_lea.vmem %s139_s28, 256  ;;  %p28838_p8 = scmp.lt.s32.totalorder %s139_s28, %s139_s28 }
  0x67   :  { %p28834_p7 = scmp.ne.s32.totalorder %s139_s28, %s28833_s9  ;;  %p28839_p9 = scmp.lt.s32.totalorder %s28833_s9, %s28833_s9 }
  0x69   :  { %p28840_p10 = por %p28839_p9, %p28838_p8 }
  0x6b   :  { %p28841_p11 = pnand %p28840_p10, %p28834_p7 }
  0x6d   :  { %28844 = shalt.err (!%p28841_p11)
}
  0x6e   :  { %s29111_s26 = smov 128   ;;  %s29112_s22 = smov 8  }
  0x6f   :  { %144 = dma.hbm_to_vmem [thread:$0]  %s35511_s11, 256, %s139_s28, [#allocation18], %s29111_s26, %s29111_s26, %s29112_s22  }
  0x70   :  { %s28845_s25 = scalar_lea.hbm %s35513_s13, 3072 }
  0x71   :  { %p28846_p12 = scmp.ne.s32.totalorder %s35513_s13, %s28845_s25  ;;  %p28849_p13 = scmp.lt.u32.totalorder %s28845_s25, %s35513_s13 }
  0x73   :  { %p28851_p0 = pnand %p28849_p13, %p28846_p12 }
  0x75   :  { %28854 = shalt.err (!%p28851_p0)
}
  0x76   :  { %s28855_s30 = scalar_lea.vmem %s29288_s29, 3072  ;;  %p28860_p2 = scmp.lt.s32.totalorder %s29288_s29, %s29288_s29 }
  0x77   :  { %p28856_p1 = scmp.ne.s32.totalorder %s29288_s29, %s28855_s30  ;;  %p28861_p3 = scmp.lt.s32.totalorder %s28855_s30, %s28855_s30 }
  0x79   :  { %p28862_p4 = por %p28861_p3, %p28860_p2 }
  0x7b   :  { %p28863_p5 = pnand %p28862_p4, %p28856_p1 }
  0x7d   :  { %28866 = shalt.err (!%p28863_p5)
}
  0x7e   :  { %s29113_s11 = smov 768   ;;  %s29114_s28 = smov 48  }
  0x7f   :  { %168 = dma.hbm_to_vmem [thread:$0]  %s35513_s13, 3072, %s29288_s29, [#allocation21], %s29113_s11, %s29113_s11, %s29114_s28  }
  0x80   :  { %s29115_s9 = smov [#allocation23]   ;;  %s29116_s7 = smov [#allocation2]  }
  0x81   :  { %s189_s23 = sshll.u32 %s29115_s9, 4  ;;  %s42_s24 = sshll.u32 %s29116_s7, 4  ;;  %s190_s23 = int_to_ptr.vmem [resolvable:$true] %s189_s23  ;;  %s29322_s24 = int_to_ptr.vmem [resolvable:$true] %s42_s24 }
  0x82   :  { %s28867_s1 = scalar_lea.hbm %s35516_s16, 32 }
  0x83   :  { %p28868_p6 = scmp.ne.s32.totalorder %s35516_s16, %s28867_s1  ;;  %p28871_p7 = scmp.lt.u32.totalorder %s28867_s1, %s35516_s16 }
  0x85   :  { %p28873_p8 = pnand %p28871_p7, %p28868_p6 }
  0x87   :  { %28876 = shalt.err (!%p28873_p8)
}
  0x88   :  { %s28877_s13 = scalar_lea.vmem %s190_s23, 32  ;;  %p28882_p10 = scmp.lt.s32.totalorder %s190_s23, %s190_s23 }
  0x89   :  { %p28878_p9 = scmp.ne.s32.totalorder %s190_s23, %s28877_s13  ;;  %p28883_p11 = scmp.lt.s32.totalorder %s28877_s13, %s28877_s13 }
  0x8b   :  { %p28884_p12 = por %p28883_p11, %p28882_p10 }
  0x8d   :  { %p28885_p13 = pnand %p28884_p12, %p28878_p9 }
  0x8f   :  { %28888 = shalt.err (!%p28885_p13)
}
  0x90   :  { %192 = dma.hbm_to_vmem [thread:$0]  %s35516_s16, 32, %s190_s23, [#allocation24]  }
  0x91   :  { %s36173_s5 = sld [smem:[#allocation180_spill]] }
  0x97   :  { %s28889_s9 = scalar_lea.hbm %s36173_s5, 512 }
  0x98   :  { %p28890_p0 = scmp.ne.s32.totalorder %s36173_s5, %s28889_s9  ;;  %p28893_p1 = scmp.lt.u32.totalorder %s28889_s9, %s36173_s5 }
  0x9a   :  { %p28895_p2 = pnand %p28893_p1, %p28890_p0 }
  0x9c   :  { %28898 = shalt.err (!%p28895_p2)
}
  0x9d   :  { %s28899_s2 = scalar_lea.vmem %s29322_s24, 512  ;;  %p28904_p4 = scmp.lt.s32.totalorder %s29322_s24, %s29322_s24 }
  0x9e   :  { %p28900_p3 = scmp.ne.s32.totalorder %s29322_s24, %s28899_s2  ;;  %p28905_p5 = scmp.lt.s32.totalorder %s28899_s2, %s28899_s2 }
  0xa0   :  { %p28906_p6 = por %p28905_p5, %p28904_p4 }
  0xa2   :  { %p28907_p7 = pnand %p28906_p6, %p28900_p3 }
  0xa4   :  { %28910 = shalt.err (!%p28907_p7)
}
  0xa5   :  { %48 = dma.hbm_to_vmem [thread:$0]  %s36173_s5, 512, %s29322_s24, [#allocation3], %s29111_s26, %s29111_s26, %s29112_s22  }
  0xa6   :  { %s29117_s3 = smov [#allocation7]   ;;  %s29118_s30 = smov [#allocation10]  }
  0xa7   :  { %s67_s4 = sshll.u32 %s29117_s3, 4  ;;  %s87_s13 = sshll.u32 %s29118_s30, 4  ;;  %s68_s4 = int_to_ptr.vmem [resolvable:$true] %s67_s4  ;;  %s88_s13 = int_to_ptr.vmem [resolvable:$true] %s87_s13 }
  0xa8   :  { %s36174_s28 = sld [smem:[#allocation183_spill]] }
  0xae   :  { %s28911_s0 = scalar_lea.hbm %s36174_s28, 16 }
  0xaf   :  { %p28912_p8 = scmp.ne.s32.totalorder %s36174_s28, %s28911_s0  ;;  %p28915_p9 = scmp.lt.u32.totalorder %s28911_s0, %s36174_s28 }
  0xb1   :  { %p28917_p10 = pnand %p28915_p9, %p28912_p8 }
  0xb3   :  { %28920 = shalt.err (!%p28917_p10)
}
  0xb4   :  { %s28921_s24 = scalar_lea.vmem %s68_s4, 16  ;;  %s28925_s5 = scalar_lea.vmem %s68_s4, 32 }
  0xb5   :  { %p28922_p11 = scmp.ne.s32.totalorder %s68_s4, %s28921_s24  ;;  %p28926_p12 = scmp.lt.s32.totalorder %s68_s4, %s68_s4 }
  0xb6   :  { %p28927_p13 = scmp.lt.s32.totalorder %s28925_s5, %s28921_s24 }
  0xb8   :  { %p28928_p0 = por %p28927_p13, %p28926_p12 }
  0xba   :  { %p28929_p1 = pnand %p28928_p0, %p28922_p11 }
  0xbc   :  { %28932 = shalt.err (!%p28929_p1)
}
  0xbd   :  { %70 = dma.hbm_to_vmem [thread:$0]  %s36174_s28, 16, %s68_s4, [#allocation6]  }
  0xbe   :  { %s28933_s3 = scalar_lea.hbm %s35506_s6, 128 }
  0xbf   :  { %p28934_p2 = scmp.ne.s32.totalorder %s35506_s6, %s28933_s3  ;;  %p28937_p3 = scmp.lt.u32.totalorder %s28933_s3, %s35506_s6 }
  0xc1   :  { %p28939_p4 = pnand %p28937_p3, %p28934_p2 }
  0xc3   :  { %28942 = shalt.err (!%p28939_p4)
}
  0xc4   :  { %s28943_s9 = scalar_lea.vmem %s88_s13, 128  ;;  %p28948_p6 = scmp.lt.s32.totalorder %s88_s13, %s88_s13 }
  0xc5   :  { %p28944_p5 = scmp.ne.s32.totalorder %s88_s13, %s28943_s9  ;;  %p28949_p7 = scmp.lt.s32.totalorder %s28943_s9, %s28943_s9 }
  0xc7   :  { %p28950_p8 = por %p28949_p7, %p28948_p6 }
  0xc9   :  { %p28951_p9 = pnand %p28950_p8, %p28944_p5 }
  0xcb   :  { %28954 = shalt.err (!%p28951_p9)
}
  0xcc   :  { %90 = dma.hbm_to_vmem [thread:$0]  %s35506_s6, 128, %s88_s13, [#allocation9]  }
  0xcd   :  { %s29119_s7 = smov [#allocation13]   ;;  %s29120_s25 = smov [#allocation16]  }
  0xce   :  { %s107_s27 = sshll.u32 %s29119_s7, 4  ;;  %s126_s24 = sshll.u32 %s29120_s25, 4  ;;  %s108_s27 = int_to_ptr.vmem [resolvable:$true] %s107_s27  ;;  %s29380_s24 = int_to_ptr.vmem [resolvable:$true] %s126_s24 }
  0xcf   :  { %s28955_s2 = scalar_lea.hbm %s35508_s8, 64 }
  0xd0   :  { %p28956_p10 = scmp.ne.s32.totalorder %s35508_s8, %s28955_s2  ;;  %p28959_p11 = scmp.lt.u32.totalorder %s28955_s2, %s35508_s8 }
  0xd2   :  { %p28961_p12 = pnand %p28959_p11, %p28956_p10 }
  0xd4   :  { %28964 = shalt.err (!%p28961_p12)
}
  0xd5   :  { %s28965_s6 = scalar_lea.vmem %s108_s27, 64  ;;  %p28970_p0 = scmp.lt.s32.totalorder %s108_s27, %s108_s27 }
  0xd6   :  { %p28966_p13 = scmp.ne.s32.totalorder %s108_s27, %s28965_s6  ;;  %p28971_p1 = scmp.lt.s32.totalorder %s28965_s6, %s28965_s6 }
  0xd8   :  { %p28972_p2 = por %p28971_p1, %p28970_p0 }
  0xda   :  { %p28973_p3 = pnand %p28972_p2, %p28966_p13 }
  0xdc   :  { %28976 = shalt.err (!%p28973_p3)
}
  0xdd   :  { %110 = dma.hbm_to_vmem [thread:$0]  %s35508_s8, 64, %s108_s27, [#allocation12]  }
  0xde   :  { %s28977_s9 = scalar_lea.hbm %s35510_s10, 256 }
  0xdf   :  { %p28978_p4 = scmp.ne.s32.totalorder %s35510_s10, %s28977_s9  ;;  %p28981_p5 = scmp.lt.u32.totalorder %s28977_s9, %s35510_s10 }
  0xe1   :  { %p28983_p6 = pnand %p28981_p5, %p28978_p4 }
  0xe3   :  { %28986 = shalt.err (!%p28983_p6)
}
  0xe4   :  { %s28987_s5 = scalar_lea.vmem %s29380_s24, 256  ;;  %p28992_p8 = scmp.lt.s32.totalorder %s29380_s24, %s29380_s24 }
  0xe5   :  { %p28988_p7 = scmp.ne.s32.totalorder %s29380_s24, %s28987_s5  ;;  %p28993_p9 = scmp.lt.s32.totalorder %s28987_s5, %s28987_s5 }
  0xe7   :  { %p28994_p10 = por %p28993_p9, %p28992_p8 }
  0xe9   :  { %p28995_p11 = pnand %p28994_p10, %p28988_p7 }
  0xeb   :  { %28998 = shalt.err (!%p28995_p11)
}
  0xec   :  { %132 = dma.hbm_to_vmem [thread:$0]  %s35510_s10, 256, %s29380_s24, [#allocation15], %s29111_s26, %s29111_s26, %s29112_s22  }
  0xed   :  { %s29121_s1 = smov [#allocation19]   ;;  %s29122_s16 = smov [#allocation22]  }
  0xee   :  { %s150_s2 = sshll.u32 %s29121_s1, 4  ;;  %s176_s23 = sshll.u32 %s29122_s16, 4  ;;  %s151_s2 = int_to_ptr.vmem [resolvable:$true] %s150_s2  ;;  %s29414_s23 = int_to_ptr.vmem [resolvable:$true] %s176_s23 }
  0xef   :  { %s28999_s6 = scalar_lea.hbm %s35512_s12, 768 }
  0xf0   :  { %p29000_p12 = scmp.ne.s32.totalorder %s35512_s12, %s28999_s6  ;;  %p29003_p13 = scmp.lt.u32.totalorder %s28999_s6, %s35512_s12 }
  0xf2   :  { %p29005_p0 = pnand %p29003_p13, %p29000_p12 }
  0xf4   :  { %29008 = shalt.err (!%p29005_p0)
}
  0xf5   :  { %s29009_s10 = scalar_lea.vmem %s151_s2, 768  ;;  %p29014_p2 = scmp.lt.s32.totalorder %s151_s2, %s151_s2 }
  0xf6   :  { %p29010_p1 = scmp.ne.s32.totalorder %s151_s2, %s29009_s10  ;;  %p29015_p3 = scmp.lt.s32.totalorder %s29009_s10, %s29009_s10 }
  0xf8   :  { %p29016_p4 = por %p29015_p3, %p29014_p2 }
  0xfa   :  { %p29017_p5 = pnand %p29016_p4, %p29010_p1 }
  0xfc   :  { %29020 = shalt.err (!%p29017_p5)
}
  0xfd   :  { %156 = dma.hbm_to_vmem [thread:$0]  %s35512_s12, 768, %s151_s2, [#allocation18], %s29111_s26, %s29111_s26, %s29112_s22  }
  0xfe   :  { %s29021_s7 = scalar_lea.hbm %s35515_s15, 1024 }
  0xff   :  { %p29022_p6 = scmp.ne.s32.totalorder %s35515_s15, %s29021_s7  ;;  %p29025_p7 = scmp.lt.u32.totalorder %s29021_s7, %s35515_s15 }
 0x101   :  { %p29027_p8 = pnand %p29025_p7, %p29022_p6 }
 0x103   :  { %29030 = shalt.err (!%p29027_p8)
}
 0x104   :  { %s29031_s1 = scalar_lea.vmem %s29414_s23, 1024  ;;  %p29036_p10 = scmp.lt.s32.totalorder %s29414_s23, %s29414_s23 }
 0x105   :  { %p29032_p9 = scmp.ne.s32.totalorder %s29414_s23, %s29031_s1  ;;  %p29037_p11 = scmp.lt.s32.totalorder %s29031_s1, %s29031_s1 }
 0x107   :  { %p29038_p12 = por %p29037_p11, %p29036_p10 }
 0x109   :  { %p29039_p13 = pnand %p29038_p12, %p29032_p9 }
 0x10b   :  { %29042 = shalt.err (!%p29039_p13)
}
 0x10c   :  { %s29123_s12 = smov 256   ;;  %s29124_s26 = smov 16  }
 0x10d   :  { %182 = dma.hbm_to_vmem [thread:$0]  %s35515_s15, 1024, %s29414_s23, [#allocation21], %s29123_s12, %s29123_s12, %s29124_s26  }
 0x10e   :  { %s29125_s16 = smov [#allocation25]   ;;  %s29043_s13 = scalar_lea.hbm %s35519_s19, 32 }
 0x10f   :  { %s203_s3 = sshll.u32 %s29125_s16, 4  ;;  %p29044_p0 = scmp.ne.s32.totalorder %s35519_s19, %s29043_s13  ;;  %s204_s3 = int_to_ptr.vmem [resolvable:$true] %s203_s3 }
 0x110   :  { %p29047_p1 = scmp.lt.u32.totalorder %s29043_s13, %s35519_s19 }
 0x112   :  { %p29049_p2 = pnand %p29047_p1, %p29044_p0 }
 0x114   :  { %29052 = shalt.err (!%p29049_p2)
}
 0x115   :  { %s29053_s24 = scalar_lea.vmem %s204_s3, 32  ;;  %p29058_p4 = scmp.lt.s32.totalorder %s204_s3, %s204_s3 }
 0x116   :  { %p29054_p3 = scmp.ne.s32.totalorder %s204_s3, %s29053_s24  ;;  %p29059_p5 = scmp.lt.s32.totalorder %s29053_s24, %s29053_s24 }
 0x118   :  { %p29060_p6 = por %p29059_p5, %p29058_p4 }
 0x11a   :  { %p29061_p7 = pnand %p29060_p6, %p29054_p3 }
 0x11c   :  { %29064 = shalt.err (!%p29061_p7)
}
 0x11d   :  { %206 = dma.hbm_to_vmem [thread:$0]  %s35519_s19, 32, %s204_s3, [#allocation24]  }
 0x11e   :  { %29087 = dma.done.wait [#allocation3], 512  }
 0x11f   :  { %29088 = vsyncadd [#allocation3], 4294966784 }
 0x120   :  { %29089 = dma.done.wait [#allocation6], 32  }
 0x121   :  { %29090 = vsyncadd [#allocation6], 4294967264 }
 0x122   :  { %29091 = dma.done.wait [#allocation9], 256  }
 0x123   :  { %29092 = vsyncadd [#allocation9], 4294967040 }
 0x124   :  { %29093 = dma.done.wait [#allocation12], 80  }
 0x125   :  { %29094 = vsyncadd [#allocation12], 4294967216 }
 0x126   :  { %29095 = dma.done.wait [#allocation15], 272  }
 0x127   :  { %29096 = vsyncadd [#allocation15], 4294967024 }
 0x128   :  { %29097 = dma.done.wait [#allocation18], 1024  }
 0x129   :  { %29098 = vsyncadd [#allocation18], 4294966272 }
 0x12a   :  { %29099 = dma.done.wait [#allocation21], 4096  }
 0x12b   :  { %29100 = vsyncadd [#allocation21], 4294963200 }
 0x12c   :  { %29101 = dma.done.wait [#allocation24], 64  }
 0x12d   :  { %29102 = vsyncadd [#allocation24], 4294967232  ;;  %v568_v0 = vlaneseq  ;;  %v24293_v4 = vld [vmem:[#allocation5] ss:$0 sm:$0xff]  ;;  %v24292_v5 = vld [vmem:[#allocation7] ss:$0 sm:$0xff] }
 0x12e   :  { %562 = vbcast.lane.b32.xlu0 %v24293_v4, 256  ;;  %298 = vbcast.lane.b32.xlu1 %v24292_v5, 256  ;;  %s36178_s4 = sld [smem:[#allocation179_spill]]  ;;  %vm332_vm0 = vcmask 60416   ;;  %vm831_vm1 = vcmask 1041409   ;;  %vm833_vm2 = vcmask 1042434  }
 0x12f   :  { %v4087_v1 = vand.u32 127, %v568_v0  ;;  %v29463_v2 = vshrl.u32 %v568_v0, 7  ;;  %vm835_vm3 = vcmask 1043459   ;;  %vm837_vm4 = vcmask 1044484   ;;  %s36187_s24 = sld [smem:[#allocation182_spill]] }
 0x130   :  { %vm839_vm5 = vcmask 1045509   ;;  %vm841_vm6 = vcmask 1046534   ;;  %vm843_vm7 = vcmask 1047559   ;;  %vm29127_vm8 = vmmov 0  }
 0x131   :  { %v29466_v3 = vsub.s32 %v4087_v1, %v29463_v2  ;;  %v29469_v6 = vsub.s32 0, %v29463_v2  ;;  %v29472_v7 = vsub.s32 1, %v29463_v2  ;;  %v29475_v8 = vsub.s32 2, %v29463_v2 }
 0x132   :  { %566 = vbcast.lane.b32.xlu0 %v24293_v4, 264  ;;  %v29478_v9 = vsub.s32 3, %v29463_v2  ;;  %v586_v10 = vsub.s32 4, %v29463_v2  ;;  %v590_v11 = vsub.s32 5, %v29463_v2  ;;  %v594_v13 = vsub.s32 6, %v29463_v2 }
 0x133   :  { %36175 = vst [vmem:[#allocation36_spill] sm:$0xff] %v29466_v3  ;;  %36176 = vst [vmem:[#allocation37_spill] sm:$0xff] %v29469_v6  ;;  %v598_v14 = vsub.s32 7, %v29463_v2  ;;  %vm854_vm9 = vcmask 130048   ;;  %vm1824_vm10 = vcmask 64512   ;;  %vm4329_vm11 = vcmask 1043456  }
 0x134   :  { %36177 = vst [vmem:[#allocation38_spill] sm:$0xff] %v29472_v7  ;;  %v29485_v12 = vld [vmem:[%s36178_s4] sm:$0xf]  ;;  %v29492_v16 = vld [vmem:[%s36178_s4 + $0x4] sm:$0xf]  ;;  %vm4324_vm12 = vcmask 31744  }
 0x135   :  { %v29497_v17 = vld [vmem:[%s36178_s4 + $0x8] sm:$0xf]  ;;  %v29502_v18 = vld [vmem:[%s36178_s4 + $0xc] sm:$0xf]  ;;  %v29507_v19 = vld [vmem:[%s36178_s4 + $0x10] sm:$0xf] }
 0x136   :  { %v29512_v20 = vld [vmem:[%s36178_s4 + $0x40] sm:$0xf]  ;;  %v29517_v21 = vld [vmem:[%s36178_s4 + $0x44] sm:$0xf]  ;;  %v29526_v26 = vld [vmem:[%s36178_s4 + $0x14] sm:$0xf] }
 0x137   :  { %v29535_v29 = vld [vmem:[%s36178_s4 + $0x48] sm:$0xf]  ;;  %v29540_v30 = vld [vmem:[%s36178_s4 + $0x4c] sm:$0xf]  ;;  %v29548_v34 = vld [vmem:[%s36178_s4 + $0x50] sm:$0xf] }
 0x138   :  { %v29553_v35 = vld [vmem:[%s36178_s4 + $0x54] sm:$0xf]  ;;  %v29583_v59 = vld [vmem:[%s36178_s4 + $0x20] sm:$0xf]  ;;  %v29596_v0 = vld [vmem:[%s36178_s4 + $0x24] sm:$0xf] }
 0x139   :  { %v29588_v60 = vld [vmem:[%s36178_s4 + $0x60] sm:$0xf]  ;;  %v29601_v1 = vld [vmem:[%s36178_s4 + $0x28] sm:$0xf]  ;;  %vm7553_vm13 = vcmask 261120  }
 0x13a   :  { %36179 = vst [vmem:[#allocation39_spill] sm:$0xff] %v29588_v60 }
 0x1a0   :  { %v563_v15 = vpop.permute.xlu0 %562 }
 0x1a1   :  { %v571_v22 = vrot.slane %v563_v15, %v29469_v6  ;;  %v575_v23 = vrot.slane %v563_v15, %v29472_v7  ;;  %v579_v24 = vrot.slane %v563_v15, %v29475_v8  ;;  %v583_v25 = vrot.slane %v563_v15, %v29478_v9 }
 0x1a2   :  { %v587_v27 = vrot.slane %v563_v15, %v586_v10  ;;  %v591_v28 = vrot.slane %v563_v15, %v590_v11  ;;  %v29562_v41 = vrot.slane %v563_v15, %v594_v13  ;;  %v29566_v42 = vrot.slane %v563_v15, %v598_v14 }
 0x1a3   :  { %v632_v31 = vmul.f32 %v571_v22, %v29485_v12  ;;  %v633_v32 = vmul.f32 %v575_v23, %v29492_v16  ;;  %v634_v33 = vmul.f32 %v579_v24, %v29497_v17  ;;  %v635_v36 = vmul.f32 %v583_v25, %v29502_v18 }
 0x1a4   :  { %v636_v37 = vmul.f32 %v587_v27, %v29507_v19  ;;  %v648_v38 = vmul.f32 %v571_v22, %v29512_v20  ;;  %v649_v39 = vmul.f32 %v575_v23, %v29517_v21  ;;  %v637_v40 = vmul.f32 %v591_v28, %v29526_v26  ;;  %v567_v47 = vpop.permute.xlu0 %566 }
 0x1a5   :  { %v650_v43 = vmul.f32 %v579_v24, %v29535_v29  ;;  %v651_v44 = vmul.f32 %v583_v25, %v29540_v30  ;;  %v664_v45 = vsel %vm332_vm0, %v632_v31, 0.0  ;;  %v665_v46 = vsel %vm332_vm0, %v633_v32, 0.0  ;;  %v29610_v25 = vld [vmem:[%s36178_s4 + $0x64] sm:$0xf] }
 0x1a6   :  { %v652_v48 = vmul.f32 %v587_v27, %v29548_v34  ;;  %v653_v49 = vmul.f32 %v591_v28, %v29553_v35  ;;  %v666_v50 = vadd.f32 %v665_v46, %v664_v45  ;;  %v695_v51 = vsel %vm332_vm0, %v648_v38, 0.0  ;;  %36180 = vst [vmem:[#allocation40_spill] sm:$0xff] %v29610_v25  ;;  %v29615_v27 = vld [vmem:[%s36178_s4 + $0x18] sm:$0xf] }
 0x1a7   :  { %v667_v52 = vsel %vm332_vm0, %v634_v33, 0.0  ;;  %v669_v53 = vsel %vm332_vm0, %v635_v36, 0.0  ;;  %v671_v54 = vsel %vm332_vm0, %v636_v37, 0.0  ;;  %v696_v55 = vsel %vm332_vm0, %v649_v39, 0.0  ;;  %v29625_v36 = vld [vmem:[%s36178_s4 + $0x1c] sm:$0xf] }
 0x1a8   :  { %v668_v56 = vadd.f32 %v667_v52, %v666_v50  ;;  %v673_v57 = vsel %vm332_vm0, %v637_v40, 0.0  ;;  %v697_v58 = vadd.f32 %v696_v55, %v695_v51  ;;  %v603_v61 = vrot.slane %v567_v47, %v29469_v6  ;;  %v29630_v39 = vld [vmem:[%s36178_s4 + $0x68] sm:$0xf]  ;;  %v29648_v46 = vld [vmem:[%s36178_s4 + $0x58] sm:$0xf] }
 0x1a9   :  { %v698_v62 = vsel %vm332_vm0, %v650_v43, 0.0  ;;  %v700_v63 = vsel %vm332_vm0, %v651_v44, 0.0  ;;  %v607_v4 = vrot.slane %v567_v47, %v29472_v7  ;;  %v611_v5 = vrot.slane %v567_v47, %v29475_v8  ;;  %36181 = vst [vmem:[#allocation41_spill] sm:$0xff] %v29630_v39  ;;  %v29637_v43 = vld [vmem:[%s36178_s4 + $0x2c] sm:$0xf] }
 0x1aa   :  { %v670_v15 = vadd.f32 %v669_v53, %v668_v56  ;;  %v699_v22 = vadd.f32 %v698_v62, %v697_v58  ;;  %v702_v23 = vsel %vm332_vm0, %v652_v48, 0.0  ;;  %v704_v24 = vsel %vm332_vm0, %v653_v49, 0.0  ;;  %v29642_v44 = vld [vmem:[%s36178_s4 + $0x30] sm:$0xf]  ;;  %v29659_v53 = vld [vmem:[%s36178_s4 + $0x34] sm:$0xf] }
 0x1ab   :  { %v615_v28 = vrot.slane %v567_v47, %v29478_v9  ;;  %v619_v31 = vrot.slane %v567_v47, %v586_v10  ;;  %v640_v32 = vmul.f32 %v603_v61, %v29583_v59  ;;  %v656_v33 = vmul.f32 %v603_v61, %v29588_v60  ;;  %v29680_v58 = vld [vmem:[%s36178_s4 + $0x3c] sm:$0xf] }
 0x1ac   :  { %v672_v37 = vadd.f32 %v671_v54, %v670_v15  ;;  %v701_v38 = vadd.f32 %v700_v63, %v699_v22  ;;  %v641_v40 = vmul.f32 %v607_v4, %v29596_v0  ;;  %v642_v10 = vmul.f32 %v611_v5, %v29601_v1  ;;  %v29664_v54 = vld [vmem:[%s36178_s4 + $0x38] sm:$0xf] }
 0x1ad   :  { %v657_v45 = vmul.f32 %v607_v4, %v29610_v25  ;;  %v623_v48 = vrot.slane %v567_v47, %v590_v11  ;;  %v627_v49 = vrot.slane %v567_v47, %v594_v13  ;;  %v638_v50 = vmul.f32 %v29562_v41, %v29615_v27  ;;  %v29669_v11 = vld [vmem:[%s36178_s4 + $0x5c] sm:$0xf]  ;;  %v29691_v4 = vld [vmem:[%s36178_s4 + $0x6c] sm:$0xf] }
 0x1ae   :  { %v674_v51 = vadd.f32 %v673_v57, %v672_v37  ;;  %v703_v52 = vadd.f32 %v702_v23, %v701_v38  ;;  %36182 = vst [vmem:[#allocation42_spill] sm:$0xff] %v29669_v11  ;;  %v631_v13 = vrot.slane %v567_v47, %v598_v14  ;;  %v639_v55 = vmul.f32 %v29566_v42, %v29625_v36 }
 0x1af   :  { %v658_v56 = vmul.f32 %v611_v5, %v29630_v39  ;;  %v679_v57 = vsel %vm332_vm0, %v640_v32, 0.0  ;;  %v643_v61 = vmul.f32 %v615_v28, %v29637_v43  ;;  %v644_v62 = vmul.f32 %v619_v31, %v29642_v44  ;;  %v29710_v32 = vld [vmem:[%s36178_s4 + $0x78] sm:$0xf] }
 0x1b0   :  { %v705_v63 = vadd.f32 %v704_v24, %v703_v52  ;;  %v710_v2 = vsel %vm332_vm0, %v656_v33, 0.0  ;;  %v654_v14 = vmul.f32 %v29562_v41, %v29648_v46  ;;  %v675_v47 = vsel %vm332_vm0, %v638_v50, 0.0  ;;  %v29700_v24 = vld [vmem:[%s36178_s4 + $0x70] sm:$0xf]  ;;  %v29705_v41 = vld [vmem:[%s36178_s4 + $0x74] sm:$0xf] }
 0x1b1   :  { %v645_v5 = vmul.f32 %v623_v48, %v29659_v53  ;;  %v646_v15 = vmul.f32 %v627_v49, %v29664_v54  ;;  %v655_v22 = vmul.f32 %v29566_v42, %v29669_v11  ;;  %v676_v23 = vadd.f32 %v675_v47, %v674_v51  ;;  %v29719_v50 = vld [vmem:[%s36178_s4 + $0x7c] sm:$0xf] }
 0x1b2   :  { %v647_v33 = vmul.f32 %v631_v13, %v29680_v58  ;;  %v677_v42 = vsel %vm332_vm0, %v639_v55, 0.0  ;;  %v681_v37 = vsel %vm332_vm0, %v641_v40, 0.0  ;;  %v683_v38 = vsel %vm332_vm0, %v642_v10, 0.0 }
 0x1b3   :  { %v678_v51 = vadd.f32 %v677_v42, %v676_v23  ;;  %v685_v52 = vsel %vm332_vm0, %v643_v61, 0.0  ;;  %v687_v47 = vsel %vm332_vm0, %v644_v62, 0.0  ;;  %v706_v3 = vsel %vm332_vm0, %v654_v14, 0.0 }
 0x1b4   :  { %v707_v39 = vadd.f32 %v706_v3, %v705_v63  ;;  %v659_v25 = vmul.f32 %v615_v28, %v29691_v4  ;;  %v660_v55 = vmul.f32 %v619_v31, %v29700_v24  ;;  %v661_v40 = vmul.f32 %v623_v48, %v29705_v41  ;;  %v29733_v63 = vpop.permute.xlu1 %298 }
 0x1b5   :  { %v680_v10 = vadd.f32 %v679_v57, %v678_v51  ;;  %v708_v60 = vsel %vm332_vm0, %v655_v22, 0.0  ;;  %v662_v11 = vmul.f32 %v627_v49, %v29710_v32  ;;  %v663_v23 = vmul.f32 %v631_v13, %v29719_v50 }
 0x1b6   :  { %v689_v61 = vsel %vm332_vm0, %v645_v5, 0.0  ;;  %v691_v62 = vsel %vm332_vm0, %v646_v15, 0.0  ;;  %v693_v14 = vsel %vm332_vm0, %v647_v33, 0.0  ;;  %v709_v3 = vadd.f32 %v708_v60, %v707_v39 }
 0x1b7   :  { %v682_v28 = vadd.f32 %v681_v37, %v680_v10  ;;  %v712_v31 = vsel %vm332_vm0, %v657_v45, 0.0  ;;  %v714_v48 = vsel %vm332_vm0, %v658_v56, 0.0  ;;  %v716_v57 = vsel %vm332_vm0, %v659_v25, 0.0 }
 0x1b8   :  { %v711_v22 = vadd.f32 %v710_v2, %v709_v3  ;;  %v718_v49 = vsel %vm332_vm0, %v660_v55, 0.0  ;;  %v720_v13 = vsel %vm332_vm0, %v661_v40, 0.0  ;;  %v722_v5 = vsel %vm332_vm0, %v662_v11, 0.0 }
 0x1b9   :  { %v684_v15 = vadd.f32 %v683_v38, %v682_v28  ;;  %v724_v33 = vsel %vm332_vm0, %v663_v23, 0.0  ;;  %v300_v60 = vmul.f32 %v29733_v63, %v29485_v12  ;;  %v301_v39 = vmul.f32 %v29733_v63, %v29492_v16 }
 0x1ba   :  { %v713_v45 = vadd.f32 %v712_v31, %v711_v22  ;;  %v302_v25 = vmul.f32 %v29733_v63, %v29497_v17  ;;  %v303_v56 = vmul.f32 %v29733_v63, %v29502_v18  ;;  %v304_v2 = vmul.f32 %v29733_v63, %v29507_v19 }
 0x1bb   :  { %v686_v11 = vadd.f32 %v685_v52, %v684_v15  ;;  %v305_v42 = vmul.f32 %v29733_v63, %v29526_v26  ;;  %v29756_v12 = vmul.f32 %v29733_v63, %v29615_v27  ;;  %v29760_v16 = vmul.f32 %v29733_v63, %v29625_v36 }
 0x1bc   :  { %v715_v37 = vadd.f32 %v714_v48, %v713_v45  ;;  %v29764_v17 = vmul.f32 %v29733_v63, %v29583_v59  ;;  %v29768_v18 = vmul.f32 %v29733_v63, %v29596_v0  ;;  %v29772_v19 = vmul.f32 %v29733_v63, %v29601_v1 }
 0x1bd   :  { %v688_v26 = vadd.f32 %v687_v47, %v686_v11  ;;  %v29776_v27 = vmul.f32 %v29733_v63, %v29637_v43  ;;  %v29780_v36 = vmul.f32 %v29733_v63, %v29642_v44  ;;  %v29784_v59 = vmul.f32 %v29733_v63, %v29659_v53 }
 0x1be   :  { %v717_v38 = vadd.f32 %v716_v57, %v715_v37  ;;  %v29788_v0 = vmul.f32 %v29733_v63, %v29664_v54  ;;  %v29792_v1 = vmul.f32 %v29733_v63, %v29680_v58  ;;  %v333_v43 = vsel %vm332_vm0, %v300_v60, 0.0 }
 0x1bf   :  { %v690_v51 = vadd.f32 %v689_v61, %v688_v26  ;;  %v334_v52 = vrot.slane %v333_v43, 4  ;;  %v340_v44 = vsel %vm332_vm0, %v301_v39, 0.0  ;;  %v347_v47 = vsel %vm332_vm0, %v302_v25, 0.0 }
 0x1c0   :  { %v719_v55 = vadd.f32 %v718_v49, %v717_v38  ;;  %v341_v53 = vrot.slane %v340_v44, 4  ;;  %v348_v40 = vrot.slane %v347_v47, 4  ;;  %v354_v10 = vsel %vm332_vm0, %v303_v56, 0.0 }
 0x1c1   :  { %v692_v23 = vadd.f32 %v691_v62, %v690_v51  ;;  %v335_v54 = vadd.f32 %v334_v52, %v333_v43  ;;  %v355_v3 = vrot.slane %v354_v10, 4  ;;  %v361_v28 = vsel %vm332_vm0, %v304_v2, 0.0 }
 0x1c2   :  { %v721_v58 = vadd.f32 %v720_v13, %v719_v55  ;;  %v342_v31 = vadd.f32 %v341_v53, %v340_v44  ;;  %v349_v48 = vadd.f32 %v348_v40, %v347_v47  ;;  %v362_v57 = vrot.slane %v361_v28, 4 }
 0x1c3   :  { %v694_v61 = vadd.f32 %v693_v14, %v692_v23  ;;  %v336_v22 = vrot.slane %v335_v54, 2  ;;  %v356_v15 = vadd.f32 %v355_v3, %v354_v10  ;;  %v368_v60 = vsel %vm332_vm0, %v305_v42, 0.0 }
 0x1c4   :  { %v723_v39 = vadd.f32 %v722_v5, %v721_v58  ;;  %v343_v49 = vrot.slane %v342_v31, 2  ;;  %v350_v45 = vrot.slane %v349_v48, 2  ;;  %v363_v25 = vadd.f32 %v362_v57, %v361_v28 }
 0x1c5   :  { %v751_v56 = vrot.slane %v694_v61, %v29472_v7  ;;  %v729_v62 = vrot.slane %v694_v61, %v29469_v6  ;;  %v795_v11 = vrot.slane %v694_v61, %v29478_v9  ;;  %v773_v13 = vrot.slane %v694_v61, %v29475_v8 }
 0x1c6   :  { %v725_v2 = vadd.f32 %v724_v33, %v723_v39  ;;  %v337_v37 = vadd.f32 %v336_v22, %v335_v54  ;;  %v344_v26 = vadd.f32 %v343_v49, %v342_v31  ;;  %v351_v14 = vadd.f32 %v350_v45, %v349_v48 }
 0x1c7   :  { %753 = vbcast.lane.b32.xlu0 %v751_v56, 256  ;;  %731 = vbcast.lane.b32.xlu1 %v729_v62, 256  ;;  %v357_v38 = vrot.slane %v356_v15, 2  ;;  %v364_v42 = vrot.slane %v363_v25, 2  ;;  %v369_v5 = vrot.slane %v368_v60, 4  ;;  %v29126_v47 = vmov 0.0|0.0  }
 0x1c8   :  { %v758_v43 = vrot.slane %v725_v2, %v29472_v7  ;;  %v736_v51 = vrot.slane %v725_v2, %v29469_v6  ;;  %v802_v52 = vrot.slane %v725_v2, %v29478_v9  ;;  %v780_v44 = vrot.slane %v725_v2, %v29475_v8  ;;  %25874 = vmatprep.subr.bf16.mxu0 %v29126_v47 }
 0x1c9   :  { %25892 = vmatprep.subr.bf16.mxu1 %v29126_v47  ;;  %v338_v33 = vrot.slane %v337_v37, 1  ;;  %v345_v55 = vrot.slane %v344_v26, 1  ;;  %v352_v53 = vrot.slane %v351_v14, 1  ;;  %v358_v40 = vadd.f32 %v357_v38, %v356_v15 }
 0x1ca   :  { %v365_v10 = vadd.f32 %v364_v42, %v363_v25  ;;  %v370_v23 = vadd.f32 %v369_v5, %v368_v60  ;;  %v375_v54 = vsel %vm332_vm0, %v29756_v12, 0.0  ;;  %v382_v3 = vsel %vm332_vm0, %v29760_v16, 0.0 }
 0x1cb   :  { %797 = vbcast.lane.b32.xlu0 %v795_v11, 256  ;;  %775 = vbcast.lane.b32.xlu1 %v773_v13, 256  ;;  %v29814_v28 = vadd.f32 %v338_v33, %v337_v37  ;;  %v29816_v58 = vadd.f32 %v345_v55, %v344_v26  ;;  %v29818_v31 = vadd.f32 %v352_v53, %v351_v14  ;;  %v359_v48 = vrot.slane %v358_v40, 1 }
 0x1cc   :  { %v366_v57 = vrot.slane %v365_v10, 1  ;;  %v371_v61 = vrot.slane %v370_v23, 2  ;;  %v376_v22 = vrot.slane %v375_v54, 4  ;;  %v383_v15 = vrot.slane %v382_v3, 4 }
 0x1cd   :  { %v29820_v60 = vadd.f32 %v359_v48, %v358_v40  ;;  %v389_v12 = vsel %vm332_vm0, %v29764_v17, 0.0  ;;  %v396_v16 = vsel %vm332_vm0, %v29768_v18, 0.0  ;;  %v403_v39 = vsel %vm332_vm0, %v29772_v19, 0.0 }
 0x1ce   :  { %v29828_v49 = vadd.f32 %v366_v57, %v365_v10  ;;  %v372_v45 = vadd.f32 %v371_v61, %v370_v23  ;;  %v377_v25 = vadd.f32 %v376_v22, %v375_v54  ;;  %v384_v56 = vadd.f32 %v383_v15, %v382_v3 }
 0x1cf   :  { %760 = vbcast.lane.b32.xlu0 %v758_v43, 256  ;;  %738 = vbcast.lane.b32.xlu1 %v736_v51, 256  ;;  %v390_v62 = vrot.slane %v389_v12, 4  ;;  %v397_v11 = vrot.slane %v396_v16, 4  ;;  %v404_v13 = vrot.slane %v403_v39, 4  ;;  %v410_v2 = vsel %vm332_vm0, %v29776_v27, 0.0 }
 0x1d0   :  { %v373_v17 = vrot.slane %v372_v45, 1  ;;  %v378_v37 = vrot.slane %v377_v25, 2  ;;  %v385_v26 = vrot.slane %v384_v56, 2  ;;  %v411_v18 = vrot.slane %v410_v2, 4 }
 0x1d1   :  { %v391_v14 = vadd.f32 %v390_v62, %v389_v12  ;;  %v398_v38 = vadd.f32 %v397_v11, %v396_v16  ;;  %v405_v19 = vadd.f32 %v404_v13, %v403_v39  ;;  %v417_v42 = vsel %vm332_vm0, %v29780_v36, 0.0 }
 0x1d2   :  { %v374_v5 = vadd.f32 %v373_v17, %v372_v45  ;;  %v379_v33 = vadd.f32 %v378_v37, %v377_v25  ;;  %v386_v43 = vadd.f32 %v385_v26, %v384_v56  ;;  %v412_v51 = vadd.f32 %v411_v18, %v410_v2 }
 0x1d3   :  { %804 = vbcast.lane.b32.xlu0 %v802_v52, 256  ;;  %782 = vbcast.lane.b32.xlu1 %v780_v44, 256  ;;  %v392_v55 = vrot.slane %v391_v14, 2  ;;  %v399_v53 = vrot.slane %v398_v38, 2  ;;  %v406_v40 = vrot.slane %v405_v19, 2  ;;  %v418_v27 = vrot.slane %v417_v42, 4 }
 0x1d4   :  { %v380_v10 = vrot.slane %v379_v33, 1  ;;  %v387_v23 = vrot.slane %v386_v43, 1  ;;  %v413_v54 = vrot.slane %v412_v51, 2  ;;  %v424_v3 = vsel %vm332_vm0, %v29784_v59, 0.0 }
 0x1d5   :  { %v393_v48 = vadd.f32 %v392_v55, %v391_v14  ;;  %v400_v57 = vadd.f32 %v399_v53, %v398_v38  ;;  %v407_v61 = vadd.f32 %v406_v40, %v405_v19  ;;  %v419_v36 = vadd.f32 %v418_v27, %v417_v42 }
 0x1d6   :  { %v381_v22 = vadd.f32 %v380_v10, %v379_v33  ;;  %v388_v15 = vadd.f32 %v387_v23, %v386_v43  ;;  %v414_v12 = vadd.f32 %v413_v54, %v412_v51  ;;  %v425_v16 = vrot.slane %v424_v3, 4 }
 0x1d7   :  { %v394_v52 = vrot.slane %v393_v48, 1  ;;  %v401_v44 = vrot.slane %v400_v57, 1  ;;  %v408_v39 = vrot.slane %v407_v61, 1  ;;  %v420_v45 = vrot.slane %v419_v36, 2 }
 0x1d8   :  { %v415_v25 = vrot.slane %v414_v12, 1  ;;  %v426_v56 = vadd.f32 %v425_v16, %v424_v3  ;;  %v431_v62 = vsel %vm332_vm0, %v29788_v0, 0.0  ;;  %v438_v59 = vsel %vm332_vm0, %v29792_v1, 0.0 }
 0x1d9   :  { %v395_v11 = vadd.f32 %v394_v52, %v393_v48  ;;  %v402_v13 = vadd.f32 %v401_v44, %v400_v57  ;;  %v409_v2 = vadd.f32 %v408_v39, %v407_v61  ;;  %v421_v17 = vadd.f32 %v420_v45, %v419_v36 }
 0x1da   :  { %v416_v37 = vadd.f32 %v415_v25, %v414_v12  ;;  %v427_v26 = vrot.slane %v426_v56, 2  ;;  %v432_v18 = vrot.slane %v431_v62, 4  ;;  %v439_v14 = vrot.slane %v438_v59, 4  ;;  %v36183_v25 = vld [vmem:[#allocation42_spill] sm:$0xff] }
 0x1db   :  { %v422_v38 = vrot.slane %v421_v17, 1  ;;  %v832_v0 = vsel %vm831_vm1, %v29816_v58, %v29814_v28  ;;  %v845_v10 = vsel %vm831_vm1, %v402_v13, %v395_v11  ;;  %v316_v48 = vmul.f32 %v29733_v63, %v29512_v20  ;;  %v36186_v11 = vld [vmem:[#allocation41_spill] sm:$0xff] }
 0x1dc   :  { %v428_v19 = vadd.f32 %v427_v26, %v426_v56  ;;  %v433_v42 = vadd.f32 %v432_v18, %v431_v62  ;;  %v440_v33 = vadd.f32 %v439_v14, %v438_v59  ;;  %v834_v43 = vsel %vm833_vm2, %v29818_v31, %v832_v0  ;;  %v36184_v56 = vld [vmem:[#allocation39_spill] sm:$0xff]  ;;  %v36185_v59 = vld [vmem:[#allocation40_spill] sm:$0xff] }
 0x1dd   :  { %v423_v1 = vadd.f32 %v422_v38, %v421_v17  ;;  %v836_v40 = vsel %vm835_vm3, %v29820_v60, %v834_v43  ;;  %v846_v3 = vsel %vm833_vm2, %v409_v2, %v845_v10  ;;  %v317_v60 = vmul.f32 %v29733_v63, %v29517_v21 }
 0x1de   :  { %v429_v51 = vrot.slane %v428_v19, 1  ;;  %v434_v55 = vrot.slane %v433_v42, 2  ;;  %v441_v53 = vrot.slane %v440_v33, 2  ;;  %v838_v27 = vsel %vm837_vm4, %v29828_v49, %v836_v40 }
 0x1df   :  { %v840_v31 = vsel %vm839_vm5, %v374_v5, %v838_v27  ;;  %v847_v36 = vsel %vm835_vm3, %v416_v37, %v846_v3  ;;  %v318_v5 = vmul.f32 %v29733_v63, %v29535_v29  ;;  %v320_v21 = vmul.f32 %v29733_v63, %v29548_v34 }
 0x1e0   :  { %v430_v28 = vadd.f32 %v429_v51, %v428_v19  ;;  %v435_v58 = vadd.f32 %v434_v55, %v433_v42  ;;  %v442_v23 = vadd.f32 %v441_v53, %v440_v33  ;;  %v842_v54 = vsel %vm841_vm6, %v381_v22, %v840_v31 }
 0x1e1   :  { %v844_v61 = vsel %vm843_vm7, %v388_v15, %v842_v54  ;;  %v848_v12 = vsel %vm837_vm4, %v423_v1, %v847_v36  ;;  %v319_v22 = vmul.f32 %v29733_v63, %v29540_v30  ;;  %v321_v15 = vmul.f32 %v29733_v63, %v29553_v35 }
 0x1e2   :  { %v436_v49 = vrot.slane %v435_v58, 1  ;;  %v443_v57 = vrot.slane %v442_v23, 1  ;;  %v859_v16 = vand.u32 4294901760, %v844_v61  ;;  %v849_v44 = vsel %vm839_vm5, %v430_v28, %v848_v12 }
 0x1e3   :  { %v322_v45 = vmul.f32 %v29733_v63, %v29648_v46  ;;  %v323_v29 = vmul.f32 %v29733_v63, %v36183_v25  ;;  %v29878_v62 = vmul.f32 %v29733_v63, %v36184_v56  ;;  %v29882_v34 = vmul.f32 %v29733_v63, %v36185_v59 }
 0x1e4   :  { %v437_v52 = vadd.f32 %v436_v49, %v435_v58  ;;  %v444_v20 = vadd.f32 %v443_v57, %v442_v23  ;;  %v29867_v39 = vsub.f32 %v844_v61, %v859_v16  ;;  %v29886_v13 = vmul.f32 %v29733_v63, %v36186_v11 }
 0x1e5   :  { %v29891_v46 = vmul.f32 %v29733_v63, %v29691_v4  ;;  %v29895_v2 = vmul.f32 %v29733_v63, %v29700_v24  ;;  %v29899_v17 = vmul.f32 %v29733_v63, %v29705_v41  ;;  %v29903_v26 = vmul.f32 %v29733_v63, %v29710_v32 }
 0x1e6   :  { %v850_v30 = vsel %vm841_vm6, %v437_v52, %v849_v44  ;;  %v29907_v18 = vmul.f32 %v29733_v63, %v29719_v50  ;;  %v445_v4 = vsel %vm332_vm0, %v316_v48, 0.0  ;;  %v452_v38 = vsel %vm332_vm0, %v317_v60, 0.0 }
 0x1e7   :  { %v851_v35 = vsel %vm843_vm7, %v444_v20, %v850_v30  ;;  %v446_v14 = vrot.slane %v445_v4, 4  ;;  %v459_v24 = vsel %vm332_vm0, %v318_v5, 0.0  ;;  %v466_v19 = vsel %vm332_vm0, %v319_v22, 0.0 }
 0x1e8   :  { %v862_v37 = vand.u32 4294901760, %v851_v35  ;;  %v453_v33 = vrot.slane %v452_v38, 4  ;;  %v460_v32 = vrot.slane %v459_v24, 4  ;;  %v467_v1 = vrot.slane %v466_v19, 4 }
 0x1e9   :  { %v447_v0 = vadd.f32 %v446_v14, %v445_v4  ;;  %v473_v50 = vsel %vm332_vm0, %v320_v21, 0.0  ;;  %v480_v63 = vsel %vm332_vm0, %v321_v15, 0.0  ;;  %v487_v10 = vsel %vm332_vm0, %v322_v45, 0.0 }
 0x1ea   :  { %v29913_v41 = vpack.c.bf16 %v862_v37, %v859_v16  ;;  %v29915_v42 = vsub.f32 %v851_v35, %v862_v37  ;;  %v454_v43 = vadd.f32 %v453_v33, %v452_v38  ;;  %v461_v51 = vadd.f32 %v460_v32, %v459_v24 }
 0x1eb   :  { %v474_v55 = vrot.slane %v473_v50, 4  ;;  %v481_v53 = vrot.slane %v480_v63, 4  ;;  %v448_v40 = vrot.slane %v447_v0, 2  ;;  %v468_v27 = vadd.f32 %v467_v1, %v466_v19 }
 0x1ec   :  { %25876 = vmatpush3.bf16.msra.mxu0 %v29913_v41  ;;  %v494_v28 = vsel %vm332_vm0, %v323_v29, 0.0  ;;  %v455_v58 = vrot.slane %v454_v43, 2  ;;  %v462_v23 = vrot.slane %v461_v51, 2  ;;  %v488_v60 = vrot.slane %v487_v10, 4 }
 0x1ed   :  { %25877 = vmatprep.subr.bf16.mxu0 %v29126_v47  ;;  %v475_v31 = vadd.f32 %v474_v55, %v473_v50  ;;  %v482_v54 = vadd.f32 %v481_v53, %v480_v63  ;;  %v449_v3 = vadd.f32 %v448_v40, %v447_v0  ;;  %v469_v48 = vrot.slane %v468_v27, 2 }
 0x1ee   :  { %v495_v49 = vrot.slane %v494_v28, 4  ;;  %v456_v57 = vadd.f32 %v455_v58, %v454_v43  ;;  %v463_v61 = vadd.f32 %v462_v23, %v461_v51  ;;  %v489_v22 = vadd.f32 %v488_v60, %v487_v10 }
 0x1ef   :  { %v476_v36 = vrot.slane %v475_v31, 2  ;;  %v483_v12 = vrot.slane %v482_v54, 2  ;;  %v450_v16 = vrot.slane %v449_v3, 1  ;;  %v470_v5 = vadd.f32 %v469_v48, %v468_v27 }
 0x1f0   :  { %v496_v52 = vadd.f32 %v495_v49, %v494_v28  ;;  %v457_v20 = vrot.slane %v456_v57, 1  ;;  %v464_v44 = vrot.slane %v463_v61, 1  ;;  %v490_v29 = vrot.slane %v489_v22, 2 }
 0x1f1   :  { %v477_v21 = vadd.f32 %v476_v36, %v475_v31  ;;  %v484_v15 = vadd.f32 %v483_v12, %v482_v54  ;;  %v29923_v45 = vadd.f32 %v450_v16, %v449_v3  ;;  %v471_v25 = vrot.slane %v470_v5, 1 }
 0x1f2   :  { %v497_v30 = vrot.slane %v496_v52, 2  ;;  %v458_v56 = vadd.f32 %v457_v20, %v456_v57  ;;  %v29925_v59 = vadd.f32 %v464_v44, %v463_v61  ;;  %v491_v4 = vadd.f32 %v490_v29, %v489_v22 }
 0x1f3   :  { %v478_v11 = vrot.slane %v477_v21, 1  ;;  %v485_v35 = vrot.slane %v484_v15, 1  ;;  %v29927_v37 = vadd.f32 %v471_v25, %v470_v5  ;;  %v501_v38 = vsel %vm332_vm0, %v29878_v62, 0.0 }
 0x1f4   :  { %v498_v14 = vadd.f32 %v497_v30, %v496_v52  ;;  %v502_v33 = vrot.slane %v501_v38, 4  ;;  %v508_v32 = vsel %vm332_vm0, %v29882_v34, 0.0  ;;  %v492_v0 = vrot.slane %v491_v4, 1 }
 0x1f5   :  { %v29931_v24 = vadd.f32 %v478_v11, %v477_v21  ;;  %v29933_v19 = vadd.f32 %v485_v35, %v484_v15  ;;  %v509_v50 = vrot.slane %v508_v32, 4  ;;  %v515_v63 = vsel %vm332_vm0, %v29886_v13, 0.0 }
 0x1f6   :  { %v499_v1 = vrot.slane %v498_v14, 1  ;;  %v503_v43 = vadd.f32 %v502_v33, %v501_v38  ;;  %v516_v51 = vrot.slane %v515_v63, 4  ;;  %v522_v55 = vsel %vm332_vm0, %v29891_v46, 0.0 }
 0x1f7   :  { %v529_v62 = vsel %vm332_vm0, %v29895_v2, 0.0  ;;  %v493_v53 = vadd.f32 %v492_v0, %v491_v4  ;;  %v510_v27 = vadd.f32 %v509_v50, %v508_v32  ;;  %v523_v10 = vrot.slane %v522_v55, 4 }
 0x1f8   :  { %v500_v40 = vadd.f32 %v499_v1, %v498_v14  ;;  %v504_v28 = vrot.slane %v503_v43, 2  ;;  %v517_v34 = vadd.f32 %v516_v51, %v515_v63  ;;  %v530_v58 = vrot.slane %v529_v62, 4 }
 0x1f9   :  { %v536_v23 = vsel %vm332_vm0, %v29899_v17, 0.0  ;;  %v511_v31 = vrot.slane %v510_v27, 2  ;;  %v524_v13 = vadd.f32 %v523_v10, %v522_v55  ;;  %v543_v3 = vsel %vm332_vm0, %v29903_v26, 0.0 }
 0x1fa   :  { %v537_v54 = vrot.slane %v536_v23, 4  ;;  %v505_v46 = vadd.f32 %v504_v28, %v503_v43  ;;  %v518_v48 = vrot.slane %v517_v34, 2  ;;  %v531_v60 = vadd.f32 %v530_v58, %v529_v62 }
 0x1fb   :  { %v544_v2 = vrot.slane %v543_v3, 4  ;;  %v512_v49 = vadd.f32 %v511_v31, %v510_v27  ;;  %v525_v57 = vrot.slane %v524_v13, 2  ;;  %v550_v36 = vsel %vm332_vm0, %v29907_v18, 0.0 }
 0x1fc   :  { %v538_v61 = vadd.f32 %v537_v54, %v536_v23  ;;  %v506_v12 = vrot.slane %v505_v46, 1  ;;  %v519_v16 = vadd.f32 %v518_v48, %v517_v34  ;;  %v532_v5 = vrot.slane %v531_v60, 2 }
 0x1fd   :  { %v545_v17 = vadd.f32 %v544_v2, %v543_v3  ;;  %v513_v22 = vrot.slane %v512_v49, 1  ;;  %v526_v52 = vadd.f32 %v525_v57, %v524_v13  ;;  %v551_v44 = vrot.slane %v550_v36, 4 }
 0x1fe   :  { %v539_v20 = vrot.slane %v538_v61, 2  ;;  %v507_v21 = vadd.f32 %v506_v12, %v505_v46  ;;  %v520_v26 = vrot.slane %v519_v16, 1  ;;  %v533_v15 = vadd.f32 %v532_v5, %v531_v60 }
 0x1ff   :  { %v546_v25 = vrot.slane %v545_v17, 2  ;;  %v514_v29 = vadd.f32 %v513_v22, %v512_v49  ;;  %v527_v30 = vrot.slane %v526_v52, 1  ;;  %v552_v35 = vadd.f32 %v551_v44, %v550_v36 }
 0x200   :  { %v540_v11 = vadd.f32 %v539_v20, %v538_v61  ;;  %v521_v4 = vadd.f32 %v520_v26, %v519_v16  ;;  %v534_v14 = vrot.slane %v533_v15, 1  ;;  %v1333_v18 = vsel %vm831_vm1, %v458_v56, %v29923_v45 }
 0x201   :  { %v547_v38 = vadd.f32 %v546_v25, %v545_v17  ;;  %v528_v33 = vadd.f32 %v527_v30, %v526_v52  ;;  %v553_v0 = vrot.slane %v552_v35, 2  ;;  %v1334_v1 = vsel %vm833_vm2, %v29925_v59, %v1333_v18  ;;  %v291_v25 = vld [vmem:[%s36187_s24] sm:$0xf] }
 0x202   :  { %v541_v32 = vrot.slane %v540_v11, 1  ;;  %v535_v50 = vadd.f32 %v534_v14, %v533_v15  ;;  %v1335_v43 = vsel %vm835_vm3, %v29927_v37, %v1334_v1  ;;  %v1340_v51 = vsel %vm831_vm1, %v514_v29, %v507_v21 }
 0x203   :  { %v548_v63 = vrot.slane %v547_v38, 1  ;;  %v554_v62 = vadd.f32 %v553_v0, %v552_v35  ;;  %v1336_v27 = vsel %vm837_vm4, %v29931_v24, %v1335_v43  ;;  %v1341_v45 = vsel %vm833_vm2, %v521_v4, %v1340_v51 }
 0x204   :  { %v542_v55 = vadd.f32 %v541_v32, %v540_v11  ;;  %v1337_v10 = vsel %vm839_vm5, %v29933_v19, %v1336_v27  ;;  %v1342_v59 = vsel %vm835_vm3, %v528_v33, %v1341_v45  ;;  %v35532_v31 = vmov 0.0  }
 0x205   :  { %v549_v56 = vadd.f32 %v548_v63, %v547_v38  ;;  %v555_v28 = vrot.slane %v554_v62, 1  ;;  %v1338_v34 = vsel %vm841_vm6, %v493_v53, %v1337_v10  ;;  %v1343_v37 = vsel %vm837_vm4, %v535_v50, %v1342_v59  ;;  %25446 = vmatprep.mubr.msk.f32.mxu0 %vm29127_vm8, %v35532_v31  ;;  %25488 = vmatprep.mubr.msk.f32.mxu1 %vm29127_vm8, %v35532_v31 }
 0x206   :  { %v1339_v58 = vsel %vm843_vm7, %v500_v40, %v1338_v34  ;;  %v1344_v23 = vsel %vm839_vm5, %v542_v55, %v1343_v37  ;;  %v938_v24 = vand.u32 4294901760, %v29867_v39  ;;  %v945_v19 = vand.u32 4294901760, %v29915_v42 }
 0x207   :  { %v556_v13 = vadd.f32 %v555_v28, %v554_v62  ;;  %v1345_v53 = vsel %vm841_vm6, %v549_v56, %v1344_v23  ;;  %v1353_v54 = vand.u32 4294901760, %v1339_v58  ;;  %v25881_v40 = vpack.c.bf16 %v29915_v42, %v29867_v39 }
 0x208   :  { %v939_v3 = vsub.f32 %v29867_v39, %v938_v24  ;;  %v946_v46 = vsub.f32 %v29915_v42, %v945_v19  ;;  %v29977_v48 = vpack.c.bf16 %v945_v19, %v938_v24  ;;  %v765_v29 = vrot.slane %v291_v25, %v29472_v7  ;;  %v24296_v39 = vld [vmem:[#allocation14] ss:$0 sm:$0xff] }
 0x209   :  { %v1346_v60 = vsel %vm843_vm7, %v556_v13, %v1345_v53  ;;  %v29980_v2 = vsub.f32 %v1339_v58, %v1353_v54  ;;  %v743_v30 = vrot.slane %v291_v25, %v29469_v6  ;;  %v787_v38 = vrot.slane %v291_v25, %v29475_v8  ;;  %2766 = vbcast.lane.b32.xlu0 %v24296_v39, 256 }
 0x20a   :  { %v1356_v49 = vand.u32 4294901760, %v1346_v60  ;;  %v940_v57 = vand.u32 4294901760, %v939_v3  ;;  %v947_v61 = vand.u32 4294901760, %v946_v46  ;;  %v809_v18 = vrot.slane %v291_v25, %v29478_v9 }
 0x20b   :  { %v1432_v36 = vand.u32 4294901760, %v29980_v2 }
 0x20c   :  { %v29983_v12 = vpack.c.bf16 %v1356_v49, %v1353_v54  ;;  %v29985_v16 = vsub.f32 %v1346_v60, %v1356_v49  ;;  %v25878_v5 = vpack.c.bf16 %v947_v61, %v940_v57 }
 0x20d   :  { %v1433_v17 = vsub.f32 %v29980_v2, %v1432_v36 }
 0x20e   :  { %25894 = vmatpush3.bf16.msra.mxu1 %v29983_v12  ;;  %v1439_v22 = vand.u32 4294901760, %v29985_v16  ;;  %v25899_v52 = vpack.c.bf16 %v29985_v16, %v29980_v2  ;;  %v1823_v2 = vld [vmem:[#allocation10] sm:$0xff] }
 0x20f   :  { %25895 = vmatprep.subr.bf16.mxu1 %v29126_v47  ;;  %v1434_v20 = vand.u32 4294901760, %v1433_v17 }
 0x210   :  { %v1440_v44 = vsub.f32 %v29985_v16, %v1439_v22  ;;  %v29994_v21 = vpack.c.bf16 %v1439_v22, %v1432_v36  ;;  %v1826_v36 = vsel %vm1824_vm10, %v1823_v2, 0 }
 0x211   :  { %v30049_v16 = vand.u32 4294901760, %v1826_v36 }
 0x212   :  { %v1441_v26 = vand.u32 4294901760, %v1440_v44 }
 0x213   :  { %v1895_v22 = vsub.f32 %v1826_v36, %v30049_v16 }
 0x214   :  { %v25896_v15 = vpack.c.bf16 %v1441_v26, %v1434_v20 }
 0x239   :  { %v754_v11 = vpop.permute.xlu0 %753  ;;  %v732_v35 = vpop.permute.xlu1 %731 }
 0x23a   :  { %v766_v4 = vmul.f32 %v765_v29, %v754_v11  ;;  %v744_v14 = vmul.f32 %v743_v30, %v732_v35 }
 0x23c   :  { %v768_v0 = vadd.f32 %v766_v4, %v744_v14 }
 0x23d   :  { %v798_v33 = vpop.permute.xlu0 %797  ;;  %v776_v32 = vpop.permute.xlu1 %775 }
 0x23e   :  { %v788_v1 = vmul.f32 %v787_v38, %v776_v32  ;;  %v810_v50 = vmul.f32 %v809_v18, %v798_v33 }
 0x240   :  { %v790_v63 = vadd.f32 %v788_v1, %v768_v0  ;;  %v30093_v1 = vld [vmem:[%s36178_s4] sm:$0xf] }
 0x241   :  { %v761_v43 = vpop.permute.xlu0 %760  ;;  %v739_v51 = vpop.permute.xlu1 %738 }
 0x242   :  { %v812_v55 = vadd.f32 %v810_v50, %v790_v63  ;;  %v767_v62 = vmul.f32 %v765_v29, %v761_v43  ;;  %v745_v27 = vmul.f32 %v743_v30, %v739_v51  ;;  %v30100_v63 = vld [vmem:[%s36178_s4 + $0x4] sm:$0xf]  ;;  %v30107_v51 = vld [vmem:[%s36178_s4 + $0x8] sm:$0xf] }
 0x244   :  { %v856_v45 = vsel %vm854_vm9, %v812_v55, 0  ;;  %v769_v8 = vadd.f32 %v767_v62, %v745_v27  ;;  %v30114_v62 = vld [vmem:[%s36178_s4 + $0xc] sm:$0xf] }
 0x245   :  { %v925_v56 = vand.u32 4294901760, %v856_v45  ;;  %v805_v10 = vpop.permute.xlu0 %804  ;;  %v783_v59 = vpop.permute.xlu1 %782 }
 0x246   :  { %v789_v28 = vmul.f32 %v787_v38, %v783_v59  ;;  %v811_v34 = vmul.f32 %v809_v18, %v805_v10  ;;  %v30123_v10 = vld [vmem:[%s36178_s4 + $0x10] sm:$0xf] }
 0x247   :  { %v926_v9 = vsub.f32 %v856_v45, %v925_v56 }
 0x248   :  { %v791_v37 = vadd.f32 %v789_v28, %v769_v8 }
 0x249   :  { %v927_v58 = vand.u32 4294901760, %v926_v9 }
 0x24a   :  { %v813_v23 = vadd.f32 %v811_v34, %v791_v37  ;;  %v30131_v34 = vld [vmem:[%s36178_s4 + $0x14] sm:$0xf] }
 0x24b   :  { %v928_v24 = vsub.f32 %v926_v9, %v927_v58 }
 0x24c   :  { %v1350_v19 = vsel %vm854_vm9, %v813_v23, 0 }
 0x24d   :  { %v1419_v13 = vand.u32 4294901760, %v1350_v19  ;;  %v929_v53 = vand.u32 4294901760, %v928_v24  ;;  %v30139_v24 = vld [vmem:[%s36178_s4 + $0x18] sm:$0xf] }
 0x24f   :  { %v1420_v54 = vsub.f32 %v1350_v19, %v1419_v13  ;;  %25447 = vmatmul.mubr.f32.vlgmr.msra.gmra.mrb[0].mxu0 %v929_v53 }
 0x250   :  { %25879 = vmatpush3.bf16.msra.mxu0 %v25878_v5  ;;  %25453 = vmatprep.mubr.msk.f32.mxu0 %vm29127_vm8, %v35532_v31 }
 0x251   :  { %25880 = vmatprep.subr.bf16.mxu0 %v29126_v47  ;;  %v1421_v3 = vand.u32 4294901760, %v1420_v54 }
 0x253   :  { %v1422_v46 = vsub.f32 %v1420_v54, %v1421_v3 }
 0x255   :  { %v1423_v60 = vand.u32 4294901760, %v1422_v46 }
 0x257   :  { %25454 = vmatmul.mubr.f32.vlgmr.msra.gmra.mrb[0].mxu0 %v925_v56  ;;  %25489 = vmatmul.mubr.f32.vlgmr.msra.gmra.mrb[0].mxu1 %v1423_v60 }
 0x258   :  { %25882 = vmatpush3.bf16.msra.mxu0 %v25881_v40  ;;  %25897 = vmatpush3.bf16.msra.mxu1 %v25896_v15 }
 0x259   :  { %25460 = vmatprep.mubr.msk.f32.mxu0 %vm29127_vm8, %v35532_v31  ;;  %25883 = vmatprep.subr.bf16.mxu0 %v29126_v47 }
 0x25a   :  { %25495 = vmatprep.mubr.msk.f32.mxu1 %vm29127_vm8, %v35532_v31  ;;  %25898 = vmatprep.subr.bf16.mxu1 %v29126_v47 }
 0x25f   :  { %25461 = vmatmul.mubr.f32.vlgmr.msra.gmra.mrb[0].mxu0 %v926_v9  ;;  %25496 = vmatmul.mubr.f32.vlgmr.msra.gmra.mrb[0].mxu1 %v1419_v13 }
 0x260   :  { %25885 = vmatpush3.bf16.msra.mxu0 %v29913_v41  ;;  %25900 = vmatpush3.bf16.msra.mxu1 %v25899_v52  ;;  %v1896_v52 = vand.u32 4294901760, %v1895_v22 }
 0x261   :  { %25467 = vmatprep.mubr.msk.f32.mxu0 %vm29127_vm8, %v35532_v31  ;;  %25886 = vmatprep.subr.bf16.mxu0 %v29126_v47 }
 0x262   :  { %25502 = vmatprep.mubr.msk.f32.mxu1 %vm29127_vm8, %v35532_v31  ;;  %25901 = vmatprep.subr.bf16.mxu1 %v29126_v47 }
 0x267   :  { %25468 = vmatmul.mubr.f32.vlgmr.msra.gmra.mrb[0].mxu0 %v927_v58  ;;  %25503 = vmatmul.mubr.f32.vlgmr.msra.gmra.mrb[0].mxu1 %v1420_v54 }
 0x268   :  { %25888 = vmatpush3.bf16.msra.mxu0 %v29977_v48  ;;  %25903 = vmatpush3.bf16.msra.mxu1 %v29983_v12 }
 0x269   :  { %25474 = vmatprep.mubr.msk.f32.mxu0 %vm29127_vm8, %v35532_v31  ;;  %25889 = vmatprep.subr.bf16.mxu0 %v29126_v47 }
 0x26a   :  { %25509 = vmatprep.mubr.msk.f32.mxu1 %vm29127_vm8, %v35532_v31  ;;  %25904 = vmatprep.subr.bf16.mxu1 %v29126_v47 }
 0x26f   :  { %25475 = vmatmul.mubr.f32.vlgmr.msra.gmra.mrb[0].mxu0 %v925_v56  ;;  %25510 = vmatmul.mubr.f32.vlgmr.msra.gmra.mrb[0].mxu1 %v1421_v3  ;;  %v30146_v3 = vld [vmem:[%s36178_s4 + $0x1c] sm:$0xf] }
 0x270   :  { %25891 = vmatpush3.bf16.msra.mxu0 %v29913_v41  ;;  %25906 = vmatpush3.bf16.msra.mxu1 %v29994_v21  ;;  %v1897_v21 = vsub.f32 %v1895_v22, %v1896_v52 }
 0x271   :  { %25481 = vmatprep.mubr.msk.f32.mxu0 %vm29127_vm8, %v35532_v31  ;;  %25516 = vmatprep.mubr.msk.f32.mxu1 %vm29127_vm8, %v35532_v31 }
 0x272   :  { %25907 = vmatprep.subr.bf16.mxu1 %v29126_v47  ;;  %25526 = vmatprep.subr.mxu0 %v35532_v31  ;;  %v814_v47 = vld [vmem:[#allocation8] sm:$0xff]  ;;  %v1898_v15 = vand.u32 4294901760, %v1897_v21 }
 0x277   :  { %25482 = vmatmul.mubr.f32.vlgmr.msra.gmra.mrb[0].mxu0 %v925_v56  ;;  %25517 = vmatmul.mubr.f32.vlgmr.msra.gmra.mrb[0].mxu1 %v1419_v13 }
 0x278   :  { %25909 = vmatpush3.bf16.msra.mxu1 %v29983_v12  ;;  %25523 = vmatprep.mubr.msk.f32.mxu1 %vm29127_vm8, %v35532_v31 }
 0x279   :  { %25528 = vmatprep.mubr.msk.f32.mxu0 %vm29127_vm8, %v35532_v31  ;;  %25556 = vmatprep.subr.mxu1 %v35532_v31 }
 0x27b   :  { %v30088_v0 = vpop.permute.xlu0 %2766 }
 0x27c   :  { %v2768_v50 = vmul.f32 %v30093_v1, %v30088_v0  ;;  %v2769_v43 = vmul.f32 %v30100_v63, %v30088_v0  ;;  %v2770_v55 = vmul.f32 %v30107_v51, %v30088_v0  ;;  %v2771_v27 = vmul.f32 %v30114_v62, %v30088_v0 }
 0x27d   :  { %v2772_v59 = vmul.f32 %v30123_v10, %v30088_v0  ;;  %v2773_v37 = vmul.f32 %v30131_v34, %v30088_v0  ;;  %v2774_v19 = vmul.f32 %v30139_v24, %v30088_v0  ;;  %v2775_v46 = vmul.f32 %v30146_v3, %v30088_v0 }
 0x27e   :  { %v2800_v45 = vsel %vm332_vm0, %v2768_v50, 0.0  ;;  %v2807_v56 = vsel %vm332_vm0, %v2769_v43, 0.0  ;;  %v2814_v9 = vsel %vm332_vm0, %v2770_v55, 0.0  ;;  %v2821_v23 = vsel %vm332_vm0, %v2771_v27, 0.0 }
 0x27f   :  { %25524 = vmatmul.mubr.f32.vlgmr.msra.gmra.mrb[0].mxu1 %v1419_v13  ;;  %v2801_v8 = vrot.slane %v2800_v45, 4  ;;  %v2808_v28 = vrot.slane %v2807_v56, 4  ;;  %v2815_v58 = vrot.slane %v2814_v9, 4  ;;  %v2822_v54 = vrot.slane %v2821_v23, 4 }
 0x280   :  { %25558 = vmatprep.mubr.msk.f32.mxu1 %vm29127_vm8, %v35532_v31  ;;  %v2828_v39 = vsel %vm332_vm0, %v2772_v59, 0.0 }
 0x281   :  { %v2802_v13 = vadd.f32 %v2801_v8, %v2800_v45  ;;  %v2809_v53 = vadd.f32 %v2808_v28, %v2807_v56  ;;  %v2816_v60 = vadd.f32 %v2815_v58, %v2814_v9 }
 0x283   :  { %v2817_v2 = vrot.slane %v2816_v60, 2 }
 0x34a   :  { %v1313_v41 = vpop.f32.mrb[0].mxu0 }
 0x34b   :  { %v28070_v42 = vadd.f32 %v1313_v41, %v814_v47  ;;  %v25483_v40 = vpop.f32.mrb[1].mxu0  ;;  %v2803_v41 = vrot.slane %v2802_v13, 2 }
 0x34c   :  { %v2823_v40 = vadd.f32 %v2822_v54, %v2821_v23 }
 0x34d   :  { %v24294_v48 = vmul.f32 -1.442695, %v28070_v42  ;;  %v2810_v42 = vrot.slane %v2809_v53, 2  ;;  %v2804_v36 = vadd.f32 %v2803_v41, %v2802_v13 }
 0x34f   :  { %28645 = vpow2.f32 %v24294_v48  ;;  %v2829_v48 = vrot.slane %v2828_v39, 4 }
 0x352   :  { %v1807_v49 = vpop.f32.mrb[0].mxu1 }
 0x353   :  { %v28071_v57 = vadd.f32 %v1807_v49, %v814_v47  ;;  %v25525_v61 = vpop.f32.mrb[1].mxu1  ;;  %v2835_v47 = vsel %vm332_vm0, %v2773_v37, 0.0 }
 0x354   :  { %v2836_v49 = vrot.slane %v2835_v47, 4  ;;  %v2849_v61 = vsel %vm332_vm0, %v2775_v46, 0.0 }
 0x355   :  { %v24295_v12 = vmul.f32 -1.442695, %v28071_v57  ;;  %v2842_v57 = vsel %vm332_vm0, %v2774_v19, 0.0 }
 0x357   :  { %28647 = vpow2.f32 %v24295_v12  ;;  %v2811_v12 = vadd.f32 %v2810_v42, %v2809_v53 }
 0x359   :  { %v28646_v5 = vpop.eup %28645  ;;  %v2812_v21 = vrot.slane %v2811_v12, 1 }
 0x35a   :  { %v1817_v17 = vadd.f32 1.0, %v28646_v5  ;;  %v2830_v5 = vadd.f32 %v2829_v48, %v2828_v39 }
 0x35c   :  { %28649 = vrcp.f32 %v1817_v17  ;;  %v2818_v17 = vadd.f32 %v2817_v2, %v2816_v60  ;;  %v30174_v2 = vld [vmem:[%s36178_s4 + $0x40] sm:$0xf] }
 0x35d   :  { %36188 = vst [vmem:[#allocation42_spill] sm:$0xff] %v30174_v2 }
 0x361   :  { %v28648_v20 = vpop.eup %28647 }
 0x362   :  { %v1818_v44 = vadd.f32 1.0, %v28648_v20  ;;  %v2850_v20 = vrot.slane %v2849_v61, 4 }
 0x364   :  { %28651 = vrcp.f32 %v1818_v44  ;;  %v2805_v44 = vrot.slane %v2804_v36, 1 }
 0x366   :  { %v28650_v26 = vpop.eup %28649 }
 0x367   :  { %v1829_v25 = vand.u32 4294901760, %v28650_v26 }
 0x369   :  { %25527 = vmatpush3.msra.mxu0 %v1829_v25  ;;  %v1906_v29 = vsub.f32 %v28650_v26, %v1829_v25 }
 0x36a   :  { %25529 = vmatmul.mubr.f32.vlgmr.msra.gmra.mrb[2].mxu0 %v1898_v15  ;;  %25531 = vmatprep.subr.mxu0 %v35532_v31 }
 0x36b   :  { %v1907_v30 = vand.u32 4294901760, %v1906_v29  ;;  %25533 = vmatprep.mubr.msk.f32.mxu0 %vm29127_vm8, %v35532_v31 }
 0x36d   :  { %v1908_v11 = vsub.f32 %v1906_v29, %v1907_v30 }
 0x36e   :  { %v28652_v35 = vpop.eup %28651 }
 0x36f   :  { %v1909_v4 = vand.u32 4294901760, %v1908_v11  ;;  %v2275_v14 = vand.u32 4294901760, %v28652_v35  ;;  %v2851_v11 = vadd.f32 %v2850_v20, %v2849_v61 }
 0x371   :  { %25532 = vmatpush3.msra.mxu0 %v1909_v4  ;;  %25557 = vmatpush3.msra.mxu1 %v2275_v14  ;;  %v2352_v38 = vsub.f32 %v28652_v35, %v2275_v14  ;;  %v2806_v35 = vadd.f32 %v2805_v44, %v2804_v36  ;;  %v2813_v4 = vadd.f32 %v2812_v21, %v2811_v12  ;;  %v2852_v50 = vrot.slane %v2851_v11, 2  ;;  %v30188_v36 = vld [vmem:[%s36178_s4 + $0x48] sm:$0xf]  ;;  %v30218_v44 = vld [vmem:[%s36178_s4 + $0x54] sm:$0xf] }
 0x372   :  { %25534 = vmatmul.mubr.f32.vlgmr.msra.gmra.mrb[2].mxu0 %v30049_v16  ;;  %25536 = vmatprep.subr.mxu0 %v35532_v31  ;;  %36189 = vst [vmem:[#allocation39_spill] sm:$0xff] %v30188_v36  ;;  %v2786_v12 = vmul.f32 %v30188_v36, %v30088_v0  ;;  %36192 = vst [vmem:[#allocation43_spill] sm:$0xff] %v30218_v44  ;;  %v2789_v21 = vmul.f32 %v30218_v44, %v30088_v0 }
 0x373   :  { %25559 = vmatmul.mubr.f32.vlgmr.msra.gmra.mrb[2].mxu1 %v1898_v15  ;;  %25537 = vmatpush3.msra.mxu0 %v1906_v29  ;;  %v2353_v18 = vand.u32 4294901760, %v2352_v38  ;;  %v2831_v15 = vrot.slane %v2830_v5, 2  ;;  %v3040_v27 = vsel %vm831_vm1, %v2813_v4, %v2806_v35  ;;  %v2853_v59 = vadd.f32 %v2852_v50, %v2851_v11 }
 0x374   :  { %25561 = vmatprep.subr.mxu1 %v35532_v31  ;;  %25538 = vmatprep.mubr.msk.f32.mxu0 %vm29127_vm8, %v35532_v31  ;;  %v2926_v35 = vsel %vm332_vm0, %v2786_v12, 0.0  ;;  %v2947_v50 = vsel %vm332_vm0, %v2789_v21, 0.0 }
 0x375   :  { %25541 = vmatprep.subr.mxu0 %v35532_v31  ;;  %v2354_v33 = vsub.f32 %v2352_v38, %v2353_v18  ;;  %25563 = vmatprep.mubr.msk.f32.mxu1 %vm29127_vm8, %v35532_v31  ;;  %v2854_v23 = vrot.slane %v2853_v59, 1 }
 0x377   :  { %v2355_v32 = vand.u32 4294901760, %v2354_v33  ;;  %v2855_v53 = vadd.f32 %v2854_v23, %v2853_v59 }
 0x379   :  { %25562 = vmatpush3.msra.mxu1 %v2355_v32 }
 0x37a   :  { %25539 = vmatmul.mubr.f32.vlgmr.msra.gmra.mrb[2].mxu0 %v1895_v22  ;;  %25566 = vmatprep.subr.mxu1 %v35532_v31 }
 0x37b   :  { %25542 = vmatpush3.msra.mxu0 %v1829_v25  ;;  %25564 = vmatmul.mubr.f32.vlgmr.msra.gmra.mrb[2].mxu1 %v30049_v16 }
 0x37c   :  { %25567 = vmatpush3.msra.mxu1 %v2352_v38  ;;  %25543 = vmatprep.mubr.msk.f32.mxu0 %vm29127_vm8, %v35532_v31  ;;  %v2832_v38 = vadd.f32 %v2831_v15, %v2830_v5 }
 0x37d   :  { %25546 = vmatprep.subr.mxu0 %v35532_v31  ;;  %25568 = vmatprep.mubr.msk.f32.mxu1 %vm29127_vm8, %v35532_v31 }
 0x37e   :  { %25571 = vmatprep.subr.mxu1 %v35532_v31  ;;  %v2833_v55 = vrot.slane %v2832_v38, 1 }
 0x380   :  { %v2834_v28 = vadd.f32 %v2833_v55, %v2832_v38  ;;  %v2927_v38 = vrot.slane %v2926_v35, 4 }
 0x382   :  { %25544 = vmatmul.mubr.f32.vlgmr.msra.gmra.mrb[2].mxu0 %v1896_v52 }
 0x383   :  { %25547 = vmatpush3.msra.mxu0 %v1907_v30  ;;  %25569 = vmatmul.mubr.f32.vlgmr.msra.gmra.mrb[2].mxu1 %v1895_v22  ;;  %v2837_v22 = vadd.f32 %v2836_v49, %v2835_v47  ;;  %v2784_v49 = vmul.f32 %v30174_v2, %v30088_v0 }
 0x384   :  { %25572 = vmatpush3.msra.mxu1 %v2275_v14  ;;  %25548 = vmatprep.mubr.msk.f32.mxu0 %vm29127_vm8, %v35532_v31 }
 0x385   :  { %25551 = vmatprep.subr.mxu0 %v35532_v31  ;;  %25573 = vmatprep.mubr.msk.f32.mxu1 %vm29127_vm8, %v35532_v31  ;;  %v2838_v29 = vrot.slane %v2837_v22, 2 }
 0x386   :  { %25576 = vmatprep.subr.mxu1 %v35532_v31 }
 0x387   :  { %v2839_v33 = vadd.f32 %v2838_v29, %v2837_v22 }
 0x389   :  { %v2840_v45 = vrot.slane %v2839_v33, 1 }
 0x38a   :  { %25549 = vmatmul.mubr.f32.vlgmr.msra.gmra.mrb[2].mxu0 %v30049_v16 }
 0x38b   :  { %25552 = vmatpush3.msra.mxu0 %v1829_v25  ;;  %25574 = vmatmul.mubr.f32.vlgmr.msra.gmra.mrb[2].mxu1 %v1896_v52  ;;  %v2843_v52 = vrot.slane %v2842_v57, 4  ;;  %v2819_v25 = vrot.slane %v2818_v17, 1  ;;  %v2841_v37 = vadd.f32 %v2840_v45, %v2839_v33  ;;  %v2928_v45 = vadd.f32 %v2927_v38, %v2926_v35 }
 0x38c   :  { %25577 = vmatpush3.msra.mxu1 %v2353_v18  ;;  %25553 = vmatprep.mubr.msk.f32.mxu0 %vm29127_vm8, %v35532_v31 }
 0x38d   :  { %25578 = vmatprep.mubr.msk.f32.mxu1 %vm29127_vm8, %v35532_v31  ;;  %25581 = vmatprep.subr.mxu1 %v35532_v31  ;;  %v2844_v30 = vadd.f32 %v2843_v52, %v2842_v57  ;;  %v2820_v18 = vadd.f32 %v2819_v25, %v2818_v17  ;;  %v30181_v57 = vld [vmem:[%s36178_s4 + $0x44] sm:$0xf]  ;;  %v30202_v17 = vld [vmem:[%s36178_s4 + $0x20] sm:$0xf]  ;;  %v30211_v52 = vld [vmem:[%s36178_s4 + $0x50] sm:$0xf] }
 0x38e   :  { %v2785_v61 = vmul.f32 %v30181_v57, %v30088_v0  ;;  %v30206_v22 = vmul.f32 %v30202_v17, %v30088_v0  ;;  %36191 = vst [vmem:[#allocation41_spill] sm:$0xff] %v30211_v52  ;;  %v2788_v20 = vmul.f32 %v30211_v52, %v30088_v0  ;;  %v30232_v25 = vld [vmem:[%s36178_s4 + $0x5c] sm:$0xf]  ;;  %v2929_v23 = vrot.slane %v2928_v45, 2 }
 0x38f   :  { %v2845_v32 = vrot.slane %v2844_v30, 2  ;;  %v3041_v8 = vsel %vm833_vm2, %v2820_v18, %v3040_v27  ;;  %36194 = vst [vmem:[#allocation45_spill] sm:$0xff] %v30232_v25  ;;  %v2791_v29 = vmul.f32 %v30232_v25, %v30088_v0 }
 0x390   :  { %v2919_v11 = vsel %vm332_vm0, %v2785_v61, 0.0 }
 0x391   :  { %v2846_v56 = vadd.f32 %v2845_v32, %v2844_v30  ;;  %v2912_v30 = vsel %vm332_vm0, %v2784_v49, 0.0  ;;  %v2940_v32 = vsel %vm332_vm0, %v2788_v20, 0.0 }
 0x392   :  { %25554 = vmatmul.mubr.f32.vlgmr.msra.gmra.mrb[2].mxu0 %v30049_v16  ;;  %v2913_v4 = vrot.slane %v2912_v30, 4 }
 0x393   :  { %25579 = vmatmul.mubr.f32.vlgmr.msra.gmra.mrb[2].mxu1 %v30049_v16  ;;  %v2847_v58 = vrot.slane %v2846_v56, 1 }
 0x394   :  { %25582 = vmatpush3.msra.mxu1 %v2275_v14  ;;  %25583 = vmatprep.mubr.msk.f32.mxu1 %vm29127_vm8, %v35532_v31  ;;  %v2914_v55 = vadd.f32 %v2913_v4, %v2912_v30 }
 0x395   :  { %v2848_v13 = vadd.f32 %v2847_v58, %v2846_v56  ;;  %v2941_v56 = vrot.slane %v2940_v32, 4 }
 0x39b   :  { %25584 = vmatmul.mubr.f32.vlgmr.msra.gmra.mrb[2].mxu1 %v30049_v16  ;;  %v2824_v16 = vrot.slane %v2823_v40, 2 }
 0x39d   :  { %v2825_v26 = vadd.f32 %v2824_v16, %v2823_v40  ;;  %v30195_v16 = vld [vmem:[%s36178_s4 + $0x4c] sm:$0xf] }
 0x39e   :  { %36190 = vst [vmem:[#allocation40_spill] sm:$0xff] %v30195_v16  ;;  %v2787_v5 = vmul.f32 %v30195_v16, %v30088_v0 }
 0x39f   :  { %v2826_v14 = vrot.slane %v2825_v26, 1 }
 0x3a0   :  { %v2933_v18 = vsel %vm332_vm0, %v2787_v5, 0.0 }
 0x3a1   :  { %v2827_v43 = vadd.f32 %v2826_v14, %v2825_v26  ;;  %v30225_v26 = vld [vmem:[%s36178_s4 + $0x58] sm:$0xf]  ;;  %v2920_v14 = vrot.slane %v2919_v11, 4  ;;  %v2934_v33 = vrot.slane %v2933_v18, 4 }
 0x3a2   :  { %36193 = vst [vmem:[#allocation44_spill] sm:$0xff] %v30225_v26  ;;  %v2790_v15 = vmul.f32 %v30225_v26, %v30088_v0 }
 0x3a3   :  { %v3042_v9 = vsel %vm835_vm3, %v2827_v43, %v3041_v8  ;;  %v2921_v27 = vadd.f32 %v2920_v14, %v2919_v11  ;;  %v2935_v59 = vadd.f32 %v2934_v33, %v2933_v18  ;;  %v2948_v8 = vrot.slane %v2947_v50, 4 }
 0x3a4   :  { %v3043_v19 = vsel %vm837_vm4, %v2834_v28, %v3042_v9  ;;  %v2954_v43 = vsel %vm332_vm0, %v2790_v15, 0.0  ;;  %v2961_v9 = vsel %vm332_vm0, %v2791_v29, 0.0 }
 0x3a5   :  { %v3044_v54 = vsel %vm839_vm5, %v2841_v37, %v3043_v19  ;;  %v2955_v28 = vrot.slane %v2954_v43, 4  ;;  %v2915_v37 = vrot.slane %v2914_v55, 2  ;;  %v2922_v58 = vrot.slane %v2921_v27, 2 }
 0x3a6   :  { %v3045_v46 = vsel %vm841_vm6, %v2848_v13, %v3044_v54  ;;  %v2942_v19 = vadd.f32 %v2941_v56, %v2940_v32  ;;  %v2936_v13 = vrot.slane %v2935_v59, 2 }
 0x3a7   :  { %v3046_v60 = vsel %vm843_vm7, %v2855_v53, %v3045_v46  ;;  %v2949_v53 = vadd.f32 %v2948_v8, %v2947_v50  ;;  %v2956_v54 = vadd.f32 %v2955_v28, %v2954_v43  ;;  %v2962_v46 = vrot.slane %v2961_v9, 4 }
 0x3a8   :  { %v3054_v39 = vsel %vm1824_vm10, %v3046_v60, 0  ;;  %v2916_v60 = vadd.f32 %v2915_v37, %v2914_v55  ;;  %v2937_v49 = vadd.f32 %v2936_v13, %v2935_v59  ;;  %v2856_v13 = vsel %vm332_vm0, %v30206_v22, 0.0 }
 0x3a9   :  { %v30162_v47 = vand.u32 4294901760, %v3054_v39  ;;  %v2950_v61 = vrot.slane %v2949_v53, 2  ;;  %v2957_v12 = vrot.slane %v2956_v54, 2  ;;  %v2963_v5 = vadd.f32 %v2962_v46, %v2961_v9  ;;  %v30267_v46 = vld [vmem:[%s36178_s4 + $0x2c] sm:$0xf] }
 0x3aa   :  { %v2917_v20 = vrot.slane %v2916_v60, 1  ;;  %v2938_v30 = vrot.slane %v2937_v49, 1 }
 0x3ab   :  { %v30165_v41 = vsub.f32 %v3054_v39, %v30162_v47  ;;  %v2923_v39 = vadd.f32 %v2922_v58, %v2921_v27  ;;  %v2951_v11 = vadd.f32 %v2950_v61, %v2949_v53  ;;  %v2958_v35 = vadd.f32 %v2957_v12, %v2956_v54  ;;  %v30247_v27 = vld [vmem:[%s36178_s4 + $0x24] sm:$0xf]  ;;  %v30256_v58 = vld [vmem:[%s36178_s4 + $0x28] sm:$0xf] }
 0x3ac   :  { %v2964_v4 = vrot.slane %v2963_v5, 2  ;;  %v2918_v14 = vadd.f32 %v2917_v20, %v2916_v60  ;;  %v2939_v32 = vadd.f32 %v2938_v30, %v2937_v49  ;;  %v2779_v60 = vmul.f32 %v30267_v46, %v30088_v0 }
 0x3ad   :  { %v35535_v42 = vand.u32 4294901760, %v30165_v41  ;;  %v2924_v21 = vrot.slane %v2923_v39, 1  ;;  %v2952_v50 = vrot.slane %v2951_v11, 1  ;;  %v2959_v43 = vrot.slane %v2958_v35, 1 }
 0x3ae   :  { %v2965_v55 = vadd.f32 %v2964_v4, %v2963_v5  ;;  %v2857_v61 = vrot.slane %v2856_v13, 4 }
 0x3af   :  { %v3127_v40 = vsub.f32 %v30165_v41, %v35535_v42  ;;  %v2925_v38 = vadd.f32 %v2924_v21, %v2923_v39  ;;  %v2953_v8 = vadd.f32 %v2952_v50, %v2951_v11  ;;  %v2960_v28 = vadd.f32 %v2959_v43, %v2958_v35  ;;  %v30274_v39 = vld [vmem:[%s36178_s4 + $0x30] sm:$0xf]  ;;  %v30291_v35 = vld [vmem:[%s36178_s4 + $0x34] sm:$0xf] }
 0x3b0   :  { %v2966_v9 = vrot.slane %v2965_v55, 1  ;;  %v2781_v4 = vmul.f32 %v30291_v35, %v30088_v0  ;;  %v30358_v42 = vld [vmem:[%s36178_s4 + $0x70] sm:$0xf] }
 0x3b1   :  { %v3128_v48 = vand.u32 4294901760, %v3127_v40  ;;  %v2930_v40 = vadd.f32 %v2929_v23, %v2928_v45  ;;  %v2777_v45 = vmul.f32 %v30247_v27, %v30088_v0  ;;  %v3563_v59 = vsel %vm831_vm1, %v2925_v38, %v2918_v14  ;;  %36199 = vst [vmem:[#allocation50_spill] sm:$0xff] %v30358_v42 }
 0x3b2   :  { %v2778_v23 = vmul.f32 %v30256_v58, %v30088_v0  ;;  %v2967_v53 = vadd.f32 %v2966_v9, %v2965_v55  ;;  %v2858_v14 = vadd.f32 %v2857_v61, %v2856_v13  ;;  %v2796_v7 = vmul.f32 %v30358_v42, %v30088_v0 }
 0x3b3   :  { %25588 = vmatprep.mubr.f32.mxu0 %v3128_v48  ;;  %v2943_v48 = vrot.slane %v2942_v19, 2  ;;  %v2931_v15 = vrot.slane %v2930_v40, 1 }
 0x3b4   :  { %v2870_v12 = vsel %vm332_vm0, %v2778_v23, 0.0  ;;  %v2859_v55 = vrot.slane %v2858_v14, 2 }
 0x3b5   :  { %v2944_v29 = vadd.f32 %v2943_v48, %v2942_v19  ;;  %v2932_v18 = vadd.f32 %v2931_v15, %v2930_v40  ;;  %v2780_v40 = vmul.f32 %v30274_v39, %v30088_v0  ;;  %v2863_v48 = vsel %vm332_vm0, %v2777_v45, 0.0 }
 0x3b6   :  { %v2864_v21 = vrot.slane %v2863_v48, 4  ;;  %v2877_v15 = vsel %vm332_vm0, %v2779_v60, 0.0  ;;  %v2871_v11 = vrot.slane %v2870_v12, 4  ;;  %v2891_v45 = vsel %vm332_vm0, %v2781_v4, 0.0 }
 0x3b7   :  { %v2945_v33 = vrot.slane %v2944_v29, 1  ;;  %v3564_v37 = vsel %vm833_vm2, %v2932_v18, %v3563_v59  ;;  %v2878_v18 = vrot.slane %v2877_v15, 4 }
 0x3b8   :  { %v3565_v19 = vsel %vm835_vm3, %v2939_v32, %v3564_v37  ;;  %v2865_v32 = vadd.f32 %v2864_v21, %v2863_v48  ;;  %v2872_v43 = vadd.f32 %v2871_v11, %v2870_v12  ;;  %v30306_v37 = vld [vmem:[%s36178_s4 + $0x60] sm:$0xf] }
 0x3b9   :  { %v2946_v56 = vadd.f32 %v2945_v33, %v2944_v29  ;;  %v2884_v29 = vsel %vm332_vm0, %v2780_v40, 0.0  ;;  %v2879_v59 = vadd.f32 %v2878_v18, %v2877_v15  ;;  %36195 = vst [vmem:[#allocation46_spill] sm:$0xff] %v30306_v37  ;;  %v2792_v23 = vmul.f32 %v30306_v37, %v30088_v0 }
 0x3ba   :  { %v2885_v33 = vrot.slane %v2884_v29, 4  ;;  %v2873_v60 = vrot.slane %v2872_v43, 2  ;;  %v2892_v40 = vrot.slane %v2891_v45, 4 }
 0x3bb   :  { %v3566_v54 = vsel %vm837_vm4, %v2946_v56, %v3565_v19  ;;  %v30313_v19 = vld [vmem:[%s36178_s4 + $0x64] sm:$0xf]  ;;  %v2880_v48 = vrot.slane %v2879_v59, 2 }
 0x3bc   :  { %v3567_v22 = vsel %vm839_vm5, %v2953_v8, %v3566_v54  ;;  %v2886_v8 = vadd.f32 %v2885_v33, %v2884_v29  ;;  %36196 = vst [vmem:[#allocation47_spill] sm:$0xff] %v30313_v19  ;;  %v2793_v13 = vmul.f32 %v30313_v19, %v30088_v0  ;;  %v2874_v29 = vadd.f32 %v2873_v60, %v2872_v43  ;;  %v30341_v33 = vld [vmem:[%s36178_s4 + $0x3c] sm:$0xf]  ;;  %v30348_v43 = vld [vmem:[%s36178_s4 + $0x6c] sm:$0xf] }
 0x3bd   :  { %v3568_v49 = vsel %vm841_vm6, %v2960_v28, %v3567_v22  ;;  %v2866_v28 = vrot.slane %v2865_v32, 2  ;;  %v2860_v22 = vadd.f32 %v2859_v55, %v2858_v14  ;;  %v2893_v11 = vadd.f32 %v2892_v40, %v2891_v45  ;;  %36198 = vst [vmem:[#allocation49_spill] sm:$0xff] %v30348_v43 }
 0x3be   :  { %v3569_v5 = vsel %vm843_vm7, %v2967_v53, %v3568_v49  ;;  %v30320_v53 = vld [vmem:[%s36178_s4 + $0x38] sm:$0xf]  ;;  %v30327_v49 = vld [vmem:[%s36178_s4 + $0x68] sm:$0xf]  ;;  %v2975_v21 = vsel %vm332_vm0, %v2793_v13, 0.0  ;;  %v2795_v45 = vmul.f32 %v30348_v43, %v30088_v0  ;;  %v2875_v31 = vrot.slane %v2874_v29, 1 }
 0x3bf   :  { %v3577_v20 = vsel %vm1824_vm10, %v3569_v5, 0  ;;  %v2782_v54 = vmul.f32 %v30320_v53, %v30088_v0  ;;  %36197 = vst [vmem:[#allocation48_spill] sm:$0xff] %v30327_v49  ;;  %v2794_v61 = vmul.f32 %v30327_v49, %v30088_v0  ;;  %v2867_v12 = vadd.f32 %v2866_v28, %v2865_v32 }
 0x3c0   :  { %v30286_v30 = vand.u32 4294901760, %v3577_v20  ;;  %v2887_v5 = vrot.slane %v2886_v8, 2  ;;  %v2783_v32 = vmul.f32 %v30341_v33, %v30088_v0  ;;  %v2861_v55 = vrot.slane %v2860_v22, 1 }
 0x3c1   :  { %v2898_v4 = vsel %vm332_vm0, %v2782_v54, 0.0  ;;  %v2868_v13 = vrot.slane %v2867_v12, 1  ;;  %v2881_v54 = vadd.f32 %v2880_v48, %v2879_v59  ;;  %v30366_v59 = vld [vmem:[%s36178_s4 + $0x74] sm:$0xf]  ;;  %v2996_v19 = vsel %vm332_vm0, %v2796_v7, 0.0 }
 0x3c2   :  { %v30296_v38 = vsub.f32 %v3577_v20, %v30286_v30  ;;  %v2968_v20 = vsel %vm332_vm0, %v2792_v23, 0.0  ;;  %v2982_v23 = vsel %vm332_vm0, %v2794_v61, 0.0  ;;  %v30353_v60 = vadd.f32 %v2887_v5, %v2886_v8  ;;  %36200 = vst [vmem:[#allocation51_spill] sm:$0xff] %v30366_v59 }
 0x3c3   :  { %v2969_v28 = vrot.slane %v2968_v20, 4  ;;  %v2899_v40 = vrot.slane %v2898_v4, 4  ;;  %v2905_v6 = vsel %vm332_vm0, %v2783_v32, 0.0  ;;  %v2797_v8 = vmul.f32 %v30366_v59, %v30088_v0 }
 0x3c4   :  { %v35534_v50 = vand.u32 4294901760, %v30296_v38  ;;  %v2983_v48 = vrot.slane %v2982_v23, 4  ;;  %v2989_v61 = vsel %vm332_vm0, %v2795_v45, 0.0  ;;  %v2869_v26 = vadd.f32 %v2868_v13, %v2867_v12  ;;  %v30378_v45 = vld [vmem:[%s36178_s4 + $0x78] sm:$0xf] }
 0x3c5   :  { %v2882_v43 = vrot.slane %v2881_v54, 1  ;;  %v2889_v42 = vrot.slane %v30353_v60, 1  ;;  %v2900_v32 = vadd.f32 %v2899_v40, %v2898_v4  ;;  %v2906_v49 = vrot.slane %v2905_v6, 4  ;;  %36201 = vst [vmem:[#allocation52_spill] sm:$0xff] %v30378_v45 }
 0x3c6   :  { %v3650_v56 = vsub.f32 %v30296_v38, %v35534_v50  ;;  %v2894_v50 = vrot.slane %v2893_v11, 2  ;;  %v2990_v52 = vrot.slane %v2989_v61, 4  ;;  %v2876_v16 = vadd.f32 %v2875_v31, %v2874_v29 }
 0x3c7   :  { %v2984_v12 = vadd.f32 %v2983_v48, %v2982_v23  ;;  %v2997_v13 = vrot.slane %v2996_v19, 4  ;;  %v30389_v23 = vld [vmem:[%s36178_s4 + $0x7c] sm:$0xf] }
 0x3c8   :  { %v3651_v9 = vand.u32 4294901760, %v3650_v56  ;;  %v2895_v29 = vadd.f32 %v2894_v50, %v2893_v11  ;;  %v2991_v59 = vadd.f32 %v2990_v52, %v2989_v61  ;;  %36202 = vst [vmem:[#allocation53_spill] sm:$0xff] %v30389_v23 }
 0x3c9   :  { %v2985_v48 = vrot.slane %v2984_v12, 2 }
 0x3ca   :  { %25618 = vmatprep.mubr.f32.mxu1 %v3651_v9  ;;  %v2976_v9 = vrot.slane %v2975_v21, 4 }
 0x3cb   :  { %v2986_v2 = vadd.f32 %v2985_v48, %v2984_v12 }
 0x3cc   :  { %v2977_v25 = vadd.f32 %v2976_v9, %v2975_v21 }
 0x3ce   :  { %v2978_v7 = vrot.slane %v2977_v25, 2 }
 0x3d0   :  { %v2979_v37 = vadd.f32 %v2978_v7, %v2977_v25 }
 0x465   :  { %v30333_v15 = vpop.f32.mrb[2].mxu0 }
 0x466   :  { %v2720_v14 = vsel %vm1824_vm10, %v30333_v15, -inf  ;;  %v25555_v18 = vpop.f32.mrb[3].mxu0 }
 0x467   :  { %v2721_v56 = vrot.slane %v2720_v14, 4 }
 0x469   :  { %v2722_v18 = vmax.f32 %v2720_v14, %v2721_v56  ;;  %v2862_v14 = vadd.f32 %v2861_v55, %v2860_v22  ;;  %v2970_v56 = vadd.f32 %v2969_v28, %v2968_v20  ;;  %v2798_v22 = vmul.f32 %v30378_v45, %v30088_v0 }
 0x46a   :  { %v3003_v20 = vsel %vm332_vm0, %v2797_v8, 0.0  ;;  %v2901_v28 = vrot.slane %v2900_v32, 2  ;;  %v2799_v8 = vmul.f32 %v30389_v23, %v30088_v0 }
 0x46b   :  { %v2723_v5 = vrot.slane %v2722_v18, 2  ;;  %v2971_v55 = vrot.slane %v2970_v56, 2 }
 0x46c   :  { %v3017_v23 = vsel %vm332_vm0, %v2799_v8, 0.0 }
 0x46d   :  { %v2724_v44 = vmax.f32 %v2722_v18, %v2723_v5  ;;  %v2907_v18 = vadd.f32 %v2906_v49, %v2905_v6  ;;  %v3047_v5 = vsel %vm831_vm1, %v2869_v26, %v2862_v14  ;;  %v2972_v11 = vadd.f32 %v2971_v55, %v2970_v56 }
 0x46e   :  { %v30373_v36 = vpop.f32.mrb[2].mxu1  ;;  %v3010_v6 = vsel %vm332_vm0, %v2798_v22, 0.0  ;;  %v2902_v26 = vadd.f32 %v2901_v28, %v2900_v32  ;;  %v2998_v49 = vadd.f32 %v2997_v13, %v2996_v19  ;;  %v2980_v56 = vrot.slane %v2979_v37, 1 }
 0x46f   :  { %v2725_v21 = vrot.slane %v2724_v44, 1  ;;  %v2727_v4 = vsel %vm1824_vm10, %v30373_v36, -inf  ;;  %v25585_v31 = vpop.f32.mrb[3].mxu1  ;;  %v2908_v14 = vrot.slane %v2907_v18, 2  ;;  %v3011_v0 = vrot.slane %v3010_v6, 4 }
 0x470   :  { %v2728_v9 = vrot.slane %v2727_v4, 4  ;;  %v3004_v31 = vrot.slane %v3003_v20, 4  ;;  %v2896_v55 = vrot.slane %v2895_v29, 1  ;;  %v3018_v7 = vrot.slane %v3017_v23, 4 }
 0x471   :  { %v2726_v40 = vmax.f32 %v2724_v44, %v2725_v21  ;;  %v2883_v44 = vadd.f32 %v2882_v43, %v2881_v54  ;;  %v3048_v21 = vsel %vm833_vm2, %v2876_v16, %v3047_v5  ;;  %v2999_v43 = vrot.slane %v2998_v49, 2 }
 0x472   :  { %v2729_v45 = vmax.f32 %v2727_v4, %v2728_v9  ;;  %v2992_v4 = vrot.slane %v2991_v59, 2  ;;  %v3005_v25 = vadd.f32 %v3004_v31, %v3003_v20  ;;  %v2890_v54 = vadd.f32 %v2889_v42, %v30353_v60 }
 0x473   :  { %v2734_v50 = vsub.f32 %v30333_v15, %v2726_v40  ;;  %v2973_v15 = vrot.slane %v2972_v11, 1  ;;  %v3049_v19 = vsel %vm835_vm3, %v2883_v44, %v3048_v21  ;;  %v2909_v16 = vadd.f32 %v2908_v14, %v2907_v18 }
 0x474   :  { %v2730_v52 = vrot.slane %v2729_v45, 2  ;;  %v2993_v32 = vadd.f32 %v2992_v4, %v2991_v59  ;;  %v3012_v12 = vadd.f32 %v3011_v0, %v3010_v6  ;;  %v2903_v13 = vrot.slane %v2902_v26, 1 }
 0x475   :  { %v2736_v61 = vmul.f32 1.442695, %v2734_v50  ;;  %v2974_v40 = vadd.f32 %v2973_v15, %v2972_v11  ;;  %v2981_v5 = vadd.f32 %v2980_v56, %v2979_v37  ;;  %v3006_v8 = vrot.slane %v3005_v25, 2 }
 0x476   :  { %v2731_v9 = vmax.f32 %v2729_v45, %v2730_v52  ;;  %v2987_v45 = vrot.slane %v2986_v2, 1  ;;  %v2897_v48 = vadd.f32 %v2896_v55, %v2895_v29  ;;  %v3000_v31 = vadd.f32 %v2999_v43, %v2998_v49 }
 0x477   :  { %28653 = vpow2.f32 %v2736_v61  ;;  %v3050_v50 = vsel %vm837_vm4, %v2890_v54, %v3049_v19  ;;  %v2994_v52 = vrot.slane %v2993_v32, 1  ;;  %v3019_v42 = vadd.f32 %v3018_v7, %v3017_v23 }
 0x478   :  { %v2732_v22 = vrot.slane %v2731_v9, 1  ;;  %v2910_v60 = vrot.slane %v2909_v16, 1  ;;  %v2988_v59 = vadd.f32 %v2987_v45, %v2986_v2  ;;  %v3013_v61 = vrot.slane %v3012_v12, 2 }
 0x479   :  { %v2904_v18 = vadd.f32 %v2903_v13, %v2902_v26  ;;  %v3007_v14 = vadd.f32 %v3006_v8, %v3005_v25  ;;  %v3570_v6 = vsel %vm831_vm1, %v2981_v5, %v2974_v40  ;;  %v3051_v11 = vsel %vm839_vm5, %v2897_v48, %v3050_v50 }
 0x47a   :  { %v2733_v28 = vmax.f32 %v2731_v9, %v2732_v22  ;;  %v3001_v37 = vrot.slane %v3000_v31, 1  ;;  %v2995_v21 = vadd.f32 %v2994_v52, %v2993_v32  ;;  %v2911_v4 = vadd.f32 %v2910_v60, %v2909_v16 }
 0x47b   :  { %v3014_v9 = vadd.f32 %v3013_v61, %v3012_v12  ;;  %v3571_v23 = vsel %vm833_vm2, %v2988_v59, %v3570_v6  ;;  %v3052_v2 = vsel %vm841_vm6, %v2904_v18, %v3051_v11  ;;  %v3008_v26 = vrot.slane %v3007_v14, 1 }
 0x47c   :  { %v2735_v20 = vsub.f32 %v30373_v36, %v2733_v28  ;;  %v3020_v36 = vrot.slane %v3019_v42, 2  ;;  %v3002_v15 = vadd.f32 %v3001_v37, %v3000_v31  ;;  %v3572_v55 = vsel %vm835_vm3, %v2995_v21, %v3571_v23 }
 0x47d   :  { %v3053_v22 = vsel %vm843_vm7, %v2911_v4, %v3052_v2  ;;  %v3015_v43 = vrot.slane %v3014_v9, 1  ;;  %v3009_v19 = vadd.f32 %v3008_v26, %v3007_v14 }
 0x47e   :  { %v2738_v44 = vmul.f32 1.442695, %v2735_v20  ;;  %v3021_v25 = vadd.f32 %v3020_v36, %v3019_v42  ;;  %v3573_v32 = vsel %vm837_vm4, %v3002_v15, %v3572_v55  ;;  %v3056_v16 = vsel %vm1824_vm10, %v3053_v22, 0  ;;  %v24297_v36 = vld [vmem:[#allocation11] ss:$0 sm:$0xff] }
 0x47f   :  { %v3016_v12 = vadd.f32 %v3015_v43, %v3014_v9  ;;  %v3574_v5 = vsel %vm839_vm5, %v3009_v19, %v3573_v32  ;;  %v30412_v8 = vand.u32 4294901760, %v3056_v16 }
 0x480   :  { %28655 = vpow2.f32 %v2738_v44  ;;  %v3022_v28 = vrot.slane %v3021_v25, 1 }
 0x481   :  { %v28654_v29 = vpop.eup %28653  ;;  %v3575_v52 = vsel %vm841_vm6, %v3016_v12, %v3574_v5  ;;  %v3135_v42 = vsub.f32 %v3056_v16, %v30412_v8  ;;  %v36203_v12 = vand.u32 4294901760, %v30165_v41 }
 0x482   :  { %v2740_v49 = vsel %vm1824_vm10, %v28654_v29, 0.0  ;;  %v3023_v31 = vadd.f32 %v3022_v28, %v3021_v25 }
 0x483   :  { %v2741_v0 = vrot.slane %v2740_v49, 4  ;;  %v3136_v61 = vand.u32 4294901760, %v3135_v42 }
 0x484   :  { %v3576_v44 = vsel %vm843_vm7, %v3023_v31, %v3575_v52 }
 0x485   :  { %v2742_v56 = vadd.f32 %v2741_v0, %v2740_v49  ;;  %v3579_v14 = vsel %vm1824_vm10, %v3576_v44, 0  ;;  %v3137_v37 = vsub.f32 %v3135_v42, %v3136_v61 }
 0x486   :  { %v30418_v11 = vand.u32 4294901760, %v3579_v14 }
 0x487   :  { %v2743_v54 = vrot.slane %v2742_v56, 2  ;;  %v3138_v0 = vand.u32 4294901760, %v3137_v37 }
 0x488   :  { %v3658_v4 = vsub.f32 %v3579_v14, %v30418_v11 }
 0x489   :  { %v2744_v7 = vadd.f32 %v2743_v54, %v2742_v56 }
 0x48a   :  { %v28656_v45 = vpop.eup %28655  ;;  %v3659_v15 = vand.u32 4294901760, %v3658_v4 }
 0x48b   :  { %v2745_v13 = vrot.slane %v2744_v7, 1  ;;  %v2747_v40 = vsel %vm1824_vm10, %v28656_v45, 0.0 }
 0x48c   :  { %v2748_v48 = vrot.slane %v2747_v40, 4 }
 0x48d   :  { %v2746_v20 = vadd.f32 %v2745_v13, %v2744_v7  ;;  %v36204_v13 = vand.u32 4294901760, %v30296_v38 }
 0x48e   :  { %v2749_v50 = vadd.f32 %v2748_v48, %v2747_v40 }
 0x48f   :  { %28657 = vrcp.f32 %v2746_v20 }
 0x490   :  { %v2750_v60 = vrot.slane %v2749_v50, 2 }
 0x492   :  { %v2751_v59 = vadd.f32 %v2750_v60, %v2749_v50 }
 0x494   :  { %v2752_v18 = vrot.slane %v2751_v59, 1 }
 0x496   :  { %v2753_v6 = vadd.f32 %v2752_v18, %v2751_v59 }
 0x498   :  { %28659 = vrcp.f32 %v2753_v6 }
 0x499   :  { %v28658_v21 = vpop.eup %28657 }
 0x49a   :  { %v2755_v49 = vmul.f32 %v28658_v21, %v28654_v29  ;;  %v3660_v29 = vsub.f32 %v3658_v4, %v3659_v15 }
 0x49c   :  { %v3059_v9 = vand.u32 4294901760, %v2755_v49  ;;  %v4076_v23 = vmul.f32 %v24297_v36, %v2755_v49  ;;  %v3661_v32 = vand.u32 4294901760, %v3660_v29 }
 0x49e   :  { %25586 = vmatprep.subr.mxu0 %v3059_v9  ;;  %v4078_v2 = vsel %vm1824_vm10, %v4076_v23, 0.0  ;;  %v3146_v26 = vsub.f32 %v2755_v49, %v3059_v9 }
 0x49f   :  { %4079 = vadd.xlane.f32.xlu1 %v4078_v2  ;;  %25587 = vmatpush3.msra.mxu0 %v3059_v9 }
 0x4a0   :  { %25589 = vmatmul.mubr.f32.vlgmr.msra.gmra.mrb[4].mxu0 %v3138_v0  ;;  %v3147_v56 = vand.u32 4294901760, %v3146_v26 }
 0x4a1   :  { %25593 = vmatprep.mubr.f32.mxu0 %v30162_v47 }
 0x4a2   :  { %v28660_v25 = vpop.eup %28659  ;;  %v3148_v55 = vsub.f32 %v3146_v26, %v3147_v56 }
 0x4a3   :  { %v2757_v22 = vmul.f32 %v28660_v25, %v28656_v45 }
 0x4a4   :  { %v3149_v43 = vand.u32 4294901760, %v3148_v55 }
 0x4a5   :  { %v3582_v54 = vand.u32 4294901760, %v2757_v22  ;;  %v30423_v19 = vmul.f32 %v24297_v36, %v2757_v22 }
 0x4a6   :  { %25591 = vmatprep.subr.mxu0 %v3149_v43 }
 0x4a7   :  { %25592 = vmatpush3.msra.mxu0 %v3149_v43  ;;  %25616 = vmatprep.subr.mxu1 %v3582_v54  ;;  %v3669_v7 = vsub.f32 %v2757_v22, %v3582_v54 }
 0x4a8   :  { %25594 = vmatmul.mubr.f32.vlgmr.msra.gmra.mrb[4].mxu0 %v30412_v8  ;;  %25596 = vmatprep.subr.mxu0 %v3146_v26 }
 0x4a9   :  { %25597 = vmatpush3.msra.mxu0 %v3146_v26  ;;  %25598 = vmatprep.mubr.f32.mxu0 %v30165_v41  ;;  %v3670_v16 = vand.u32 4294901760, %v3669_v7 }
 0x4aa   :  { %25601 = vmatprep.subr.mxu0 %v3059_v9  ;;  %25617 = vmatpush3.msra.mxu1 %v3582_v54 }
 0x4ab   :  { %25619 = vmatmul.mubr.f32.vlgmr.msra.gmra.mrb[4].mxu1 %v3661_v32  ;;  %v3671_v28 = vsub.f32 %v3669_v7, %v3670_v16 }
 0x4ac   :  { %25623 = vmatprep.mubr.f32.mxu1 %v30286_v30 }
 0x4ad   :  { %v3672_v45 = vand.u32 4294901760, %v3671_v28 }
 0x4af   :  { %25621 = vmatprep.subr.mxu1 %v3672_v45 }
 0x4b0   :  { %25599 = vmatmul.mubr.f32.vlgmr.msra.gmra.mrb[4].mxu0 %v3135_v42  ;;  %25622 = vmatpush3.msra.mxu1 %v3672_v45 }
 0x4b1   :  { %25602 = vmatpush3.msra.mxu0 %v3059_v9  ;;  %25603 = vmatprep.mubr.f32.mxu0 %v36203_v12 }
 0x4b2   :  { %25606 = vmatprep.subr.mxu0 %v3147_v56  ;;  %25626 = vmatprep.subr.mxu1 %v3669_v7 }
 0x4b3   :  { %25624 = vmatmul.mubr.f32.vlgmr.msra.gmra.mrb[4].mxu1 %v30418_v11 }
 0x4b4   :  { %25627 = vmatpush3.msra.mxu1 %v3669_v7  ;;  %25628 = vmatprep.mubr.f32.mxu1 %v30296_v38  ;;  %v36205_v38 = vld [vmem:[#allocation36_spill] sm:$0xff] }
 0x4b5   :  { %25631 = vmatprep.subr.mxu1 %v3582_v54 }
 0x4b8   :  { %25604 = vmatmul.mubr.f32.vlgmr.msra.gmra.mrb[4].mxu0 %v3136_v61 }
 0x4b9   :  { %25607 = vmatpush3.msra.mxu0 %v3147_v56  ;;  %25608 = vmatprep.mubr.f32.mxu0 %v30162_v47 }
 0x4ba   :  { %25611 = vmatprep.subr.mxu0 %v3059_v9 }
 0x4bb   :  { %25629 = vmatmul.mubr.f32.vlgmr.msra.gmra.mrb[4].mxu1 %v3658_v4 }
 0x4bc   :  { %25632 = vmatpush3.msra.mxu1 %v3582_v54  ;;  %25633 = vmatprep.mubr.f32.mxu1 %v36204_v13 }
 0x4bd   :  { %25636 = vmatprep.subr.mxu1 %v3670_v16 }
 0x4c0   :  { %25609 = vmatmul.mubr.f32.vlgmr.msra.gmra.mrb[4].mxu0 %v30412_v8 }
 0x4c1   :  { %25612 = vmatpush3.msra.mxu0 %v3059_v9  ;;  %25613 = vmatprep.mubr.f32.mxu0 %v30162_v47 }
 0x4c3   :  { %25634 = vmatmul.mubr.f32.vlgmr.msra.gmra.mrb[4].mxu1 %v3659_v15 }
 0x4c4   :  { %25637 = vmatpush3.msra.mxu1 %v3670_v16  ;;  %25638 = vmatprep.mubr.f32.mxu1 %v30286_v30 }
 0x4c5   :  { %25641 = vmatprep.subr.mxu1 %v3582_v54 }
 0x4c8   :  { %25614 = vmatmul.mubr.f32.vlgmr.msra.gmra.mrb[4].mxu0 %v30412_v8 }
 0x4cb   :  { %25639 = vmatmul.mubr.f32.vlgmr.msra.gmra.mrb[4].mxu1 %v30418_v11 }
 0x4cc   :  { %25642 = vmatpush3.msra.mxu1 %v3582_v54  ;;  %25643 = vmatprep.mubr.f32.mxu1 %v30286_v30 }
 0x4d3   :  { %25644 = vmatmul.mubr.f32.vlgmr.msra.gmra.mrb[4].mxu1 %v30418_v11 }
 0x52c   :  { %v4080_v41 = vpop.xlane.xlu1 %4079 }
 0x52d   :  { %v4091_v40 = vrot.slane %v4080_v41, %v36205_v38 }
 0x52f   :  { %v4103_v5 = vmul.f32 %v30100_v63, %v4091_v40  ;;  %v4102_v47 = vmul.f32 %v30093_v1, %v4091_v40  ;;  %v4110_v8 = vmul.f32 %v30202_v17, %v4091_v40  ;;  %v4104_v31 = vmul.f32 %v30107_v51, %v4091_v40 }
 0x530   :  { %v4105_v52 = vmul.f32 %v30114_v62, %v4091_v40  ;;  %v4111_v63 = vmul.f32 %v30247_v27, %v4091_v40  ;;  %v4106_v17 = vmul.f32 %v30123_v10, %v4091_v40  ;;  %v4112_v51 = vmul.f32 %v30256_v58, %v4091_v40 }
 0x531   :  { %v4137_v48 = vsel %vm332_vm0, %v4103_v5, 0.0  ;;  %v4134_v20 = vsel %vm332_vm0, %v4102_v47, 0.0  ;;  %v4158_v30 = vsel %vm332_vm0, %v4110_v8, 0.0  ;;  %v4140_v50 = vsel %vm332_vm0, %v4104_v31, 0.0 }
 0x532   :  { %4138 = vadd.xlane.f32.xlu1 %v4137_v48  ;;  %4135 = vadd.xlane.f32.xlu0 %v4134_v20  ;;  %v4143_v1 = vsel %vm332_vm0, %v4105_v52, 0.0  ;;  %v4161_v42 = vsel %vm332_vm0, %v4111_v63, 0.0  ;;  %v4146_v60 = vsel %vm332_vm0, %v4106_v17, 0.0  ;;  %v4164_v44 = vsel %vm332_vm0, %v4112_v51, 0.0 }
 0x533   :  { %v4107_v62 = vmul.f32 %v30131_v34, %v4091_v40  ;;  %v4113_v27 = vmul.f32 %v30267_v46, %v4091_v40  ;;  %v4108_v10 = vmul.f32 %v30139_v24, %v4091_v40  ;;  %v4114_v58 = vmul.f32 %v30274_v39, %v4091_v40 }
 0x534   :  { %v4109_v34 = vmul.f32 %v30146_v3, %v4091_v40  ;;  %v4115_v46 = vmul.f32 %v30291_v35, %v4091_v40  ;;  %v4117_v24 = vmul.f32 %v30341_v33, %v4091_v40  ;;  %v4116_v39 = vmul.f32 %v30320_v53, %v4091_v40  ;;  %v2759_v35 = vld [vmem:[#allocation13] sm:$0xf] }
 0x535   :  { %v4149_v59 = vsel %vm332_vm0, %v4107_v62, 0.0  ;;  %v4167_v61 = vsel %vm332_vm0, %v4113_v27, 0.0  ;;  %v4152_v18 = vsel %vm332_vm0, %v4108_v10, 0.0  ;;  %v4170_v14 = vsel %vm332_vm0, %v4114_v58, 0.0 }
 0x536   :  { %4159 = vadd.xlane.f32.xlu1 %v4158_v30  ;;  %4141 = vadd.xlane.f32.xlu0 %v4140_v50  ;;  %v4155_v6 = vsel %vm332_vm0, %v4109_v34, 0.0  ;;  %v4173_v11 = vsel %vm332_vm0, %v4115_v46, 0.0  ;;  %v4179_v37 = vsel %vm332_vm0, %v4117_v24, 0.0  ;;  %v4176_v21 = vsel %vm332_vm0, %v4116_v39, 0.0 }
 0x537   :  { %v4081_v3 = vsel %vm1824_vm10, %v30423_v19, 0.0  ;;  %v4331_v36 = vsel %vm4329_vm11, %v2759_v35, 0 }
 0x538   :  { %v30477_v49 = vand.u32 4294901760, %v4331_v36 }
 0x53a   :  { %4144 = vadd.xlane.f32.xlu1 %v4143_v1  ;;  %4162 = vadd.xlane.f32.xlu0 %v4161_v42  ;;  %v30484_v53 = vsub.f32 %v4331_v36, %v30477_v49 }
 0x53b   :  { %25646 = vmatprep.subr.mxu0 %v30477_v49  ;;  %25676 = vmatprep.subr.mxu1 %v30477_v49 }
 0x53c   :  { %25647 = vmatpush3.msra.mxu0 %v30477_v49  ;;  %25677 = vmatpush3.msra.mxu1 %v30477_v49  ;;  %v30487_v33 = vand.u32 4294901760, %v30484_v53 }
 0x53e   :  { %4147 = vadd.xlane.f32.xlu1 %v4146_v60  ;;  %4165 = vadd.xlane.f32.xlu0 %v4164_v44  ;;  %v4423_v4 = vsub.f32 %v30484_v53, %v30487_v33 }
 0x540   :  { %v30491_v9 = vand.u32 4294901760, %v4423_v4 }
 0x542   :  { %4150 = vadd.xlane.f32.xlu1 %v4149_v59  ;;  %4168 = vadd.xlane.f32.xlu0 %v4167_v61 }
 0x543   :  { %25651 = vmatprep.subr.mxu0 %v30491_v9  ;;  %25681 = vmatprep.subr.mxu1 %v30491_v9 }
 0x546   :  { %4153 = vadd.xlane.f32.xlu1 %v4152_v18  ;;  %4171 = vadd.xlane.f32.xlu0 %v4170_v14 }
 0x54a   :  { %4156 = vadd.xlane.f32.xlu1 %v4155_v6  ;;  %4174 = vadd.xlane.f32.xlu0 %v4173_v11 }
 0x54e   :  { %4180 = vadd.xlane.f32.xlu1 %v4179_v37  ;;  %4177 = vadd.xlane.f32.xlu0 %v4176_v21 }
 0x552   :  { %4082 = vadd.xlane.f32.xlu0 %v4081_v3 }
 0x59b   :  { %v30495_v23 = vpop.f32.mrb[4].mxu0 }
 0x59c   :  { %v30497_v0 = vpop.f32.mrb[5].mxu0 }
 0x5a6   :  { %v30499_v2 = vpop.f32.mrb[4].mxu1 }
 0x5a7   :  { %v30501_v26 = vpop.f32.mrb[5].mxu1 }
 0x5bf   :  { %v4139_v15 = vpop.xlane.xlu1 %4138  ;;  %v4136_v56 = vpop.xlane.xlu0 %4135 }
 0x5c0   :  { %v4253_v7 = vrot.slane %v4139_v15, %v36205_v38  ;;  %v4249_v16 = vrot.slane %v4136_v56, %v36205_v38  ;;  %v36206_v56 = vld [vmem:[#allocation42_spill] sm:$0xff] }
 0x5c2   :  { %v4310_v40 = vsel %vm831_vm1, %v4253_v7, %v4249_v16  ;;  %v36208_v7 = vld [vmem:[#allocation39_spill] sm:$0xff] }
 0x5c3   :  { %v4160_v25 = vpop.xlane.xlu1 %4159  ;;  %v4142_v55 = vpop.xlane.xlu0 %4141 }
 0x5c4   :  { %v4257_v28 = vrot.slane %v4142_v55, %v36205_v38  ;;  %v4281_v30 = vrot.slane %v4160_v25, %v36205_v38 }
 0x5c6   :  { %v4311_v47 = vsel %vm833_vm2, %v4257_v28, %v4310_v40  ;;  %v36210_v40 = vld [vmem:[#allocation47_spill] sm:$0xff] }
 0x5c7   :  { %v4145_v22 = vpop.xlane.xlu1 %4144  ;;  %v4163_v29 = vpop.xlane.xlu0 %4162 }
 0x5c8   :  { %v4261_v45 = vrot.slane %v4145_v22, %v36205_v38  ;;  %v4285_v48 = vrot.slane %v4163_v29, %v36205_v38  ;;  %v36207_v29 = vld [vmem:[#allocation46_spill] sm:$0xff] }
 0x5ca   :  { %v4312_v8 = vsel %vm835_vm3, %v4261_v45, %v4311_v47  ;;  %v4317_v60 = vsel %vm831_vm1, %v4285_v48, %v4281_v30  ;;  %v36212_v30 = vld [vmem:[#allocation48_spill] sm:$0xff] }
 0x5cb   :  { %v4148_v43 = vpop.xlane.xlu1 %4147  ;;  %v4166_v54 = vpop.xlane.xlu0 %4165 }
 0x5cc   :  { %v4265_v12 = vrot.slane %v4148_v43, %v36205_v38  ;;  %v4289_v31 = vrot.slane %v4166_v54, %v36205_v38 }
 0x5ce   :  { %v4313_v50 = vsel %vm837_vm4, %v4265_v12, %v4312_v8  ;;  %v4318_v27 = vsel %vm833_vm2, %v4289_v31, %v4317_v60  ;;  %v36211_v8 = vld [vmem:[#allocation41_spill] sm:$0xff] }
 0x5cf   :  { %v4151_v19 = vpop.xlane.xlu1 %4150  ;;  %v4169_v32 = vpop.xlane.xlu0 %4168 }
 0x5d0   :  { %v4269_v5 = vrot.slane %v4151_v19, %v36205_v38  ;;  %v4293_v52 = vrot.slane %v4169_v32, %v36205_v38 }
 0x5d2   :  { %v4314_v42 = vsel %vm839_vm5, %v4269_v5, %v4313_v50  ;;  %v4319_v61 = vsel %vm835_vm3, %v4293_v52, %v4318_v27 }
 0x5d3   :  { %v4154_v13 = vpop.xlane.xlu1 %4153  ;;  %v4172_v41 = vpop.xlane.xlu0 %4171 }
 0x5d4   :  { %v4273_v20 = vrot.slane %v4154_v13, %v36205_v38  ;;  %v4297_v17 = vrot.slane %v4172_v41, %v36205_v38  ;;  %v36209_v13 = vld [vmem:[#allocation40_spill] sm:$0xff] }
 0x5d6   :  { %v4315_v44 = vsel %vm841_vm6, %v4273_v20, %v4314_v42  ;;  %v4320_v14 = vsel %vm837_vm4, %v4297_v17, %v4319_v61  ;;  %v36214_v17 = vld [vmem:[#allocation49_spill] sm:$0xff] }
 0x5d7   :  { %v4157_v63 = vpop.xlane.xlu1 %4156  ;;  %v4175_v1 = vpop.xlane.xlu0 %4174 }
 0x5d8   :  { %v4277_v51 = vrot.slane %v4157_v63, %v36205_v38  ;;  %v4301_v62 = vrot.slane %v4175_v1, %v36205_v38  ;;  %v36213_v1 = vld [vmem:[#allocation43_spill] sm:$0xff] }
 0x5da   :  { %v4316_v59 = vsel %vm843_vm7, %v4277_v51, %v4315_v44  ;;  %v4321_v11 = vsel %vm839_vm5, %v4301_v62, %v4320_v14  ;;  %v36215_v62 = vld [vmem:[#allocation44_spill] sm:$0xff] }
 0x5db   :  { %v4325_v10 = vsel %vm4324_vm12, %v4316_v59, 0  ;;  %v4181_v58 = vpop.xlane.xlu1 %4180  ;;  %v4178_v18 = vpop.xlane.xlu0 %4177  ;;  %v36216_v59 = vld [vmem:[#allocation50_spill] sm:$0xff] }
 0x5dc   :  { %v30529_v34 = vand.u32 4294901760, %v4325_v10  ;;  %v4309_v46 = vrot.slane %v4181_v58, %v36205_v38  ;;  %v4305_v6 = vrot.slane %v4178_v18, %v36205_v38  ;;  %v36217_v18 = vld [vmem:[#allocation45_spill] sm:$0xff] }
 0x5de   :  { %v4400_v24 = vsub.f32 %v4325_v10, %v30529_v34  ;;  %v4322_v39 = vsel %vm841_vm6, %v4305_v6, %v4321_v11 }
 0x5df   :  { %v4323_v37 = vsel %vm843_vm7, %v4309_v46, %v4322_v39  ;;  %v4083_v21 = vpop.xlane.xlu0 %4082  ;;  %v36218_v46 = vld [vmem:[#allocation51_spill] sm:$0xff]  ;;  %v36219_v39 = vld [vmem:[#allocation53_spill] sm:$0xff] }
 0x5e0   :  { %v4327_v3 = vsel %vm4324_vm12, %v4323_v37, 0  ;;  %v4095_v35 = vrot.slane %v4083_v21, %v36205_v38  ;;  %v4401_v36 = vand.u32 4294901760, %v4400_v24  ;;  %v36220_v21 = vld [vmem:[#allocation52_spill] sm:$0xff] }
 0x5e1   :  { %v30539_v4 = vand.u32 4294901760, %v4327_v3 }
 0x5e2   :  { %v4119_v15 = vmul.f32 %v30181_v57, %v4095_v35  ;;  %v4118_v25 = vmul.f32 %v36206_v56, %v4095_v35  ;;  %v4402_v55 = vsub.f32 %v4400_v24, %v4401_v36  ;;  %v4126_v43 = vmul.f32 %v36207_v29, %v4095_v35 }
 0x5e3   :  { %v30544_v22 = vsub.f32 %v4327_v3, %v30539_v4  ;;  %v4120_v16 = vmul.f32 %v36208_v7, %v4095_v35  ;;  %v4121_v41 = vmul.f32 %v36209_v13, %v4095_v35  ;;  %v4127_v5 = vmul.f32 %v36210_v40, %v4095_v35 }
 0x5e4   :  { %v4185_v54 = vsel %vm332_vm0, %v4119_v15, 0.0  ;;  %v4182_v19 = vsel %vm332_vm0, %v4118_v25, 0.0  ;;  %v4403_v32 = vand.u32 4294901760, %v4402_v55  ;;  %v4206_v45 = vsel %vm332_vm0, %v4126_v43, 0.0 }
 0x5e5   :  { %4186 = vadd.xlane.f32.xlu0 %v4185_v54  ;;  %4183 = vadd.xlane.f32.xlu1 %v4182_v19  ;;  %v4411_v28 = vand.u32 4294901760, %v30544_v22  ;;  %v4188_v12 = vsel %vm332_vm0, %v4120_v16, 0.0  ;;  %v4191_v48 = vsel %vm332_vm0, %v4121_v41, 0.0  ;;  %v4209_v20 = vsel %vm332_vm0, %v4127_v5, 0.0 }
 0x5e6   :  { %25648 = vmatprep.mubr.f32.mxu0 %v4403_v32  ;;  %v4122_v31 = vmul.f32 %v36211_v8, %v4095_v35  ;;  %v4128_v50 = vmul.f32 %v36212_v30, %v4095_v35  ;;  %v4123_v42 = vmul.f32 %v36213_v1, %v4095_v35  ;;  %v4129_v51 = vmul.f32 %v36214_v17, %v4095_v35 }
 0x5e7   :  { %v4412_v57 = vsub.f32 %v30544_v22, %v4411_v28  ;;  %v4124_v27 = vmul.f32 %v36215_v62, %v4095_v35  ;;  %v4130_v61 = vmul.f32 %v36216_v59, %v4095_v35  ;;  %v4125_v14 = vmul.f32 %v36217_v18, %v4095_v35 }
 0x5e8   :  { %v4194_v52 = vsel %vm332_vm0, %v4122_v31, 0.0  ;;  %v4212_v63 = vsel %vm332_vm0, %v4128_v50, 0.0  ;;  %v4197_v60 = vsel %vm332_vm0, %v4123_v42, 0.0  ;;  %v4215_v44 = vsel %vm332_vm0, %v4129_v51, 0.0 }
 0x5e9   :  { %4207 = vadd.xlane.f32.xlu0 %v4206_v45  ;;  %4189 = vadd.xlane.f32.xlu1 %v4188_v12  ;;  %v4413_v47 = vand.u32 4294901760, %v4412_v57  ;;  %v4200_v10 = vsel %vm332_vm0, %v4124_v27, 0.0  ;;  %v4218_v58 = vsel %vm332_vm0, %v4130_v61, 0.0  ;;  %v4131_v6 = vmul.f32 %v36218_v46, %v4095_v35 }
 0x5ea   :  { %v4203_v11 = vsel %vm332_vm0, %v4125_v14, 0.0  ;;  %v4133_v37 = vmul.f32 %v36219_v39, %v4095_v35  ;;  %v4132_v3 = vmul.f32 %v36220_v21, %v4095_v35  ;;  %v5412_v15 = vsel %vm1824_vm10, %v30497_v0, 0 }
 0x5eb   :  { %25649 = vmatmul.mubr.f32.vlgmr.msra.gmra.mrb[6].mxu0 %v4413_v47  ;;  %v30589_v25 = vand.u32 4294901760, %v5412_v15 }
 0x5ec   :  { %25653 = vmatprep.mubr.f32.mxu0 %v30529_v34  ;;  %25652 = vmatpush3.msra.mxu0 %v30491_v9  ;;  %v4227_v56 = vsel %vm332_vm0, %v4133_v37, 0.0 }
 0x5ed   :  { %4192 = vadd.xlane.f32.xlu0 %v4191_v48  ;;  %4210 = vadd.xlane.f32.xlu1 %v4209_v20  ;;  %v30594_v35 = vsub.f32 %v5412_v15, %v30589_v25 }
 0x5ee   :  { %25656 = vmatprep.subr.mxu0 %v30484_v53 }
 0x5ef   :  { %v5492_v0 = vand.u32 4294901760, %v30594_v35 }
 0x5f1   :  { %4195 = vadd.xlane.f32.xlu0 %v4194_v52  ;;  %4213 = vadd.xlane.f32.xlu1 %v4212_v63  ;;  %v5493_v55 = vsub.f32 %v30594_v35, %v5492_v0 }
 0x5f3   :  { %25654 = vmatmul.mubr.f32.vlgmr.msra.gmra.mrb[6].mxu0 %v30539_v4 }
 0x5f4   :  { %25658 = vmatprep.mubr.f32.mxu0 %v4400_v24  ;;  %25657 = vmatpush3.msra.mxu0 %v30484_v53  ;;  %v4221_v24 = vsel %vm332_vm0, %v4131_v6, 0.0 }
 0x5f5   :  { %4198 = vadd.xlane.f32.xlu0 %v4197_v60  ;;  %4216 = vadd.xlane.f32.xlu1 %v4215_v44 }
 0x5f6   :  { %25661 = vmatprep.subr.mxu0 %v30477_v49 }
 0x5f9   :  { %4201 = vadd.xlane.f32.xlu0 %v4200_v10  ;;  %4219 = vadd.xlane.f32.xlu1 %v4218_v58 }
 0x5fb   :  { %25659 = vmatmul.mubr.f32.vlgmr.msra.gmra.mrb[6].mxu0 %v30544_v22  ;;  %v5494_v22 = vand.u32 4294901760, %v5493_v55 }
 0x5fc   :  { %25663 = vmatprep.mubr.f32.mxu0 %v4401_v36  ;;  %25662 = vmatpush3.msra.mxu0 %v30477_v49  ;;  %v4224_v36 = vsel %vm332_vm0, %v4132_v3, 0.0 }
 0x5fd   :  { %4204 = vadd.xlane.f32.xlu0 %v4203_v11  ;;  %4222 = vadd.xlane.f32.xlu1 %v4221_v24 }
 0x5fe   :  { %25666 = vmatprep.subr.mxu0 %v30487_v33 }
 0x601   :  { %4228 = vadd.xlane.f32.xlu0 %v4227_v56  ;;  %4225 = vadd.xlane.f32.xlu1 %v4224_v36 }
 0x603   :  { %25664 = vmatmul.mubr.f32.vlgmr.msra.gmra.mrb[6].mxu0 %v4411_v28 }
 0x604   :  { %25668 = vmatprep.mubr.f32.mxu0 %v30529_v34  ;;  %25667 = vmatpush3.msra.mxu0 %v30487_v33 }
 0x605   :  { %25671 = vmatprep.subr.mxu0 %v30477_v49 }
 0x60b   :  { %25669 = vmatmul.mubr.f32.vlgmr.msra.gmra.mrb[6].mxu0 %v30539_v4 }
 0x60c   :  { %25673 = vmatprep.mubr.f32.mxu0 %v30529_v34  ;;  %25672 = vmatpush3.msra.mxu0 %v30477_v49 }
 0x613   :  { %25674 = vmatmul.mubr.f32.vlgmr.msra.gmra.mrb[6].mxu0 %v30539_v4 }
 0x614   :  { %25710 = vmatprep.mubr.f32.mxu0 %v5494_v22 }
 0x672   :  { %v4187_v29 = vpop.xlane.xlu0 %4186  ;;  %v4184_v43 = vpop.xlane.xlu1 %4183 }
 0x673   :  { %v4845_v45 = vrot.slane %v4187_v29, %v36205_v38  ;;  %v4841_v12 = vrot.slane %v4184_v43, %v36205_v38 }
 0x675   :  { %v4902_v47 = vsel %vm831_vm1, %v4845_v45, %v4841_v12 }
 0x676   :  { %v4208_v54 = vpop.xlane.xlu0 %4207  ;;  %v4190_v19 = vpop.xlane.xlu1 %4189 }
 0x677   :  { %v4849_v13 = vrot.slane %v4190_v19, %v36205_v38  ;;  %v4873_v52 = vrot.slane %v4208_v54, %v36205_v38 }
 0x679   :  { %v4903_v20 = vsel %vm833_vm2, %v4849_v13, %v4902_v47 }
 0x67a   :  { %v4193_v32 = vpop.xlane.xlu0 %4192  ;;  %v4211_v7 = vpop.xlane.xlu1 %4210 }
 0x67b   :  { %v4853_v41 = vrot.slane %v4193_v32, %v36205_v38  ;;  %v4877_v8 = vrot.slane %v4211_v7, %v36205_v38 }
 0x67d   :  { %v4904_v30 = vsel %vm835_vm3, %v4853_v41, %v4903_v20  ;;  %v4909_v62 = vsel %vm831_vm1, %v4877_v8, %v4873_v52 }
 0x67e   :  { %v4196_v16 = vpop.xlane.xlu0 %4195  ;;  %v4214_v28 = vpop.xlane.xlu1 %4213 }
 0x67f   :  { %v4857_v4 = vrot.slane %v4196_v16, %v36205_v38  ;;  %v4881_v50 = vrot.slane %v4214_v28, %v36205_v38 }
 0x681   :  { %v4905_v63 = vsel %vm837_vm4, %v4857_v4, %v4904_v30  ;;  %v4910_v61 = vsel %vm833_vm2, %v4881_v50, %v4909_v62 }
 0x682   :  { %v4199_v57 = vpop.xlane.xlu0 %4198  ;;  %v4217_v34 = vpop.xlane.xlu1 %4216 }
 0x683   :  { %v4861_v48 = vrot.slane %v4199_v57, %v36205_v38  ;;  %v4885_v1 = vrot.slane %v4217_v34, %v36205_v38 }
 0x685   :  { %v4906_v51 = vsel %vm839_vm5, %v4861_v48, %v4905_v63  ;;  %v4911_v58 = vsel %vm835_vm3, %v4885_v1, %v4910_v61 }
 0x686   :  { %v4202_v40 = vpop.xlane.xlu0 %4201  ;;  %v4220_v5 = vpop.xlane.xlu1 %4219 }
 0x687   :  { %v4865_v31 = vrot.slane %v4202_v40, %v36205_v38  ;;  %v4889_v60 = vrot.slane %v4220_v5, %v36205_v38 }
 0x689   :  { %v4907_v27 = vsel %vm841_vm6, %v4865_v31, %v4906_v51  ;;  %v4912_v6 = vsel %vm837_vm4, %v4889_v60, %v4911_v58  ;;  %v6464_v51 = vld [vmem:[#allocation17 + $0x8] sm:$0xff] }
 0x68a   :  { %v4205_v42 = vpop.xlane.xlu0 %4204  ;;  %v4223_v17 = vpop.xlane.xlu1 %4222 }
 0x68b   :  { %v4869_v44 = vrot.slane %v4205_v42, %v36205_v38  ;;  %v4893_v59 = vrot.slane %v4223_v17, %v36205_v38  ;;  %v6463_v17 = vld [vmem:[#allocation17] sm:$0xff] }
 0x68c   :  { %v6472_v60 = vand.u32 4294901760, %v6463_v17 }
 0x68d   :  { %v4908_v10 = vsel %vm843_vm7, %v4869_v44, %v4907_v27  ;;  %v4913_v37 = vsel %vm839_vm5, %v4893_v59, %v4912_v6  ;;  %v6475_v44 = vand.u32 4294901760, %v6464_v51 }
 0x68e   :  { %v4916_v18 = vsel %vm4324_vm12, %v4908_v10, 0  ;;  %v4229_v14 = vpop.xlane.xlu0 %4228  ;;  %v4226_v46 = vpop.xlane.xlu1 %4225 }
 0x68f   :  { %v4986_v11 = vand.u32 4294901760, %v4916_v18  ;;  %v4901_v24 = vrot.slane %v4229_v14, %v36205_v38  ;;  %v4897_v39 = vrot.slane %v4226_v46, %v36205_v38  ;;  %v5926_v38 = vsel %vm1824_vm10, %v30501_v26, 0 }
 0x690   :  { %v30645_v7 = vand.u32 4294901760, %v5926_v38  ;;  %v30667_v62 = vpack.c.bf16 %v6475_v44, %v6472_v60  ;;  %v6567_v14 = vsub.f32 %v6464_v51, %v6475_v44  ;;  %v286_v44 = vld [vmem:[#allocation2] sm:$0xff] }
 0x691   :  { %v4987_v21 = vsub.f32 %v4916_v18, %v4986_v11  ;;  %v4914_v3 = vsel %vm841_vm6, %v4897_v39, %v4913_v37  ;;  %v6560_v18 = vsub.f32 %v6463_v17, %v6472_v60  ;;  %v36221_v60 = vmov 0.0  }
 0x692   :  { %v4915_v15 = vsel %vm843_vm7, %v4901_v24, %v4914_v3  ;;  %v6568_v24 = vand.u32 4294901760, %v6567_v14 }
 0x693   :  { %v4918_v56 = vsel %vm4324_vm12, %v4915_v15, 0  ;;  %v4988_v36 = vand.u32 4294901760, %v4987_v21 }
 0x694   :  { %v4996_v55 = vand.u32 4294901760, %v4918_v56  ;;  %v6569_v15 = vsub.f32 %v6567_v14, %v6568_v24 }
 0x695   :  { %v4989_v22 = vsub.f32 %v4987_v21, %v4988_v36 }
 0x696   :  { %v4997_v29 = vsub.f32 %v4918_v56, %v4996_v55 }
 0x697   :  { %v4990_v43 = vand.u32 4294901760, %v4989_v22 }
 0x698   :  { %v4998_v54 = vand.u32 4294901760, %v4997_v29 }
 0x699   :  { %25678 = vmatprep.mubr.f32.mxu1 %v4990_v43 }
 0x69a   :  { %v4999_v19 = vsub.f32 %v4997_v29, %v4998_v54 }
 0x69c   :  { %v5000_v32 = vand.u32 4294901760, %v4999_v19 }
 0x69e   :  { %25679 = vmatmul.mubr.f32.vlgmr.msra.gmra.mrb[6].mxu1 %v5000_v32 }
 0x69f   :  { %25683 = vmatprep.mubr.f32.mxu1 %v4986_v11  ;;  %25682 = vmatpush3.msra.mxu1 %v30491_v9 }
 0x6a0   :  { %25686 = vmatprep.subr.mxu1 %v30484_v53 }
 0x6a6   :  { %25684 = vmatmul.mubr.f32.vlgmr.msra.gmra.mrb[6].mxu1 %v4996_v55 }
 0x6a7   :  { %25688 = vmatprep.mubr.f32.mxu1 %v4987_v21  ;;  %25687 = vmatpush3.msra.mxu1 %v30484_v53  ;;  %v30650_v53 = vsub.f32 %v5926_v38, %v30645_v7 }
 0x6a8   :  { %25691 = vmatprep.subr.mxu1 %v30477_v49 }
 0x6a9   :  { %v6006_v9 = vand.u32 4294901760, %v30650_v53 }
 0x6ab   :  { %v6007_v26 = vsub.f32 %v30650_v53, %v6006_v9 }
 0x6ad   :  { %v6008_v16 = vand.u32 4294901760, %v6007_v26  ;;  %v30677_v26 = vpack.c.bf16 %v6567_v14, %v6560_v18 }
 0x6ae   :  { %25689 = vmatmul.mubr.f32.vlgmr.msra.gmra.mrb[6].mxu1 %v4997_v29  ;;  %v6570_v29 = vand.u32 4294901760, %v6569_v15 }
 0x6af   :  { %25693 = vmatprep.mubr.f32.mxu1 %v4988_v36  ;;  %25692 = vmatpush3.msra.mxu1 %v30477_v49 }
 0x6b0   :  { %25696 = vmatprep.subr.mxu1 %v30487_v33 }
 0x6b6   :  { %25694 = vmatmul.mubr.f32.vlgmr.msra.gmra.mrb[6].mxu1 %v4998_v54 }
 0x6b7   :  { %25698 = vmatprep.mubr.f32.mxu1 %v4986_v11  ;;  %25697 = vmatpush3.msra.mxu1 %v30487_v33  ;;  %v5415_v33 = vsel %vm1824_vm10, %v30495_v23, 0 }
 0x6b8   :  { %25701 = vmatprep.subr.mxu1 %v30477_v49  ;;  %v5500_v28 = vand.u32 4294901760, %v5415_v33 }
 0x6ba   :  { %v5501_v34 = vsub.f32 %v5415_v33, %v5500_v28 }
 0x6bc   :  { %v5502_v40 = vand.u32 4294901760, %v5501_v34 }
 0x6be   :  { %25699 = vmatmul.mubr.f32.vlgmr.msra.gmra.mrb[6].mxu1 %v4996_v55  ;;  %v5503_v23 = vsub.f32 %v5501_v34, %v5502_v40 }
 0x6bf   :  { %25703 = vmatprep.mubr.f32.mxu1 %v4986_v11  ;;  %25702 = vmatpush3.msra.mxu1 %v30477_v49  ;;  %v6561_v11 = vand.u32 4294901760, %v6560_v18 }
 0x6c0   :  { %v5504_v1 = vand.u32 4294901760, %v5503_v23 }
 0x6c6   :  { %25704 = vmatmul.mubr.f32.vlgmr.msra.gmra.mrb[6].mxu1 %v4996_v55 }
 0x6c7   :  { %25752 = vmatprep.mubr.f32.mxu1 %v6008_v16 }
 0x6e6   :  { %v25675_v57 = vpop.f32.mrb[6].mxu0 }
 0x6e7   :  { %v5421_v45 = vsel %vm1824_vm10, %v25675_v57, 0  ;;  %v4812_v12 = vpop.f32.mrb[7].mxu0  ;;  %v30682_v57 = vpack.c.bf16 %v6568_v24, %v6561_v11 }
 0x6e8   :  { %v5427_v13 = vand.u32 4294901760, %v5421_v45  ;;  %v5418_v41 = vsel %vm1824_vm10, %v4812_v12, 0 }
 0x6e9   :  { %v5424_v49 = vand.u32 4294901760, %v5418_v41 }
 0x6ea   :  { %v5519_v4 = vsub.f32 %v5421_v45, %v5427_v13 }
 0x6eb   :  { %v25910_v5 = vpack.c.bf16 %v5427_v13, %v5424_v49  ;;  %v5512_v47 = vsub.f32 %v5418_v41, %v5424_v49 }
 0x6ec   :  { %v5520_v48 = vand.u32 4294901760, %v5519_v4 }
 0x6ed   :  { %v5513_v20 = vand.u32 4294901760, %v5512_v47  ;;  %25911 = vmatprep.subr.bf16.mxu0 %v25910_v5  ;;  %v25918_v8 = vpack.c.bf16 %v5519_v4, %v5512_v47 }
 0x6ee   :  { %v5521_v31 = vsub.f32 %v5519_v4, %v5520_v48  ;;  %25913 = vmatpush3.bf16.xpose.msra.mxu0 %v25910_v5 }
 0x6ef   :  { %v5514_v30 = vsub.f32 %v5512_v47, %v5513_v20  ;;  %v25926_v50 = vpack.c.bf16 %v5520_v48, %v5513_v20 }
 0x6f0   :  { %v5522_v52 = vand.u32 4294901760, %v5521_v31 }
 0x6f1   :  { %v5515_v63 = vand.u32 4294901760, %v5514_v30 }
 0x6f3   :  { %v25914_v42 = vpack.c.bf16 %v5522_v52, %v5515_v63 }
 0x6f5   :  { %25711 = vmatmul.mubr.f32.vlgmr.msra.gmra.mrb[8].mxu0 %v5504_v1  ;;  %25915 = vmatprep.subr.bf16.mxu0 %v25914_v42 }
 0x6f6   :  { %25917 = vmatpush3.bf16.xpose.msra.mxu0 %v25914_v42  ;;  %25717 = vmatprep.mubr.f32.mxu0 %v30589_v25 }
 0x6f7   :  { %25919 = vmatprep.subr.bf16.mxu0 %v25918_v8 }
 0x6fd   :  { %25718 = vmatmul.mubr.f32.vlgmr.msra.gmra.mrb[8].mxu0 %v5500_v28 }
 0x6fe   :  { %25921 = vmatpush3.bf16.xpose.msra.mxu0 %v25918_v8  ;;  %25724 = vmatprep.mubr.f32.mxu0 %v30594_v35  ;;  %v5929_v35 = vsel %vm1824_vm10, %v30499_v2, 0  ;;  %v6562_v2 = vsub.f32 %v6560_v18, %v6561_v11 }
 0x6ff   :  { %25923 = vmatprep.subr.bf16.mxu0 %v25910_v5 }
 0x700   :  { %v6563_v22 = vand.u32 4294901760, %v6562_v2  ;;  %v7535_v2 = vld [vmem:[#allocation20 + $0x30] sm:$0xff] }
 0x702   :  { %v30675_v38 = vpack.c.bf16 %v6570_v29, %v6563_v22  ;;  %v7548_v22 = vld [vmem:[#allocation20 + $0x98] sm:$0xff]  ;;  %v7541_v29 = vld [vmem:[#allocation20 + $0x60] sm:$0xff] }
 0x705   :  { %25725 = vmatmul.mubr.f32.vlgmr.msra.gmra.mrb[8].mxu0 %v5501_v34  ;;  %v5410_v34 = vld [vmem:[#allocation16 + $0x8] sm:$0xff] }
 0x706   :  { %25925 = vmatpush3.bf16.xpose.msra.mxu0 %v25910_v5  ;;  %25731 = vmatprep.mubr.f32.mxu0 %v5492_v0  ;;  %v6014_v0 = vand.u32 4294901760, %v5929_v35 }
 0x707   :  { %25927 = vmatprep.subr.bf16.mxu0 %v25926_v50 }
 0x708   :  { %v6015_v59 = vsub.f32 %v5929_v35, %v6014_v0  ;;  %v7555_v35 = vsel %vm7553_vm13, %v286_v44, 0 }
 0x70a   :  { %v6016_v39 = vand.u32 4294901760, %v6015_v59 }
 0x70c   :  { %v6017_v43 = vsub.f32 %v6015_v59, %v6016_v39 }
 0x70d   :  { %25732 = vmatmul.mubr.f32.vlgmr.msra.gmra.mrb[8].mxu0 %v5502_v40 }
 0x70e   :  { %25929 = vmatpush3.bf16.xpose.msra.mxu0 %v25926_v50  ;;  %25738 = vmatprep.mubr.f32.mxu0 %v30589_v25  ;;  %v6018_v33 = vand.u32 4294901760, %v6017_v43 }
 0x70f   :  { %25931 = vmatprep.subr.bf16.mxu0 %v25910_v5 }
 0x715   :  { %25739 = vmatmul.mubr.f32.vlgmr.msra.gmra.mrb[8].mxu0 %v5500_v28 }
 0x716   :  { %25933 = vmatpush3.bf16.xpose.msra.mxu0 %v25910_v5  ;;  %25745 = vmatprep.mubr.f32.mxu0 %v30589_v25 }
 0x717   :  { %25959 = vmatprep.subr.bf16.mxu0 %v30667_v62 }
 0x71d   :  { %25746 = vmatmul.mubr.f32.vlgmr.msra.gmra.mrb[8].mxu0 %v5500_v28 }
 0x71e   :  { %25961 = vmatpush3.bf16.msra.mxu0 %v30667_v62 }
 0x71f   :  { %25963 = vmatprep.subr.bf16.mxu0 %v30675_v38 }
 0x799   :  { %v25705_v27 = vpop.f32.mrb[6].mxu1 }
 0x79a   :  { %v5935_v61 = vsel %vm1824_vm10, %v25705_v27, 0  ;;  %v5399_v25 = vpop.f32.mrb[7].mxu1  ;;  %v287_v27 = vld [vmem:[#allocation2 + $0x8] sm:$0xff] }
 0x79b   :  { %v5941_v10 = vand.u32 4294901760, %v5935_v61  ;;  %v5932_v58 = vsel %vm1824_vm10, %v5399_v25, 0 }
 0x79c   :  { %v5938_v46 = vand.u32 4294901760, %v5932_v58 }
 0x79d   :  { %v6033_v6 = vsub.f32 %v5935_v61, %v5941_v10 }
 0x79e   :  { %v25934_v37 = vpack.c.bf16 %v5941_v10, %v5938_v46  ;;  %v6026_v21 = vsub.f32 %v5932_v58, %v5938_v46 }
 0x79f   :  { %v6034_v3 = vand.u32 4294901760, %v6033_v6 }
 0x7a0   :  { %v6027_v56 = vand.u32 4294901760, %v6026_v21  ;;  %25935 = vmatprep.subr.bf16.mxu1 %v25934_v37  ;;  %v25942_v36 = vpack.c.bf16 %v6033_v6, %v6026_v21 }
 0x7a1   :  { %v6035_v55 = vsub.f32 %v6033_v6, %v6034_v3  ;;  %25937 = vmatpush3.bf16.xpose.msra.mxu1 %v25934_v37 }
 0x7a2   :  { %v6028_v54 = vsub.f32 %v6026_v21, %v6027_v56  ;;  %v25950_v19 = vpack.c.bf16 %v6034_v3, %v6027_v56  ;;  %v7529_v3 = vld [vmem:[#allocation20] sm:$0xff] }
 0x7a3   :  { %v6036_v32 = vand.u32 4294901760, %v6035_v55  ;;  %v7542_v55 = vld [vmem:[#allocation20 + $0x68] sm:$0xff]  ;;  %v7562_v43 = vand.u32 4294901760, %v7529_v3 }
 0x7a4   :  { %v6029_v16 = vand.u32 4294901760, %v6028_v54  ;;  %v7566_v54 = vand.u32 4294901760, %v7535_v2 }
 0x7a6   :  { %v25938_v28 = vpack.c.bf16 %v6036_v32, %v6029_v16 }
 0x7a8   :  { %25753 = vmatmul.mubr.f32.vlgmr.msra.gmra.mrb[8].mxu1 %v6018_v33  ;;  %25939 = vmatprep.subr.bf16.mxu1 %v25938_v28  ;;  %v30727_v33 = vpack.c.bf16 %v7566_v54, %v7562_v43 }
 0x7a9   :  { %25941 = vmatpush3.bf16.xpose.msra.mxu1 %v25938_v28  ;;  %25759 = vmatprep.mubr.f32.mxu1 %v30645_v7  ;;  %v7568_v28 = vand.u32 4294901760, %v7542_v55 }
 0x7aa   :  { %25943 = vmatprep.subr.bf16.mxu1 %v25942_v36 }
 0x7b0   :  { %25760 = vmatmul.mubr.f32.vlgmr.msra.gmra.mrb[8].mxu1 %v6014_v0 }
 0x7b1   :  { %25945 = vmatpush3.bf16.xpose.msra.mxu1 %v25942_v36  ;;  %25766 = vmatprep.mubr.f32.mxu1 %v30650_v53  ;;  %v5409_v53 = vld [vmem:[#allocation16] sm:$0xff] }
 0x7b2   :  { %25947 = vmatprep.subr.bf16.mxu1 %v25934_v37 }
 0x7b8   :  { %25767 = vmatmul.mubr.f32.vlgmr.msra.gmra.mrb[8].mxu1 %v6015_v59  ;;  %v7558_v59 = vsel %vm7553_vm13, %v287_v27, 0 }
 0x7b9   :  { %25949 = vmatpush3.bf16.xpose.msra.mxu1 %v25934_v37  ;;  %25773 = vmatprep.mubr.f32.mxu1 %v6006_v9  ;;  %v30710_v18 = vand.u32 4294901760, %v7558_v59 }
 0x7ba   :  { %25951 = vmatprep.subr.bf16.mxu1 %v25950_v19 }
 0x7bb   :  { %v30716_v24 = vsub.f32 %v7558_v59, %v30710_v18 }
 0x7bd   :  { %v30721_v15 = vand.u32 4294901760, %v30716_v24 }
 0x7c0   :  { %25774 = vmatmul.mubr.f32.vlgmr.msra.gmra.mrb[8].mxu1 %v6016_v39  ;;  %v7530_v39 = vld [vmem:[#allocation20 + $0x8] sm:$0xff] }
 0x7c1   :  { %25953 = vmatpush3.bf16.xpose.msra.mxu1 %v25950_v19  ;;  %25780 = vmatprep.mubr.f32.mxu1 %v30645_v7  ;;  %v7560_v56 = vand.u32 4294901760, %v7530_v39  ;;  %v7547_v19 = vld [vmem:[#allocation20 + $0x90] sm:$0xff] }
 0x7c2   :  { %25955 = vmatprep.subr.bf16.mxu1 %v25934_v37 }
 0x7c8   :  { %25781 = vmatmul.mubr.f32.vlgmr.msra.gmra.mrb[8].mxu1 %v6014_v0 }
 0x7c9   :  { %25957 = vmatpush3.bf16.xpose.msra.mxu1 %v25934_v37  ;;  %25787 = vmatprep.mubr.f32.mxu1 %v30645_v7  ;;  %v7536_v37 = vld [vmem:[#allocation20 + $0x38] sm:$0xff] }
 0x7ca   :  { %25983 = vmatprep.subr.bf16.mxu1 %v30667_v62  ;;  %v7564_v36 = vand.u32 4294901760, %v7536_v37 }
 0x7cc   :  { %v30725_v16 = vpack.c.bf16 %v7564_v36, %v7560_v56 }
 0x7d0   :  { %25788 = vmatmul.mubr.f32.vlgmr.msra.gmra.mrb[8].mxu1 %v6014_v0  ;;  %v30704_v0 = vand.u32 4294901760, %v7555_v35 }
 0x7d1   :  { %25985 = vmatpush3.bf16.msra.mxu1 %v30667_v62 }
 0x7d2   :  { %25987 = vmatprep.subr.bf16.mxu1 %v30675_v38  ;;  %v30708_v61 = vsub.f32 %v7555_v35, %v30704_v0 }
 0x7d4   :  { %v30713_v6 = vand.u32 4294901760, %v30708_v61 }
 0x7d6   :  { %v7636_v21 = vsub.f32 %v30708_v61, %v30713_v6 }
 0x7d8   :  { %v30723_v32 = vand.u32 4294901760, %v7636_v21 }
 0x7f0   :  { %v25747_v9 = vpop.f32.mrb[8].mxu0 }
 0x7f1   :  { %v28072_v45 = vadd.f32 %v25747_v9, %v5410_v34  ;;  %v5915_v12 = vpop.f32.mrb[9].mxu0  ;;  %v7647_v9 = vsub.f32 %v30716_v24, %v30721_v15 }
 0x7f2   :  { %v28073_v13 = vadd.f32 %v5915_v12, %v5409_v53  ;;  %v30732_v12 = vsub.f32 %v7530_v39, %v7560_v56 }
 0x7f3   :  { %v24299_v41 = vmul.f32 -1.442695, %v28072_v45  ;;  %v7574_v45 = vand.u32 4294901760, %v7547_v19 }
 0x7f4   :  { %v24298_v49 = vmul.f32 -1.442695, %v28073_v13  ;;  %v30734_v13 = vsub.f32 %v7536_v37, %v7564_v36 }
 0x7f5   :  { %28661 = vpow2.f32 %v24299_v41  ;;  %v30780_v39 = vsub.f32 %v7547_v19, %v7574_v45 }
 0x7f6   :  { %28663 = vpow2.f32 %v24298_v49  ;;  %v30739_v49 = vsub.f32 %v7529_v3, %v7562_v43  ;;  %v30786_v3 = vand.u32 4294901760, %v7647_v9 }
 0x7f7   :  { %v7699_v56 = vand.u32 4294901760, %v30780_v39 }
 0x7ff   :  { %v28662_v4 = vpop.eup %28661 }
 0x800   :  { %v28664_v40 = vpop.eup %28663  ;;  %v6452_v7 = vadd.f32 1.0, %v28662_v4  ;;  %v30741_v4 = vsub.f32 %v7535_v2, %v7566_v54  ;;  %v30802_v54 = vpack.c.bf16 %v30734_v13, %v30732_v12 }
 0x801   :  { %v6451_v5 = vadd.f32 1.0, %v28664_v40  ;;  %v30743_v40 = vsub.f32 %v7542_v55, %v7568_v28  ;;  %v7700_v55 = vsub.f32 %v30780_v39, %v7699_v56 }
 0x802   :  { %28665 = vrcp.f32 %v6452_v7 }
 0x803   :  { %28667 = vrcp.f32 %v6451_v5 }
 0x80c   :  { %v28666_v47 = vpop.eup %28665 }
 0x80d   :  { %v28668_v48 = vpop.eup %28667  ;;  %v6469_v20 = vsel %vm854_vm9, %v28666_v47, 0  ;;  %v7657_v47 = vand.u32 4294901760, %v30732_v12 }
 0x80e   :  { %v6466_v8 = vsel %vm854_vm9, %v28668_v48, 0  ;;  %v6548_v31 = vand.u32 4294901760, %v6469_v20  ;;  %v7669_v48 = vand.u32 4294901760, %v30734_v13 }
 0x80f   :  { %v6538_v23 = vand.u32 4294901760, %v6466_v8 }
 0x810   :  { %v6549_v30 = vsub.f32 %v6469_v20, %v6548_v31 }
 0x811   :  { %v6539_v50 = vsub.f32 %v6466_v8, %v6538_v23 }
 0x812   :  { %v6550_v52 = vand.u32 4294901760, %v6549_v30 }
 0x813   :  { %v6540_v63 = vand.u32 4294901760, %v6539_v50 }
 0x814   :  { %v6551_v1 = vsub.f32 %v6549_v30, %v6550_v52 }
 0x815   :  { %v6541_v42 = vsub.f32 %v6539_v50, %v6540_v63 }
 0x816   :  { %v6552_v51 = vand.u32 4294901760, %v6551_v1  ;;  %v7670_v1 = vsub.f32 %v30734_v13, %v7669_v48 }
 0x817   :  { %v6542_v17 = vand.u32 4294901760, %v6541_v42 }
 0x818   :  { %v7671_v27 = vand.u32 4294901760, %v7670_v1 }
 0x819   :  { %25794 = vmatprep.mubr.f32.mxu0 %v6542_v17 }
 0x81a   :  { %25795 = vmatmul.mubr.f32.vlgmr.msra.gmra.mrb[10].mxu0 %v6552_v51 }
 0x81b   :  { %25801 = vmatprep.mubr.f32.mxu0 %v6538_v23  ;;  %25965 = vmatpush3.bf16.msra.mxu0 %v30675_v38 }
 0x81c   :  { %25967 = vmatprep.subr.bf16.mxu0 %v30677_v26 }
 0x822   :  { %25802 = vmatmul.mubr.f32.vlgmr.msra.gmra.mrb[10].mxu0 %v6548_v31 }
 0x823   :  { %25808 = vmatprep.mubr.f32.mxu0 %v6539_v50  ;;  %25969 = vmatpush3.bf16.msra.mxu0 %v30677_v26  ;;  %v7681_v50 = vand.u32 4294901760, %v30743_v40 }
 0x824   :  { %25971 = vmatprep.subr.bf16.mxu0 %v30667_v62 }
 0x825   :  { %v7682_v44 = vsub.f32 %v30743_v40, %v7681_v50 }
 0x82a   :  { %25809 = vmatmul.mubr.f32.vlgmr.msra.gmra.mrb[10].mxu0 %v6549_v30  ;;  %v7675_v30 = vand.u32 4294901760, %v30741_v4 }
 0x82b   :  { %25815 = vmatprep.mubr.f32.mxu0 %v6540_v63  ;;  %25973 = vmatpush3.bf16.msra.mxu0 %v30667_v62  ;;  %v7658_v63 = vsub.f32 %v30732_v12, %v7657_v47 }
 0x82c   :  { %25975 = vmatprep.subr.bf16.mxu0 %v30682_v57  ;;  %v7676_v51 = vsub.f32 %v30741_v4, %v7675_v30 }
 0x82d   :  { %v7659_v35 = vand.u32 4294901760, %v7658_v63 }
 0x832   :  { %25816 = vmatmul.mubr.f32.vlgmr.msra.gmra.mrb[10].mxu0 %v6550_v52 }
 0x833   :  { %25822 = vmatprep.mubr.f32.mxu0 %v6538_v23  ;;  %25977 = vmatpush3.bf16.msra.mxu0 %v30682_v57 }
 0x834   :  { %25979 = vmatprep.subr.bf16.mxu0 %v30667_v62 }
 0x83a   :  { %25823 = vmatmul.mubr.f32.vlgmr.msra.gmra.mrb[10].mxu0 %v6548_v31 }
 0x83b   :  { %25829 = vmatprep.mubr.f32.mxu0 %v6538_v23  ;;  %25981 = vmatpush3.bf16.msra.mxu0 %v30667_v62  ;;  %v7663_v23 = vand.u32 4294901760, %v30739_v49 }
 0x83c   :  { %26007 = vmatprep.subr.bf16.mxu0 %v30725_v16 }
 0x83d   :  { %v7664_v17 = vsub.f32 %v30739_v49, %v7663_v23 }
 0x842   :  { %25830 = vmatmul.mubr.f32.vlgmr.msra.gmra.mrb[10].mxu0 %v6548_v31 }
 0x843   :  { %7632 = vmatprep.mubr.f32.mxu0 %v36221_v60  ;;  %26009 = vmatpush1.bf16.msra.mxu0 %v30727_v33 }
 0x8a3   :  { %v25789_v25 = vpop.f32.mrb[8].mxu1 }
 0x8a4   :  { %v28074_v10 = vadd.f32 %v25789_v25, %v5410_v34  ;;  %v6429_v58 = vpop.f32.mrb[9].mxu1  ;;  %v7572_v34 = vand.u32 4294901760, %v7548_v22  ;;  %v7665_v25 = vand.u32 4294901760, %v7664_v17 }
 0x8a5   :  { %v28075_v14 = vadd.f32 %v6429_v58, %v5409_v53  ;;  %v7570_v53 = vand.u32 4294901760, %v7541_v29  ;;  %v7683_v58 = vand.u32 4294901760, %v7682_v44 }
 0x8a6   :  { %v24301_v46 = vmul.f32 -1.442695, %v28074_v10  ;;  %v30737_v41 = vpack.c.bf16 %v7572_v34, %v7568_v28  ;;  %v30749_v20 = vsub.f32 %v7548_v22, %v7572_v34  ;;  %v7677_v10 = vand.u32 4294901760, %v7676_v51 }
 0x8a7   :  { %v24300_v11 = vmul.f32 -1.442695, %v28075_v14  ;;  %v30745_v5 = vpack.c.bf16 %v7574_v45, %v7570_v53  ;;  %v30775_v14 = vsub.f32 %v7541_v29, %v7570_v53  ;;  %v7701_v29 = vand.u32 4294901760, %v7700_v55 }
 0x8a8   :  { %28669 = vpow2.f32 %v24301_v46  ;;  %26011 = vmatprep.subr.bf16.mxu0 %v30737_v41  ;;  %v7693_v42 = vand.u32 4294901760, %v30749_v20  ;;  %v30778_v46 = vpack.c.bf16 %v7671_v27, %v7659_v35  ;;  %v30782_v37 = vpack.c.bf16 %v7677_v10, %v7665_v25 }
 0x8a9   :  { %28671 = vpow2.f32 %v24300_v11  ;;  %36222 = vst [vmem:[#allocation36_spill] sm:$0xff] %v30745_v5  ;;  %26013 = vmatpush1.bf16.msra.mxu0 %v30745_v5  ;;  %v7687_v21 = vand.u32 4294901760, %v30775_v14  ;;  %v30832_v17 = vpack.c.bf16 %v30780_v39, %v30775_v14  ;;  %v7550_v39 = vld [vmem:[#allocation20 + $0xa8] sm:$0xff] }
 0x8aa   :  { %v7694_v59 = vsub.f32 %v30749_v20, %v7693_v42  ;;  %26015 = vmatprep.subr.bf16.mxu0 %v30778_v46  ;;  %v30870_v12 = vpack.c.bf16 %v7693_v42, %v7681_v50 }
 0x8ab   :  { %v7688_v36 = vsub.f32 %v30775_v14, %v7687_v21  ;;  %v30879_v13 = vpack.c.bf16 %v7699_v56, %v7687_v21  ;;  %v7537_v14 = vld [vmem:[#allocation20 + $0x40] sm:$0xff] }
 0x8ac   :  { %7638 = vmatmul.mubr.f32.vlgmr.msra.gmra.mrb[12].mxu0 %v30723_v32  ;;  %v7695_v11 = vand.u32 4294901760, %v7694_v59  ;;  %v30853_v59 = vpack.c.bf16 %v7669_v48, %v7657_v47  ;;  %36225 = vst [vmem:[#allocation39_spill] sm:$0xff] %v30870_v12  ;;  %v30893_v47 = vld [vmem:[#allocation20 + $0x20] sm:$0xff]  ;;  %v30895_v48 = vld [vmem:[#allocation20 + $0x50] sm:$0xff] }
 0x8ad   :  { %7643 = vmatprep.mubr.f32.mxu0 %v36221_v60  ;;  %26017 = vmatpush1.bf16.msra.mxu0 %v30782_v37  ;;  %v7689_v22 = vand.u32 4294901760, %v7688_v36  ;;  %36226 = vst [vmem:[#allocation40_spill] sm:$0xff] %v30879_v13  ;;  %v35555_v50 = vand.u32 4294901760, %v30895_v48  ;;  %v8158_v36 = vand.u32 4294901760, %v7537_v14 }
 0x8ae   :  { %v30789_v2 = vpack.c.bf16 %v7695_v11, %v7683_v58  ;;  %36223 = vst [vmem:[#allocation42_spill] sm:$0xff] %v30853_v59  ;;  %v7531_v58 = vld [vmem:[#allocation20 + $0x10] sm:$0xff]  ;;  %v7544_v11 = vld [vmem:[#allocation20 + $0x78] sm:$0xff] }
 0x8af   :  { %v30805_v34 = vpack.c.bf16 %v7701_v29, %v7689_v22  ;;  %v8154_v56 = vand.u32 4294901760, %v7531_v58  ;;  %v8160_v55 = vand.u32 4294901760, %v7544_v11  ;;  %v8164_v22 = vand.u32 4294901760, %v7550_v39  ;;  %v7543_v29 = vld [vmem:[#allocation20 + $0x70] sm:$0xff] }
 0x8b0   :  { %7649 = vmatmul.mubr.f32.gmra.mrb[14].mxu0 %v30786_v3  ;;  %26019 = vmatprep.subr.bf16.mxu0 %v30789_v2 }
 0x8b1   :  { %7759 = vmatprep.mubr.f32.mxu0 %v36221_v60  ;;  %26021 = vmatpush1.bf16.msra.mxu0 %v30805_v34 }
 0x8b2   :  { %v28670_v7 = vpop.eup %28669  ;;  %26023 = vmatprep.subr.bf16.mxu0 %v30802_v54 }
 0x8b3   :  { %v28672_v8 = vpop.eup %28671  ;;  %v6454_v31 = vadd.f32 1.0, %v28670_v7  ;;  %v30815_v7 = vpack.c.bf16 %v30741_v4, %v30739_v49  ;;  %v30882_v49 = vld [vmem:[#allocation20 + $0x28] sm:$0xff]  ;;  %v30884_v4 = vld [vmem:[#allocation20 + $0x58] sm:$0xff] }
 0x8b4   :  { %v6453_v52 = vadd.f32 1.0, %v28672_v8  ;;  %7761 = vmatmul.mubr.f32.vlgmr.msra.gmra.mrb[12].mxu0 %v30704_v0 }
 0x8b5   :  { %28673 = vrcp.f32 %v6454_v31  ;;  %v30823_v31 = vpack.c.bf16 %v30749_v20, %v30743_v40  ;;  %26025 = vmatpush1.bf16.msra.mxu0 %v30815_v7  ;;  %7766 = vmatprep.mubr.f32.mxu0 %v36221_v60  ;;  %v35557_v40 = vand.u32 4294901760, %v30884_v4  ;;  %v7532_v20 = vld [vmem:[#allocation20 + $0x18] sm:$0xff] }
 0x8b6   :  { %28675 = vrcp.f32 %v6453_v52  ;;  %v8152_v25 = vand.u32 4294901760, %v7532_v20 }
 0x8b7   :  { %26027 = vmatprep.subr.bf16.mxu0 %v30823_v31 }
 0x8b8   :  { %7768 = vmatmul.mubr.f32.gmra.mrb[14].mxu0 %v30710_v18 }
 0x8b9   :  { %26029 = vmatpush1.bf16.msra.mxu0 %v30832_v17  ;;  %7854 = vmatprep.mubr.f32.mxu0 %v36221_v60 }
 0x8ba   :  { %26031 = vmatprep.subr.bf16.mxu0 %v30725_v16 }
 0x8bc   :  { %7857 = vmatmul.mubr.f32.vlgmr.msra.gmra.mrb[12].mxu0 %v30708_v61 }
 0x8bd   :  { %26033 = vmatpush1.bf16.msra.mxu0 %v30727_v33  ;;  %7862 = vmatprep.mubr.f32.mxu0 %v36221_v60 }
 0x8be   :  { %26035 = vmatprep.subr.bf16.mxu0 %v30737_v41 }
 0x8bf   :  { %v28674_v43 = vpop.eup %28673 }
 0x8c0   :  { %v28676_v19 = vpop.eup %28675  ;;  %v6977_v28 = vsel %vm854_vm9, %v28674_v43, 0  ;;  %7865 = vmatmul.mubr.f32.gmra.mrb[14].mxu0 %v30716_v24  ;;  %v7549_v43 = vld [vmem:[#allocation20 + $0xa0] sm:$0xff] }
 0x8c1   :  { %v6974_v53 = vsel %vm854_vm9, %v28676_v19, 0  ;;  %v30808_v9 = vand.u32 4294901760, %v6977_v28  ;;  %7943 = vmatprep.mubr.f32.mxu0 %v36221_v60  ;;  %26037 = vmatpush1.bf16.msra.mxu0 %v30745_v5  ;;  %v30926_v19 = vsub.f32 %v7532_v20, %v8152_v25 }
 0x8c2   :  { %v30810_v45 = vand.u32 4294901760, %v6974_v53  ;;  %26039 = vmatprep.subr.bf16.mxu0 %v30853_v59 }
 0x8c3   :  { %v30818_v8 = vsub.f32 %v6977_v28, %v30808_v9 }
 0x8c4   :  { %v7047_v52 = vsub.f32 %v6974_v53, %v30810_v45  ;;  %7947 = vmatmul.mubr.f32.vlgmr.msra.gmra.mrb[12].mxu0 %v30713_v6 }
 0x8c5   :  { %v7058_v63 = vand.u32 4294901760, %v30818_v8  ;;  %7952 = vmatprep.mubr.f32.mxu0 %v36221_v60 }
 0x8c6   :  { %v7048_v1 = vand.u32 4294901760, %v7047_v52 }
 0x8c7   :  { %v7059_v51 = vsub.f32 %v30818_v8, %v7058_v63 }
 0x8c8   :  { %v7049_v44 = vsub.f32 %v7047_v52, %v7048_v1  ;;  %7956 = vmatmul.mubr.f32.gmra.mrb[14].mxu0 %v30721_v15 }
 0x8c9   :  { %v7060_v27 = vand.u32 4294901760, %v7059_v51  ;;  %8050 = vmatprep.mubr.f32.mxu0 %v36221_v60 }
 0x8ca   :  { %v7050_v35 = vand.u32 4294901760, %v7049_v44  ;;  %v30941_v44 = vsub.f32 %v7544_v11, %v8160_v55  ;;  %v30967_v11 = vpack.c.bf16 %v8164_v22, %v8160_v55 }
 0x8cc   :  { %25836 = vmatprep.mubr.f32.mxu1 %v7050_v35  ;;  %v30943_v35 = vsub.f32 %v7550_v39, %v8164_v22 }
 0x8cd   :  { %25837 = vmatmul.mubr.f32.vlgmr.msra.gmra.mrb[10].mxu1 %v7060_v27 }
 0x8ce   :  { %25843 = vmatprep.mubr.f32.mxu1 %v30810_v45  ;;  %25989 = vmatpush3.bf16.msra.mxu1 %v30675_v38  ;;  %v30863_v38 = vpack.c.bf16 %v7675_v30, %v7663_v23  ;;  %v7538_v23 = vld [vmem:[#allocation20 + $0x48] sm:$0xff]  ;;  %v35556_v30 = vand.u32 4294901760, %v30893_v47 }
 0x8cf   :  { %25991 = vmatprep.subr.bf16.mxu1 %v30677_v26  ;;  %v8156_v10 = vand.u32 4294901760, %v7538_v23 }
 0x8d0   :  { %36224 = vst [vmem:[#allocation46_spill] sm:$0xff] %v30863_v38  ;;  %26041 = vmatpush1.bf16.msra.mxu0 %v30863_v38  ;;  %v30918_v21 = vpack.c.bf16 %v35555_v50, %v35556_v30 }
 0x8d1   :  { %26043 = vmatprep.subr.bf16.mxu0 %v30870_v12  ;;  %v30928_v28 = vsub.f32 %v7538_v23, %v8156_v10  ;;  %v30933_v53 = vpack.c.bf16 %v8156_v10, %v8152_v25 }
 0x8d3   :  { %v35561_v51 = vand.u32 4294901760, %v30928_v28 }
 0x8d4   :  { %26045 = vmatpush1.bf16.msra.mxu0 %v30879_v13 }
 0x8d5   :  { %25844 = vmatmul.mubr.f32.vlgmr.msra.gmra.mrb[10].mxu1 %v30808_v9  ;;  %26047 = vmatprep.subr.bf16.mxu0 %v30725_v16 }
 0x8d6   :  { %25850 = vmatprep.mubr.f32.mxu1 %v7047_v52  ;;  %25993 = vmatpush3.bf16.msra.mxu1 %v30677_v26  ;;  %v35558_v26 = vand.u32 4294901760, %v30882_v49  ;;  %v30935_v52 = vsub.f32 %v7531_v58, %v8154_v56  ;;  %v8285_v58 = vand.u32 4294901760, %v30943_v35 }
 0x8d7   :  { %25995 = vmatprep.subr.bf16.mxu1 %v30667_v62  ;;  %8052 = vmatmul.mubr.f32.vlgmr.msra.gmra.mrb[12].mxu0 %v30704_v0 }
 0x8d8   :  { %26049 = vmatpush1.bf16.msra.mxu0 %v30727_v33  ;;  %8057 = vmatprep.mubr.f32.mxu0 %v36221_v60  ;;  %v30909_v42 = vpack.c.bf16 %v35557_v40, %v35558_v26  ;;  %v35560_v27 = vand.u32 4294901760, %v30935_v52 }
 0x8d9   :  { %26051 = vmatprep.subr.bf16.mxu0 %v30737_v41 }
 0x8da   :  { %v8256_v39 = vsub.f32 %v30935_v52, %v35560_v27 }
 0x8db   :  { %8059 = vmatmul.mubr.f32.gmra.mrb[14].mxu0 %v30710_v18 }
 0x8dc   :  { %26053 = vmatpush1.bf16.msra.mxu0 %v30745_v5  ;;  %8137 = vmatprep.mubr.f32.mxu0 %v36221_v60  ;;  %v8257_v55 = vand.u32 4294901760, %v8256_v39 }
 0x8dd   :  { %25851 = vmatmul.mubr.f32.vlgmr.msra.gmra.mrb[10].mxu1 %v30818_v8  ;;  %26103 = vmatprep.subr.bf16.mxu0 %v30909_v42  ;;  %v8166_v8 = vand.u32 4294901760, %v7549_v43 }
 0x8de   :  { %25857 = vmatprep.mubr.f32.mxu1 %v7048_v1  ;;  %25997 = vmatpush3.bf16.msra.mxu1 %v30667_v62  ;;  %v8249_v1 = vand.u32 4294901760, %v30926_v19 }
 0x8df   :  { %25999 = vmatprep.subr.bf16.mxu1 %v30682_v57  ;;  %8139 = vmatmul.mubr.f32.vlgmr.msra.gmra.mrb[12].mxu0 %v30704_v0  ;;  %v30954_v25 = vsub.f32 %v7549_v43, %v8166_v8 }
 0x8e0   :  { %26105 = vmatpush1.bf16.msra.mxu0 %v30918_v21  ;;  %8144 = vmatprep.mubr.f32.mxu0 %v36221_v60  ;;  %v8250_v10 = vsub.f32 %v30926_v19, %v8249_v1 }
 0x8e1   :  { %v8291_v50 = vand.u32 4294901760, %v30954_v25 }
 0x8e2   :  { %v8251_v30 = vand.u32 4294901760, %v8250_v10 }
 0x8e3   :  { %8146 = vmatmul.mubr.f32.gmra.mrb[14].mxu0 %v30710_v18  ;;  %v8292_v27 = vsub.f32 %v30954_v25, %v8291_v50 }
 0x8e4   :  { %8816 = vmatprep.mubr.f32.mxu0 %v36221_v60 }
 0x8e5   :  { %25858 = vmatmul.mubr.f32.vlgmr.msra.gmra.mrb[10].mxu1 %v7058_v63  ;;  %v30937_v63 = vsub.f32 %v7537_v14, %v8158_v36  ;;  %v30965_v14 = vpack.c.bf16 %v8158_v36, %v8154_v56  ;;  %v8286_v56 = vsub.f32 %v30943_v35, %v8285_v58 }
 0x8e6   :  { %25864 = vmatprep.mubr.f32.mxu1 %v30810_v45  ;;  %26001 = vmatpush3.bf16.msra.mxu1 %v30682_v57  ;;  %v8162_v57 = vand.u32 4294901760, %v7543_v29 }
 0x8e7   :  { %26003 = vmatprep.subr.bf16.mxu1 %v30667_v62  ;;  %v35559_v20 = vand.u32 4294901760, %v30937_v63 }
 0x8e8   :  { %v30952_v23 = vsub.f32 %v7543_v29, %v8162_v57  ;;  %v30980_v36 = vpack.c.bf16 %v8166_v8, %v8162_v57  ;;  %v8293_v8 = vand.u32 4294901760, %v8292_v27 }
 0x8e9   :  { %v8268_v29 = vsub.f32 %v30937_v63, %v35559_v20 }
 0x8ea   :  { %v8279_v43 = vand.u32 4294901760, %v30952_v23  ;;  %v31022_v27 = vpack.c.bf16 %v30954_v25, %v30952_v23 }
 0x8eb   :  { %v8269_v22 = vand.u32 4294901760, %v8268_v29 }
 0x8ec   :  { %v8280_v20 = vsub.f32 %v30952_v23, %v8279_v43  ;;  %36229 = vst [vmem:[#allocation48_spill] sm:$0xff] %v31022_v27  ;;  %v36233_v23 = vand.u32 4294901760, %v30937_v63 }
 0x8ed   :  { %25865 = vmatmul.mubr.f32.vlgmr.msra.gmra.mrb[10].mxu1 %v30808_v9 }
 0x8ee   :  { %25871 = vmatprep.mubr.f32.mxu1 %v30810_v45  ;;  %26005 = vmatpush3.bf16.msra.mxu1 %v30667_v62  ;;  %v8262_v45 = vsub.f32 %v30928_v28, %v35561_v51  ;;  %v8273_v62 = vand.u32 4294901760, %v30941_v44  ;;  %v8287_v51 = vand.u32 4294901760, %v8286_v56  ;;  %v8281_v57 = vand.u32 4294901760, %v8280_v20 }
 0x8ef   :  { %26055 = vmatprep.subr.bf16.mxu1 %v30933_v53  ;;  %v36232_v20 = vand.u32 4294901760, %v30935_v52 }
 0x8f0   :  { %v8263_v40 = vand.u32 4294901760, %v8262_v45  ;;  %v8274_v26 = vsub.f32 %v30941_v44, %v8273_v62  ;;  %v31049_v29 = vpack.c.bf16 %v8285_v58, %v8273_v62 }
 0x8f1   :  { %v31046_v25 = vpack.c.bf16 %v36233_v23, %v36232_v20 }
 0x8f2   :  { %v30987_v10 = vpack.c.bf16 %v8263_v40, %v8251_v30  ;;  %v8275_v45 = vand.u32 4294901760, %v8274_v26  ;;  %v30998_v40 = vpack.c.bf16 %v8293_v8, %v8281_v57  ;;  %v31003_v26 = vpack.c.bf16 %v30928_v28, %v30926_v19  ;;  %36235 = vst [vmem:[#allocation44_spill] sm:$0xff] %v31049_v29 }
 0x8f3   :  { %v31010_v30 = vpack.c.bf16 %v30937_v63, %v30935_v52  ;;  %36234 = vst [vmem:[#allocation49_spill] sm:$0xff] %v31046_v25  ;;  %v31059_v52 = vpack.c.bf16 %v8291_v50, %v8279_v43  ;;  %v7546_v50 = vld [vmem:[#allocation20 + $0x88] sm:$0xff]  ;;  %v7552_v43 = vld [vmem:[#allocation20 + $0xb8] sm:$0xff]  ;;  %v36239_v57 = vand.u32 4294901760, %v30882_v49 }
 0x8f4   :  { %v30993_v39 = vpack.c.bf16 %v8287_v51, %v8275_v45  ;;  %v31015_v51 = vpack.c.bf16 %v30943_v35, %v30941_v44  ;;  %v36230_v44 = vand.u32 4294901760, %v30928_v28  ;;  %v8752_v56 = vand.u32 4294901760, %v7546_v50  ;;  %v7551_v45 = vld [vmem:[#allocation20 + $0xb0] sm:$0xff] }
 0x8f5   :  { %25872 = vmatmul.mubr.f32.vlgmr.msra.gmra.mrb[10].mxu1 %v30808_v9  ;;  %v30990_v9 = vpack.c.bf16 %v8269_v22, %v8257_v55  ;;  %36227 = vst [vmem:[#allocation47_spill] sm:$0xff] %v31010_v30  ;;  %36238 = vst [vmem:[#allocation51_spill] sm:$0xff] %v31059_v52  ;;  %v8756_v55 = vand.u32 4294901760, %v7552_v43  ;;  %v7545_v22 = vld [vmem:[#allocation20 + $0x80] sm:$0xff]  ;;  %v31092_v8 = vsub.f32 %v30882_v49, %v36239_v57 }
 0x8f6   :  { %26057 = vmatpush1.bf16.msra.mxu1 %v30965_v14  ;;  %8224 = vmatprep.mubr.f32.mxu1 %v36221_v60  ;;  %36228 = vst [vmem:[#allocation41_spill] sm:$0xff] %v31015_v51  ;;  %v31037_v35 = vpack.c.bf16 %v36230_v44, %v8249_v1  ;;  %v36240_v44 = vand.u32 4294901760, %v30884_v4  ;;  %v8754_v23 = vand.u32 4294901760, %v7545_v22 }
 0x8f7   :  { %26059 = vmatprep.subr.bf16.mxu1 %v30967_v11  ;;  %v8841_v49 = vand.u32 4294901760, %v31092_v8 }
 0x8f8   :  { %36231 = vst [vmem:[#allocation43_spill] sm:$0xff] %v31037_v35  ;;  %v31097_v20 = vsub.f32 %v30884_v4, %v36240_v44  ;;  %v31113_v4 = vsub.f32 %v7546_v50, %v8752_v56 }
 0x8fa   :  { %26061 = vmatpush1.bf16.msra.mxu1 %v30980_v36  ;;  %v8853_v57 = vand.u32 4294901760, %v31097_v20 }
 0x8fb   :  { %26063 = vmatprep.subr.bf16.mxu1 %v30987_v10 }
 0x8fd   :  { %8230 = vmatmul.mubr.f32.vlgmr.msra.gmra.mrb[12].mxu1 %v30723_v32 }
 0x8fe   :  { %26065 = vmatpush1.bf16.msra.mxu1 %v30990_v9  ;;  %8235 = vmatprep.mubr.f32.mxu1 %v36221_v60 }
 0x8ff   :  { %26067 = vmatprep.subr.bf16.mxu1 %v30993_v39 }
 0x901   :  { %8241 = vmatmul.mubr.f32.gmra.mrb[14].mxu1 %v30786_v3 }
 0x902   :  { %26069 = vmatpush1.bf16.msra.mxu1 %v30998_v40  ;;  %8351 = vmatprep.mubr.f32.mxu1 %v36221_v60 }
 0x903   :  { %26071 = vmatprep.subr.bf16.mxu1 %v31003_v26 }
 0x905   :  { %8353 = vmatmul.mubr.f32.vlgmr.msra.gmra.mrb[12].mxu1 %v30704_v0 }
 0x906   :  { %26073 = vmatpush1.bf16.msra.mxu1 %v31010_v30  ;;  %8358 = vmatprep.mubr.f32.mxu1 %v36221_v60 }
 0x907   :  { %26075 = vmatprep.subr.bf16.mxu1 %v31015_v51 }
 0x909   :  { %8360 = vmatmul.mubr.f32.gmra.mrb[14].mxu1 %v30710_v18 }
 0x90a   :  { %26077 = vmatpush1.bf16.msra.mxu1 %v31022_v27  ;;  %8446 = vmatprep.mubr.f32.mxu1 %v36221_v60 }
 0x90b   :  { %26079 = vmatprep.subr.bf16.mxu1 %v30933_v53 }
 0x90d   :  { %8449 = vmatmul.mubr.f32.vlgmr.msra.gmra.mrb[12].mxu1 %v30708_v61 }
 0x90e   :  { %26081 = vmatpush1.bf16.msra.mxu1 %v30965_v14  ;;  %8454 = vmatprep.mubr.f32.mxu1 %v36221_v60 }
 0x90f   :  { %26083 = vmatprep.subr.bf16.mxu1 %v30967_v11 }
 0x911   :  { %8457 = vmatmul.mubr.f32.gmra.mrb[14].mxu1 %v30716_v24 }
 0x912   :  { %26085 = vmatpush1.bf16.msra.mxu1 %v30980_v36  ;;  %8535 = vmatprep.mubr.f32.mxu1 %v36221_v60 }
 0x913   :  { %26087 = vmatprep.subr.bf16.mxu1 %v31037_v35 }
 0x915   :  { %v31051_v19 = vpop.f32.mrb[10].mxu0  ;;  %8539 = vmatmul.mubr.f32.vlgmr.msra.gmra.mrb[12].mxu1 %v30713_v6 }
 0x916   :  { %36236 = vst [vmem:[#allocation50_spill] sm:$0xff] %v31051_v19  ;;  %v35563_v28 = vsub.f32 1.0, %v31051_v19  ;;  %v31055_v1 = vpop.f32.mrb[11].mxu0  ;;  %26089 = vmatpush1.bf16.msra.mxu1 %v31046_v25  ;;  %8544 = vmatprep.mubr.f32.mxu1 %v36221_v60 }
 0x917   :  { %36237 = vst [vmem:[#allocation45_spill] sm:$0xff] %v31055_v1  ;;  %v35562_v63 = vsub.f32 1.0, %v31055_v1  ;;  %26091 = vmatprep.subr.bf16.mxu1 %v31049_v29  ;;  %v31109_v1 = vpack.c.bf16 %v8756_v55, %v8752_v56  ;;  %v31123_v29 = vsub.f32 %v7545_v22, %v8754_v23 }
 0x918   :  { %v7488_v62 = vsel %vm854_vm9, %v35563_v28, -inf }
 0x919   :  { %7489 = vmax.xlane.f32.xlu0 %v7488_v62  ;;  %v7485_v58 = vsel %vm854_vm9, %v35562_v63, -inf  ;;  %8548 = vmatmul.mubr.f32.gmra.mrb[14].mxu1 %v30721_v15  ;;  %v8758_v62 = vand.u32 4294901760, %v7551_v45  ;;  %v36242_v63 = vand.u32 4294901760, %v30895_v48  ;;  %v8871_v12 = vand.u32 4294901760, %v31123_v29 }
 0x91a   :  { %7486 = vmax.xlane.f32.xlu1 %v7485_v58  ;;  %26093 = vmatpush1.bf16.msra.mxu1 %v31059_v52  ;;  %v36241_v58 = vand.u32 4294901760, %v30893_v47  ;;  %v8865_v52 = vand.u32 4294901760, %v31113_v4 }
 0x91b   :  { %8642 = vmatprep.mubr.f32.mxu1 %v36221_v60  ;;  %26095 = vmatprep.subr.bf16.mxu1 %v30933_v53  ;;  %v31107_v28 = vsub.f32 %v30895_v48, %v36242_v63  ;;  %v31115_v44 = vpack.c.bf16 %v8758_v62, %v8754_v23  ;;  %v8842_v48 = vsub.f32 %v31092_v8, %v8841_v49 }
 0x91c   :  { %26107 = vmatprep.subr.bf16.mxu0 %v31109_v1  ;;  %v8854_v63 = vsub.f32 %v31097_v20, %v8853_v57  ;;  %v8882_v35 = vsub.f32 %v7551_v45, %v8758_v62  ;;  %v8872_v30 = vsub.f32 %v31123_v29, %v8871_v12 }
 0x91d   :  { %8644 = vmatmul.mubr.f32.vlgmr.msra.gmra.mrb[12].mxu1 %v30704_v0  ;;  %26109 = vmatpush1.bf16.msra.mxu0 %v31115_v44  ;;  %v8843_v13 = vand.u32 4294901760, %v8842_v48 }
 0x91e   :  { %26097 = vmatpush1.bf16.msra.mxu1 %v30965_v14  ;;  %8649 = vmatprep.mubr.f32.mxu1 %v36221_v60  ;;  %v8883_v51 = vand.u32 4294901760, %v8882_v35  ;;  %v8873_v48 = vand.u32 4294901760, %v8872_v30 }
 0x91f   :  { %26099 = vmatprep.subr.bf16.mxu1 %v30967_v11 }
 0x920   :  { %8822 = vmatmul.mubr.f32.vlgmr.msra.gmra.mrb[16].mxu0 %v30723_v32  ;;  %v8884_v62 = vsub.f32 %v8882_v35, %v8883_v51 }
 0x921   :  { %8651 = vmatmul.mubr.f32.gmra.mrb[14].mxu1 %v30710_v18  ;;  %8827 = vmatprep.mubr.f32.mxu0 %v36221_v60 }
 0x922   :  { %26101 = vmatpush1.bf16.msra.mxu1 %v30980_v36  ;;  %8729 = vmatprep.mubr.f32.mxu1 %v36221_v60 }
 0x923   :  { %26151 = vmatprep.subr.bf16.mxu1 %v30725_v16 }
 0x924   :  { %8833 = vmatmul.mubr.f32.gmra.mrb[18].mxu0 %v30786_v3 }
 0x925   :  { %8731 = vmatmul.mubr.f32.vlgmr.msra.gmra.mrb[12].mxu1 %v30704_v0  ;;  %8943 = vmatprep.mubr.f32.mxu0 %v36221_v60 }
 0x926   :  { %8736 = vmatprep.mubr.f32.mxu1 %v36221_v60  ;;  %26153 = vmatpush1.bf16.msra.mxu1 %v30727_v33 }
 0x927   :  { %26155 = vmatprep.subr.bf16.mxu1 %v30737_v41 }
 0x929   :  { %8738 = vmatmul.mubr.f32.gmra.mrb[14].mxu1 %v30710_v18 }
 0x92a   :  { %26157 = vmatpush1.bf16.msra.mxu1 %v30745_v5  ;;  %9414 = vmatprep.mubr.f32.mxu1 %v36221_v60 }
 0x92b   :  { %26159 = vmatprep.subr.bf16.mxu1 %v30778_v46  ;;  %v31102_v46 = vsub.f32 %v30893_v47, %v36241_v58  ;;  %v8859_v47 = vand.u32 4294901760, %v31107_v28  ;;  %v8876_v58 = vsub.f32 %v7552_v43, %v8756_v55  ;;  %v8855_v43 = vand.u32 4294901760, %v8854_v63 }
 0x92c   :  { %v8866_v55 = vsub.f32 %v31113_v4, %v8865_v52 }
 0x92d   :  { %v8847_v19 = vand.u32 4294901760, %v31102_v46  ;;  %v8860_v56 = vsub.f32 %v31107_v28, %v8859_v47  ;;  %v8877_v25 = vand.u32 4294901760, %v8876_v58  ;;  %v31131_v22 = vpack.c.bf16 %v8855_v43, %v8843_v13 }
 0x92e   :  { %v8867_v23 = vand.u32 4294901760, %v8866_v55  ;;  %v31144_v13 = vpack.c.bf16 %v31097_v20, %v31092_v8  ;;  %v31157_v30 = vpack.c.bf16 %v8876_v58, %v31113_v4  ;;  %v288_v8 = vld [vmem:[#allocation2 + $0x10] sm:$0xff]  ;;  %v289_v20 = vld [vmem:[#allocation2 + $0x18] sm:$0xff] }
 0x92f   :  { %v8848_v50 = vsub.f32 %v31102_v46, %v8847_v19  ;;  %v8861_v38 = vand.u32 4294901760, %v8860_v56  ;;  %v8878_v59 = vsub.f32 %v8876_v58, %v8877_v25  ;;  %26111 = vmatprep.subr.bf16.mxu0 %v31131_v22 }
 0x931   :  { %v8849_v27 = vand.u32 4294901760, %v8848_v50  ;;  %v8879_v45 = vand.u32 4294901760, %v8878_v59  ;;  %v8885_v50 = vand.u32 4294901760, %v8884_v62  ;;  %v31153_v59 = vpack.c.bf16 %v31107_v28, %v31102_v46 }
 0x932   :  { %v31182_v28 = vpack.c.bf16 %v8877_v25, %v8865_v52  ;;  %v9337_v46 = vsel %vm7553_vm13, %v288_v8, 0 }
 0x933   :  { %v31134_v5 = vpack.c.bf16 %v8861_v38, %v8849_v27  ;;  %v31139_v63 = vpack.c.bf16 %v8879_v45, %v8867_v23  ;;  %v31147_v38 = vpack.c.bf16 %v8885_v50, %v8873_v48  ;;  %v31163_v27 = vpack.c.bf16 %v8882_v35, %v31123_v29 }
 0x934   :  { %v31174_v35 = vpack.c.bf16 %v8853_v57, %v8841_v49  ;;  %v31179_v29 = vpack.c.bf16 %v8859_v47, %v8847_v19  ;;  %v9340_v49 = vsel %vm7553_vm13, %v289_v20, 0  ;;  %v31189_v57 = vpack.c.bf16 %v8883_v51, %v8871_v12 }
 0x935   :  { %26113 = vmatpush1.bf16.msra.mxu0 %v31134_v5  ;;  %v31191_v19 = vand.u32 4294901760, %v9337_v46  ;;  %v31193_v4 = vand.u32 4294901760, %v9340_v49 }
 0x936   :  { %26115 = vmatprep.subr.bf16.mxu0 %v31139_v63 }
 0x937   :  { %36243 = vst [vmem:[#allocation53_spill] sm:$0xff] %v31191_v19  ;;  %36244 = vst [vmem:[#allocation52_spill] sm:$0xff] %v31193_v4  ;;  %v31197_v25 = vsub.f32 %v9337_v46, %v31191_v19  ;;  %v31200_v52 = vsub.f32 %v9340_v49, %v31193_v4 }
 0x939   :  { %26117 = vmatpush1.bf16.msra.mxu0 %v31147_v38  ;;  %36245 = vst [vmem:[#allocation54_spill] sm:$0xff] %v31197_v25  ;;  %36246 = vst [vmem:[#allocation55_spill] sm:$0xff] %v31200_v52  ;;  %v31206_v12 = vand.u32 4294901760, %v31197_v25  ;;  %v31209_v51 = vand.u32 4294901760, %v31200_v52 }
 0x93a   :  { %26119 = vmatprep.subr.bf16.mxu0 %v31144_v13 }
 0x93b   :  { %36247 = vst [vmem:[#allocation56_spill] sm:$0xff] %v31206_v12  ;;  %36248 = vst [vmem:[#allocation57_spill] sm:$0xff] %v31209_v51  ;;  %v9418_v47 = vsub.f32 %v31197_v25, %v31206_v12  ;;  %v9429_v56 = vsub.f32 %v31200_v52, %v31209_v51 }
 0x93c   :  { %8945 = vmatmul.mubr.f32.vlgmr.msra.gmra.mrb[16].mxu0 %v30704_v0 }
 0x93d   :  { %26121 = vmatpush1.bf16.msra.mxu0 %v31153_v59  ;;  %8950 = vmatprep.mubr.f32.mxu0 %v36221_v60  ;;  %v31217_v58 = vand.u32 4294901760, %v9418_v47  ;;  %v31227_v43 = vand.u32 4294901760, %v9429_v56 }
 0x93e   :  { %26123 = vmatprep.subr.bf16.mxu0 %v31157_v30 }
 0x93f   :  { %36249 = vst [vmem:[#allocation58_spill] sm:$0xff] %v31217_v58  ;;  %9420 = vmatmul.mubr.f32.vlgmr.msra.gmra.mrb[16].mxu1 %v31217_v58  ;;  %36250 = vst [vmem:[#allocation59_spill] sm:$0xff] %v31227_v43 }
 0x940   :  { %8952 = vmatmul.mubr.f32.gmra.mrb[18].mxu0 %v30710_v18  ;;  %26161 = vmatpush1.bf16.msra.mxu1 %v30782_v37  ;;  %v36251_v37 = vld [vmem:[#allocation36_spill] sm:$0xff] }
 0x941   :  { %26125 = vmatpush1.bf16.msra.mxu0 %v31163_v27  ;;  %9038 = vmatprep.mubr.f32.mxu0 %v36221_v60 }
 0x942   :  { %26127 = vmatprep.subr.bf16.mxu0 %v30909_v42  ;;  %9425 = vmatprep.mubr.f32.mxu1 %v36221_v60 }
 0x943   :  { %9431 = vmatmul.mubr.f32.gmra.mrb[18].mxu1 %v31227_v43  ;;  %26163 = vmatprep.subr.bf16.mxu1 %v30789_v2  ;;  %v36252_v2 = vld [vmem:[#allocation47_spill] sm:$0xff] }
 0x944   :  { %9041 = vmatmul.mubr.f32.vlgmr.msra.gmra.mrb[16].mxu0 %v30708_v61  ;;  %26165 = vmatpush1.bf16.msra.mxu1 %v30805_v34  ;;  %v36254_v34 = vld [vmem:[#allocation42_spill] sm:$0xff] }
 0x945   :  { %26129 = vmatpush1.bf16.msra.mxu0 %v30918_v21  ;;  %9046 = vmatprep.mubr.f32.mxu0 %v36221_v60 }
 0x946   :  { %26131 = vmatprep.subr.bf16.mxu0 %v31109_v1  ;;  %9541 = vmatprep.mubr.f32.mxu1 %v36221_v60 }
 0x947   :  { %9543 = vmatmul.mubr.f32.vlgmr.msra.gmra.mrb[16].mxu1 %v31191_v19  ;;  %26167 = vmatprep.subr.bf16.mxu1 %v30802_v54  ;;  %v36253_v54 = vld [vmem:[#allocation41_spill] sm:$0xff] }
 0x948   :  { %9049 = vmatmul.mubr.f32.gmra.mrb[18].mxu0 %v30716_v24  ;;  %26169 = vmatpush1.bf16.msra.mxu1 %v30815_v7  ;;  %v36255_v7 = vld [vmem:[#allocation46_spill] sm:$0xff] }
 0x949   :  { %26133 = vmatpush1.bf16.msra.mxu0 %v31115_v44  ;;  %9127 = vmatprep.mubr.f32.mxu0 %v36221_v60 }
 0x94a   :  { %26135 = vmatprep.subr.bf16.mxu0 %v31174_v35  ;;  %9548 = vmatprep.mubr.f32.mxu1 %v36221_v60 }
 0x94b   :  { %9550 = vmatmul.mubr.f32.gmra.mrb[18].mxu1 %v31193_v4  ;;  %26171 = vmatprep.subr.bf16.mxu1 %v30823_v31  ;;  %v36256_v31 = vld [vmem:[#allocation48_spill] sm:$0xff] }
 0x94c   :  { %9131 = vmatmul.mubr.f32.vlgmr.msra.gmra.mrb[16].mxu0 %v30713_v6  ;;  %26173 = vmatpush1.bf16.msra.mxu1 %v30832_v17  ;;  %v36257_v17 = vld [vmem:[#allocation39_spill] sm:$0xff] }
 0x94d   :  { %26137 = vmatpush1.bf16.msra.mxu0 %v31179_v29  ;;  %9136 = vmatprep.mubr.f32.mxu0 %v36221_v60 }
 0x94e   :  { %26139 = vmatprep.subr.bf16.mxu0 %v31182_v28  ;;  %9636 = vmatprep.mubr.f32.mxu1 %v36221_v60 }
 0x94f   :  { %9639 = vmatmul.mubr.f32.vlgmr.msra.gmra.mrb[16].mxu1 %v31197_v25  ;;  %26175 = vmatprep.subr.bf16.mxu1 %v30725_v16 }
 0x950   :  { %9140 = vmatmul.mubr.f32.gmra.mrb[18].mxu0 %v30721_v15  ;;  %26177 = vmatpush1.bf16.msra.mxu1 %v30727_v33 }
 0x951   :  { %26141 = vmatpush1.bf16.msra.mxu0 %v31189_v57  ;;  %9234 = vmatprep.mubr.f32.mxu0 %v36221_v60 }
 0x952   :  { %26143 = vmatprep.subr.bf16.mxu0 %v30909_v42  ;;  %9644 = vmatprep.mubr.f32.mxu1 %v36221_v60 }
 0x953   :  { %9647 = vmatmul.mubr.f32.gmra.mrb[18].mxu1 %v31200_v52  ;;  %26179 = vmatprep.subr.bf16.mxu1 %v30737_v41 }
 0x954   :  { %9236 = vmatmul.mubr.f32.vlgmr.msra.gmra.mrb[16].mxu0 %v30704_v0  ;;  %26181 = vmatpush1.bf16.msra.mxu1 %v36251_v37 }
 0x955   :  { %26145 = vmatpush1.bf16.msra.mxu0 %v30918_v21  ;;  %9241 = vmatprep.mubr.f32.mxu0 %v36221_v60 }
 0x956   :  { %26147 = vmatprep.subr.bf16.mxu0 %v31109_v1  ;;  %9725 = vmatprep.mubr.f32.mxu1 %v36221_v60 }
 0x957   :  { %9729 = vmatmul.mubr.f32.vlgmr.msra.gmra.mrb[16].mxu1 %v31206_v12  ;;  %26183 = vmatprep.subr.bf16.mxu1 %v36254_v34 }
 0x958   :  { %9243 = vmatmul.mubr.f32.gmra.mrb[18].mxu0 %v30710_v18  ;;  %26185 = vmatpush1.bf16.msra.mxu1 %v36255_v7 }
 0x959   :  { %26149 = vmatpush1.bf16.msra.mxu0 %v31115_v44  ;;  %9321 = vmatprep.mubr.f32.mxu0 %v36221_v60 }
 0x95a   :  { %26199 = vmatprep.subr.bf16.mxu0 %v30933_v53  ;;  %9734 = vmatprep.mubr.f32.mxu1 %v36221_v60 }
 0x95b   :  { %9738 = vmatmul.mubr.f32.gmra.mrb[18].mxu1 %v31209_v51  ;;  %26187 = vmatprep.subr.bf16.mxu1 %v36257_v17 }
 0x95c   :  { %9323 = vmatmul.mubr.f32.vlgmr.msra.gmra.mrb[16].mxu0 %v30704_v0  ;;  %9832 = vmatprep.mubr.f32.mxu1 %v36221_v60 }
 0x95d   :  { %26201 = vmatpush1.bf16.msra.mxu0 %v30965_v14  ;;  %9328 = vmatprep.mubr.f32.mxu0 %v36221_v60 }
 0x95e   :  { %26203 = vmatprep.subr.bf16.mxu0 %v30967_v11 }
 0x960   :  { %9330 = vmatmul.mubr.f32.gmra.mrb[18].mxu0 %v30710_v18 }
 0x961   :  { %26205 = vmatpush1.bf16.msra.mxu0 %v30980_v36  ;;  %10006 = vmatprep.mubr.f32.mxu0 %v36221_v60 }
 0x962   :  { %26207 = vmatprep.subr.bf16.mxu0 %v30987_v10  ;;  %v36258_v10 = vld [vmem:[#allocation40_spill] sm:$0xff] }
 0x963   :  { %26189 = vmatpush1.bf16.msra.mxu1 %v36258_v10 }
 0x964   :  { %10012 = vmatmul.mubr.f32.vlgmr.msra.gmra.mrb[20].mxu0 %v31217_v58  ;;  %26191 = vmatprep.subr.bf16.mxu1 %v30725_v16  ;;  %v36260_v16 = vld [vmem:[#allocation49_spill] sm:$0xff] }
 0x965   :  { %26209 = vmatpush1.bf16.msra.mxu0 %v30990_v9  ;;  %10017 = vmatprep.mubr.f32.mxu0 %v36221_v60  ;;  %v36259_v9 = vld [vmem:[#allocation43_spill] sm:$0xff] }
 0x966   :  { %26211 = vmatprep.subr.bf16.mxu0 %v30993_v39  ;;  %9834 = vmatmul.mubr.f32.vlgmr.msra.gmra.mrb[16].mxu1 %v31191_v19  ;;  %v36265_v39 = vld [vmem:[#allocation45_spill] sm:$0xff] }
 0x967   :  { %26193 = vmatpush1.bf16.msra.mxu1 %v30727_v33  ;;  %9839 = vmatprep.mubr.f32.mxu1 %v36221_v60  ;;  %v36261_v33 = vld [vmem:[#allocation44_spill] sm:$0xff] }
 0x968   :  { %10023 = vmatmul.mubr.f32.gmra.mrb[22].mxu0 %v31227_v43  ;;  %26195 = vmatprep.subr.bf16.mxu1 %v30737_v41  ;;  %v36262_v41 = vld [vmem:[#allocation51_spill] sm:$0xff] }
 0x969   :  { %26213 = vmatpush1.bf16.msra.mxu0 %v30998_v40  ;;  %10133 = vmatprep.mubr.f32.mxu0 %v36221_v60  ;;  %v36266_v40 = vsub.f32 1.0, %v36265_v39 }
 0x96a   :  { %26215 = vmatprep.subr.bf16.mxu0 %v31003_v26  ;;  %9841 = vmatmul.mubr.f32.gmra.mrb[18].mxu1 %v31193_v4 }
 0x96b   :  { %26197 = vmatpush1.bf16.msra.mxu1 %v36251_v37  ;;  %9919 = vmatprep.mubr.f32.mxu1 %v36221_v60 }
 0x96c   :  { %10135 = vmatmul.mubr.f32.vlgmr.msra.gmra.mrb[20].mxu0 %v31191_v19  ;;  %26247 = vmatprep.subr.bf16.mxu1 %v30909_v42 }
 0x96d   :  { %26217 = vmatpush1.bf16.msra.mxu0 %v36252_v2  ;;  %10140 = vmatprep.mubr.f32.mxu0 %v36221_v60 }
 0x96e   :  { %26219 = vmatprep.subr.bf16.mxu0 %v36253_v54  ;;  %9921 = vmatmul.mubr.f32.vlgmr.msra.gmra.mrb[16].mxu1 %v31191_v19 }
 0x96f   :  { %26249 = vmatpush1.bf16.msra.mxu1 %v30918_v21  ;;  %9926 = vmatprep.mubr.f32.mxu1 %v36221_v60 }
 0x970   :  { %10142 = vmatmul.mubr.f32.gmra.mrb[22].mxu0 %v31193_v4  ;;  %26251 = vmatprep.subr.bf16.mxu1 %v31109_v1 }
 0x971   :  { %26221 = vmatpush1.bf16.msra.mxu0 %v36256_v31  ;;  %10228 = vmatprep.mubr.f32.mxu0 %v36221_v60 }
 0x972   :  { %26223 = vmatprep.subr.bf16.mxu0 %v30933_v53  ;;  %9928 = vmatmul.mubr.f32.gmra.mrb[18].mxu1 %v31193_v4 }
 0x973   :  { %26253 = vmatpush1.bf16.msra.mxu1 %v31115_v44  ;;  %10598 = vmatprep.mubr.f32.mxu1 %v36221_v60 }
 0x974   :  { %10231 = vmatmul.mubr.f32.vlgmr.msra.gmra.mrb[20].mxu0 %v31197_v25  ;;  %26255 = vmatprep.subr.bf16.mxu1 %v31131_v22 }
 0x975   :  { %26225 = vmatpush1.bf16.msra.mxu0 %v30965_v14  ;;  %10236 = vmatprep.mubr.f32.mxu0 %v36221_v60 }
 0x976   :  { %26227 = vmatprep.subr.bf16.mxu0 %v30967_v11  ;;  %10604 = vmatmul.mubr.f32.vlgmr.msra.gmra.mrb[20].mxu1 %v31217_v58 }
 0x977   :  { %26257 = vmatpush1.bf16.msra.mxu1 %v31134_v5  ;;  %10609 = vmatprep.mubr.f32.mxu1 %v36221_v60 }
 0x978   :  { %10239 = vmatmul.mubr.f32.gmra.mrb[22].mxu0 %v31200_v52  ;;  %26259 = vmatprep.subr.bf16.mxu1 %v31139_v63 }
 0x979   :  { %26229 = vmatpush1.bf16.msra.mxu0 %v30980_v36  ;;  %10317 = vmatprep.mubr.f32.mxu0 %v36221_v60 }
 0x97a   :  { %26231 = vmatprep.subr.bf16.mxu0 %v36259_v9  ;;  %10615 = vmatmul.mubr.f32.gmra.mrb[22].mxu1 %v31227_v43 }
 0x97b   :  { %26261 = vmatpush1.bf16.msra.mxu1 %v31147_v38  ;;  %10725 = vmatprep.mubr.f32.mxu1 %v36221_v60 }
 0x97c   :  { %10321 = vmatmul.mubr.f32.vlgmr.msra.gmra.mrb[20].mxu0 %v31206_v12  ;;  %26263 = vmatprep.subr.bf16.mxu1 %v31144_v13 }
 0x97d   :  { %26233 = vmatpush1.bf16.msra.mxu0 %v36260_v16  ;;  %10326 = vmatprep.mubr.f32.mxu0 %v36221_v60 }
 0x97e   :  { %26235 = vmatprep.subr.bf16.mxu0 %v36261_v33  ;;  %10727 = vmatmul.mubr.f32.vlgmr.msra.gmra.mrb[20].mxu1 %v31191_v19 }
 0x97f   :  { %26265 = vmatpush1.bf16.msra.mxu1 %v31153_v59  ;;  %10732 = vmatprep.mubr.f32.mxu1 %v36221_v60 }
 0x980   :  { %10330 = vmatmul.mubr.f32.gmra.mrb[22].mxu0 %v31209_v51  ;;  %26267 = vmatprep.subr.bf16.mxu1 %v31157_v30 }
 0x981   :  { %26237 = vmatpush1.bf16.msra.mxu0 %v36262_v41  ;;  %10424 = vmatprep.mubr.f32.mxu0 %v36221_v60 }
 0x982   :  { %26239 = vmatprep.subr.bf16.mxu0 %v30933_v53  ;;  %10734 = vmatmul.mubr.f32.gmra.mrb[22].mxu1 %v31193_v4  ;;  %v36263_v53 = vld [vmem:[#allocation50_spill] sm:$0xff] }
 0x983   :  { %26269 = vmatpush1.bf16.msra.mxu1 %v31163_v27  ;;  %10820 = vmatprep.mubr.f32.mxu1 %v36221_v60 }
 0x984   :  { %10426 = vmatmul.mubr.f32.vlgmr.msra.gmra.mrb[20].mxu0 %v31191_v19  ;;  %26271 = vmatprep.subr.bf16.mxu1 %v30909_v42 }
 0x985   :  { %26241 = vmatpush1.bf16.msra.mxu0 %v30965_v14  ;;  %10431 = vmatprep.mubr.f32.mxu0 %v36221_v60  ;;  %v36264_v14 = vsub.f32 1.0, %v36263_v53 }
 0x986   :  { %26243 = vmatprep.subr.bf16.mxu0 %v30967_v11  ;;  %10823 = vmatmul.mubr.f32.vlgmr.msra.gmra.mrb[20].mxu1 %v31197_v25 }
 0x987   :  { %26273 = vmatpush1.bf16.msra.mxu1 %v30918_v21  ;;  %10828 = vmatprep.mubr.f32.mxu1 %v36221_v60 }
 0x988   :  { %10433 = vmatmul.mubr.f32.gmra.mrb[22].mxu0 %v31193_v4  ;;  %26275 = vmatprep.subr.bf16.mxu1 %v31109_v1 }
 0x989   :  { %26245 = vmatpush1.bf16.msra.mxu0 %v30980_v36  ;;  %10511 = vmatprep.mubr.f32.mxu0 %v36221_v60 }
 0x98a   :  { %10831 = vmatmul.mubr.f32.gmra.mrb[22].mxu1 %v31200_v52 }
 0x98b   :  { %26277 = vmatpush1.bf16.msra.mxu1 %v31115_v44  ;;  %10909 = vmatprep.mubr.f32.mxu1 %v36221_v60 }
 0x98c   :  { %10513 = vmatmul.mubr.f32.vlgmr.msra.gmra.mrb[20].mxu0 %v31191_v19  ;;  %26279 = vmatprep.subr.bf16.mxu1 %v31174_v35 }
 0x98d   :  { %10518 = vmatprep.mubr.f32.mxu0 %v36221_v60 }
 0x98e   :  { %10913 = vmatmul.mubr.f32.vlgmr.msra.gmra.mrb[20].mxu1 %v31206_v12  ;;  %v31490_v12 = vld [vmem:[#allocation19 + $0x18] sm:$0xff] }
 0x98f   :  { %26281 = vmatpush1.bf16.msra.mxu1 %v31179_v29  ;;  %10918 = vmatprep.mubr.f32.mxu1 %v36221_v60 }
 0x990   :  { %10520 = vmatmul.mubr.f32.gmra.mrb[22].mxu0 %v31193_v4  ;;  %26283 = vmatprep.subr.bf16.mxu1 %v31182_v28 }
 0x991   :  { %11205 = vmatprep.mubr.f32.mxu0 %v36221_v60 }
 0x992   :  { %10922 = vmatmul.mubr.f32.gmra.mrb[22].mxu1 %v31209_v51 }
 0x993   :  { %26285 = vmatpush1.bf16.msra.mxu1 %v31189_v57  ;;  %11016 = vmatprep.mubr.f32.mxu1 %v36221_v60 }
 0x994   :  { %26287 = vmatprep.subr.bf16.mxu1 %v30909_v42 }
 0x996   :  { %11018 = vmatmul.mubr.f32.vlgmr.msra.gmra.mrb[20].mxu1 %v31191_v19 }
 0x997   :  { %26289 = vmatpush1.bf16.msra.mxu1 %v30918_v21  ;;  %11023 = vmatprep.mubr.f32.mxu1 %v36221_v60 }
 0x998   :  { %26291 = vmatprep.subr.bf16.mxu1 %v31109_v1 }
 0x99a   :  { %11025 = vmatmul.mubr.f32.gmra.mrb[22].mxu1 %v31193_v4 }
 0x99b   :  { %26293 = vmatpush1.bf16.msra.mxu1 %v31115_v44  ;;  %11103 = vmatprep.mubr.f32.mxu1 %v36221_v60 }
 0x99e   :  { %11105 = vmatmul.mubr.f32.vlgmr.msra.gmra.mrb[20].mxu1 %v31191_v19 }
 0x99f   :  { %11110 = vmatprep.mubr.f32.mxu1 %v36221_v60 }
 0x9a2   :  { %11112 = vmatmul.mubr.f32.gmra.mrb[22].mxu1 %v31193_v4 }
 0x9a3   :  { %11751 = vmatprep.mubr.f32.mxu1 %v36221_v60 }
 0x9a6   :  { %v7490_v5 = vpop.xlane.xlu0 %7489 }
 0x9a7   :  { %v7498_v11 = vsub.f32 %v36264_v14, %v7490_v5  ;;  %v7487_v36 = vpop.xlane.xlu1 %7486 }
 0x9a8   :  { %v7497_v26 = vsub.f32 %v36266_v40, %v7487_v36 }
 0x9a9   :  { %v7503_v55 = vmul.f32 1.442695, %v7498_v11 }
 0x9aa   :  { %v7501_v22 = vmul.f32 1.442695, %v7497_v26 }
 0x9ab   :  { %28677 = vpow2.f32 %v7503_v55 }
 0x9ac   :  { %28679 = vpow2.f32 %v7501_v22 }
 0x9b2   :  { %v8140_v13 = vpop.f32.mrb[12].mxu0 }
 0x9b3   :  { %v8142_v59 = vpop.f32.mrb[13].mxu0  ;;  %v12231_v8 = vand.u32 4294901760, %v8140_v13 }
 0x9b4   :  { %v12229_v35 = vand.u32 4294901760, %v8142_v59 }
 0x9b5   :  { %v31372_v42 = vpop.eup %28677  ;;  %v31406_v9 = vsub.f32 %v8140_v13, %v12231_v8 }
 0x9b6   :  { %v31375_v21 = vpop.eup %28679  ;;  %v7512_v1 = vsel %vm854_vm9, %v31372_v42, 0.0  ;;  %v8147_v29 = vpop.f32.mrb[14].mxu0  ;;  %v31401_v7 = vsub.f32 %v8142_v59, %v12229_v35 }
 0x9b7   :  { %7513 = vadd.xlane.f32.xlu0 %v7512_v1  ;;  %v7509_v44 = vsel %vm854_vm9, %v31375_v21, 0.0  ;;  %v12235_v20 = vand.u32 4294901760, %v8147_v29  ;;  %v8149_v46 = vpop.f32.mrb[15].mxu0  ;;  %v12328_v1 = vand.u32 4294901760, %v31406_v9 }
 0x9b8   :  { %7510 = vadd.xlane.f32.xlu1 %v7509_v44  ;;  %v12233_v57 = vand.u32 4294901760, %v8149_v46  ;;  %v12322_v40 = vand.u32 4294901760, %v31401_v7 }
 0x9b9   :  { %v31398_v37 = vpack.c.bf16 %v12235_v20, %v12231_v8  ;;  %v31413_v5 = vsub.f32 %v8147_v29, %v12235_v20 }
 0x9ba   :  { %v31403_v31 = vpack.c.bf16 %v12233_v57, %v12229_v35  ;;  %v12323_v29 = vsub.f32 %v31401_v7, %v12322_v40 }
 0x9c8   :  { %v31382_v23 = vpop.f32.mrb[10].mxu1 }
 0x9c9   :  { %v35580_v45 = vsub.f32 1.0, %v31382_v23  ;;  %v31385_v62 = vpop.f32.mrb[11].mxu1 }
 0x9ca   :  { %v35579_v48 = vsub.f32 1.0, %v31385_v62 }
 0x9cb   :  { %v7494_v63 = vsel %vm854_vm9, %v35580_v45, -inf }
 0x9cc   :  { %7495 = vmax.xlane.f32.xlu0 %v7494_v63  ;;  %v7491_v50 = vsel %vm854_vm9, %v35579_v48, -inf }
 0x9cd   :  { %7492 = vmax.xlane.f32.xlu1 %v7491_v50  ;;  %v31433_v50 = vsub.f32 %v8149_v46, %v12233_v57 }
 0x9f8   :  { %v8732_v38 = vpop.f32.mrb[12].mxu1 }
 0x9f9   :  { %v11139_v30 = vand.u32 4294901760, %v8732_v38  ;;  %v8734_v27 = vpop.f32.mrb[13].mxu1 }
 0x9fa   :  { %v11137_v28 = vand.u32 4294901760, %v8734_v27 }
 0x9fb   :  { %v31394_v49 = vsub.f32 %v8732_v38, %v11139_v30 }
 0x9fc   :  { %v31396_v47 = vsub.f32 %v8734_v27, %v11137_v28  ;;  %v8739_v56 = vpop.f32.mrb[14].mxu1 }
 0x9fd   :  { %v11236_v2 = vand.u32 4294901760, %v31394_v49  ;;  %v11143_v54 = vand.u32 4294901760, %v8739_v56  ;;  %v8741_v34 = vpop.f32.mrb[15].mxu1 }
 0x9fe   :  { %v11230_v17 = vand.u32 4294901760, %v31396_v47  ;;  %v11141_v10 = vand.u32 4294901760, %v8741_v34 }
 0x9ff   :  { %v11237_v16 = vsub.f32 %v31394_v49, %v11236_v2  ;;  %v31409_v33 = vpack.c.bf16 %v11143_v54, %v11139_v30  ;;  %v31411_v41 = vsub.f32 %v8739_v56, %v11143_v54  ;;  %v12340_v30 = vand.u32 4294901760, %v31413_v5 }
 0xa00   :  { %v11231_v53 = vsub.f32 %v31396_v47, %v11230_v17  ;;  %v31416_v14 = vpack.c.bf16 %v11141_v10, %v11137_v28  ;;  %v31418_v11 = vsub.f32 %v8741_v34, %v11141_v10  ;;  %v12334_v28 = vand.u32 4294901760, %v31433_v50 }
 0xa01   :  { %v11248_v36 = vand.u32 4294901760, %v31411_v41  ;;  %v11238_v44 = vand.u32 4294901760, %v11237_v16  ;;  %v12329_v56 = vsub.f32 %v31406_v9, %v12328_v1  ;;  %v12324_v54 = vand.u32 4294901760, %v12323_v29 }
 0xa02   :  { %v11242_v55 = vand.u32 4294901760, %v31418_v11  ;;  %26295 = vmatprep.subr.bf16.mxu0 %v31416_v14  ;;  %v11232_v59 = vand.u32 4294901760, %v11231_v53  ;;  %v12335_v46 = vsub.f32 %v31433_v50, %v12334_v28 }
 0xa03   :  { %v11249_v63 = vsub.f32 %v31411_v41, %v11248_v36  ;;  %26297 = vmatpush1.bf16.msra.mxu0 %v31409_v33  ;;  %v31435_v13 = vpack.c.bf16 %v11248_v36, %v11236_v2  ;;  %v12341_v2 = vsub.f32 %v31413_v5, %v12340_v30  ;;  %v12330_v10 = vand.u32 4294901760, %v12329_v56 }
 0xa04   :  { %v11243_v38 = vsub.f32 %v31418_v11, %v11242_v55  ;;  %v31439_v27 = vpack.c.bf16 %v11242_v55, %v11230_v17  ;;  %v12336_v34 = vand.u32 4294901760, %v12335_v46  ;;  %v31452_v36 = vpack.c.bf16 %v12334_v28, %v12322_v40 }
 0xa05   :  { %v11250_v35 = vand.u32 4294901760, %v11249_v63  ;;  %v12342_v16 = vand.u32 4294901760, %v12341_v2  ;;  %v31454_v55 = vpack.c.bf16 %v12340_v30, %v12328_v1 }
 0xa06   :  { %v11244_v8 = vand.u32 4294901760, %v11243_v38  ;;  %v31448_v17 = vpack.c.bf16 %v12336_v34, %v12324_v54 }
 0xa07   :  { %v31443_v20 = vpack.c.bf16 %v11250_v35, %v11238_v44  ;;  %v31456_v44 = vpack.c.bf16 %v12342_v16, %v12330_v10 }
 0xa08   :  { %v26298_v57 = vpack.c.bf16 %v11244_v8, %v11232_v59 }
 0xa0a   :  { %26299 = vmatprep.subr.bf16.mxu0 %v26298_v57 }
 0xa2f   :  { %v9324_v63 = vpop.f32.mrb[16].mxu0 }
 0xa30   :  { %v13330_v38 = vand.u32 4294901760, %v9324_v63  ;;  %v9326_v59 = vpop.f32.mrb[17].mxu0 }
 0xa31   :  { %v13328_v35 = vand.u32 4294901760, %v9326_v59 }
 0xa32   :  { %v31458_v29 = vsub.f32 %v9324_v63, %v13330_v38 }
 0xa33   :  { %v31460_v8 = vsub.f32 %v9326_v59, %v13328_v35  ;;  %v9331_v46 = vpop.f32.mrb[18].mxu0 }
 0xa34   :  { %v13427_v57 = vand.u32 4294901760, %v31458_v29  ;;  %v13334_v56 = vand.u32 4294901760, %v9331_v46  ;;  %v9333_v2 = vpop.f32.mrb[19].mxu0 }
 0xa35   :  { %v13421_v40 = vand.u32 4294901760, %v31460_v8  ;;  %v13332_v28 = vand.u32 4294901760, %v9333_v2 }
 0xa36   :  { %v13428_v1 = vsub.f32 %v31458_v29, %v13427_v57  ;;  %v31465_v30 = vpack.c.bf16 %v13334_v56, %v13330_v38  ;;  %v31467_v54 = vsub.f32 %v9331_v46, %v13334_v56 }
 0xa37   :  { %v13422_v34 = vsub.f32 %v31460_v8, %v13421_v40  ;;  %v31470_v10 = vpack.c.bf16 %v13332_v28, %v13328_v35  ;;  %v31472_v16 = vsub.f32 %v9333_v2, %v13332_v28 }
 0xa38   :  { %v13439_v63 = vand.u32 4294901760, %v31467_v54  ;;  %v13429_v53 = vand.u32 4294901760, %v13428_v1 }
 0xa39   :  { %v13433_v26 = vand.u32 4294901760, %v31472_v16  ;;  %v13423_v46 = vand.u32 4294901760, %v13422_v34 }
 0xa3a   :  { %v13440_v39 = vsub.f32 %v31467_v54, %v13439_v63  ;;  %v31484_v28 = vpack.c.bf16 %v13439_v63, %v13427_v57 }
 0xa3b   :  { %v13434_v38 = vsub.f32 %v31472_v16, %v13433_v26  ;;  %v31482_v2 = vpack.c.bf16 %v13433_v26, %v13421_v40 }
 0xa3c   :  { %v13441_v35 = vand.u32 4294901760, %v13440_v39  ;;  %v31495_v39 = vld [vmem:[#allocation19 + $0x10] sm:$0xff] }
 0xa3d   :  { %v13435_v22 = vand.u32 4294901760, %v13434_v38  ;;  %v36267_v38 = vsub.f32 1.0, %v31382_v23 }
 0xa3e   :  { %v31486_v48 = vpack.c.bf16 %v13441_v35, %v13429_v53 }
 0xa3f   :  { %v31488_v59 = vpack.c.bf16 %v13435_v22, %v13423_v46 }
 0xa44   :  { %v7514_v45 = vpop.xlane.xlu0 %7513 }
 0xa45   :  { %28681 = vrcp.f32 %v7514_v45  ;;  %v7511_v1 = vpop.xlane.xlu1 %7510 }
 0xa46   :  { %28683 = vrcp.f32 %v7511_v1 }
 0xa4f   :  { %v28682_v51 = vpop.eup %28681 }
 0xa50   :  { %v28684_v34 = vpop.eup %28683  ;;  %v31493_v56 = vmul.f32 %v28682_v51, %v31372_v42 }
 0xa51   :  { %v31498_v26 = vmul.f32 %v28684_v34, %v31375_v21 }
 0xa52   :  { %v11128_v22 = vmul.f32 %v31490_v12, %v31493_v56 }
 0xa53   :  { %v11127_v45 = vmul.f32 %v31495_v39, %v31498_v26 }
 0xa54   :  { %v11135_v53 = vsel %vm854_vm9, %v11128_v22, 0  ;;  %v36268_v22 = vsub.f32 1.0, %v31385_v62 }
 0xa55   :  { %v11132_v57 = vsel %vm854_vm9, %v11127_v45, 0  ;;  %v31506_v40 = vand.u32 4294901760, %v11135_v53 }
 0xa56   :  { %v31508_v63 = vand.u32 4294901760, %v11132_v57 }
 0xa57   :  { %v31511_v51 = vsub.f32 %v11135_v53, %v31506_v40 }
 0xa58   :  { %v31514_v42 = vsub.f32 %v11132_v57, %v31508_v63 }
 0xa59   :  { %v7496_v21 = vpop.xlane.xlu0 %7495  ;;  %v35585_v34 = vand.u32 4294901760, %v31511_v51 }
 0xa5a   :  { %v7500_v46 = vsub.f32 %v36267_v38, %v7496_v21  ;;  %v7493_v35 = vpop.xlane.xlu1 %7492  ;;  %v35586_v1 = vand.u32 4294901760, %v31514_v42  ;;  %v36269_v38 = vpack.c.bf16 %v31418_v11, %v31396_v47 }
 0xa5b   :  { %v7499_v45 = vsub.f32 %v36268_v22, %v7493_v35  ;;  %v11220_v23 = vsub.f32 %v31511_v51, %v35585_v34 }
 0xa5c   :  { %v7507_v52 = vmul.f32 1.442695, %v7500_v46  ;;  %v11209_v53 = vsub.f32 %v31514_v42, %v35586_v1  ;;  %v36271_v1 = vpack.c.bf16 %v31411_v41, %v31394_v49 }
 0xa5d   :  { %v7505_v25 = vmul.f32 1.442695, %v7499_v45  ;;  %v11221_v21 = vand.u32 4294901760, %v11220_v23 }
 0xa5e   :  { %28685 = vpow2.f32 %v7507_v52  ;;  %v11210_v57 = vand.u32 4294901760, %v11209_v53 }
 0xa5f   :  { %28687 = vpow2.f32 %v7505_v25  ;;  %v10514_v62 = vpop.f32.mrb[20].mxu0 }
 0xa60   :  { %11211 = vmatmul.mubr.f32.vlgmr.msra.gmra.mrb[24].mxu0 %v11210_v57  ;;  %v11685_v46 = vand.u32 4294901760, %v10514_v62  ;;  %v10516_v35 = vpop.f32.mrb[21].mxu0 }
 0xa61   :  { %11216 = vmatprep.mubr.f32.mxu0 %v36221_v60  ;;  %26301 = vmatpush1.bf16.msra.mxu0 %v31443_v20  ;;  %v11683_v52 = vand.u32 4294901760, %v10516_v35 }
 0xa62   :  { %26303 = vmatprep.subr.bf16.mxu0 %v36269_v38  ;;  %v31533_v22 = vsub.f32 %v10514_v62, %v11685_v46 }
 0xa63   :  { %v31536_v25 = vsub.f32 %v10516_v35, %v11683_v52  ;;  %v10521_v45 = vpop.f32.mrb[22].mxu0 }
 0xa64   :  { %11222 = vmatmul.mubr.f32.gmra.mrb[26].mxu0 %v11221_v21  ;;  %v11782_v53 = vand.u32 4294901760, %v31533_v22  ;;  %v11689_v20 = vand.u32 4294901760, %v10521_v45  ;;  %v10523_v57 = vpop.f32.mrb[23].mxu0 }
 0xa65   :  { %11312 = vmatprep.mubr.f32.mxu0 %v36221_v60  ;;  %v11776_v23 = vand.u32 4294901760, %v31536_v25  ;;  %v11687_v34 = vand.u32 4294901760, %v10523_v57 }
 0xa66   :  { %v11783_v11 = vsub.f32 %v31533_v22, %v11782_v53  ;;  %v31544_v62 = vpack.c.bf16 %v11689_v20, %v11685_v46  ;;  %v31546_v21 = vsub.f32 %v10521_v45, %v11689_v20 }
 0xa67   :  { %v11777_v4 = vsub.f32 %v31536_v25, %v11776_v23  ;;  %v31557_v19 = vpack.c.bf16 %v11687_v34, %v11683_v52  ;;  %v31559_v43 = vsub.f32 %v10523_v57, %v11687_v34 }
 0xa68   :  { %v31540_v47 = vpop.eup %28685  ;;  %11314 = vmatmul.mubr.f32.vlgmr.msra.gmra.mrb[24].mxu0 %v31508_v63  ;;  %36270 = vst [vmem:[#allocation36_spill] sm:$0xff] %v31544_v62  ;;  %v11794_v45 = vand.u32 4294901760, %v31546_v21 }
 0xa69   :  { %v31548_v38 = vpop.eup %28687  ;;  %v7518_v35 = vsel %vm854_vm9, %v31540_v47, 0.0  ;;  %11319 = vmatprep.mubr.f32.mxu0 %v36221_v60  ;;  %26305 = vmatpush1.bf16.msra.mxu0 %v36271_v1  ;;  %v11788_v49 = vand.u32 4294901760, %v31559_v43  ;;  %v11784_v1 = vand.u32 4294901760, %v11783_v11  ;;  %v11778_v52 = vand.u32 4294901760, %v11777_v4  ;;  %v31586_v4 = vld [vmem:[#allocation19] sm:$0xff] }
 0xa6a   :  { %7519 = vadd.xlane.f32.xlu0 %v7518_v35  ;;  %v7515_v46 = vsel %vm854_vm9, %v31548_v38, 0.0  ;;  %26307 = vmatprep.subr.bf16.mxu0 %v31416_v14  ;;  %v11795_v41 = vsub.f32 %v31546_v21, %v11794_v45  ;;  %v31578_v58 = vpack.c.bf16 %v11794_v45, %v11782_v53  ;;  %v11120_v53 = vmul.f32 %v31586_v4, %v31498_v26 }
 0xa6b   :  { %7516 = vadd.xlane.f32.xlu1 %v7515_v46  ;;  %26319 = vmatprep.subr.bf16.mxu1 %v31557_v19  ;;  %v11789_v34 = vsub.f32 %v31559_v43, %v11788_v49  ;;  %v31576_v20 = vpack.c.bf16 %v11788_v49, %v11776_v23  ;;  %v31592_v23 = vld [vmem:[#allocation19 + $0x8] sm:$0xff]  ;;  %v36273_v45 = vand.u32 4294901760, %v31514_v42  ;;  %v36274_v49 = vand.u32 4294901760, %v31511_v51 }
 0xa6c   :  { %11321 = vmatmul.mubr.f32.gmra.mrb[26].mxu0 %v31506_v40  ;;  %26321 = vmatpush1.bf16.msra.mxu1 %v31544_v62  ;;  %v11796_v35 = vand.u32 4294901760, %v11795_v41  ;;  %36272 = vst [vmem:[#allocation47_spill] sm:$0xff] %v31592_v23 }
 0xa6d   :  { %11399 = vmatprep.mubr.f32.mxu0 %v36221_v60  ;;  %v11790_v46 = vand.u32 4294901760, %v11789_v34  ;;  %v9922_v34 = vpop.f32.mrb[16].mxu1 }
 0xa6e   :  { %v31583_v11 = vpack.c.bf16 %v11796_v35, %v11784_v1  ;;  %v12777_v35 = vand.u32 4294901760, %v9922_v34 }
 0xa6f   :  { %v26322_v62 = vpack.c.bf16 %v11790_v46, %v11778_v52  ;;  %v9924_v46 = vpop.f32.mrb[17].mxu1 }
 0xa70   :  { %11402 = vmatmul.mubr.f32.vlgmr.msra.gmra.mrb[24].mxu0 %v31514_v42 }
 0xa71   :  { %11407 = vmatprep.mubr.f32.mxu0 %v36221_v60  ;;  %26309 = vmatpush1.bf16.msra.mxu0 %v31409_v33 }
 0xa72   :  { %26311 = vmatprep.subr.bf16.mxu0 %v31439_v27  ;;  %26323 = vmatprep.subr.bf16.mxu1 %v26322_v62  ;;  %v11121_v27 = vmul.f32 %v31592_v23, %v31493_v56  ;;  %v12224_v62 = vsel %vm854_vm9, %v11120_v53, 0  ;;  %v9929_v53 = vpop.f32.mrb[18].mxu1 }
 0xa73   :  { %v31605_v41 = vand.u32 4294901760, %v12224_v62 }
 0xa74   :  { %11410 = vmatmul.mubr.f32.gmra.mrb[26].mxu0 %v31511_v51  ;;  %v12227_v42 = vsel %vm854_vm9, %v11121_v27, 0 }
 0xa75   :  { %11484 = vmatprep.mubr.f32.mxu0 %v36221_v60 }
 0xa78   :  { %11488 = vmatmul.mubr.f32.vlgmr.msra.gmra.mrb[24].mxu0 %v36273_v45  ;;  %v12781_v45 = vand.u32 4294901760, %v9929_v53 }
 0xa79   :  { %11493 = vmatprep.mubr.f32.mxu0 %v36221_v60  ;;  %26313 = vmatpush1.bf16.msra.mxu0 %v31435_v13  ;;  %v31615_v13 = vsub.f32 %v12224_v62, %v31605_v41  ;;  %v12775_v62 = vand.u32 4294901760, %v9924_v46 }
 0xa7a   :  { %26315 = vmatprep.subr.bf16.mxu0 %v31416_v14  ;;  %v31611_v14 = vand.u32 4294901760, %v12227_v42  ;;  %v31638_v57 = vpack.c.bf16 %v12781_v45, %v12777_v35 }
 0xa7b   :  { %v35595_v1 = vand.u32 4294901760, %v31615_v13 }
 0xa7c   :  { %11497 = vmatmul.mubr.f32.gmra.mrb[26].mxu0 %v36274_v49  ;;  %v31620_v51 = vsub.f32 %v12227_v42, %v31611_v14  ;;  %v31636_v42 = vsub.f32 %v9922_v34, %v12777_v35 }
 0xa7d   :  { %11579 = vmatprep.mubr.f32.mxu0 %v36221_v60  ;;  %v12301_v52 = vsub.f32 %v31615_v13, %v35595_v1  ;;  %v31640_v1 = vsub.f32 %v9929_v53, %v12781_v45 }
 0xa7e   :  { %36275 = vst [vmem:[#allocation41_spill] sm:$0xff] %v31636_v42  ;;  %v12874_v53 = vand.u32 4294901760, %v31636_v42 }
 0xa7f   :  { %v12886_v45 = vand.u32 4294901760, %v31640_v1 }
 0xa80   :  { %11581 = vmatmul.mubr.f32.vlgmr.msra.gmra.mrb[24].mxu0 %v31508_v63 }
 0xa81   :  { %11586 = vmatprep.mubr.f32.mxu0 %v36221_v60  ;;  %26317 = vmatpush1.bf16.msra.mxu0 %v31409_v33  ;;  %v35597_v33 = vand.u32 4294901760, %v31620_v51 }
 0xa82   :  { %26343 = vmatprep.subr.bf16.mxu0 %v31403_v31 }
 0xa83   :  { %v12312_v27 = vsub.f32 %v31620_v51, %v35597_v33  ;;  %v36276_v33 = vpack.c.bf16 %v31433_v50, %v31401_v7  ;;  %v36277_v7 = vpack.c.bf16 %v31413_v5, %v31406_v9  ;;  %v12875_v50 = vsub.f32 %v31636_v42, %v12874_v53 }
 0xa84   :  { %11588 = vmatmul.mubr.f32.gmra.mrb[26].mxu0 %v31506_v40 }
 0xa85   :  { %11662 = vmatprep.mubr.f32.mxu0 %v36221_v60  ;;  %v12313_v34 = vand.u32 4294901760, %v12312_v27  ;;  %v12876_v27 = vand.u32 4294901760, %v12875_v50  ;;  %v13316_v50 = vld [vmem:[#allocation19 + $0x20] sm:$0xff] }
 0xa88   :  { %11664 = vmatmul.mubr.f32.vlgmr.msra.gmra.mrb[24].mxu0 %v31508_v63  ;;  %v9931_v63 = vpop.f32.mrb[19].mxu1 }
 0xa89   :  { %26345 = vmatpush1.bf16.msra.mxu0 %v31398_v37  ;;  %11669 = vmatprep.mubr.f32.mxu0 %v36221_v60  ;;  %v12779_v49 = vand.u32 4294901760, %v9931_v63 }
 0xa8a   :  { %26347 = vmatprep.subr.bf16.mxu0 %v31448_v17  ;;  %v12302_v17 = vand.u32 4294901760, %v12301_v52  ;;  %v31651_v52 = vsub.f32 %v9924_v46, %v12775_v62 }
 0xa8b   :  { %v31642_v23 = vpack.c.bf16 %v12779_v49, %v12775_v62  ;;  %v31653_v35 = vsub.f32 %v9931_v63, %v12779_v49 }
 0xa8c   :  { %11671 = vmatmul.mubr.f32.gmra.mrb[26].mxu0 %v31506_v40 }
 0xa8d   :  { %12297 = vmatprep.mubr.f32.mxu0 %v36221_v60 }
 0xa90   :  { %12303 = vmatmul.mubr.f32.vlgmr.msra.gmra.mrb[24].mxu0 %v12302_v17  ;;  %v12880_v17 = vand.u32 4294901760, %v31653_v35 }
 0xa91   :  { %26349 = vmatpush1.bf16.msra.mxu0 %v31456_v44  ;;  %12308 = vmatprep.mubr.f32.mxu0 %v36221_v60  ;;  %v12868_v44 = vand.u32 4294901760, %v31651_v52 }
 0xa92   :  { %26351 = vmatprep.subr.bf16.mxu0 %v36276_v33  ;;  %v12887_v33 = vsub.f32 %v31640_v1, %v12886_v45  ;;  %v12881_v63 = vsub.f32 %v31653_v35, %v12880_v17 }
 0xa93   :  { %v12869_v46 = vsub.f32 %v31651_v52, %v12868_v44 }
 0xa94   :  { %12314 = vmatmul.mubr.f32.gmra.mrb[26].mxu0 %v12313_v34  ;;  %v12888_v62 = vand.u32 4294901760, %v12887_v33  ;;  %v12882_v49 = vand.u32 4294901760, %v12881_v63  ;;  %v31674_v34 = vpack.c.bf16 %v12880_v17, %v12868_v44  ;;  %v13317_v44 = vld [vmem:[#allocation19 + $0x28] sm:$0xff]  ;;  %v36279_v33 = vand.u32 4294901760, %v31620_v51 }
 0xa95   :  { %12404 = vmatprep.mubr.f32.mxu0 %v36221_v60  ;;  %v12870_v5 = vand.u32 4294901760, %v12869_v46  ;;  %v11106_v46 = vpop.f32.mrb[20].mxu1 }
 0xa96   :  { %v31683_v42 = vpack.c.bf16 %v12888_v62, %v12876_v27  ;;  %v11108_v63 = vpop.f32.mrb[21].mxu1 }
 0xa97   :  { %v31681_v40 = vpack.c.bf16 %v12882_v49, %v12870_v5  ;;  %v11113_v27 = vpop.f32.mrb[22].mxu1 }
 0xa98   :  { %12406 = vmatmul.mubr.f32.vlgmr.msra.gmra.mrb[24].mxu0 %v31605_v41  ;;  %v13880_v49 = vand.u32 4294901760, %v11113_v27 }
 0xa99   :  { %26353 = vmatpush1.bf16.msra.mxu0 %v36277_v7  ;;  %12411 = vmatprep.mubr.f32.mxu0 %v36221_v60  ;;  %v31676_v7 = vpack.c.bf16 %v12886_v45, %v12874_v53  ;;  %v13318_v53 = vmul.f32 %v13316_v50, %v31498_v26  ;;  %v36278_v45 = vand.u32 4294901760, %v31615_v13  ;;  %v11115_v50 = vpop.f32.mrb[23].mxu1 }
 0xa9a   :  { %26355 = vmatprep.subr.bf16.mxu0 %v31403_v31 }
 0xa9b   :  { %v13323_v17 = vsel %vm854_vm9, %v13318_v53, 0  ;;  %v13874_v53 = vand.u32 4294901760, %v11108_v63 }
 0xa9c   :  { %12413 = vmatmul.mubr.f32.gmra.mrb[26].mxu0 %v31611_v14  ;;  %v31699_v26 = vand.u32 4294901760, %v13323_v17 }
 0xa9d   :  { %12491 = vmatprep.mubr.f32.mxu0 %v36221_v60 }
 0xaa0   :  { %12494 = vmatmul.mubr.f32.vlgmr.msra.gmra.mrb[24].mxu0 %v31615_v13 }
 0xaa1   :  { %26357 = vmatpush1.bf16.msra.mxu0 %v31398_v37  ;;  %12499 = vmatprep.mubr.f32.mxu0 %v36221_v60 }
 0xaa2   :  { %26359 = vmatprep.subr.bf16.mxu0 %v31452_v36  ;;  %v13319_v36 = vmul.f32 %v13317_v44, %v31493_v56 }
 0xaa4   :  { %12502 = vmatmul.mubr.f32.gmra.mrb[26].mxu0 %v31620_v51  ;;  %v13326_v13 = vsel %vm854_vm9, %v13319_v36, 0 }
 0xaa5   :  { %12576 = vmatprep.mubr.f32.mxu0 %v36221_v60 }
 0xaa8   :  { %12580 = vmatmul.mubr.f32.vlgmr.msra.gmra.mrb[24].mxu0 %v36278_v45  ;;  %v13878_v45 = vand.u32 4294901760, %v11115_v50 }
 0xaa9   :  { %26361 = vmatpush1.bf16.msra.mxu0 %v31454_v55  ;;  %12585 = vmatprep.mubr.f32.mxu0 %v36221_v60  ;;  %v31709_v55 = vand.u32 4294901760, %v13326_v13 }
 0xaaa   :  { %26363 = vmatprep.subr.bf16.mxu0 %v31403_v31  ;;  %v31707_v31 = vsub.f32 %v13323_v17, %v31699_v26  ;;  %v31730_v17 = vsub.f32 %v11113_v27, %v13880_v49  ;;  %v31745_v27 = vsub.f32 %v11115_v50, %v13878_v45 }
 0xaab   :  { %v31715_v51 = vsub.f32 %v13326_v13, %v31709_v55 }
 0xaac   :  { %12589 = vmatmul.mubr.f32.gmra.mrb[26].mxu0 %v36279_v33  ;;  %v13399_v56 = vand.u32 4294901760, %v31707_v31  ;;  %36281 = vst [vmem:[#allocation46_spill] sm:$0xff] %v31730_v17  ;;  %36284 = vst [vmem:[#allocation39_spill] sm:$0xff] %v31745_v27 }
 0xaad   :  { %12671 = vmatprep.mubr.f32.mxu0 %v36221_v60  ;;  %v13410_v5 = vand.u32 4294901760, %v31715_v51 }
 0xaae   :  { %v13400_v62 = vsub.f32 %v31707_v31, %v13399_v56 }
 0xaaf   :  { %v13411_v33 = vsub.f32 %v31715_v51, %v13410_v5 }
 0xab0   :  { %12673 = vmatmul.mubr.f32.vlgmr.msra.gmra.mrb[24].mxu0 %v31605_v41  ;;  %v13401_v36 = vand.u32 4294901760, %v13400_v62 }
 0xab1   :  { %26365 = vmatpush1.bf16.msra.mxu0 %v31398_v37  ;;  %12678 = vmatprep.mubr.f32.mxu0 %v36221_v60  ;;  %v13876_v37 = vand.u32 4294901760, %v11106_v46 }
 0xab2   :  { %26391 = vmatprep.subr.bf16.mxu0 %v31470_v10 }
 0xab3   :  { %v31728_v44 = vpack.c.bf16 %v13880_v49, %v13876_v37  ;;  %v13985_v49 = vand.u32 4294901760, %v31730_v17 }
 0xab4   :  { %12680 = vmatmul.mubr.f32.gmra.mrb[26].mxu0 %v31611_v14 }
 0xab5   :  { %12754 = vmatprep.mubr.f32.mxu0 %v36221_v60 }
 0xab8   :  { %12756 = vmatmul.mubr.f32.vlgmr.msra.gmra.mrb[24].mxu0 %v31605_v41  ;;  %v31726_v41 = vsub.f32 %v11106_v46, %v13876_v37  ;;  %v13412_v46 = vand.u32 4294901760, %v13411_v33  ;;  %v31743_v37 = vsub.f32 %v11108_v63, %v13874_v53  ;;  %v13986_v63 = vsub.f32 %v31730_v17, %v13985_v49 }
 0xab9   :  { %26393 = vmatpush1.bf16.msra.mxu0 %v31465_v30  ;;  %12761 = vmatprep.mubr.f32.mxu0 %v36221_v60 }
 0xaba   :  { %26395 = vmatprep.subr.bf16.mxu0 %v31488_v59  ;;  %36280 = vst [vmem:[#allocation42_spill] sm:$0xff] %v31726_v41  ;;  %v31733_v59 = vpack.c.bf16 %v13878_v45, %v13874_v53  ;;  %36283 = vst [vmem:[#allocation48_spill] sm:$0xff] %v31743_v37  ;;  %v13973_v62 = vand.u32 4294901760, %v31726_v41  ;;  %v13987_v33 = vand.u32 4294901760, %v13986_v63 }
 0xabc   :  { %12763 = vmatmul.mubr.f32.gmra.mrb[26].mxu0 %v31611_v14  ;;  %v36282_v14 = vpack.c.bf16 %v31472_v16, %v31460_v8  ;;  %v36285_v8 = vpack.c.bf16 %v31467_v54, %v31458_v29  ;;  %v13974_v16 = vsub.f32 %v31726_v41, %v13973_v62 }
 0xabd   :  { %13396 = vmatprep.mubr.f32.mxu0 %v36221_v60 }
 0xabe   :  { %v13975_v45 = vand.u32 4294901760, %v13974_v16 }
 0xac0   :  { %13402 = vmatmul.mubr.f32.vlgmr.msra.gmra.mrb[24].mxu0 %v13401_v36  ;;  %v13979_v36 = vand.u32 4294901760, %v31745_v27  ;;  %v31775_v9 = vpack.c.bf16 %v13987_v33, %v13975_v45 }
 0xac1   :  { %26397 = vmatpush1.bf16.msra.mxu0 %v31486_v48  ;;  %13407 = vmatprep.mubr.f32.mxu0 %v36221_v60  ;;  %v13967_v48 = vand.u32 4294901760, %v31743_v37 }
 0xac2   :  { %26399 = vmatprep.subr.bf16.mxu0 %v36282_v14  ;;  %v13980_v53 = vsub.f32 %v31745_v27, %v13979_v36  ;;  %36289 = vst [vmem:[#allocation44_spill] sm:$0xff] %v31775_v9 }
 0xac3   :  { %v13968_v50 = vsub.f32 %v31743_v37, %v13967_v48 }
 0xac4   :  { %13413 = vmatmul.mubr.f32.gmra.mrb[26].mxu0 %v13412_v46  ;;  %v13981_v14 = vand.u32 4294901760, %v13980_v53  ;;  %v31766_v46 = vpack.c.bf16 %v13979_v36, %v13967_v48  ;;  %v14495_v48 = vld [vmem:[#allocation22 + $0x8] sm:$0xff]  ;;  %v14497_v36 = vld [vmem:[#allocation22 + $0x18] sm:$0xff] }
 0xac5   :  { %13503 = vmatprep.mubr.f32.mxu0 %v36221_v60  ;;  %v13969_v54 = vand.u32 4294901760, %v13968_v50  ;;  %v14502_v16 = vand.u32 4294901760, %v14495_v48  ;;  %v14506_v63 = vand.u32 4294901760, %v14497_v36  ;;  %v14499_v50 = vld [vmem:[#allocation22 + $0x28] sm:$0xff]  ;;  %v14501_v53 = vld [vmem:[#allocation22 + $0x38] sm:$0xff] }
 0xac6   :  { %36286 = vst [vmem:[#allocation40_spill] sm:$0xff] %v31766_v46 }
 0xac7   :  { %v31773_v13 = vpack.c.bf16 %v13981_v14, %v13969_v54  ;;  %v31786_v45 = vpack.c.bf16 %v14506_v63, %v14502_v16  ;;  %v31790_v33 = vsub.f32 %v14497_v36, %v14506_v63  ;;  %v14514_v54 = vand.u32 4294901760, %v14501_v53 }
 0xac8   :  { %13505 = vmatmul.mubr.f32.vlgmr.msra.gmra.mrb[24].mxu0 %v31699_v26 }
 0xac9   :  { %26401 = vmatpush1.bf16.msra.mxu0 %v36285_v8  ;;  %13510 = vmatprep.mubr.f32.mxu0 %v36221_v60  ;;  %v31768_v8 = vpack.c.bf16 %v13985_v49, %v13973_v62  ;;  %36288 = vst [vmem:[#allocation49_spill] sm:$0xff] %v31773_v13  ;;  %v14494_v62 = vld [vmem:[#allocation22] sm:$0xff]  ;;  %v14496_v49 = vld [vmem:[#allocation22 + $0x10] sm:$0xff]  ;;  %v31824_v37 = vsub.f32 %v14501_v53, %v14514_v54 }
 0xaca   :  { %26403 = vmatprep.subr.bf16.mxu0 %v31470_v10 }
 0xacb   :  { %36287 = vst [vmem:[#allocation43_spill] sm:$0xff] %v31768_v8  ;;  %v35603_v8 = vand.u32 4294901760, %v31790_v33  ;;  %v14635_v13 = vand.u32 4294901760, %v31824_v37 }
 0xacc   :  { %13512 = vmatmul.mubr.f32.gmra.mrb[26].mxu0 %v31709_v55 }
 0xacd   :  { %13590 = vmatprep.mubr.f32.mxu0 %v36221_v60 }
 0xad0   :  { %13593 = vmatmul.mubr.f32.vlgmr.msra.gmra.mrb[24].mxu0 %v31707_v31  ;;  %v14498_v31 = vld [vmem:[#allocation22 + $0x20] sm:$0xff] }
 0xad1   :  { %26405 = vmatpush1.bf16.msra.mxu0 %v31465_v30  ;;  %13598 = vmatprep.mubr.f32.mxu0 %v36221_v60 }
 0xad2   :  { %26407 = vmatprep.subr.bf16.mxu0 %v31482_v2  ;;  %v14504_v2 = vand.u32 4294901760, %v14494_v62 }
 0xad4   :  { %13601 = vmatmul.mubr.f32.gmra.mrb[26].mxu0 %v31715_v51  ;;  %v14508_v51 = vand.u32 4294901760, %v14496_v49  ;;  %v31793_v14 = vsub.f32 %v14494_v62, %v14504_v2 }
 0xad5   :  { %13675 = vmatprep.mubr.f32.mxu0 %v36221_v60 }
 0xad8   :  { %13679 = vmatmul.mubr.f32.vlgmr.msra.gmra.mrb[24].mxu0 %v13399_v56  ;;  %v14500_v56 = vld [vmem:[#allocation22 + $0x30] sm:$0xff] }
 0xad9   :  { %26409 = vmatpush1.bf16.msra.mxu0 %v31484_v28  ;;  %13684 = vmatprep.mubr.f32.mxu0 %v36221_v60  ;;  %v31788_v28 = vsub.f32 %v14495_v48, %v14502_v16  ;;  %v14512_v48 = vand.u32 4294901760, %v14498_v31  ;;  %v14516_v36 = vand.u32 4294901760, %v14500_v56  ;;  %v35605_v16 = vand.u32 4294901760, %v31793_v14 }
 0xada   :  { %26411 = vmatprep.subr.bf16.mxu0 %v31470_v10  ;;  %v14510_v10 = vand.u32 4294901760, %v14499_v50 }
 0xadb   :  { %v35600_v29 = vand.u32 4294901760, %v31788_v28  ;;  %v14606_v63 = vsub.f32 %v31793_v14, %v35605_v16  ;;  %v31833_v16 = vpack.c.bf16 %v14516_v36, %v14512_v48 }
 0xadc   :  { %13688 = vmatmul.mubr.f32.gmra.mrb[26].mxu0 %v13410_v5  ;;  %v31795_v5 = vsub.f32 %v14496_v49, %v14508_v51  ;;  %v31811_v49 = vpack.c.bf16 %v14508_v51, %v14504_v2  ;;  %v31813_v46 = vpack.c.bf16 %v14514_v54, %v14510_v10  ;;  %v31822_v17 = vsub.f32 %v14499_v50, %v14510_v10 }
 0xadd   :  { %13770 = vmatprep.mubr.f32.mxu0 %v36221_v60  ;;  %v14600_v62 = vsub.f32 %v31788_v28, %v35600_v29  ;;  %v31826_v2 = vsub.f32 %v14498_v31, %v14512_v48  ;;  %v31828_v51 = vsub.f32 %v14500_v56, %v14516_v36  ;;  %36293 = vst [vmem:[#allocation45_spill] sm:$0xff] %v31833_v16  ;;  %v14607_v53 = vand.u32 4294901760, %v14606_v63 }
 0xade   :  { %36290 = vst [vmem:[#allocation51_spill] sm:$0xff] %v31811_v49  ;;  %36291 = vst [vmem:[#allocation50_spill] sm:$0xff] %v31813_v46  ;;  %v36292_v41 = vand.u32 4294901760, %v31795_v5  ;;  %v14623_v9 = vand.u32 4294901760, %v31822_v17 }
 0xadf   :  { %v14641_v50 = vand.u32 4294901760, %v31828_v51 }
 0xae0   :  { %13772 = vmatmul.mubr.f32.vlgmr.msra.gmra.mrb[24].mxu0 %v31699_v26  ;;  %v14618_v29 = vsub.f32 %v31795_v5, %v36292_v41  ;;  %v14629_v41 = vand.u32 4294901760, %v31826_v2  ;;  %v14624_v56 = vsub.f32 %v31822_v17, %v14623_v9 }
 0xae1   :  { %26413 = vmatpush1.bf16.msra.mxu0 %v31465_v30  ;;  %13777 = vmatprep.mubr.f32.mxu0 %v36221_v60  ;;  %v14612_v30 = vsub.f32 %v31790_v33, %v35603_v8  ;;  %v14601_v8 = vand.u32 4294901760, %v14600_v62 }
 0xae2   :  { %26439 = vmatprep.subr.bf16.mxu0 %v31786_v45  ;;  %v14619_v31 = vand.u32 4294901760, %v14618_v29  ;;  %v14630_v54 = vsub.f32 %v31826_v2, %v14629_v41  ;;  %v14642_v29 = vsub.f32 %v31828_v51, %v14641_v50  ;;  %v14625_v48 = vand.u32 4294901760, %v14624_v56 }
 0xae3   :  { %v14613_v27 = vand.u32 4294901760, %v14612_v30 }
 0xae4   :  { %13779 = vmatmul.mubr.f32.gmra.mrb[26].mxu0 %v31709_v55  ;;  %v31857_v63 = vpack.c.bf16 %v14619_v31, %v14607_v53  ;;  %v31882_v53 = vpack.c.bf16 %v31824_v37, %v31822_v17 }
 0xae5   :  { %13853 = vmatprep.mubr.f32.mxu0 %v36221_v60  ;;  %v31846_v10 = vpack.c.bf16 %v14613_v27, %v14601_v8  ;;  %v14631_v27 = vand.u32 4294901760, %v14630_v54  ;;  %v14643_v8 = vand.u32 4294901760, %v14642_v29  ;;  %v36302_v54 = vand.u32 4294901760, %v31788_v28 }
 0xae6   :  { %36295 = vst [vmem:[#allocation61_spill] sm:$0xff] %v31857_v63  ;;  %36300 = vst [vmem:[#allocation66_spill] sm:$0xff] %v31882_v53  ;;  %v36303_v29 = vand.u32 4294901760, %v31790_v33 }
 0xae7   :  { %36294 = vst [vmem:[#allocation60_spill] sm:$0xff] %v31846_v10  ;;  %v31865_v30 = vpack.c.bf16 %v14643_v8, %v14631_v27 }
 0xae8   :  { %13855 = vmatmul.mubr.f32.vlgmr.msra.gmra.mrb[24].mxu0 %v31699_v26  ;;  %v14636_v26 = vsub.f32 %v31824_v37, %v14635_v13 }
 0xae9   :  { %13860 = vmatprep.mubr.f32.mxu0 %v36221_v60  ;;  %26441 = vmatpush1.bf16.msra.mxu0 %v31811_v49  ;;  %36297 = vst [vmem:[#allocation63_spill] sm:$0xff] %v31865_v30 }
 0xaea   :  { %26443 = vmatprep.subr.bf16.mxu0 %v31813_v46  ;;  %v14637_v36 = vand.u32 4294901760, %v14636_v26 }
 0xaec   :  { %13862 = vmatmul.mubr.f32.gmra.mrb[26].mxu0 %v31709_v55  ;;  %v31860_v62 = vpack.c.bf16 %v14637_v36, %v14625_v48  ;;  %v31870_v55 = vpack.c.bf16 %v31790_v33, %v31788_v28  ;;  %v31904_v48 = vpack.c.bf16 %v36303_v29, %v36302_v54  ;;  %v36305_v28 = vand.u32 4294901760, %v31793_v14  ;;  %v31994_v54 = vld [vmem:[%s35514_s14 + $0x38] sm:$0xff] }
 0xaed   :  { %26445 = vmatpush1.bf16.msra.mxu0 %v31833_v16  ;;  %14574 = vmatprep.mubr.f32.mxu0 %v36221_v60  ;;  %v36306_v33 = vand.u32 4294901760, %v31795_v5 }
 0xaee   :  { %26447 = vmatprep.subr.bf16.mxu0 %v31846_v10  ;;  %36296 = vst [vmem:[#allocation62_spill] sm:$0xff] %v31860_v62  ;;  %36298 = vst [vmem:[#allocation64_spill] sm:$0xff] %v31870_v55 }
 0xaef   :  { %36304 = vst [vmem:[#allocation68_spill] sm:$0xff] %v31904_v48 }
 0xaf0   :  { %14580 = vmatmul.mubr.f32.vlgmr.msra.gmra.mrb[28].mxu0 %v30723_v32  ;;  %v31877_v32 = vpack.c.bf16 %v31795_v5, %v31793_v14 }
 0xaf1   :  { %26449 = vmatpush1.bf16.msra.mxu0 %v31857_v63  ;;  %14585 = vmatprep.mubr.f32.mxu0 %v36221_v60 }
 0xaf2   :  { %26451 = vmatprep.subr.bf16.mxu0 %v31860_v62  ;;  %36299 = vst [vmem:[#allocation65_spill] sm:$0xff] %v31877_v32 }
 0xaf4   :  { %14591 = vmatmul.mubr.f32.gmra.mrb[30].mxu0 %v30786_v3  ;;  %v31889_v3 = vpack.c.bf16 %v31828_v51, %v31826_v2 }
 0xaf5   :  { %26453 = vmatpush1.bf16.msra.mxu0 %v31865_v30  ;;  %14701 = vmatprep.mubr.f32.mxu0 %v36221_v60 }
 0xaf6   :  { %26455 = vmatprep.subr.bf16.mxu0 %v31870_v55  ;;  %36301 = vst [vmem:[#allocation67_spill] sm:$0xff] %v31889_v3 }
 0xaf7   :  { %v7520_v31 = vpop.xlane.xlu0 %7519 }
 0xaf8   :  { %28689 = vrcp.f32 %v7520_v31  ;;  %v7517_v56 = vpop.xlane.xlu1 %7516  ;;  %14703 = vmatmul.mubr.f32.vlgmr.msra.gmra.mrb[28].mxu0 %v30704_v0  ;;  %v31921_v31 = vpack.c.bf16 %v36306_v33, %v36305_v28 }
 0xaf9   :  { %28691 = vrcp.f32 %v7517_v56  ;;  %26457 = vmatpush1.bf16.msra.mxu0 %v31877_v32  ;;  %14708 = vmatprep.mubr.f32.mxu0 %v36221_v60  ;;  %v31983_v56 = vld [vmem:[%s35514_s14 + $0x10] sm:$0xff] }
 0xafa   :  { %26459 = vmatprep.subr.bf16.mxu0 %v31882_v53  ;;  %36307 = vst [vmem:[#allocation69_spill] sm:$0xff] %v31921_v31  ;;  %v35610_v28 = vand.u32 4294901760, %v31983_v56 }
 0xafc   :  { %14710 = vmatmul.mubr.f32.gmra.mrb[30].mxu0 %v30710_v18 }
 0xafd   :  { %26461 = vmatpush1.bf16.msra.mxu0 %v31889_v3  ;;  %14796 = vmatprep.mubr.f32.mxu0 %v36221_v60 }
 0xafe   :  { %26463 = vmatprep.subr.bf16.mxu0 %v31786_v45 }
 0xb00   :  { %14799 = vmatmul.mubr.f32.vlgmr.msra.gmra.mrb[28].mxu0 %v30708_v61 }
 0xb01   :  { %26465 = vmatpush1.bf16.msra.mxu0 %v31811_v49  ;;  %14804 = vmatprep.mubr.f32.mxu0 %v36221_v60 }
 0xb02   :  { %v28690_v26 = vpop.eup %28689  ;;  %26467 = vmatprep.subr.bf16.mxu0 %v31813_v46 }
 0xb03   :  { %v28692_v36 = vpop.eup %28691  ;;  %v31907_v27 = vmul.f32 %v28690_v26, %v31540_v47  ;;  %v31989_v26 = vld [vmem:[%s35514_s14 + $0x28] sm:$0xff] }
 0xb04   :  { %v31910_v8 = vmul.f32 %v28692_v36, %v31548_v38  ;;  %14807 = vmatmul.mubr.f32.gmra.mrb[30].mxu0 %v30716_v24  ;;  %v31930_v24 = vpack.c.bf16 %v14635_v13, %v14623_v9  ;;  %v31963_v13 = vld [vmem:[%s35514_s14 + $0x18] sm:$0xff] }
 0xb05   :  { %v11130_v61 = vmul.f32 %v31490_v12, %v31907_v27  ;;  %26469 = vmatpush1.bf16.msra.mxu0 %v31833_v16  ;;  %14885 = vmatprep.mubr.f32.mxu0 %v36221_v60 }
 0xb06   :  { %v11129_v47 = vmul.f32 %v31495_v39, %v31910_v8  ;;  %26471 = vmatprep.subr.bf16.mxu0 %v31904_v48  ;;  %36308 = vst [vmem:[#allocation70_spill] sm:$0xff] %v31930_v24  ;;  %v31945_v39 = vpack.c.bf16 %v14641_v50, %v14629_v41  ;;  %v35606_v41 = vand.u32 4294901760, %v31963_v13  ;;  %v31978_v50 = vld [vmem:[%s35514_s14] sm:$0xff]  ;;  %v11122_v63 = vmul.f32 %v31586_v4, %v31910_v8 }
 0xb07   :  { %v11681_v12 = vsel %vm854_vm9, %v11130_v61, 0  ;;  %v35612_v61 = vand.u32 4294901760, %v31978_v50 }
 0xb08   :  { %v11678_v38 = vsel %vm854_vm9, %v11129_v47, 0  ;;  %v31934_v14 = vand.u32 4294901760, %v11681_v12  ;;  %14889 = vmatmul.mubr.f32.vlgmr.msra.gmra.mrb[28].mxu0 %v30713_v6  ;;  %36309 = vst [vmem:[#allocation71_spill] sm:$0xff] %v31945_v39  ;;  %v31958_v6 = vld [vmem:[%s35514_s14 + $0x8] sm:$0xff]  ;;  %v35611_v47 = vand.u32 4294901760, %v31989_v26 }
 0xb09   :  { %v31937_v5 = vand.u32 4294901760, %v11678_v38  ;;  %26473 = vmatpush1.bf16.msra.mxu0 %v31921_v31  ;;  %14894 = vmatprep.mubr.f32.mxu0 %v36221_v60  ;;  %v35607_v51 = vand.u32 4294901760, %v31958_v6 }
 0xb0a   :  { %v31948_v9 = vsub.f32 %v11681_v12, %v31934_v14  ;;  %26475 = vmatprep.subr.bf16.mxu0 %v31930_v24 }
 0xb0b   :  { %v31952_v17 = vsub.f32 %v11678_v38, %v31937_v5  ;;  %v32008_v33 = vpack.c.bf16 %v35606_v41, %v35607_v51  ;;  %v32015_v38 = vld [vmem:[%s35514_s14 + $0x20] sm:$0xff]  ;;  %v32032_v41 = vld [vmem:[%s35514_s14 + $0x58] sm:$0xff]  ;;  %v36311_v51 = vpack.c.bf16 %v31559_v43, %v31536_v25  ;;  %v36313_v43 = vand.u32 4294901760, %v31994_v54 }
 0xb0c   :  { %14898 = vmatmul.mubr.f32.gmra.mrb[30].mxu0 %v30721_v15  ;;  %v35608_v2 = vand.u32 4294901760, %v31948_v9 }
 0xb0d   :  { %v35609_v37 = vand.u32 4294901760, %v31952_v17  ;;  %26477 = vmatpush1.bf16.msra.mxu0 %v31945_v39  ;;  %14992 = vmatprep.mubr.f32.mxu0 %v36221_v60  ;;  %36310 = vst [vmem:[#allocation72_spill] sm:$0xff] %v32008_v33  ;;  %v32053_v25 = vpack.c.bf16 %v36313_v43, %v35611_v47  ;;  %v32071_v43 = vld [vmem:[%s35514_s14 + $0x68] sm:$0xff]  ;;  %v32076_v47 = vld [vmem:[%s35514_s14 + $0x78] sm:$0xff] }
 0xb0e   :  { %26479 = vmatprep.subr.bf16.mxu0 %v31786_v45  ;;  %v11766_v36 = vsub.f32 %v31948_v9, %v35608_v2 }
 0xb0f   :  { %v11755_v15 = vsub.f32 %v31952_v17, %v35609_v37  ;;  %v35619_v37 = vand.u32 4294901760, %v32015_v38  ;;  %36314 = vst [vmem:[#allocation74_spill] sm:$0xff] %v32053_v25 }
 0xb10   :  { %14994 = vmatmul.mubr.f32.vlgmr.msra.gmra.mrb[28].mxu0 %v30704_v0  ;;  %v11767_v2 = vand.u32 4294901760, %v11766_v36  ;;  %v36319_v36 = vpack.c.bf16 %v31546_v21, %v31533_v22 }
 0xb11   :  { %v11756_v29 = vand.u32 4294901760, %v11755_v15  ;;  %26481 = vmatpush1.bf16.msra.mxu0 %v31811_v49  ;;  %14999 = vmatprep.mubr.f32.mxu0 %v36221_v60  ;;  %v32020_v15 = vld [vmem:[%s35514_s14 + $0x30] sm:$0xff]  ;;  %v12770_v49 = vsel %vm854_vm9, %v11122_v63, 0 }
 0xb12   :  { %26483 = vmatprep.subr.bf16.mxu0 %v31813_v46  ;;  %v35618_v12 = vand.u32 4294901760, %v32020_v15 }
 0xb13   :  { %11757 = vmatmul.mubr.f32.vlgmr.msra.gmra.mrb[24].mxu1 %v11756_v29  ;;  %v32027_v29 = vld [vmem:[%s35514_s14 + $0x48] sm:$0xff] }
 0xb14   :  { %26325 = vmatpush1.bf16.msra.mxu1 %v31583_v11  ;;  %11762 = vmatprep.mubr.f32.mxu1 %v36221_v60  ;;  %v32044_v11 = vpack.c.bf16 %v35610_v28, %v35612_v61  ;;  %v32060_v28 = vld [vmem:[%s35514_s14 + $0x40] sm:$0xff]  ;;  %v32084_v61 = vpack.c.bf16 %v35618_v12, %v35619_v37 }
 0xb15   :  { %26327 = vmatprep.subr.bf16.mxu1 %v36311_v51  ;;  %15001 = vmatmul.mubr.f32.gmra.mrb[30].mxu0 %v30710_v18  ;;  %v32102_v37 = vld [vmem:[%s35514_s14 + $0x60] sm:$0xff]  ;;  %v32107_v51 = vld [vmem:[%s35514_s14 + $0x70] sm:$0xff]  ;;  %v36320_v22 = vand.u32 4294901760, %v32060_v28 }
 0xb16   :  { %26485 = vmatpush1.bf16.msra.mxu0 %v31833_v16  ;;  %15079 = vmatprep.mubr.f32.mxu0 %v36221_v60  ;;  %36312 = vst [vmem:[#allocation73_spill] sm:$0xff] %v32044_v11  ;;  %36315 = vst [vmem:[#allocation75_spill] sm:$0xff] %v32084_v61  ;;  %v35635_v12 = vand.u32 4294901760, %v32102_v37  ;;  %v35634_v39 = vand.u32 4294901760, %v32107_v51  ;;  %v36342_v16 = vand.u32 4294901760, %v31952_v17 }
 0xb17   :  { %11768 = vmatmul.mubr.f32.gmra.mrb[26].mxu1 %v11767_v2  ;;  %26535 = vmatprep.subr.bf16.mxu0 %v32008_v33  ;;  %v32065_v2 = vld [vmem:[%s35514_s14 + $0x50] sm:$0xff] }
 0xb18   :  { %11858 = vmatprep.mubr.f32.mxu1 %v36221_v60  ;;  %v36321_v21 = vand.u32 4294901760, %v32065_v2  ;;  %v32170_v31 = vpack.c.bf16 %v35634_v39, %v35635_v12  ;;  %v32187_v39 = vld [vmem:[%s35514_s14 + $0xa0] sm:$0xff]  ;;  %v32192_v12 = vld [vmem:[%s35514_s14 + $0xb0] sm:$0xff] }
 0xb19   :  { %15081 = vmatmul.mubr.f32.vlgmr.msra.gmra.mrb[28].mxu0 %v30704_v0  ;;  %v36316_v0 = vand.u32 4294901760, %v32027_v29  ;;  %v35656_v55 = vand.u32 4294901760, %v32192_v12 }
 0xb1a   :  { %26537 = vmatpush1.bf16.msra.mxu0 %v32044_v11  ;;  %15086 = vmatprep.mubr.f32.mxu0 %v36221_v60  ;;  %v36317_v11 = vand.u32 4294901760, %v32032_v41  ;;  %36326 = vst [vmem:[#allocation79_spill] sm:$0xff] %v32170_v31 }
 0xb1b   :  { %11860 = vmatmul.mubr.f32.vlgmr.msra.gmra.mrb[24].mxu1 %v31937_v5  ;;  %26539 = vmatprep.subr.bf16.mxu0 %v32053_v25  ;;  %v36323_v25 = vand.u32 4294901760, %v32071_v43 }
 0xb1c   :  { %v32095_v33 = vpack.c.bf16 %v36317_v11, %v36316_v0  ;;  %26329 = vmatpush1.bf16.msra.mxu1 %v36319_v36  ;;  %11865 = vmatprep.mubr.f32.mxu1 %v36221_v60  ;;  %v32116_v11 = vld [vmem:[%s35514_s14 + $0x88] sm:$0xff]  ;;  %v32121_v0 = vld [vmem:[%s35514_s14 + $0x98] sm:$0xff]  ;;  %v32130_v36 = vpack.c.bf16 %v36321_v21, %v36320_v22  ;;  %v32147_v22 = vld [vmem:[%s35514_s14 + $0x80] sm:$0xff] }
 0xb1d   :  { %26331 = vmatprep.subr.bf16.mxu1 %v31557_v19  ;;  %15088 = vmatmul.mubr.f32.gmra.mrb[30].mxu0 %v30710_v18  ;;  %v36324_v18 = vand.u32 4294901760, %v32076_v47  ;;  %v32152_v21 = vld [vmem:[%s35514_s14 + $0x90] sm:$0xff]  ;;  %v36327_v48 = vand.u32 4294901760, %v32116_v11  ;;  %v36328_v3 = vand.u32 4294901760, %v32121_v0 }
 0xb1e   :  { %36318 = vst [vmem:[#allocation76_spill] sm:$0xff] %v32095_v33  ;;  %26541 = vmatpush1.bf16.msra.mxu0 %v32084_v61  ;;  %36322 = vst [vmem:[#allocation77_spill] sm:$0xff] %v32130_v36  ;;  %v35644_v61 = vand.u32 4294901760, %v32147_v22  ;;  %v36333_v32 = vand.u32 4294901760, %v32152_v21 }
 0xb1f   :  { %11867 = vmatmul.mubr.f32.gmra.mrb[26].mxu1 %v31934_v14  ;;  %26543 = vmatprep.subr.bf16.mxu0 %v32095_v33  ;;  %v32140_v24 = vpack.c.bf16 %v36324_v18, %v36323_v25  ;;  %v32158_v25 = vld [vmem:[%s35514_s14 + $0xa8] sm:$0xff]  ;;  %v32163_v18 = vld [vmem:[%s35514_s14 + $0xb8] sm:$0xff]  ;;  %v32180_v53 = vpack.c.bf16 %v36328_v3, %v36327_v48  ;;  %v36330_v33 = vld [vmem:[#allocation36_spill] sm:$0xff] }
 0xb20   :  { %11945 = vmatprep.mubr.f32.mxu1 %v36221_v60  ;;  %v32199_v3 = vld [vmem:[%s35514_s14 + $0xc8] sm:$0xff]  ;;  %v32204_v48 = vld [vmem:[%s35514_s14 + $0xd8] sm:$0xff]  ;;  %v36335_v30 = vand.u32 4294901760, %v32158_v25 }
 0xb21   :  { %36325 = vst [vmem:[#allocation78_spill] sm:$0xff] %v32140_v24  ;;  %36329 = vst [vmem:[#allocation80_spill] sm:$0xff] %v32180_v53  ;;  %v36343_v46 = vand.u32 4294901760, %v32199_v3  ;;  %v36344_v4 = vand.u32 4294901760, %v32204_v48 }
 0xb22   :  { %26545 = vmatpush1.bf16.msra.mxu0 %v32130_v36  ;;  %36331 = vst [vmem:[#allocation36_spill] sm:$0xff] %v32199_v3  ;;  %36332 = vst [vmem:[#allocation81_spill] sm:$0xff] %v32204_v48  ;;  %v32212_v36 = vpack.c.bf16 %v36333_v32, %v35644_v61  ;;  %v32229_v32 = vld [vmem:[%s35514_s14 + $0xc0] sm:$0xff]  ;;  %v32234_v61 = vld [vmem:[%s35514_s14 + $0xd0] sm:$0xff]  ;;  %v36352_v3 = vand.u32 4294901760, %v31948_v9 }
 0xb23   :  { %11948 = vmatmul.mubr.f32.vlgmr.msra.gmra.mrb[24].mxu1 %v31952_v17  ;;  %26547 = vmatprep.subr.bf16.mxu0 %v32140_v24  ;;  %v35657_v24 = vand.u32 4294901760, %v32187_v39  ;;  %36338 = vst [vmem:[#allocation84_spill] sm:$0xff] %v32234_v61  ;;  %v35666_v10 = vand.u32 4294901760, %v32234_v61  ;;  %v32289_v17 = vld [vmem:[%s35514_s14 + $0x118] sm:$0xff] }
 0xb24   :  { %26333 = vmatpush1.bf16.msra.mxu1 %v36330_v33  ;;  %11953 = vmatprep.mubr.f32.mxu1 %v36221_v60  ;;  %36334 = vst [vmem:[#allocation82_spill] sm:$0xff] %v32212_v36  ;;  %36349 = vst [vmem:[#allocation92_spill] sm:$0xff] %v32289_v17 }
 0xb25   :  { %26335 = vmatprep.subr.bf16.mxu1 %v31576_v20  ;;  %v36336_v20 = vand.u32 4294901760, %v32163_v18 }
 0xb26   :  { %26549 = vmatpush1.bf16.msra.mxu0 %v32170_v31  ;;  %v32254_v31 = vpack.c.bf16 %v35656_v55, %v35657_v24  ;;  %v32272_v24 = vld [vmem:[%s35514_s14 + $0xe0] sm:$0xff] }
 0xb27   :  { %11956 = vmatmul.mubr.f32.gmra.mrb[26].mxu1 %v31948_v9  ;;  %26551 = vmatprep.subr.bf16.mxu0 %v32180_v53  ;;  %v32222_v62 = vpack.c.bf16 %v36336_v20, %v36335_v30  ;;  %v32240_v30 = vld [vmem:[%s35514_s14 + $0xe8] sm:$0xff]  ;;  %v32245_v20 = vld [vmem:[%s35514_s14 + $0xf8] sm:$0xff]  ;;  %v35667_v53 = vand.u32 4294901760, %v32229_v32  ;;  %36346 = vst [vmem:[#allocation89_spill] sm:$0xff] %v32272_v24  ;;  %v32323_v9 = vld [vmem:[%s35514_s14 + $0x110] sm:$0xff] }
 0xb28   :  { %12030 = vmatprep.mubr.f32.mxu1 %v36221_v60  ;;  %36339 = vst [vmem:[#allocation85_spill] sm:$0xff] %v32240_v30  ;;  %36340 = vst [vmem:[#allocation86_spill] sm:$0xff] %v32245_v20  ;;  %v36354_v63 = vand.u32 4294901760, %v32245_v20  ;;  %v35694_v20 = vand.u32 4294901760, %v32323_v9 }
 0xb29   :  { %36337 = vst [vmem:[#allocation83_spill] sm:$0xff] %v32222_v62  ;;  %36341 = vst [vmem:[#allocation87_spill] sm:$0xff] %v32254_v31 }
 0xb2a   :  { %26553 = vmatpush1.bf16.msra.mxu0 %v32212_v36  ;;  %v32265_v36 = vpack.c.bf16 %v36344_v4, %v36343_v46  ;;  %v32284_v46 = vld [vmem:[%s35514_s14 + $0x108] sm:$0xff]  ;;  %36357 = vst [vmem:[#allocation95_spill] sm:$0xff] %v32323_v9 }
 0xb2b   :  { %12034 = vmatmul.mubr.f32.vlgmr.msra.gmra.mrb[24].mxu1 %v36342_v16  ;;  %26555 = vmatprep.subr.bf16.mxu0 %v32222_v62  ;;  %v32277_v16 = vld [vmem:[%s35514_s14 + $0xf0] sm:$0xff]  ;;  %36348 = vst [vmem:[#allocation91_spill] sm:$0xff] %v32284_v46  ;;  %v36350_v4 = vld [vmem:[#allocation47_spill] sm:$0xff]  ;;  %v35681_v62 = vand.u32 4294901760, %v32272_v24 }
 0xb2c   :  { %36345 = vst [vmem:[#allocation88_spill] sm:$0xff] %v32265_v36  ;;  %36347 = vst [vmem:[#allocation90_spill] sm:$0xff] %v32277_v16  ;;  %26337 = vmatpush1.bf16.msra.mxu1 %v31578_v58  ;;  %12039 = vmatprep.mubr.f32.mxu1 %v36221_v60  ;;  %v11123_v55 = vmul.f32 %v36350_v4, %v31907_v27  ;;  %v32300_v58 = vpack.c.bf16 %v35666_v10, %v35667_v53  ;;  %v35680_v48 = vand.u32 4294901760, %v32277_v16  ;;  %v32318_v53 = vld [vmem:[%s35514_s14 + $0x100] sm:$0xff] }
 0xb2d   :  { %26339 = vmatprep.subr.bf16.mxu1 %v31557_v19  ;;  %v36353_v19 = vand.u32 4294901760, %v32240_v30  ;;  %36356 = vst [vmem:[#allocation94_spill] sm:$0xff] %v32318_v53  ;;  %v36361_v30 = vand.u32 4294901760, %v32284_v46 }
 0xb2e   :  { %26557 = vmatpush1.bf16.msra.mxu0 %v32254_v31  ;;  %36351 = vst [vmem:[#allocation47_spill] sm:$0xff] %v32300_v58  ;;  %v12773_v10 = vsel %vm854_vm9, %v11123_v55, 0  ;;  %v32344_v31 = vpack.c.bf16 %v35680_v48, %v35681_v62  ;;  %v36362_v55 = vand.u32 4294901760, %v32289_v17  ;;  %v32361_v48 = vld [vmem:[%s35514_s14 + $0x120] sm:$0xff]  ;;  %v32366_v62 = vld [vmem:[%s35514_s14 + $0x130] sm:$0xff] }
 0xb2f   :  { %12043 = vmatmul.mubr.f32.gmra.mrb[26].mxu1 %v36352_v3  ;;  %26559 = vmatprep.subr.bf16.mxu0 %v32265_v36  ;;  %v32311_v4 = vpack.c.bf16 %v36354_v63, %v36353_v19  ;;  %v32329_v3 = vld [vmem:[%s35514_s14 + $0x128] sm:$0xff]  ;;  %v32334_v19 = vld [vmem:[%s35514_s14 + $0x138] sm:$0xff]  ;;  %v32336_v63 = vand.u32 4294901760, %v12770_v49  ;;  %v35695_v36 = vand.u32 4294901760, %v32318_v53  ;;  %36364 = vst [vmem:[#allocation100_spill] sm:$0xff] %v32366_v62  ;;  %v35708_v17 = vand.u32 4294901760, %v32366_v62 }
 0xb30   :  { %12125 = vmatprep.mubr.f32.mxu1 %v36221_v60  ;;  %36358 = vst [vmem:[#allocation96_spill] sm:$0xff] %v32329_v3  ;;  %36359 = vst [vmem:[#allocation97_spill] sm:$0xff] %v32334_v19  ;;  %v32354_v61 = vpack.c.bf16 %v36362_v55, %v36361_v30  ;;  %v32373_v30 = vld [vmem:[%s35514_s14 + $0x148] sm:$0xff]  ;;  %v32378_v55 = vld [vmem:[%s35514_s14 + $0x158] sm:$0xff]  ;;  %v36369_v46 = vand.u32 4294901760, %v32334_v19 }
 0xb31   :  { %36355 = vst [vmem:[#allocation93_spill] sm:$0xff] %v32311_v4  ;;  %36360 = vst [vmem:[#allocation98_spill] sm:$0xff] %v32344_v31  ;;  %v32382_v16 = vsub.f32 %v12770_v49, %v32336_v63  ;;  %v36368_v49 = vand.u32 4294901760, %v32329_v3  ;;  %v36376_v9 = vand.u32 4294901760, %v32373_v30 }
 0xb32   :  { %26561 = vmatpush1.bf16.msra.mxu0 %v32300_v58  ;;  %36363 = vst [vmem:[#allocation99_spill] sm:$0xff] %v32354_v61  ;;  %36365 = vst [vmem:[#allocation101_spill] sm:$0xff] %v32373_v30  ;;  %v32384_v58 = vand.u32 4294901760, %v12773_v10 }
 0xb33   :  { %12127 = vmatmul.mubr.f32.vlgmr.msra.gmra.mrb[24].mxu1 %v31937_v5  ;;  %26563 = vmatprep.subr.bf16.mxu0 %v32311_v4  ;;  %36366 = vst [vmem:[#allocation102_spill] sm:$0xff] %v32378_v55  ;;  %v35709_v4 = vand.u32 4294901760, %v32361_v48  ;;  %v32401_v24 = vpack.c.bf16 %v36369_v46, %v36368_v49  ;;  %v32419_v46 = vld [vmem:[%s35514_s14 + $0x168] sm:$0xff]  ;;  %v32424_v49 = vld [vmem:[%s35514_s14 + $0x178] sm:$0xff] }
 0xb34   :  { %26341 = vmatpush1.bf16.msra.mxu1 %v36330_v33  ;;  %12132 = vmatprep.mubr.f32.mxu1 %v36221_v60  ;;  %v32391_v33 = vpack.c.bf16 %v35694_v20, %v35695_v36  ;;  %v32408_v20 = vld [vmem:[%s35514_s14 + $0x140] sm:$0xff]  ;;  %v32413_v36 = vld [vmem:[%s35514_s14 + $0x150] sm:$0xff]  ;;  %36373 = vst [vmem:[#allocation107_spill] sm:$0xff] %v32419_v46  ;;  %36374 = vst [vmem:[#allocation108_spill] sm:$0xff] %v32424_v49 }
 0xb35   :  { %26367 = vmatprep.subr.bf16.mxu1 %v31642_v23  ;;  %36370 = vst [vmem:[#allocation104_spill] sm:$0xff] %v32401_v24  ;;  %36371 = vst [vmem:[#allocation105_spill] sm:$0xff] %v32408_v20  ;;  %v35721_v19 = vand.u32 4294901760, %v32408_v20  ;;  %v35720_v3 = vand.u32 4294901760, %v32413_v36  ;;  %v36416_v20 = vand.u32 4294901760, %v31983_v56 }
 0xb36   :  { %26565 = vmatpush1.bf16.msra.mxu0 %v32344_v31  ;;  %36367 = vst [vmem:[#allocation103_spill] sm:$0xff] %v32391_v33  ;;  %36372 = vst [vmem:[#allocation106_spill] sm:$0xff] %v32413_v36  ;;  %v32428_v31 = vsub.f32 %v12773_v10, %v32384_v58  ;;  %v36377_v10 = vand.u32 4294901760, %v32378_v55 }
 0xb37   :  { %12134 = vmatmul.mubr.f32.gmra.mrb[26].mxu1 %v31934_v14  ;;  %26567 = vmatprep.subr.bf16.mxu0 %v32354_v61  ;;  %v32435_v61 = vpack.c.bf16 %v35708_v17, %v35709_v4  ;;  %v32452_v17 = vld [vmem:[%s35514_s14 + $0x160] sm:$0xff]  ;;  %v36383_v4 = vand.u32 4294901760, %v32382_v16 }
 0xb38   :  { %12208 = vmatprep.mubr.f32.mxu1 %v36221_v60  ;;  %v32445_v53 = vpack.c.bf16 %v36377_v10, %v36376_v9  ;;  %36379 = vst [vmem:[#allocation111_spill] sm:$0xff] %v32452_v17  ;;  %v32464_v9 = vld [vmem:[%s35514_s14 + $0x188] sm:$0xff]  ;;  %v32469_v10 = vld [vmem:[%s35514_s14 + $0x198] sm:$0xff]  ;;  %v35727_v55 = vand.u32 4294901760, %v32452_v17 }
 0xb39   :  { %36375 = vst [vmem:[#allocation109_spill] sm:$0xff] %v32435_v61  ;;  %36381 = vst [vmem:[#allocation113_spill] sm:$0xff] %v32464_v9  ;;  %v12847_v62 = vsub.f32 %v32382_v16, %v36383_v4  ;;  %v36386_v4 = vand.u32 4294901760, %v32424_v49  ;;  %v36393_v49 = vand.u32 4294901760, %v32469_v10 }
 0xb3a   :  { %26569 = vmatpush1.bf16.msra.mxu0 %v32391_v33  ;;  %36378 = vst [vmem:[#allocation110_spill] sm:$0xff] %v32445_v53  ;;  %36382 = vst [vmem:[#allocation114_spill] sm:$0xff] %v32469_v10 }
 0xb3b   :  { %12210 = vmatmul.mubr.f32.vlgmr.msra.gmra.mrb[24].mxu1 %v31937_v5  ;;  %26571 = vmatprep.subr.bf16.mxu0 %v32401_v24  ;;  %v32457_v5 = vld [vmem:[%s35514_s14 + $0x170] sm:$0xff]  ;;  %v32481_v24 = vpack.c.bf16 %v35720_v3, %v35721_v19  ;;  %v32498_v3 = vld [vmem:[%s35514_s14 + $0x180] sm:$0xff]  ;;  %v12848_v19 = vand.u32 4294901760, %v12847_v62  ;;  %v36392_v62 = vand.u32 4294901760, %v32464_v9  ;;  %v36412_v9 = vand.u32 4294901760, %v31978_v50 }
 0xb3c   :  { %36380 = vst [vmem:[#allocation112_spill] sm:$0xff] %v32457_v5  ;;  %26369 = vmatpush1.bf16.msra.mxu1 %v31638_v57  ;;  %12215 = vmatprep.mubr.f32.mxu1 %v36221_v60  ;;  %v35726_v30 = vand.u32 4294901760, %v32457_v5  ;;  %36388 = vst [vmem:[#allocation117_spill] sm:$0xff] %v32498_v3  ;;  %v36404_v5 = vand.u32 4294901760, %v31958_v6 }
 0xb3d   :  { %26371 = vmatprep.subr.bf16.mxu1 %v31681_v40  ;;  %36384 = vst [vmem:[#allocation115_spill] sm:$0xff] %v32481_v24  ;;  %v36385_v40 = vand.u32 4294901760, %v32419_v46 }
 0xb3e   :  { %26573 = vmatpush1.bf16.msra.mxu0 %v32435_v61  ;;  %v32514_v36 = vpack.c.bf16 %v35726_v30, %v35727_v55  ;;  %v35728_v61 = vand.u32 4294901760, %v32498_v3  ;;  %v36395_v30 = vpack.c.bf16 %v31653_v35, %v31651_v52  ;;  %v32570_v35 = vld [vmem:[%s35514_s14 + $0x1d8] sm:$0xff] }
 0xb3f   :  { %12217 = vmatmul.mubr.f32.gmra.mrb[26].mxu1 %v31934_v14  ;;  %26575 = vmatprep.subr.bf16.mxu0 %v32445_v53  ;;  %v32491_v33 = vpack.c.bf16 %v36386_v4, %v36385_v40  ;;  %v32503_v14 = vld [vmem:[%s35514_s14 + $0x190] sm:$0xff]  ;;  %v36390_v40 = vand.u32 4294901760, %v32428_v31  ;;  %v32538_v53 = vld [vmem:[%s35514_s14 + $0x1b8] sm:$0xff] }
 0xb40   :  { %36389 = vst [vmem:[#allocation118_spill] sm:$0xff] %v32503_v14  ;;  %12843 = vmatprep.mubr.f32.mxu1 %v36221_v60  ;;  %36391 = vst [vmem:[#allocation119_spill] sm:$0xff] %v32514_v36 }
 0xb41   :  { %36387 = vst [vmem:[#allocation116_spill] sm:$0xff] %v32491_v33  ;;  %v12858_v4 = vsub.f32 %v32428_v31, %v36390_v40  ;;  %v32523_v40 = vpack.c.bf16 %v36393_v49, %v36392_v62  ;;  %v32562_v62 = vld [vmem:[%s35514_s14 + $0x1c8] sm:$0xff] }
 0xb42   :  { %26577 = vmatpush1.bf16.msra.mxu0 %v32481_v24  ;;  %v32599_v24 = vld [vmem:[%s35514_s14 + $0x1f8] sm:$0xff]  ;;  %v36406_v3 = vand.u32 4294901760, %v32562_v62 }
 0xb43   :  { %12849 = vmatmul.mubr.f32.vlgmr.msra.gmra.mrb[24].mxu1 %v12848_v19  ;;  %26579 = vmatprep.subr.bf16.mxu0 %v32491_v33  ;;  %36394 = vst [vmem:[#allocation120_spill] sm:$0xff] %v32523_v40  ;;  %v12859_v55 = vand.u32 4294901760, %v12858_v4  ;;  %v32533_v19 = vld [vmem:[%s35514_s14 + $0x1a8] sm:$0xff]  ;;  %v32557_v4 = vld [vmem:[%s35514_s14 + $0x1b0] sm:$0xff] }
 0xb44   :  { %26373 = vmatpush1.bf16.msra.mxu1 %v31683_v42  ;;  %12854 = vmatprep.mubr.f32.mxu1 %v36221_v60  ;;  %v36396_v42 = vand.u32 4294901760, %v32503_v14  ;;  %v32594_v33 = vld [vmem:[%s35514_s14 + $0x1e8] sm:$0xff]  ;;  %v36402_v52 = vand.u32 4294901760, %v32557_v4  ;;  %v32619_v14 = vsub.f32 %v31958_v6, %v36404_v5  ;;  %v36410_v6 = vand.u32 4294901760, %v31963_v13 }
 0xb45   :  { %26375 = vmatprep.subr.bf16.mxu1 %v36395_v30  ;;  %v32552_v30 = vld [vmem:[%s35514_s14 + $0x1a0] sm:$0xff] }
 0xb46   :  { %26581 = vmatpush1.bf16.msra.mxu0 %v32514_v36  ;;  %v32545_v49 = vpack.c.bf16 %v36396_v42, %v35728_v61  ;;  %v32576_v36 = vld [vmem:[%s35514_s14 + $0x1c0] sm:$0xff]  ;;  %v36398_v61 = vand.u32 4294901760, %v32533_v19  ;;  %v36399_v42 = vand.u32 4294901760, %v32538_v53  ;;  %36405 = vst [vmem:[#allocation124_spill] sm:$0xff] %v32619_v14  ;;  %v32638_v5 = vsub.f32 %v31963_v13, %v36410_v6 }
 0xb47   :  { %12860 = vmatmul.mubr.f32.gmra.mrb[26].mxu1 %v12859_v55  ;;  %26583 = vmatprep.subr.bf16.mxu0 %v32523_v40  ;;  %v32581_v55 = vld [vmem:[%s35514_s14 + $0x1d0] sm:$0xff]  ;;  %v35757_v46 = vand.u32 4294901760, %v32619_v14  ;;  %v32654_v13 = vsub.f32 %v31983_v56, %v36416_v20 }
 0xb48   :  { %36397 = vst [vmem:[#allocation121_spill] sm:$0xff] %v32545_v49  ;;  %12950 = vmatprep.mubr.f32.mxu1 %v36221_v60  ;;  %v32588_v40 = vpack.c.bf16 %v36399_v42, %v36398_v61  ;;  %v32606_v61 = vld [vmem:[%s35514_s14 + $0x1e0] sm:$0xff]  ;;  %v36401_v42 = vand.u32 4294901760, %v32552_v30  ;;  %36411 = vst [vmem:[#allocation127_spill] sm:$0xff] %v32638_v5 }
 0xb4a   :  { %36400 = vst [vmem:[#allocation122_spill] sm:$0xff] %v32588_v40  ;;  %26585 = vmatpush1.bf16.msra.mxu0 %v32545_v49  ;;  %v32613_v10 = vpack.c.bf16 %v36402_v52, %v36401_v42  ;;  %v36407_v49 = vand.u32 4294901760, %v32570_v35  ;;  %v32633_v42 = vld [vmem:[%s35514_s14 + $0x1f0] sm:$0xff]  ;;  %v36423_v52 = vand.u32 4294901760, %v31994_v54 }
 0xb4b   :  { %12952 = vmatmul.mubr.f32.vlgmr.msra.gmra.mrb[24].mxu1 %v32336_v63  ;;  %26587 = vmatprep.subr.bf16.mxu0 %v32588_v40  ;;  %36409 = vst [vmem:[#allocation126_spill] sm:$0xff] %v32633_v42  ;;  %v32643_v40 = vsub.f32 %v31978_v50, %v36412_v9  ;;  %v36418_v50 = vand.u32 4294901760, %v32576_v36  ;;  %v36419_v9 = vand.u32 4294901760, %v32581_v55 }
 0xb4c   :  { %36403 = vst [vmem:[#allocation123_spill] sm:$0xff] %v32613_v10  ;;  %v32627_v17 = vpack.c.bf16 %v36407_v49, %v36406_v3  ;;  %v36414_v3 = vld [vmem:[#allocation41_spill] sm:$0xff]  ;;  %12957 = vmatprep.mubr.f32.mxu1 %v36221_v60  ;;  %v32672_v56 = vsub.f32 %v31994_v54, %v36423_v52  ;;  %v36427_v54 = vand.u32 4294901760, %v32594_v33  ;;  %v36428_v52 = vand.u32 4294901760, %v32599_v24 }
 0xb4d   :  { %36413 = vst [vmem:[#allocation128_spill] sm:$0xff] %v32643_v40  ;;  %v36415_v49 = vpack.c.bf16 %v31640_v1, %v36414_v3  ;;  %36417 = vst [vmem:[#allocation41_spill] sm:$0xff] %v32654_v13  ;;  %v32661_v6 = vpack.c.bf16 %v36419_v9, %v36418_v50  ;;  %v36421_v3 = vand.u32 4294901760, %v31989_v26  ;;  %v15850_v50 = vsub.f32 %v32619_v14, %v35757_v46 }
 0xb4e   :  { %36408 = vst [vmem:[#allocation125_spill] sm:$0xff] %v32627_v17  ;;  %36424 = vst [vmem:[#allocation131_spill] sm:$0xff] %v32672_v56  ;;  %26589 = vmatpush1.bf16.msra.mxu0 %v32613_v10  ;;  %v36425_v9 = vand.u32 4294901760, %v32015_v38  ;;  %v32695_v20 = vpack.c.bf16 %v36428_v52, %v36427_v54  ;;  %v36430_v46 = vand.u32 4294901760, %v32638_v5  ;;  %v36434_v10 = vand.u32 4294901760, %v32027_v29 }
 0xb4f   :  { %26377 = vmatpush1.bf16.msra.mxu1 %v36415_v49  ;;  %36420 = vst [vmem:[#allocation129_spill] sm:$0xff] %v32661_v6  ;;  %v32667_v49 = vsub.f32 %v31989_v26, %v36421_v3  ;;  %v36426_v26 = vand.u32 4294901760, %v32020_v15  ;;  %26591 = vmatprep.subr.bf16.mxu0 %v32627_v17 }
 0xb50   :  { %26379 = vmatprep.subr.bf16.mxu1 %v31642_v23  ;;  %v32682_v1 = vsub.f32 %v32015_v38, %v36425_v9  ;;  %12959 = vmatmul.mubr.f32.gmra.mrb[26].mxu1 %v32384_v58  ;;  %36429 = vst [vmem:[#allocation132_spill] sm:$0xff] %v32695_v20  ;;  %v15862_v38 = vsub.f32 %v32638_v5, %v36430_v46  ;;  %v15851_v9 = vand.u32 4294901760, %v15850_v50  ;;  %v36437_v50 = vand.u32 4294901760, %v32032_v41 }
 0xb51   :  { %36422 = vst [vmem:[#allocation130_spill] sm:$0xff] %v32667_v49  ;;  %v32687_v3 = vsub.f32 %v32020_v15, %v36426_v26  ;;  %13037 = vmatprep.mubr.f32.mxu1 %v36221_v60  ;;  %v36431_v15 = vand.u32 4294901760, %v32606_v61  ;;  %v36432_v26 = vand.u32 4294901760, %v32633_v42  ;;  %v32711_v54 = vsub.f32 %v32027_v29, %v36434_v10 }
 0xb52   :  { %v15863_v14 = vand.u32 4294901760, %v15862_v38  ;;  %26593 = vmatpush1.bf16.msra.mxu0 %v32661_v6  ;;  %v32720_v52 = vsub.f32 %v32032_v41, %v36437_v50  ;;  %v36439_v10 = vand.u32 4294901760, %v32060_v28  ;;  %v36445_v50 = vand.u32 4294901760, %v32076_v47 }
 0xb53   :  { %v32706_v17 = vpack.c.bf16 %v36432_v26, %v36431_v15  ;;  %36435 = vst [vmem:[#allocation134_spill] sm:$0xff] %v32711_v54  ;;  %26595 = vmatprep.subr.bf16.mxu0 %v32695_v20  ;;  %v35764_v38 = vand.u32 4294901760, %v32711_v54  ;;  %v28733_v20 = vld [vmem:[#allocation19 + $0x20] sm:$0xff] }
 0xb54   :  { %13040 = vmatmul.mubr.f32.vlgmr.msra.gmra.mrb[24].mxu1 %v32382_v16  ;;  %v32715_v46 = vpack.c.bf16 %v15863_v14, %v15851_v9  ;;  %36438 = vst [vmem:[#allocation136_spill] sm:$0xff] %v32720_v52  ;;  %v35766_v29 = vand.u32 4294901760, %v32720_v52  ;;  %v32730_v14 = vsub.f32 %v32060_v28, %v36439_v10  ;;  %v36441_v9 = vand.u32 4294901760, %v32065_v2 }
 0xb55   :  { %36433 = vst [vmem:[#allocation133_spill] sm:$0xff] %v32706_v17  ;;  %26381 = vmatpush1.bf16.msra.mxu1 %v31638_v57  ;;  %13045 = vmatprep.mubr.f32.mxu1 %v36221_v60  ;;  %v15898_v15 = vsub.f32 %v32711_v54, %v35764_v38  ;;  %v32749_v28 = vsub.f32 %v32076_v47, %v36445_v50 }
 0xb56   :  { %36436 = vst [vmem:[#allocation135_spill] sm:$0xff] %v32715_v46  ;;  %26383 = vmatprep.subr.bf16.mxu1 %v31674_v34  ;;  %36440 = vst [vmem:[#allocation137_spill] sm:$0xff] %v32730_v14  ;;  %v32735_v41 = vsub.f32 %v32065_v2, %v36441_v9  ;;  %26597 = vmatpush1.bf16.msra.mxu0 %v32706_v17  ;;  %v36443_v34 = vand.u32 4294901760, %v32071_v43  ;;  %v15910_v2 = vsub.f32 %v32720_v52, %v35766_v29 }
 0xb57   :  { %36446 = vst [vmem:[#allocation140_spill] sm:$0xff] %v32749_v28  ;;  %26599 = vmatprep.subr.bf16.mxu0 %v32715_v46  ;;  %v15899_v47 = vand.u32 4294901760, %v15898_v15  ;;  %v36449_v46 = vand.u32 4294901760, %v32107_v51  ;;  %v36451_v9 = vand.u32 4294901760, %v32730_v14  ;;  %v13320_v50 = vmul.f32 %v28733_v20, %v31910_v8 }
 0xb58   :  { %36442 = vst [vmem:[#allocation138_spill] sm:$0xff] %v32735_v41  ;;  %v32744_v26 = vsub.f32 %v32071_v43, %v36443_v34  ;;  %13048 = vmatmul.mubr.f32.gmra.mrb[26].mxu1 %v32428_v31  ;;  %v36447_v43 = vand.u32 4294901760, %v32102_v37  ;;  %v15911_v10 = vand.u32 4294901760, %v15910_v2 }
 0xb59   :  { %13122 = vmatprep.mubr.f32.mxu1 %v36221_v60  ;;  %v32769_v29 = vsub.f32 %v32107_v51, %v36449_v46  ;;  %v15904_v17 = vsub.f32 %v32730_v14, %v36451_v9  ;;  %v36454_v51 = vand.u32 4294901760, %v32749_v28  ;;  %v36455_v9 = vand.u32 4294901760, %v32382_v16 }
 0xb5a   :  { %36444 = vst [vmem:[#allocation139_spill] sm:$0xff] %v32744_v26  ;;  %v32761_v34 = vsub.f32 %v32102_v37, %v36447_v43  ;;  %v36452_v37 = vand.u32 4294901760, %v32735_v41  ;;  %v36453_v38 = vand.u32 4294901760, %v32744_v26  ;;  %v32788_v5 = vpack.c.bf16 %v15911_v10, %v15899_v47  ;;  %v28734_v47 = vld [vmem:[#allocation19 + $0x28] sm:$0xff] }
 0xb5b   :  { %36450 = vst [vmem:[#allocation142_spill] sm:$0xff] %v32769_v29  ;;  %v15934_v46 = vsub.f32 %v32749_v28, %v36454_v51  ;;  %v35783_v2 = vand.u32 4294901760, %v32769_v29  ;;  %v13869_v10 = vsel %vm854_vm9, %v13320_v50, 0 }
 0xb5c   :  { %36448 = vst [vmem:[#allocation141_spill] sm:$0xff] %v32761_v34  ;;  %v15916_v43 = vsub.f32 %v32735_v41, %v36452_v37  ;;  %v15922_v6 = vsub.f32 %v32744_v26, %v36453_v38  ;;  %13126 = vmatmul.mubr.f32.vlgmr.msra.gmra.mrb[24].mxu1 %v36455_v9  ;;  %v15905_v37 = vand.u32 4294901760, %v15904_v17  ;;  %v36456_v42 = vand.u32 4294901760, %v32761_v34 }
 0xb5d   :  { %26385 = vmatpush1.bf16.msra.mxu1 %v31676_v7  ;;  %13131 = vmatprep.mubr.f32.mxu1 %v36221_v60  ;;  %v15935_v38 = vand.u32 4294901760, %v15934_v46  ;;  %v15940_v51 = vsub.f32 %v32769_v29, %v35783_v2  ;;  %v32810_v9 = vand.u32 4294901760, %v13869_v10  ;;  %v36517_v2 = vld [vmem:[#allocation84_spill] sm:$0xff] }
 0xb5e   :  { %v15917_v15 = vand.u32 4294901760, %v15916_v43  ;;  %v15928_v8 = vsub.f32 %v32761_v34, %v36456_v42  ;;  %v15923_v20 = vand.u32 4294901760, %v15922_v6  ;;  %26387 = vmatprep.subr.bf16.mxu1 %v31642_v23  ;;  %v13321_v42 = vmul.f32 %v28734_v47, %v31907_v27 }
 0xb5f   :  { %v15941_v7 = vand.u32 4294901760, %v15940_v51  ;;  %v36457_v6 = vand.u32 4294901760, %v32428_v31  ;;  %v13944_v27 = vsub.f32 %v13869_v10, %v32810_v9  ;;  %v36459_v51 = vld [vmem:[#allocation44_spill] sm:$0xff] }
 0xb60   :  { %v32799_v16 = vpack.c.bf16 %v15917_v15, %v15905_v37  ;;  %v15929_v17 = vand.u32 4294901760, %v15928_v8  ;;  %v32803_v43 = vpack.c.bf16 %v15935_v38, %v15923_v20  ;;  %v13872_v23 = vsel %vm854_vm9, %v13321_v42, 0  ;;  %v36464_v42 = vld [vmem:[#allocation42_spill] sm:$0xff] }
 0xb61   :  { %13135 = vmatmul.mubr.f32.gmra.mrb[26].mxu1 %v36457_v6  ;;  %v32818_v31 = vand.u32 4294901760, %v13872_v23  ;;  %v13945_v50 = vand.u32 4294901760, %v13944_v27  ;;  %v36466_v6 = vand.u32 4294901760, %v32533_v19 }
 0xb62   :  { %13217 = vmatprep.mubr.f32.mxu1 %v36221_v60  ;;  %v32808_v46 = vpack.c.bf16 %v15941_v7, %v15929_v17  ;;  %v36461_v17 = vld [vmem:[#allocation48_spill] sm:$0xff] }
 0xb63   :  { %v13955_v15 = vsub.f32 %v13872_v23, %v32818_v31  ;;  %v13946_v37 = vsub.f32 %v13944_v27, %v13945_v50  ;;  %v32846_v23 = vsub.f32 %v32533_v19, %v36466_v6  ;;  %v36477_v6 = vand.u32 4294901760, %v32570_v35 }
 0xb65   :  { %13219 = vmatmul.mubr.f32.vlgmr.msra.gmra.mrb[24].mxu1 %v32336_v63  ;;  %v13956_v8 = vand.u32 4294901760, %v13955_v15  ;;  %v13947_v20 = vand.u32 4294901760, %v13946_v37 }
 0xb66   :  { %26389 = vmatpush1.bf16.msra.mxu1 %v31638_v57  ;;  %13224 = vmatprep.mubr.f32.mxu1 %v36221_v60  ;;  %v36458_v57 = vld [vmem:[#allocation49_spill] sm:$0xff] }
 0xb67   :  { %26415 = vmatprep.subr.bf16.mxu1 %v31733_v59  ;;  %v13957_v38 = vsub.f32 %v13955_v15, %v13956_v8  ;;  %36467 = vst [vmem:[#allocation49_spill] sm:$0xff] %v32846_v23 }
 0xb69   :  { %13226 = vmatmul.mubr.f32.gmra.mrb[26].mxu1 %v32384_v58  ;;  %v13958_v47 = vand.u32 4294901760, %v13957_v38 }
 0xb6a   :  { %13300 = vmatprep.mubr.f32.mxu1 %v36221_v60 }
 0xb6d   :  { %13302 = vmatmul.mubr.f32.vlgmr.msra.gmra.mrb[24].mxu1 %v32336_v63  ;;  %v36460_v63 = vld [vmem:[#allocation39_spill] sm:$0xff] }
 0xb6e   :  { %26417 = vmatpush1.bf16.msra.mxu1 %v31728_v44  ;;  %13307 = vmatprep.mubr.f32.mxu1 %v36221_v60  ;;  %v36462_v10 = vpack.c.bf16 %v36460_v63, %v36461_v17 }
 0xb6f   :  { %26419 = vmatprep.subr.bf16.mxu1 %v36458_v57  ;;  %v36468_v57 = vand.u32 4294901760, %v32538_v53 }
 0xb71   :  { %13309 = vmatmul.mubr.f32.gmra.mrb[26].mxu1 %v32384_v58  ;;  %v36463_v58 = vld [vmem:[#allocation46_spill] sm:$0xff]  ;;  %v32851_v37 = vsub.f32 %v32538_v53, %v36468_v57  ;;  %v36473_v53 = vand.u32 4294901760, %v32557_v4  ;;  %v32889_v57 = vsub.f32 %v32570_v35, %v36477_v6 }
 0xb72   :  { %13942 = vmatprep.mubr.f32.mxu1 %v36221_v60  ;;  %v36465_v7 = vpack.c.bf16 %v36463_v58, %v36464_v42 }
 0xb73   :  { %36469 = vst [vmem:[#allocation44_spill] sm:$0xff] %v32851_v37  ;;  %v35781_v19 = vand.u32 4294901760, %v32851_v37  ;;  %v32867_v17 = vsub.f32 %v32557_v4, %v36473_v53  ;;  %36478 = vst [vmem:[#allocation42_spill] sm:$0xff] %v32889_v57 }
 0xb75   :  { %13948 = vmatmul.mubr.f32.vlgmr.msra.gmra.mrb[24].mxu1 %v13947_v20  ;;  %v36470_v20 = vand.u32 4294901760, %v32552_v30  ;;  %36474 = vst [vmem:[#allocation48_spill] sm:$0xff] %v32867_v17  ;;  %v16174_v58 = vsub.f32 %v32851_v37, %v35781_v19  ;;  %v35777_v42 = vand.u32 4294901760, %v32867_v17  ;;  %v36515_v19 = vand.u32 4294901760, %v32229_v32 }
 0xb76   :  { %26421 = vmatpush1.bf16.msra.mxu1 %v36459_v51  ;;  %13953 = vmatprep.mubr.f32.mxu1 %v36221_v60  ;;  %v35782_v51 = vand.u32 4294901760, %v32846_v23 }
 0xb77   :  { %26423 = vmatprep.subr.bf16.mxu1 %v36462_v10  ;;  %v32858_v38 = vsub.f32 %v32552_v30, %v36470_v20  ;;  %v36475_v10 = vand.u32 4294901760, %v32562_v62 }
 0xb78   :  { %v16162_v30 = vsub.f32 %v32846_v23, %v35782_v51  ;;  %v33006_v51 = vsub.f32 %v32229_v32, %v36515_v19  ;;  %v36523_v32 = vld [vmem:[#allocation85_spill] sm:$0xff] }
 0xb79   :  { %13959 = vmatmul.mubr.f32.gmra.mrb[26].mxu1 %v13958_v47  ;;  %36471 = vst [vmem:[#allocation39_spill] sm:$0xff] %v32858_v38  ;;  %v35780_v63 = vand.u32 4294901760, %v32858_v38  ;;  %v32872_v47 = vsub.f32 %v32562_v62, %v36475_v10  ;;  %v36524_v19 = vand.u32 4294901760, %v36523_v32 }
 0xb7a   :  { %14049 = vmatprep.mubr.f32.mxu1 %v36221_v60 }
 0xb7b   :  { %36476 = vst [vmem:[#allocation46_spill] sm:$0xff] %v32872_v47  ;;  %v16168_v4 = vsub.f32 %v32858_v38, %v35780_v63  ;;  %v35779_v62 = vand.u32 4294901760, %v32872_v47  ;;  %v36514_v63 = vld [vmem:[#allocation50_spill] sm:$0xff] }
 0xb7c   :  { %36516 = vst [vmem:[#allocation50_spill] sm:$0xff] %v33006_v51 }
 0xb7d   :  { %14051 = vmatmul.mubr.f32.vlgmr.msra.gmra.mrb[24].mxu1 %v32810_v9  ;;  %v16169_v20 = vand.u32 4294901760, %v16168_v4  ;;  %v16186_v53 = vsub.f32 %v32872_v47, %v35779_v62 }
 0xb7e   :  { %26425 = vmatpush1.bf16.msra.mxu1 %v36465_v7  ;;  %14056 = vmatprep.mubr.f32.mxu1 %v36221_v60  ;;  %v16163_v7 = vand.u32 4294901760, %v16162_v30  ;;  %v35778_v30 = vand.u32 4294901760, %v32889_v57 }
 0xb7f   :  { %26427 = vmatprep.subr.bf16.mxu1 %v31733_v59  ;;  %v16187_v4 = vand.u32 4294901760, %v16186_v53 }
 0xb80   :  { %v16198_v6 = vsub.f32 %v32889_v57, %v35778_v30  ;;  %v36503_v30 = vand.u32 4294901760, %v32192_v12 }
 0xb81   :  { %14058 = vmatmul.mubr.f32.gmra.mrb[26].mxu1 %v32818_v31 }
 0xb82   :  { %14136 = vmatprep.mubr.f32.mxu1 %v36221_v60  ;;  %v32979_v62 = vsub.f32 %v32192_v12, %v36503_v30  ;;  %v36511_v12 = vld [vmem:[#allocation81_spill] sm:$0xff] }
 0xb83   :  { %v36512_v30 = vand.u32 4294901760, %v36511_v12 }
 0xb84   :  { %36504 = vst [vmem:[#allocation157_spill] sm:$0xff] %v32979_v62 }
 0xb85   :  { %14139 = vmatmul.mubr.f32.vlgmr.msra.gmra.mrb[24].mxu1 %v13944_v27  ;;  %v36472_v27 = vld [vmem:[#allocation40_spill] sm:$0xff] }
 0xb86   :  { %26429 = vmatpush1.bf16.msra.mxu1 %v31728_v44  ;;  %14144 = vmatprep.mubr.f32.mxu1 %v36221_v60 }
 0xb87   :  { %26431 = vmatprep.subr.bf16.mxu1 %v36472_v27  ;;  %v16180_v27 = vsub.f32 %v32867_v17, %v35777_v42 }
 0xb89   :  { %14147 = vmatmul.mubr.f32.gmra.mrb[26].mxu1 %v13955_v15  ;;  %v16175_v15 = vand.u32 4294901760, %v16174_v58  ;;  %v36480_v58 = vld [vmem:[#allocation43_spill] sm:$0xff]  ;;  %v16181_v35 = vand.u32 4294901760, %v16180_v27  ;;  %v36487_v27 = vand.u32 4294901760, %v32121_v0 }
 0xb8a   :  { %14221 = vmatprep.mubr.f32.mxu1 %v36221_v60 }
 0xb8b   :  { %v32897_v10 = vpack.c.bf16 %v16175_v15, %v16163_v7  ;;  %v32906_v42 = vpack.c.bf16 %v16181_v35, %v16169_v20  ;;  %v32920_v15 = vpack.c.bf16 %v32735_v41, %v32730_v14  ;;  %v32930_v53 = vsub.f32 %v32121_v0, %v36487_v27 }
 0xb8c   :  { %v36491_v35 = vand.u32 4294901760, %v32147_v22 }
 0xb8d   :  { %14225 = vmatmul.mubr.f32.vlgmr.msra.gmra.mrb[24].mxu1 %v13945_v50  ;;  %36479 = vst [vmem:[#allocation40_spill] sm:$0xff] %v32897_v10  ;;  %36481 = vst [vmem:[#allocation43_spill] sm:$0xff] %v32906_v42  ;;  %v16199_v50 = vand.u32 4294901760, %v16198_v6  ;;  %v36583_v42 = vld [vmem:[#allocation106_spill] sm:$0xff] }
 0xb8e   :  { %26433 = vmatpush1.bf16.msra.mxu1 %v36480_v58  ;;  %14230 = vmatprep.mubr.f32.mxu1 %v36221_v60  ;;  %36484 = vst [vmem:[#allocation145_spill] sm:$0xff] %v32920_v15  ;;  %36488 = vst [vmem:[#allocation147_spill] sm:$0xff] %v32930_v53  ;;  %v32939_v58 = vpack.c.bf16 %v32769_v29, %v32761_v34  ;;  %v36518_v29 = vand.u32 4294901760, %v36517_v2  ;;  %v36569_v15 = vld [vmem:[#allocation53_spill] sm:$0xff]  ;;  %v36584_v10 = vand.u32 4294901760, %v36583_v42 }
 0xb8f   :  { %26435 = vmatprep.subr.bf16.mxu1 %v31733_v59  ;;  %v32909_v7 = vpack.c.bf16 %v16199_v50, %v16187_v4  ;;  %v32916_v59 = vpack.c.bf16 %v32720_v52, %v32711_v54  ;;  %v36493_v4 = vand.u32 4294901760, %v32152_v21  ;;  %v36533_v52 = vld [vmem:[#allocation90_spill] sm:$0xff] }
 0xb90   :  { %36490 = vst [vmem:[#allocation149_spill] sm:$0xff] %v32939_v58  ;;  %v33011_v34 = vsub.f32 %v36517_v2, %v36518_v29  ;;  %v36526_v29 = vld [vmem:[#allocation86_spill] sm:$0xff]  ;;  %v36534_v54 = vand.u32 4294901760, %v36533_v52  ;;  %v36566_v58 = vld [vmem:[#allocation100_spill] sm:$0xff] }
 0xb91   :  { %14234 = vmatmul.mubr.f32.gmra.mrb[26].mxu1 %v13956_v8  ;;  %36482 = vst [vmem:[#allocation143_spill] sm:$0xff] %v32909_v7  ;;  %36483 = vst [vmem:[#allocation144_spill] sm:$0xff] %v32916_v59  ;;  %v36485_v8 = vand.u32 4294901760, %v32116_v11  ;;  %v32949_v0 = vsub.f32 %v32152_v21, %v36493_v4  ;;  %v36499_v21 = vand.u32 4294901760, %v32163_v18  ;;  %v36527_v2 = vand.u32 4294901760, %v36526_v29  ;;  %v36579_v59 = vld [vmem:[#allocation66_spill] sm:$0xff] }
 0xb92   :  { %14316 = vmatprep.mubr.f32.mxu1 %v36221_v60  ;;  %36519 = vst [vmem:[#allocation84_spill] sm:$0xff] %v33011_v34 }
 0xb93   :  { %v32925_v20 = vsub.f32 %v32116_v11, %v36485_v8  ;;  %v32944_v11 = vsub.f32 %v32147_v22, %v36491_v35  ;;  %36494 = vst [vmem:[#allocation151_spill] sm:$0xff] %v32949_v0  ;;  %v36497_v22 = vand.u32 4294901760, %v32158_v25  ;;  %v32969_v27 = vsub.f32 %v32163_v18, %v36499_v21  ;;  %v36506_v18 = vld [vmem:[#allocation51_spill] sm:$0xff] }
 0xb94   :  { %v36501_v35 = vand.u32 4294901760, %v32187_v39 }
 0xb95   :  { %14318 = vmatmul.mubr.f32.vlgmr.msra.gmra.mrb[24].mxu1 %v32810_v9  ;;  %36486 = vst [vmem:[#allocation146_spill] sm:$0xff] %v32925_v20  ;;  %36492 = vst [vmem:[#allocation150_spill] sm:$0xff] %v32944_v11  ;;  %v32954_v6 = vpack.c.bf16 %v32930_v53, %v32925_v20  ;;  %v32959_v50 = vpack.c.bf16 %v32949_v0, %v32944_v11  ;;  %v32964_v8 = vsub.f32 %v32158_v25, %v36497_v22 }
 0xb96   :  { %26437 = vmatpush1.bf16.msra.mxu1 %v31728_v44  ;;  %14323 = vmatprep.mubr.f32.mxu1 %v36221_v60  ;;  %v32935_v44 = vpack.c.bf16 %v32749_v28, %v32744_v26  ;;  %36500 = vst [vmem:[#allocation155_spill] sm:$0xff] %v32969_v27  ;;  %v32974_v4 = vsub.f32 %v32187_v39, %v36501_v35  ;;  %v36508_v39 = vld [vmem:[#allocation36_spill] sm:$0xff]  ;;  %v36530_v26 = vld [vmem:[#allocation89_spill] sm:$0xff] }
 0xb97   :  { %26487 = vmatprep.subr.bf16.mxu1 %v31786_v45  ;;  %36495 = vst [vmem:[#allocation152_spill] sm:$0xff] %v32954_v6  ;;  %36496 = vst [vmem:[#allocation153_spill] sm:$0xff] %v32959_v50  ;;  %v32984_v25 = vpack.c.bf16 %v32969_v27, %v32964_v8  ;;  %v36509_v21 = vand.u32 4294901760, %v36508_v39  ;;  %v36529_v28 = vld [vmem:[#allocation60_spill] sm:$0xff]  ;;  %v36531_v41 = vand.u32 4294901760, %v36530_v26  ;;  %v36553_v6 = vld [vmem:[#allocation59_spill] sm:$0xff] }
 0xb98   :  { %36489 = vst [vmem:[#allocation148_spill] sm:$0xff] %v32935_v44  ;;  %36498 = vst [vmem:[#allocation154_spill] sm:$0xff] %v32964_v8  ;;  %v32990_v22 = vpack.c.bf16 %v32979_v62, %v32974_v4  ;;  %v36567_v44 = vand.u32 4294901760, %v36566_v58 }
 0xb99   :  { %14325 = vmatmul.mubr.f32.gmra.mrb[26].mxu1 %v32818_v31  ;;  %36502 = vst [vmem:[#allocation156_spill] sm:$0xff] %v32974_v4  ;;  %36505 = vst [vmem:[#allocation158_spill] sm:$0xff] %v32984_v25  ;;  %v32995_v35 = vsub.f32 %v36508_v39, %v36509_v21  ;;  %v36521_v21 = vld [vmem:[#allocation45_spill] sm:$0xff]  ;;  %v33038_v14 = vsub.f32 %v36530_v26, %v36531_v41  ;;  %v36540_v41 = vld [vmem:[#allocation91_spill] sm:$0xff] }
 0xb9a   :  { %14399 = vmatprep.mubr.f32.mxu1 %v36221_v60  ;;  %36507 = vst [vmem:[#allocation51_spill] sm:$0xff] %v32990_v22  ;;  %v36541_v26 = vand.u32 4294901760, %v36540_v41  ;;  %v36550_v25 = vld [vmem:[#allocation95_spill] sm:$0xff] }
 0xb9b   :  { %36510 = vst [vmem:[#allocation36_spill] sm:$0xff] %v32995_v35  ;;  %36532 = vst [vmem:[#allocation60_spill] sm:$0xff] %v33038_v14  ;;  %v36551_v50 = vand.u32 4294901760, %v36550_v25 }
 0xb9d   :  { %14401 = vmatmul.mubr.f32.vlgmr.msra.gmra.mrb[24].mxu1 %v32810_v9  ;;  %v33000_v9 = vsub.f32 %v36511_v12, %v36512_v30  ;;  %v33022_v12 = vpack.c.bf16 %v33011_v34, %v33006_v51  ;;  %v33027_v30 = vsub.f32 %v36523_v32, %v36524_v19  ;;  %v36538_v19 = vld [vmem:[#allocation61_spill] sm:$0xff] }
 0xb9e   :  { %14406 = vmatprep.mubr.f32.mxu1 %v36221_v60  ;;  %26489 = vmatpush1.bf16.msra.mxu1 %v36506_v18 }
 0xb9f   :  { %36513 = vst [vmem:[#allocation81_spill] sm:$0xff] %v33000_v9  ;;  %26491 = vmatprep.subr.bf16.mxu1 %v36514_v63  ;;  %v33016_v39 = vpack.c.bf16 %v33000_v9, %v32995_v35  ;;  %36522 = vst [vmem:[#allocation45_spill] sm:$0xff] %v33022_v12  ;;  %v33043_v12 = vsub.f32 %v36533_v52, %v36534_v54  ;;  %v36543_v54 = vld [vmem:[#allocation92_spill] sm:$0xff] }
 0xba0   :  { %36525 = vst [vmem:[#allocation85_spill] sm:$0xff] %v33027_v30  ;;  %v36544_v52 = vand.u32 4294901760, %v36543_v54 }
 0xba1   :  { %14408 = vmatmul.mubr.f32.gmra.mrb[26].mxu1 %v32818_v31  ;;  %36520 = vst [vmem:[#allocation159_spill] sm:$0xff] %v33016_v39  ;;  %v33032_v31 = vsub.f32 %v36526_v29, %v36527_v2  ;;  %36535 = vst [vmem:[#allocation89_spill] sm:$0xff] %v33043_v12  ;;  %v36536_v39 = vld [vmem:[#allocation58_spill] sm:$0xff]  ;;  %v33059_v29 = vsub.f32 %v36540_v41, %v36541_v26  ;;  %v36555_v26 = vld [vmem:[#allocation63_spill] sm:$0xff] }
 0xba2   :  { %26493 = vmatpush1.bf16.msra.mxu1 %v36521_v21  ;;  %15166 = vmatprep.mubr.f32.mxu1 %v36221_v60  ;;  %v36546_v2 = vld [vmem:[#allocation62_spill] sm:$0xff] }
 0xba3   :  { %36528 = vst [vmem:[#allocation86_spill] sm:$0xff] %v33032_v31  ;;  %26495 = vmatprep.subr.bf16.mxu1 %v36529_v28  ;;  %v33048_v32 = vpack.c.bf16 %v33032_v31, %v33027_v30  ;;  %v33054_v28 = vpack.c.bf16 %v33043_v12, %v33038_v14  ;;  %36542 = vst [vmem:[#allocation61_spill] sm:$0xff] %v33059_v29 }
 0xba5   :  { %15172 = vmatmul.mubr.f32.vlgmr.msra.gmra.mrb[28].mxu1 %v36536_v39  ;;  %36537 = vst [vmem:[#allocation90_spill] sm:$0xff] %v33048_v32  ;;  %36539 = vst [vmem:[#allocation58_spill] sm:$0xff] %v33054_v28  ;;  %v33064_v39 = vsub.f32 %v36543_v54, %v36544_v52  ;;  %v36547_v32 = vld [vmem:[#allocation94_spill] sm:$0xff]  ;;  %v33075_v28 = vsub.f32 %v36550_v25, %v36551_v50  ;;  %v36560_v50 = vld [vmem:[#allocation97_spill] sm:$0xff] }
 0xba6   :  { %26497 = vmatpush1.bf16.msra.mxu1 %v36538_v19  ;;  %15177 = vmatprep.mubr.f32.mxu1 %v36221_v60  ;;  %v36548_v19 = vand.u32 4294901760, %v36547_v32  ;;  %v36561_v25 = vand.u32 4294901760, %v36560_v50 }
 0xba7   :  { %36545 = vst [vmem:[#allocation91_spill] sm:$0xff] %v33064_v39  ;;  %26499 = vmatprep.subr.bf16.mxu1 %v36546_v2  ;;  %36552 = vst [vmem:[#allocation62_spill] sm:$0xff] %v33075_v28  ;;  %v33080_v41 = vpack.c.bf16 %v33064_v39, %v33059_v29 }
 0xba8   :  { %v33070_v22 = vsub.f32 %v36547_v32, %v36548_v19  ;;  %v36557_v32 = vld [vmem:[#allocation96_spill] sm:$0xff] }
 0xba9   :  { %15183 = vmatmul.mubr.f32.gmra.mrb[30].mxu1 %v36553_v6  ;;  %36554 = vst [vmem:[#allocation94_spill] sm:$0xff] %v33080_v41  ;;  %v36558_v52 = vand.u32 4294901760, %v36557_v32  ;;  %v33096_v6 = vsub.f32 %v36560_v50, %v36561_v25  ;;  %v36563_v19 = vld [vmem:[#allocation64_spill] sm:$0xff] }
 0xbaa   :  { %36549 = vst [vmem:[#allocation92_spill] sm:$0xff] %v33070_v22  ;;  %26501 = vmatpush1.bf16.msra.mxu1 %v36555_v26  ;;  %15293 = vmatprep.mubr.f32.mxu1 %v36221_v60  ;;  %v33086_v54 = vpack.c.bf16 %v33075_v28, %v33070_v22  ;;  %v36564_v26 = vand.u32 4294901760, %v32361_v48 }
 0xbab   :  { %v33091_v2 = vsub.f32 %v36557_v32, %v36558_v52  ;;  %36562 = vst [vmem:[#allocation63_spill] sm:$0xff] %v33096_v6  ;;  %26503 = vmatprep.subr.bf16.mxu1 %v36563_v19  ;;  %v36571_v52 = vld [vmem:[#allocation65_spill] sm:$0xff] }
 0xbac   :  { %36556 = vst [vmem:[#allocation95_spill] sm:$0xff] %v33086_v54  ;;  %v33102_v41 = vsub.f32 %v32361_v48, %v36564_v26  ;;  %v33107_v54 = vsub.f32 %v36566_v58, %v36567_v44  ;;  %v36573_v48 = vld [vmem:[#allocation101_spill] sm:$0xff]  ;;  %v36576_v44 = vld [vmem:[#allocation102_spill] sm:$0xff] }
 0xbad   :  { %36559 = vst [vmem:[#allocation59_spill] sm:$0xff] %v33091_v2  ;;  %15295 = vmatmul.mubr.f32.vlgmr.msra.gmra.mrb[28].mxu1 %v36569_v15  ;;  %v33112_v32 = vpack.c.bf16 %v33096_v6, %v33091_v2  ;;  %v36574_v25 = vand.u32 4294901760, %v36573_v48  ;;  %v36577_v58 = vand.u32 4294901760, %v36576_v44 }
 0xbae   :  { %36565 = vst [vmem:[#allocation96_spill] sm:$0xff] %v33102_v41  ;;  %36568 = vst [vmem:[#allocation97_spill] sm:$0xff] %v33107_v54  ;;  %26505 = vmatpush1.bf16.msra.mxu1 %v36571_v52  ;;  %15300 = vmatprep.mubr.f32.mxu1 %v36221_v60  ;;  %v33118_v50 = vpack.c.bf16 %v33107_v54, %v33102_v41  ;;  %v36586_v54 = vld [vmem:[#allocation52_spill] sm:$0xff] }
 0xbaf   :  { %36570 = vst [vmem:[#allocation64_spill] sm:$0xff] %v33112_v32  ;;  %v33123_v19 = vsub.f32 %v36573_v48, %v36574_v25  ;;  %v33128_v26 = vsub.f32 %v36576_v44, %v36577_v58  ;;  %26507 = vmatprep.subr.bf16.mxu1 %v36579_v59  ;;  %v36580_v32 = vld [vmem:[#allocation105_spill] sm:$0xff]  ;;  %v36588_v25 = vld [vmem:[#allocation67_spill] sm:$0xff] }
 0xbb0   :  { %36572 = vst [vmem:[#allocation100_spill] sm:$0xff] %v33118_v50  ;;  %v36581_v52 = vand.u32 4294901760, %v36580_v32  ;;  %v33139_v50 = vsub.f32 %v36583_v42, %v36584_v10  ;;  %v36593_v42 = vld [vmem:[#allocation108_spill] sm:$0xff] }
 0xbb1   :  { %36575 = vst [vmem:[#allocation53_spill] sm:$0xff] %v33123_v19  ;;  %36578 = vst [vmem:[#allocation65_spill] sm:$0xff] %v33128_v26  ;;  %15302 = vmatmul.mubr.f32.gmra.mrb[30].mxu1 %v36586_v54  ;;  %v33144_v48 = vpack.c.bf16 %v33128_v26, %v33123_v19  ;;  %v36594_v10 = vand.u32 4294901760, %v36593_v42  ;;  %v36599_v19 = vld [vmem:[#allocation112_spill] sm:$0xff] }
 0xbb2   :  { %v33134_v7 = vsub.f32 %v36580_v32, %v36581_v52  ;;  %36585 = vst [vmem:[#allocation102_spill] sm:$0xff] %v33139_v50  ;;  %26509 = vmatpush1.bf16.msra.mxu1 %v36588_v25  ;;  %15388 = vmatprep.mubr.f32.mxu1 %v36221_v60  ;;  %v36590_v32 = vld [vmem:[#allocation107_spill] sm:$0xff] }
 0xbb3   :  { %36587 = vst [vmem:[#allocation66_spill] sm:$0xff] %v33144_v48  ;;  %v36591_v44 = vand.u32 4294901760, %v36590_v32  ;;  %v33160_v52 = vsub.f32 %v36593_v42, %v36594_v10  ;;  %26511 = vmatprep.subr.bf16.mxu1 %v31786_v45  ;;  %v36596_v48 = vld [vmem:[#allocation111_spill] sm:$0xff]  ;;  %v36605_v42 = vld [vmem:[#allocation113_spill] sm:$0xff] }
 0xbb4   :  { %36582 = vst [vmem:[#allocation101_spill] sm:$0xff] %v33134_v7  ;;  %v33150_v59 = vpack.c.bf16 %v33139_v50, %v33134_v7  ;;  %v36597_v25 = vand.u32 4294901760, %v36596_v48  ;;  %v36600_v50 = vand.u32 4294901760, %v36599_v19  ;;  %v36602_v7 = vld [vmem:[#allocation54_spill] sm:$0xff]  ;;  %v36606_v10 = vand.u32 4294901760, %v36605_v42 }
 0xbb5   :  { %v33155_v58 = vsub.f32 %v36590_v32, %v36591_v44  ;;  %36595 = vst [vmem:[#allocation52_spill] sm:$0xff] %v33160_v52  ;;  %15391 = vmatmul.mubr.f32.vlgmr.msra.gmra.mrb[28].mxu1 %v36602_v7  ;;  %v36608_v7 = vld [vmem:[#allocation114_spill] sm:$0xff] }
 0xbb6   :  { %36589 = vst [vmem:[#allocation105_spill] sm:$0xff] %v33150_v59  ;;  %v33166_v26 = vsub.f32 %v36596_v48, %v36597_v25  ;;  %v33171_v59 = vsub.f32 %v36599_v19, %v36600_v50  ;;  %26513 = vmatpush1.bf16.msra.mxu1 %v36506_v18  ;;  %15396 = vmatprep.mubr.f32.mxu1 %v36221_v60  ;;  %v36609_v19 = vand.u32 4294901760, %v36608_v7  ;;  %v36614_v48 = vld [vmem:[#allocation118_spill] sm:$0xff] }
 0xbb7   :  { %36592 = vst [vmem:[#allocation106_spill] sm:$0xff] %v33155_v58  ;;  %v33176_v32 = vpack.c.bf16 %v33160_v52, %v33155_v58  ;;  %v33188_v50 = vsub.f32 %v36605_v42, %v36606_v10  ;;  %26515 = vmatprep.subr.bf16.mxu1 %v36514_v63  ;;  %v36611_v52 = vld [vmem:[#allocation117_spill] sm:$0xff]  ;;  %v36617_v42 = vld [vmem:[#allocation55_spill] sm:$0xff] }
 0xbb8   :  { %36598 = vst [vmem:[#allocation67_spill] sm:$0xff] %v33166_v26  ;;  %36601 = vst [vmem:[#allocation107_spill] sm:$0xff] %v33171_v59  ;;  %v33182_v44 = vpack.c.bf16 %v33171_v59, %v33166_v26  ;;  %v33193_v25 = vsub.f32 %v36608_v7, %v36609_v19  ;;  %v36612_v58 = vand.u32 4294901760, %v36611_v52  ;;  %v36615_v59 = vand.u32 4294901760, %v36614_v48  ;;  %v36621_v19 = vld [vmem:[#allocation68_spill] sm:$0xff] }
 0xbb9   :  { %36603 = vst [vmem:[#allocation108_spill] sm:$0xff] %v33176_v32  ;;  %36607 = vst [vmem:[#allocation112_spill] sm:$0xff] %v33188_v50  ;;  %v35843_v32 = vand.u32 4294901760, %v32654_v13  ;;  %15399 = vmatmul.mubr.f32.gmra.mrb[30].mxu1 %v36617_v42 }
 0xbba   :  { %36604 = vst [vmem:[#allocation111_spill] sm:$0xff] %v33182_v44  ;;  %36610 = vst [vmem:[#allocation54_spill] sm:$0xff] %v33193_v25  ;;  %v33200_v44 = vsub.f32 %v36611_v52, %v36612_v58  ;;  %v33205_v26 = vsub.f32 %v36614_v48, %v36615_v59  ;;  %v33210_v10 = vpack.c.bf16 %v33193_v25, %v33188_v50  ;;  %26517 = vmatpush1.bf16.msra.mxu1 %v36521_v21  ;;  %v36622_v50 = vld [vmem:[#allocation56_spill] sm:$0xff] }
 0xbbb   :  { %15477 = vmatprep.mubr.f32.mxu1 %v36221_v60  ;;  %v36620_v52 = vand.u32 4294901760, %v32643_v40  ;;  %26519 = vmatprep.subr.bf16.mxu1 %v36621_v19  ;;  %v15868_v42 = vsub.f32 %v32654_v13, %v35843_v32  ;;  %v13856_v7 = vpop.f32.mrb[24].mxu0  ;;  %v36624_v48 = vand.u32 4294901760, %v32667_v49  ;;  %v33241_v32 = vpack.c.bf16 %v32867_v17, %v32858_v38  ;;  %v36640_v13 = vld [vmem:[#allocation71_spill] sm:$0xff] }
 0xbbc   :  { %36613 = vst [vmem:[#allocation113_spill] sm:$0xff] %v33200_v44  ;;  %36616 = vst [vmem:[#allocation114_spill] sm:$0xff] %v33205_v26  ;;  %v33217_v58 = vpack.c.bf16 %v33205_v26, %v33200_v44  ;;  %v36625_v26 = vld [vmem:[#allocation69_spill] sm:$0xff]  ;;  %v36636_v38 = vand.u32 4294901760, %v32687_v3 }
 0xbbd   :  { %36618 = vst [vmem:[#allocation117_spill] sm:$0xff] %v33210_v10  ;;  %v15856_v59 = vsub.f32 %v32643_v40, %v36620_v52  ;;  %15481 = vmatmul.mubr.f32.vlgmr.msra.gmra.mrb[28].mxu1 %v36622_v50  ;;  %v14422_v52 = vmax.f32 %v13856_v7, 0.0  ;;  %v13858_v40 = vpop.f32.mrb[25].mxu0  ;;  %v15874_v19 = vsub.f32 %v32667_v49, %v36624_v48  ;;  %36626 = vst [vmem:[#allocation68_spill] sm:$0xff] %v33241_v32  ;;  %v36627_v10 = vand.u32 4294901760, %v32672_v56  ;;  %v36628_v7 = vld [vmem:[#allocation70_spill] sm:$0xff] }
 0xbbe   :  { %36619 = vst [vmem:[#allocation118_spill] sm:$0xff] %v33217_v58  ;;  %v33232_v58 = vpack.c.bf16 %v32851_v37, %v32846_v23  ;;  %26521 = vmatpush1.bf16.msra.mxu1 %v36625_v26  ;;  %15486 = vmatprep.mubr.f32.mxu1 %v36221_v60  ;;  %v14423_v25 = vmax.f32 %v13858_v40, 0.0  ;;  %v36630_v48 = vand.u32 4294901760, %v32576_v36  ;;  %v36632_v49 = vand.u32 4294901760, %v32581_v55  ;;  %v36637_v32 = vld [vmem:[#allocation57_spill] sm:$0xff] }
 0xbbf   :  { %v15857_v50 = vand.u32 4294901760, %v15856_v59  ;;  %v15886_v37 = vsub.f32 %v32672_v56, %v36627_v10  ;;  %26523 = vmatprep.subr.bf16.mxu1 %v36628_v7  ;;  %v33247_v23 = vand.u32 4294901760, %v14422_v52  ;;  %v13863_v59 = vpop.f32.mrb[26].mxu0  ;;  %v36635_v10 = vand.u32 4294901760, %v32682_v1 }
 0xbc0   :  { %36623 = vst [vmem:[#allocation55_spill] sm:$0xff] %v33232_v58  ;;  %v15869_v58 = vand.u32 4294901760, %v15868_v42  ;;  %v33252_v26 = vsub.f32 %v32576_v36, %v36630_v48  ;;  %v33257_v17 = vsub.f32 %v32581_v55, %v36632_v49  ;;  %v33259_v40 = vand.u32 4294901760, %v14423_v25  ;;  %v13865_v48 = vpop.f32.mrb[27].mxu0 }
 0xbc1   :  { %36629 = vst [vmem:[#allocation56_spill] sm:$0xff] %v33247_v23  ;;  %v15880_v7 = vsub.f32 %v32682_v1, %v36635_v10  ;;  %v15892_v42 = vsub.f32 %v32687_v3, %v36636_v38  ;;  %15490 = vmatmul.mubr.f32.gmra.mrb[30].mxu1 %v36637_v32  ;;  %v33270_v36 = vpack.c.bf16 %v32889_v57, %v32872_v47  ;;  %v14424_v49 = vmax.f32 %v13863_v59, 0.0 }
 0xbc2   :  { %36631 = vst [vmem:[#allocation69_spill] sm:$0xff] %v33252_v26  ;;  %36633 = vst [vmem:[#allocation70_spill] sm:$0xff] %v33257_v17  ;;  %v33273_v55 = vsub.f32 %v14422_v52, %v33247_v23  ;;  %v15875_v56 = vand.u32 4294901760, %v15874_v19  ;;  %26525 = vmatpush1.bf16.msra.mxu1 %v36640_v13  ;;  %15584 = vmatprep.mubr.f32.mxu1 %v36221_v60  ;;  %v33279_v10 = vpack.c.bf16 %v33257_v17, %v33252_v26 }
 0xbc3   :  { %36634 = vst [vmem:[#allocation160_spill] sm:$0xff] %v33259_v40  ;;  %36638 = vst [vmem:[#allocation57_spill] sm:$0xff] %v33270_v36  ;;  %v33282_v38 = vsub.f32 %v14423_v25, %v33259_v40  ;;  %v14425_v32 = vmax.f32 %v13865_v48, 0.0  ;;  %v36642_v57 = vand.u32 4294901760, %v32594_v33  ;;  %v36644_v59 = vand.u32 4294901760, %v32599_v24  ;;  %26527 = vmatprep.subr.bf16.mxu1 %v31786_v45 }
 0xbc4   :  { %36639 = vst [vmem:[#allocation161_spill] sm:$0xff] %v33273_v55  ;;  %36641 = vst [vmem:[#allocation71_spill] sm:$0xff] %v33279_v10  ;;  %v35860_v13 = vand.u32 4294901760, %v33273_v55  ;;  %v33296_v47 = vand.u32 4294901760, %v14424_v49  ;;  %v36647_v25 = vand.u32 4294901760, %v32606_v61  ;;  %v36649_v10 = vld [vmem:[#allocation126_spill] sm:$0xff] }
 0xbc5   :  { %v33287_v52 = vsub.f32 %v32594_v33, %v36642_v57  ;;  %v33292_v19 = vsub.f32 %v32599_v24, %v36644_v59  ;;  %v36650_v36 = vand.u32 4294901760, %v36649_v10  ;;  %v33308_v57 = vand.u32 4294901760, %v14425_v32  ;;  %15586 = vmatmul.mubr.f32.vlgmr.msra.gmra.mrb[28].mxu1 %v36569_v15 }
 0xbc6   :  { %36646 = vst [vmem:[#allocation164_spill] sm:$0xff] %v33296_v47  ;;  %v33301_v48 = vsub.f32 %v32606_v61, %v36647_v25  ;;  %v35867_v24 = vand.u32 4294901760, %v33282_v38  ;;  %v15887_v59 = vand.u32 4294901760, %v15886_v37  ;;  %v15823_v61 = vsub.f32 %v33273_v55, %v35860_v13  ;;  %26529 = vmatpush1.bf16.msra.mxu1 %v36506_v18  ;;  %15591 = vmatprep.mubr.f32.mxu1 %v36221_v60 }
 0xbc7   :  { %36643 = vst [vmem:[#allocation162_spill] sm:$0xff] %v33287_v52  ;;  %36645 = vst [vmem:[#allocation163_spill] sm:$0xff] %v33292_v19  ;;  %v33306_v33 = vsub.f32 %v36649_v10, %v36650_v36  ;;  %v33314_v45 = vpack.c.bf16 %v33292_v19, %v33287_v52  ;;  %v33320_v25 = vsub.f32 %v14424_v49, %v33296_v47  ;;  %26531 = vmatprep.subr.bf16.mxu1 %v36514_v63 }
 0xbc8   :  { %36648 = vst [vmem:[#allocation165_spill] sm:$0xff] %v33301_v48  ;;  %36652 = vst [vmem:[#allocation166_spill] sm:$0xff] %v33308_v57  ;;  %v33329_v36 = vsub.f32 %v14425_v32, %v33308_v57  ;;  %v15817_v10 = vsub.f32 %v33282_v38, %v35867_v24  ;;  %v33335_v13 = vpack.c.bf16 %v15869_v58, %v15857_v50  ;;  %v15881_v18 = vand.u32 4294901760, %v15880_v7 }
 0xbc9   :  { %36651 = vst [vmem:[#allocation126_spill] sm:$0xff] %v33306_v33  ;;  %36653 = vst [vmem:[#allocation167_spill] sm:$0xff] %v33314_v45  ;;  %v33326_v37 = vpack.c.bf16 %v33306_v33, %v33301_v48  ;;  %v35868_v49 = vand.u32 4294901760, %v33320_v25  ;;  %v33339_v47 = vpack.c.bf16 %v15887_v59, %v15875_v56  ;;  %15593 = vmatmul.mubr.f32.gmra.mrb[30].mxu1 %v36586_v54  ;;  %v15824_v32 = vand.u32 4294901760, %v15823_v61  ;;  %v36655_v59 = vld [vmem:[#allocation72_spill] sm:$0xff] }
 0xbca   :  { %v15818_v55 = vand.u32 4294901760, %v15817_v10  ;;  %v35869_v45 = vand.u32 4294901760, %v33329_v36  ;;  %v35872_v63 = vand.u32 4294901760, %v32925_v20  ;;  %v35870_v58 = vand.u32 4294901760, %v32930_v53  ;;  %26533 = vmatpush1.bf16.msra.mxu1 %v36521_v21  ;;  %15671 = vmatprep.mubr.f32.mxu1 %v36221_v60 }
 0xbcb   :  { %36654 = vst [vmem:[#allocation168_spill] sm:$0xff] %v33326_v37  ;;  %v15893_v37 = vand.u32 4294901760, %v15892_v42  ;;  %v15839_v24 = vsub.f32 %v33320_v25, %v35868_v49  ;;  %v35871_v50 = vand.u32 4294901760, %v32944_v11  ;;  %v35874_v7 = vand.u32 4294901760, %v32949_v0  ;;  %26919 = vmatprep.subr.bf16.mxu1 %v36655_v59 }
 0xbcc   :  { %15819 = vmatprep.mubr.f32.mxu0 %v15818_v55  ;;  %v15833_v56 = vsub.f32 %v33329_v36, %v35869_v45  ;;  %v35873_v42 = vand.u32 4294901760, %v32964_v8  ;;  %v35875_v61 = vand.u32 4294901760, %v32969_v27  ;;  %v15946_v49 = vsub.f32 %v32925_v20, %v35872_v63  ;;  %v36656_v45 = vld [vmem:[#allocation73_spill] sm:$0xff]  ;;  %v36660_v63 = vld [vmem:[#allocation76_spill] sm:$0xff] }
 0xbcd   :  { %15825 = vmatmul.mubr.f32.vlgmr.msra.gmra.mrb[28].mxu0 %v15824_v32  ;;  %v33358_v10 = vpack.c.bf16 %v15893_v37, %v15881_v18  ;;  %15673 = vmatmul.mubr.f32.vlgmr.msra.gmra.mrb[28].mxu1 %v36569_v15  ;;  %v15840_v55 = vand.u32 4294901760, %v15839_v24  ;;  %v15958_v32 = vsub.f32 %v32930_v53, %v35870_v58  ;;  %v15952_v37 = vsub.f32 %v32944_v11, %v35871_v50  ;;  %v36687_v53 = vld [vmem:[#allocation53_spill] sm:$0xff] }
 0xbce   :  { %26601 = vmatpush1.bf16.msra.mxu0 %v33335_v13  ;;  %v15834_v21 = vand.u32 4294901760, %v15833_v56  ;;  %26921 = vmatpush1.bf16.msra.mxu1 %v36656_v45  ;;  %v15964_v15 = vsub.f32 %v32949_v0, %v35874_v7  ;;  %v15970_v24 = vsub.f32 %v32964_v8, %v35873_v42  ;;  %v36657_v56 = vld [vmem:[#allocation74_spill] sm:$0xff]  ;;  %v15947_v42 = vand.u32 4294901760, %v15946_v49  ;;  %v36658_v7 = vld [vmem:[#allocation75_spill] sm:$0xff] }
 0xbcf   :  { %26603 = vmatprep.subr.bf16.mxu0 %v33339_v47  ;;  %26923 = vmatprep.subr.bf16.mxu1 %v36657_v56  ;;  %v15953_v18 = vand.u32 4294901760, %v15952_v37  ;;  %v36659_v58 = vand.u32 4294901760, %v32974_v4  ;;  %v36661_v8 = vand.u32 4294901760, %v32979_v62  ;;  %v36662_v49 = vand.u32 4294901760, %v32995_v35 }
 0xbd0   :  { %15835 = vmatprep.mubr.f32.mxu0 %v15834_v21  ;;  %v15982_v21 = vsub.f32 %v32969_v27, %v35875_v61  ;;  %15678 = vmatprep.mubr.f32.mxu1 %v36221_v60  ;;  %v15965_v61 = vand.u32 4294901760, %v15964_v15  ;;  %v15971_v27 = vand.u32 4294901760, %v15970_v24  ;;  %v36663_v37 = vand.u32 4294901760, %v33000_v9 }
 0xbd1   :  { %15841 = vmatmul.mubr.f32.gmra.mrb[30].mxu0 %v15840_v55  ;;  %v15959_v55 = vand.u32 4294901760, %v15958_v32  ;;  %v15976_v50 = vsub.f32 %v32974_v4, %v36659_v58  ;;  %15680 = vmatmul.mubr.f32.gmra.mrb[30].mxu1 %v36586_v54  ;;  %v15988_v0 = vsub.f32 %v32979_v62, %v36661_v8  ;;  %v15994_v32 = vsub.f32 %v32995_v35, %v36662_v49  ;;  %v36664_v62 = vld [vmem:[#allocation77_spill] sm:$0xff] }
 0xbd2   :  { %26605 = vmatpush1.bf16.msra.mxu0 %v33358_v10  ;;  %16232 = vmatprep.mubr.f32.mxu0 %v33259_v40  ;;  %v15983_v60 = vand.u32 4294901760, %v15982_v21  ;;  %v16006_v15 = vsub.f32 %v33000_v9, %v36663_v37  ;;  %v33414_v49 = vpack.c.bf16 %v15965_v61, %v15953_v18  ;;  %v36666_v37 = vld [vmem:[#allocation78_spill] sm:$0xff]  ;;  %v36669_v21 = vand.u32 4294901760, %v33011_v34  ;;  %v36691_v40 = vld [vmem:[#allocation87_spill] sm:$0xff] }
 0xbd3   :  { %26607 = vmatprep.subr.bf16.mxu0 %v32788_v5  ;;  %26925 = vmatpush1.bf16.msra.mxu1 %v36658_v7  ;;  %v33409_v54 = vpack.c.bf16 %v15959_v55, %v15947_v42  ;;  %v15977_v35 = vand.u32 4294901760, %v15976_v50  ;;  %v15989_v58 = vand.u32 4294901760, %v15988_v0  ;;  %v15995_v4 = vand.u32 4294901760, %v15994_v32 }
 0xbd4   :  { %26927 = vmatprep.subr.bf16.mxu1 %v36660_v63  ;;  %36665 = vst [vmem:[#allocation72_spill] sm:$0xff] %v33414_v49  ;;  %v33417_v9 = vpack.c.bf16 %v15983_v60, %v15971_v27  ;;  %v16007_v24 = vand.u32 4294901760, %v16006_v15  ;;  %v36668_v42 = vand.u32 4294901760, %v33006_v51  ;;  %v16012_v8 = vsub.f32 %v33011_v34, %v36669_v21  ;;  %v36673_v34 = vld [vmem:[#allocation80_spill] sm:$0xff] }
 0xbd5   :  { %v36670_v60 = vand.u32 4294901760, %v33027_v30  ;;  %v36671_v27 = vand.u32 4294901760, %v33032_v31  ;;  %v36677_v50 = vand.u32 4294901760, %v33043_v12 }
 0xbd6   :  { %26609 = vmatpush1.bf16.msra.mxu0 %v32799_v16  ;;  %36667 = vst [vmem:[#allocation73_spill] sm:$0xff] %v33417_v9  ;;  %v16000_v55 = vsub.f32 %v33006_v51, %v36668_v42  ;;  %v36672_v42 = vld [vmem:[#allocation79_spill] sm:$0xff]  ;;  %v33442_v51 = vpack.c.bf16 %v15989_v58, %v15977_v35  ;;  %v16013_v15 = vand.u32 4294901760, %v16012_v8 }
 0xbd7   :  { %26611 = vmatprep.subr.bf16.mxu0 %v32803_v43  ;;  %26929 = vmatpush1.bf16.msra.mxu1 %v36664_v62  ;;  %v16018_v0 = vsub.f32 %v33027_v30, %v36670_v60  ;;  %v16030_v18 = vsub.f32 %v33032_v31, %v36671_v27  ;;  %v33444_v60 = vpack.c.bf16 %v16007_v24, %v15995_v4  ;;  %v36676_v31 = vand.u32 4294901760, %v33038_v14  ;;  %v36686_v30 = vld [vmem:[#allocation97_spill] sm:$0xff] }
 0xbd8   :  { %26931 = vmatprep.subr.bf16.mxu1 %v36666_v37  ;;  %36674 = vst [vmem:[#allocation74_spill] sm:$0xff] %v33442_v51  ;;  %v16001_v32 = vand.u32 4294901760, %v16000_v55  ;;  %v16036_v61 = vsub.f32 %v33043_v12, %v36677_v50  ;;  %v36678_v4 = vand.u32 4294901760, %v33059_v29  ;;  %v36679_v27 = vand.u32 4294901760, %v33064_v39  ;;  %v36680_v55 = vld [vmem:[#allocation82_spill] sm:$0xff] }
 0xbd9   :  { %36675 = vst [vmem:[#allocation75_spill] sm:$0xff] %v33444_v60  ;;  %v16024_v21 = vsub.f32 %v33038_v14, %v36676_v31  ;;  %v16019_v35 = vand.u32 4294901760, %v16018_v0  ;;  %v16031_v58 = vand.u32 4294901760, %v16030_v18  ;;  %v36681_v31 = vand.u32 4294901760, %v33070_v22 }
 0xbda   :  { %26613 = vmatpush1.bf16.msra.mxu0 %v32808_v46  ;;  %v16042_v24 = vsub.f32 %v33059_v29, %v36678_v4  ;;  %v16054_v8 = vsub.f32 %v33064_v39, %v36679_v27  ;;  %v36682_v50 = vand.u32 4294901760, %v33075_v28  ;;  %v36683_v0 = vand.u32 4294901760, %v33091_v2  ;;  %v36684_v29 = vld [vmem:[#allocation83_spill] sm:$0xff] }
 0xbdb   :  { %26615 = vmatprep.subr.bf16.mxu0 %v33409_v54  ;;  %26933 = vmatpush1.bf16.msra.mxu1 %v36672_v42  ;;  %v16048_v14 = vsub.f32 %v33070_v22, %v36681_v31  ;;  %v36685_v27 = vand.u32 4294901760, %v33096_v6  ;;  %v36688_v22 = vld [vmem:[#allocation65_spill] sm:$0xff]  ;;  %v33483_v4 = vpack.c.bf16 %v16031_v58, %v16019_v35  ;;  %v36692_v31 = vand.u32 4294901760, %v33102_v41 }
 0xbdc   :  { %26935 = vmatprep.subr.bf16.mxu1 %v36673_v34  ;;  %v16060_v12 = vsub.f32 %v33075_v28, %v36682_v50  ;;  %v16066_v18 = vsub.f32 %v33091_v2, %v36683_v0  ;;  %v33480_v50 = vpack.c.bf16 %v16013_v15, %v16001_v32  ;;  %v16025_v28 = vand.u32 4294901760, %v16024_v21 }
 0xbdd   :  { %v16078_v39 = vsub.f32 %v33096_v6, %v36685_v27  ;;  %v16037_v0 = vand.u32 4294901760, %v16036_v61  ;;  %36690 = vst [vmem:[#allocation77_spill] sm:$0xff] %v33483_v4  ;;  %v16043_v2 = vand.u32 4294901760, %v16042_v24  ;;  %v16049_v27 = vand.u32 4294901760, %v16048_v14  ;;  %v36698_v24 = vld [vmem:[#allocation101_spill] sm:$0xff] }
 0xbde   :  { %26617 = vmatpush1.bf16.msra.mxu0 %v33414_v49  ;;  %36689 = vst [vmem:[#allocation76_spill] sm:$0xff] %v33480_v50  ;;  %v16061_v11 = vand.u32 4294901760, %v16060_v12  ;;  %v16067_v6 = vand.u32 4294901760, %v16066_v18  ;;  %v16072_v20 = vsub.f32 %v33102_v41, %v36692_v31  ;;  %v36694_v61 = vand.u32 4294901760, %v36686_v30  ;;  %v36699_v18 = vld [vmem:[#allocation102_spill] sm:$0xff]  ;;  %v36702_v41 = vld [vmem:[#allocation52_spill] sm:$0xff] }
 0xbdf   :  { %26619 = vmatprep.subr.bf16.mxu0 %v33417_v9  ;;  %26937 = vmatpush1.bf16.msra.mxu1 %v36680_v55  ;;  %v16055_v9 = vand.u32 4294901760, %v16054_v8  ;;  %v16079_v32 = vand.u32 4294901760, %v16078_v39  ;;  %v36695_v21 = vand.u32 4294901760, %v36687_v53  ;;  %v36696_v58 = vand.u32 4294901760, %v36688_v22 }
 0xbe0   :  { %26939 = vmatprep.subr.bf16.mxu1 %v36684_v29  ;;  %v16084_v15 = vsub.f32 %v36686_v30, %v36694_v61  ;;  %v33500_v12 = vpack.c.bf16 %v16037_v0, %v16025_v28  ;;  %v36701_v61 = vld [vmem:[#allocation106_spill] sm:$0xff] }
 0xbe1   :  { %v16090_v35 = vsub.f32 %v36687_v53, %v36695_v21  ;;  %v16102_v14 = vsub.f32 %v36688_v22, %v36696_v58  ;;  %v33505_v31 = vpack.c.bf16 %v16055_v9, %v16043_v2  ;;  %v36703_v53 = vld [vmem:[#allocation47_spill] sm:$0xff]  ;;  %v16073_v58 = vand.u32 4294901760, %v16072_v20  ;;  %v36705_v22 = vld [vmem:[#allocation93_spill] sm:$0xff] }
 0xbe2   :  { %26621 = vmatpush1.bf16.msra.mxu0 %v33442_v51  ;;  %v36693_v51 = vld [vmem:[#allocation88_spill] sm:$0xff]  ;;  %36697 = vst [vmem:[#allocation78_spill] sm:$0xff] %v33500_v12  ;;  %v33513_v28 = vpack.c.bf16 %v16079_v32, %v16067_v6  ;;  %v16085_v0 = vand.u32 4294901760, %v16084_v15  ;;  %v36707_v9 = vand.u32 4294901760, %v36698_v24  ;;  %v36708_v21 = vand.u32 4294901760, %v36699_v18  ;;  %v36710_v20 = vld [vmem:[#allocation107_spill] sm:$0xff] }
 0xbe3   :  { %26623 = vmatprep.subr.bf16.mxu0 %v33444_v60  ;;  %26941 = vmatpush1.bf16.msra.mxu1 %v36691_v40  ;;  %36700 = vst [vmem:[#allocation79_spill] sm:$0xff] %v33505_v31  ;;  %v33510_v60 = vpack.c.bf16 %v16061_v11, %v16049_v27  ;;  %v16091_v8 = vand.u32 4294901760, %v16090_v35  ;;  %v16103_v39 = vand.u32 4294901760, %v16102_v14  ;;  %v36709_v11 = vld [vmem:[#allocation67_spill] sm:$0xff]  ;;  %v36711_v6 = vand.u32 4294901760, %v36701_v61  ;;  %v36713_v14 = vld [vmem:[#allocation112_spill] sm:$0xff] }
 0xbe4   :  { %26943 = vmatprep.subr.bf16.mxu1 %v36693_v51  ;;  %36706 = vst [vmem:[#allocation170_spill] sm:$0xff] %v33513_v28  ;;  %v16096_v2 = vsub.f32 %v36698_v24, %v36707_v9  ;;  %v16108_v30 = vsub.f32 %v36699_v18, %v36708_v21  ;;  %v36712_v15 = vand.u32 4294901760, %v36702_v41  ;;  %v36714_v24 = vld [vmem:[#allocation54_spill] sm:$0xff]  ;;  %v36716_v21 = vld [vmem:[#allocation99_spill] sm:$0xff]  ;;  %v33535_v27 = vpack.c.bf16 %v16085_v0, %v16073_v58  ;;  %v36723_v18 = vld [vmem:[#allocation104_spill] sm:$0xff] }
 0xbe5   :  { %36704 = vst [vmem:[#allocation169_spill] sm:$0xff] %v33510_v60  ;;  %v16114_v32 = vsub.f32 %v36701_v61, %v36711_v6  ;;  %v36718_v9 = vand.u32 4294901760, %v36709_v11  ;;  %v36720_v58 = vand.u32 4294901760, %v36713_v14  ;;  %v36721_v6 = vand.u32 4294901760, %v36714_v24 }
 0xbe6   :  { %26625 = vmatpush1.bf16.msra.mxu0 %v33480_v50  ;;  %v16126_v35 = vsub.f32 %v36702_v41, %v36712_v15  ;;  %v36715_v50 = vld [vmem:[#allocation98_spill] sm:$0xff]  ;;  %v16097_v61 = vand.u32 4294901760, %v16096_v2  ;;  %v16109_v15 = vand.u32 4294901760, %v16108_v30  ;;  %v36719_v41 = vand.u32 4294901760, %v36710_v20  ;;  %v36722_v2 = vld [vmem:[#allocation103_spill] sm:$0xff] }
 0xbe7   :  { %26627 = vmatprep.subr.bf16.mxu0 %v33483_v4  ;;  %26945 = vmatpush1.bf16.msra.mxu1 %v36703_v53  ;;  %v33537_v4 = vpack.c.bf16 %v16103_v39, %v16091_v8  ;;  %v16115_v8 = vand.u32 4294901760, %v16114_v32  ;;  %v16138_v0 = vsub.f32 %v36713_v14, %v36720_v58  ;;  %v16150_v30 = vsub.f32 %v36714_v24, %v36721_v6 }
 0xbe8   :  { %26947 = vmatprep.subr.bf16.mxu1 %v36705_v22  ;;  %v16132_v49 = vsub.f32 %v36710_v20, %v36719_v41  ;;  %v16127_v39 = vand.u32 4294901760, %v16126_v35  ;;  %v33564_v35 = vpack.c.bf16 %v16109_v15, %v16097_v61  ;;  %v35925_v61 = vand.u32 4294901760, %v33252_v26 }
 0xbe9   :  { %v16139_v24 = vand.u32 4294901760, %v16138_v0  ;;  %v35927_v15 = vand.u32 4294901760, %v33287_v52  ;;  %v36733_v0 = vld [vmem:[#allocation116_spill] sm:$0xff] }
 0xbea   :  { %26629 = vmatpush1.bf16.msra.mxu0 %v33500_v12  ;;  %v16120_v12 = vsub.f32 %v36709_v11, %v36718_v9  ;;  %v36724_v9 = vand.u32 4294901760, %v33200_v44  ;;  %36726 = vst [vmem:[#allocation171_spill] sm:$0xff] %v33564_v35  ;;  %v16133_v14 = vand.u32 4294901760, %v16132_v49  ;;  %v33567_v6 = vpack.c.bf16 %v16127_v39, %v16115_v8  ;;  %v36732_v39 = vld [vmem:[#allocation115_spill] sm:$0xff] }
 0xbeb   :  { %26631 = vmatprep.subr.bf16.mxu0 %v33505_v31  ;;  %26949 = vmatpush1.bf16.msra.mxu1 %v36715_v50  ;;  %v36717_v31 = vld [vmem:[#allocation114_spill] sm:$0xff]  ;;  %v16151_v11 = vand.u32 4294901760, %v16150_v30  ;;  %v35924_v49 = vand.u32 4294901760, %v33257_v17  ;;  %v35930_v8 = vand.u32 4294901760, %v33292_v19 }
 0xbec   :  { %26951 = vmatprep.subr.bf16.mxu1 %v36716_v21  ;;  %v16144_v41 = vsub.f32 %v33200_v44, %v36724_v9  ;;  %v36725_v20 = vand.u32 4294901760, %v36717_v31  ;;  %v16121_v58 = vand.u32 4294901760, %v16120_v12  ;;  %36727 = vst [vmem:[#allocation172_spill] sm:$0xff] %v33567_v6 }
 0xbed   :  { %v33577_v12 = vpack.c.bf16 %v16151_v11, %v16139_v24  ;;  %v16204_v24 = vsub.f32 %v33257_v17, %v35924_v49  ;;  %v35936_v11 = vand.u32 4294901760, %v33301_v48  ;;  %v36737_v17 = vand.u32 4294901760, %v33306_v33 }
 0xbee   :  { %26633 = vmatpush1.bf16.msra.mxu0 %v33510_v60  ;;  %v16156_v32 = vsub.f32 %v36717_v31, %v36725_v20  ;;  %v36729_v60 = vld [vmem:[#allocation110_spill] sm:$0xff]  ;;  %v16145_v9 = vand.u32 4294901760, %v16144_v41  ;;  %v33572_v20 = vpack.c.bf16 %v16133_v14, %v16121_v58  ;;  %v16192_v14 = vsub.f32 %v33252_v26, %v35925_v61  ;;  %v36735_v58 = vld [vmem:[#allocation119_spill] sm:$0xff] }
 0xbef   :  { %26635 = vmatprep.subr.bf16.mxu0 %v33513_v28  ;;  %26953 = vmatpush1.bf16.msra.mxu1 %v36722_v2  ;;  %v36728_v28 = vld [vmem:[#allocation109_spill] sm:$0xff]  ;;  %36731 = vst [vmem:[#allocation174_spill] sm:$0xff] %v33577_v12  ;;  %v16205_v61 = vand.u32 4294901760, %v16204_v24  ;;  %v16216_v41 = vsub.f32 %v33301_v48, %v35936_v11  ;;  %v36740_v31 = vld [vmem:[#allocation122_spill] sm:$0xff]  ;;  %v36745_v48 = vld [vmem:[#allocation123_spill] sm:$0xff] }
 0xbf0   :  { %26955 = vmatprep.subr.bf16.mxu1 %v36723_v18  ;;  %v16157_v44 = vand.u32 4294901760, %v16156_v32  ;;  %36730 = vst [vmem:[#allocation173_spill] sm:$0xff] %v33572_v20  ;;  %v16222_v32 = vsub.f32 %v33292_v19, %v35930_v8  ;;  %v16193_v49 = vand.u32 4294901760, %v16192_v14  ;;  %v36739_v19 = vld [vmem:[#allocation121_spill] sm:$0xff] }
 0xbf1   :  { %v16217_v24 = vand.u32 4294901760, %v16216_v41 }
 0xbf2   :  { %26637 = vmatpush1.bf16.msra.mxu0 %v33535_v27  ;;  %v33583_v30 = vpack.c.bf16 %v16157_v44, %v16145_v9  ;;  %v16210_v44 = vsub.f32 %v33287_v52, %v35927_v15  ;;  %v36736_v9 = vld [vmem:[#allocation120_spill] sm:$0xff]  ;;  %v16228_v15 = vsub.f32 %v33306_v33, %v36737_v17  ;;  %v16223_v8 = vand.u32 4294901760, %v16222_v32  ;;  %v36746_v17 = vld [vmem:[#allocation125_spill] sm:$0xff]  ;;  %v36749_v33 = vld [vmem:[#allocation127_spill] sm:$0xff] }
 0xbf3   :  { %26639 = vmatprep.subr.bf16.mxu0 %v33537_v4  ;;  %26957 = vmatpush1.bf16.msra.mxu1 %v36728_v28  ;;  %v36738_v52 = vld [vmem:[#allocation40_spill] sm:$0xff]  ;;  %v33614_v14 = vpack.c.bf16 %v16205_v61, %v16193_v49  ;;  %v36751_v49 = vld [vmem:[#allocation129_spill] sm:$0xff] }
 0xbf4   :  { %26959 = vmatprep.subr.bf16.mxu1 %v36729_v60  ;;  %36734 = vst [vmem:[#allocation175_spill] sm:$0xff] %v33583_v30  ;;  %v16211_v26 = vand.u32 4294901760, %v16210_v44  ;;  %v36748_v32 = vld [vmem:[#allocation124_spill] sm:$0xff] }
 0xbf5   :  { %36742 = vst [vmem:[#allocation176_spill] sm:$0xff] %v33614_v14  ;;  %v33627_v61 = vpack.c.bf16 %v36749_v33, %v36748_v32 }
 0xbf6   :  { %26641 = vmatpush1.bf16.msra.mxu0 %v33564_v35  ;;  %v33617_v11 = vpack.c.bf16 %v16223_v8, %v16211_v26  ;;  %v36753_v26 = vld [vmem:[#allocation128_spill] sm:$0xff]  ;;  %v36754_v8 = vld [vmem:[#allocation41_spill] sm:$0xff]  ;;  %v36773_v35 = vld [vmem:[#allocation90_spill] sm:$0xff] }
 0xbf7   :  { %26643 = vmatprep.subr.bf16.mxu0 %v33567_v6  ;;  %26961 = vmatpush1.bf16.msra.mxu1 %v36732_v39  ;;  %36750 = vst [vmem:[#allocation124_spill] sm:$0xff] %v33627_v61  ;;  %v33634_v41 = vpack.c.bf16 %v36754_v8, %v36753_v26  ;;  %v36769_v6 = vld [vmem:[#allocation158_spill] sm:$0xff] }
 0xbf8   :  { %26963 = vmatprep.subr.bf16.mxu1 %v36733_v0  ;;  %36744 = vst [vmem:[#allocation177_spill] sm:$0xff] %v33617_v11 }
 0xbf9   :  { %36755 = vst [vmem:[#allocation127_spill] sm:$0xff] %v33634_v41 }
 0xbfa   :  { %26645 = vmatpush1.bf16.msra.mxu0 %v33572_v20  ;;  %v36743_v20 = vld [vmem:[#allocation143_spill] sm:$0xff] }
 0xbfb   :  { %26647 = vmatprep.subr.bf16.mxu0 %v33577_v12  ;;  %26965 = vmatpush1.bf16.msra.mxu1 %v36735_v58  ;;  %v36741_v12 = vld [vmem:[#allocation43_spill] sm:$0xff] }
 0xbfc   :  { %26967 = vmatprep.subr.bf16.mxu1 %v36736_v9 }
 0xbfe   :  { %26649 = vmatpush1.bf16.msra.mxu0 %v33583_v30  ;;  %v16229_v30 = vand.u32 4294901760, %v16228_v15  ;;  %v36752_v15 = vld [vmem:[#allocation132_spill] sm:$0xff] }
 0xbff   :  { %26651 = vmatprep.subr.bf16.mxu0 %v36738_v52  ;;  %26969 = vmatpush1.bf16.msra.mxu1 %v36739_v19  ;;  %v36768_v52 = vld [vmem:[#allocation153_spill] sm:$0xff] }
 0xc00   :  { %26971 = vmatprep.subr.bf16.mxu1 %v36740_v31  ;;  %v33622_v44 = vpack.c.bf16 %v16229_v30, %v16217_v24  ;;  %v36756_v30 = vld [vmem:[#allocation130_spill] sm:$0xff]  ;;  %v36757_v24 = vld [vmem:[#allocation131_spill] sm:$0xff] }
 0xc02   :  { %26653 = vmatpush1.bf16.msra.mxu0 %v36741_v12  ;;  %36747 = vst [vmem:[#allocation178_spill] sm:$0xff] %v33622_v44  ;;  %v36763_v12 = vld [vmem:[#allocation144_spill] sm:$0xff] }
 0xc03   :  { %26655 = vmatprep.subr.bf16.mxu0 %v36743_v20  ;;  %26973 = vmatpush1.bf16.msra.mxu1 %v36745_v48  ;;  %v36760_v20 = vld [vmem:[#allocation135_spill] sm:$0xff] }
 0xc04   :  { %26975 = vmatprep.subr.bf16.mxu1 %v36746_v17 }
 0xc06   :  { %26657 = vmatpush1.bf16.msra.mxu0 %v33614_v14  ;;  %v33639_v14 = vpack.c.bf16 %v36757_v24, %v36756_v30 }
 0xc07   :  { %26659 = vmatprep.subr.bf16.mxu0 %v33617_v11  ;;  %26977 = vmatpush1.bf16.msra.mxu1 %v36751_v49  ;;  %v36759_v11 = vld [vmem:[#allocation133_spill] sm:$0xff] }
 0xc08   :  { %26979 = vmatprep.subr.bf16.mxu1 %v36752_v15  ;;  %36758 = vst [vmem:[#allocation128_spill] sm:$0xff] %v33639_v14 }
 0xc0a   :  { %26661 = vmatpush1.bf16.msra.mxu0 %v33622_v44  ;;  %v33648_v44 = vpack.c.bf16 %v32687_v3, %v32682_v1 }
 0xc0b   :  { %26663 = vmatprep.subr.bf16.mxu0 %v33627_v61  ;;  %26981 = vmatpush1.bf16.msra.mxu1 %v36759_v11  ;;  %v36762_v61 = vld [vmem:[#allocation164_spill] sm:$0xff] }
 0xc0c   :  { %26983 = vmatprep.subr.bf16.mxu1 %v36760_v20  ;;  %36761 = vst [vmem:[#allocation41_spill] sm:$0xff] %v33648_v44  ;;  %v36764_v20 = vld [vmem:[#allocation145_spill] sm:$0xff] }
 0xc0d   :  { %16234 = vmatmul.mubr.f32.vlgmr.msra.gmra.mrb[28].mxu0 %v33247_v23  ;;  %v36765_v23 = vld [vmem:[#allocation148_spill] sm:$0xff] }
 0xc0e   :  { %16240 = vmatprep.mubr.f32.mxu0 %v33308_v57  ;;  %26665 = vmatpush1.bf16.msra.mxu0 %v33634_v41  ;;  %v36766_v57 = vld [vmem:[#allocation149_spill] sm:$0xff]  ;;  %v36767_v41 = vld [vmem:[#allocation152_spill] sm:$0xff] }
 0xc0f   :  { %26667 = vmatprep.subr.bf16.mxu0 %v33639_v14  ;;  %v36770_v14 = vld [vmem:[#allocation51_spill] sm:$0xff] }
 0xc11   :  { %16242 = vmatmul.mubr.f32.gmra.mrb[30].mxu0 %v36762_v61  ;;  %v36771_v61 = vld [vmem:[#allocation159_spill] sm:$0xff] }
 0xc12   :  { %26669 = vmatpush1.bf16.msra.mxu0 %v33648_v44  ;;  %16442 = vmatprep.mubr.f32.mxu0 %v33282_v38  ;;  %v36772_v44 = vld [vmem:[#allocation45_spill] sm:$0xff] }
 0xc13   :  { %26671 = vmatprep.subr.bf16.mxu0 %v36763_v12  ;;  %v36774_v12 = vld [vmem:[#allocation58_spill] sm:$0xff] }
 0xc16   :  { %26673 = vmatpush1.bf16.msra.mxu0 %v36764_v20  ;;  %v36775_v20 = vld [vmem:[#allocation94_spill] sm:$0xff] }
 0xc17   :  { %26675 = vmatprep.subr.bf16.mxu0 %v36765_v23  ;;  %v36776_v23 = vld [vmem:[#allocation95_spill] sm:$0xff] }
 0xc1a   :  { %26677 = vmatpush1.bf16.msra.mxu0 %v36766_v57  ;;  %v36777_v57 = vld [vmem:[#allocation64_spill] sm:$0xff] }
 0xc1b   :  { %26679 = vmatprep.subr.bf16.mxu0 %v36767_v41  ;;  %v36778_v41 = vld [vmem:[#allocation100_spill] sm:$0xff] }
 0xc1e   :  { %26681 = vmatpush1.bf16.msra.mxu0 %v36768_v52  ;;  %v36779_v52 = vld [vmem:[#allocation66_spill] sm:$0xff] }
 0xc1f   :  { %26683 = vmatprep.subr.bf16.mxu0 %v36769_v6  ;;  %v36780_v6 = vld [vmem:[#allocation105_spill] sm:$0xff] }
 0xc22   :  { %26685 = vmatpush1.bf16.msra.mxu0 %v36770_v14  ;;  %v36781_v14 = vld [vmem:[#allocation108_spill] sm:$0xff] }
 0xc23   :  { %26687 = vmatprep.subr.bf16.mxu0 %v36771_v61  ;;  %v36782_v61 = vld [vmem:[#allocation111_spill] sm:$0xff] }
 0xc26   :  { %26689 = vmatpush1.bf16.msra.mxu0 %v36772_v44  ;;  %v36783_v44 = vld [vmem:[#allocation117_spill] sm:$0xff] }
 0xc27   :  { %26691 = vmatprep.subr.bf16.mxu0 %v36773_v35  ;;  %v36784_v35 = vld [vmem:[#allocation118_spill] sm:$0xff] }
 0xc2a   :  { %26693 = vmatpush1.bf16.msra.mxu0 %v36774_v12  ;;  %v36785_v12 = vld [vmem:[#allocation55_spill] sm:$0xff] }
 0xc2b   :  { %26695 = vmatprep.subr.bf16.mxu0 %v36775_v20  ;;  %v36786_v20 = vld [vmem:[#allocation68_spill] sm:$0xff] }
 0xc2e   :  { %26697 = vmatpush1.bf16.msra.mxu0 %v36776_v23  ;;  %v36787_v23 = vld [vmem:[#allocation57_spill] sm:$0xff] }
 0xc2f   :  { %26699 = vmatprep.subr.bf16.mxu0 %v36777_v57  ;;  %v36788_v57 = vld [vmem:[#allocation71_spill] sm:$0xff] }
 0xc32   :  { %26701 = vmatpush1.bf16.msra.mxu0 %v36778_v41  ;;  %v36789_v41 = vld [vmem:[#allocation167_spill] sm:$0xff] }
 0xc33   :  { %26703 = vmatprep.subr.bf16.mxu0 %v36779_v52  ;;  %v36790_v52 = vld [vmem:[#allocation168_spill] sm:$0xff] }
 0xc36   :  { %26705 = vmatpush1.bf16.msra.mxu0 %v36780_v6 }
 0xc37   :  { %26707 = vmatprep.subr.bf16.mxu0 %v36781_v14  ;;  %v36791_v14 = vld [vmem:[#allocation161_spill] sm:$0xff] }
 0xc3a   :  { %26709 = vmatpush1.bf16.msra.mxu0 %v36782_v61 }
 0xc3b   :  { %26711 = vmatprep.subr.bf16.mxu0 %v36783_v44 }
 0xc3e   :  { %26713 = vmatpush1.bf16.msra.mxu0 %v36784_v35 }
 0xc3f   :  { %26715 = vmatprep.subr.bf16.mxu0 %v36785_v12 }
 0xc42   :  { %26717 = vmatpush1.bf16.msra.mxu0 %v36786_v20 }
 0xc43   :  { %26719 = vmatprep.subr.bf16.mxu0 %v36787_v23 }
 0xc46   :  { %26721 = vmatpush1.bf16.msra.mxu0 %v36788_v57  ;;  %v36792_v57 = vand.u32 4294901760, %v33282_v38 }
 0xc47   :  { %26723 = vmatprep.subr.bf16.mxu0 %v36789_v41 }
 0xc4a   :  { %26725 = vmatpush1.bf16.msra.mxu0 %v36790_v52 }
 0xc4b   :  { %26727 = vmatprep.subr.bf16.mxu0 %v36655_v59 }
 0xc4d   :  { %16445 = vmatmul.mubr.f32.vlgmr.msra.gmra.mrb[28].mxu0 %v36791_v14 }
 0xc4e   :  { %16452 = vmatprep.mubr.f32.mxu0 %v33329_v36  ;;  %26729 = vmatpush1.bf16.msra.mxu0 %v36656_v45 }
 0xc4f   :  { %26731 = vmatprep.subr.bf16.mxu0 %v36657_v56 }
 0xc51   :  { %16455 = vmatmul.mubr.f32.gmra.mrb[30].mxu0 %v33320_v25 }
 0xc52   :  { %26733 = vmatpush1.bf16.msra.mxu0 %v36658_v7  ;;  %16592 = vmatprep.mubr.f32.mxu0 %v36792_v57 }
 0xc53   :  { %26735 = vmatprep.subr.bf16.mxu0 %v36660_v63 }
 0xc56   :  { %26737 = vmatpush1.bf16.msra.mxu0 %v36664_v62 }
 0xc57   :  { %26739 = vmatprep.subr.bf16.mxu0 %v36666_v37 }
 0xc5a   :  { %26741 = vmatpush1.bf16.msra.mxu0 %v36672_v42 }
 0xc5b   :  { %26743 = vmatprep.subr.bf16.mxu0 %v36673_v34 }
 0xc5e   :  { %26745 = vmatpush1.bf16.msra.mxu0 %v36680_v55 }
 0xc5f   :  { %26747 = vmatprep.subr.bf16.mxu0 %v36684_v29 }
 0xc62   :  { %26749 = vmatpush1.bf16.msra.mxu0 %v36691_v40 }
 0xc63   :  { %26751 = vmatprep.subr.bf16.mxu0 %v36693_v51 }
 0xc66   :  { %26753 = vmatpush1.bf16.msra.mxu0 %v36703_v53 }
 0xc67   :  { %26755 = vmatprep.subr.bf16.mxu0 %v36705_v22 }
 0xc6a   :  { %26757 = vmatpush1.bf16.msra.mxu0 %v36715_v50 }
 0xc6b   :  { %26759 = vmatprep.subr.bf16.mxu0 %v36716_v21 }
 0xc6e   :  { %26761 = vmatpush1.bf16.msra.mxu0 %v36722_v2 }
 0xc6f   :  { %26763 = vmatprep.subr.bf16.mxu0 %v36723_v18 }
 0xc70   :  { %v14402_v38 = vpop.f32.mrb[24].mxu1 }
 0xc71   :  { %v14426_v57 = vmax.f32 %v14402_v38, 0.0  ;;  %v14404_v52 = vpop.f32.mrb[25].mxu1 }
 0xc72   :  { %26765 = vmatpush1.bf16.msra.mxu0 %v36728_v28  ;;  %v14427_v41 = vmax.f32 %v14404_v52, 0.0 }
 0xc73   :  { %26767 = vmatprep.subr.bf16.mxu0 %v36729_v60  ;;  %v33708_v23 = vand.u32 4294901760, %v14426_v57 }
 0xc74   :  { %v33710_v20 = vand.u32 4294901760, %v14427_v41  ;;  %v14409_v12 = vpop.f32.mrb[26].mxu1 }
 0xc75   :  { %36793 = vst [vmem:[#allocation130_spill] sm:$0xff] %v33708_v23  ;;  %v33713_v35 = vsub.f32 %v14426_v57, %v33708_v23  ;;  %v14428_v44 = vmax.f32 %v14409_v12, 0.0  ;;  %v14411_v18 = vpop.f32.mrb[27].mxu1 }
 0xc76   :  { %26769 = vmatpush1.bf16.msra.mxu0 %v36732_v39  ;;  %v33717_v38 = vsub.f32 %v14427_v41, %v33710_v20  ;;  %v14429_v28 = vmax.f32 %v14411_v18, 0.0 }
 0xc77   :  { %26771 = vmatprep.subr.bf16.mxu0 %v36733_v0  ;;  %v35959_v52 = vand.u32 4294901760, %v33713_v35  ;;  %v33721_v60 = vand.u32 4294901760, %v14428_v44 }
 0xc78   :  { %v33723_v2 = vand.u32 4294901760, %v14429_v28  ;;  %v35962_v61 = vand.u32 4294901760, %v33717_v38 }
 0xc79   :  { %36794 = vst [vmem:[#allocation131_spill] sm:$0xff] %v33721_v60  ;;  %v17169_v12 = vsub.f32 %v33713_v35, %v35959_v52  ;;  %v33730_v57 = vsub.f32 %v14428_v44, %v33721_v60 }
 0xc7a   :  { %36795 = vst [vmem:[#allocation135_spill] sm:$0xff] %v33723_v2  ;;  %26773 = vmatpush1.bf16.msra.mxu0 %v36735_v58  ;;  %v33734_v18 = vsub.f32 %v14429_v28, %v33723_v2  ;;  %v17163_v41 = vsub.f32 %v33717_v38, %v35962_v61  ;;  %v36877_v61 = vld [vmem:[#allocation62_spill] sm:$0xff] }
 0xc7b   :  { %26775 = vmatprep.subr.bf16.mxu0 %v36736_v9  ;;  %v35960_v0 = vand.u32 4294901760, %v33730_v57  ;;  %v17170_v52 = vand.u32 4294901760, %v17169_v12 }
 0xc7c   :  { %v17164_v39 = vand.u32 4294901760, %v17163_v41  ;;  %v35961_v21 = vand.u32 4294901760, %v33734_v18 }
 0xc7d   :  { %v17185_v44 = vsub.f32 %v33730_v57, %v35960_v0  ;;  %v36856_v0 = vld [vmem:[#allocation84_spill] sm:$0xff] }
 0xc7e   :  { %26777 = vmatpush1.bf16.msra.mxu0 %v36739_v19  ;;  %17165 = vmatprep.mubr.f32.mxu1 %v17164_v39  ;;  %v17179_v28 = vsub.f32 %v33734_v18, %v35961_v21  ;;  %v36797_v39 = vand.u32 4294901760, %v36749_v33  ;;  %v36801_v33 = vand.u32 4294901760, %v36757_v24  ;;  %v36808_v24 = vld [vmem:[#allocation136_spill] sm:$0xff]  ;;  %v36860_v21 = vld [vmem:[#allocation86_spill] sm:$0xff] }
 0xc7f   :  { %26779 = vmatprep.subr.bf16.mxu0 %v36740_v31  ;;  %17171 = vmatmul.mubr.f32.vlgmr.msra.gmra.mrb[28].mxu1 %v17170_v52  ;;  %v17186_v12 = vand.u32 4294901760, %v17185_v44  ;;  %v36799_v52 = vand.u32 4294901760, %v36754_v8  ;;  %v36805_v8 = vand.u32 4294901760, %v32687_v3  ;;  %v36813_v3 = vld [vmem:[#allocation137_spill] sm:$0xff] }
 0xc80   :  { %26985 = vmatpush1.bf16.msra.mxu1 %v33335_v13  ;;  %v17180_v41 = vand.u32 4294901760, %v17179_v28  ;;  %v36796_v13 = vand.u32 4294901760, %v36748_v32 }
 0xc81   :  { %26987 = vmatprep.subr.bf16.mxu1 %v33339_v47 }
 0xc82   :  { %26781 = vmatpush1.bf16.msra.mxu0 %v36745_v48  ;;  %17181 = vmatprep.mubr.f32.mxu1 %v17180_v41  ;;  %v33763_v47 = vpack.c.bf16 %v36797_v39, %v36796_v13  ;;  %v36809_v41 = vand.u32 4294901760, %v36808_v24  ;;  %v36814_v13 = vand.u32 4294901760, %v36813_v3  ;;  %v36826_v24 = vld [vmem:[#allocation142_spill] sm:$0xff] }
 0xc83   :  { %26783 = vmatprep.subr.bf16.mxu0 %v36746_v17  ;;  %17187 = vmatmul.mubr.f32.gmra.mrb[30].mxu1 %v17186_v12  ;;  %v36811_v12 = vld [vmem:[#allocation72_spill] sm:$0xff] }
 0xc84   :  { %26989 = vmatpush1.bf16.msra.mxu1 %v33358_v10  ;;  %17578 = vmatprep.mubr.f32.mxu1 %v33710_v20  ;;  %v36798_v10 = vand.u32 4294901760, %v36753_v26  ;;  %v36804_v26 = vand.u32 4294901760, %v32682_v1  ;;  %v36812_v1 = vld [vmem:[#allocation160_spill] sm:$0xff] }
 0xc85   :  { %26991 = vmatprep.subr.bf16.mxu1 %v32788_v5  ;;  %v36800_v5 = vand.u32 4294901760, %v36756_v30  ;;  %v36806_v30 = vld [vmem:[#allocation134_spill] sm:$0xff] }
 0xc86   :  { %26785 = vmatpush1.bf16.msra.mxu0 %v36751_v49  ;;  %v33772_v44 = vpack.c.bf16 %v36799_v52, %v36798_v10  ;;  %v33791_v28 = vpack.c.bf16 %v36805_v8, %v36804_v26  ;;  %v36817_v52 = vld [vmem:[#allocation73_spill] sm:$0xff]  ;;  %v36822_v26 = vld [vmem:[#allocation74_spill] sm:$0xff]  ;;  %v36823_v8 = vld [vmem:[#allocation75_spill] sm:$0xff] }
 0xc87   :  { %26787 = vmatprep.subr.bf16.mxu0 %v36752_v15  ;;  %v33779_v32 = vpack.c.bf16 %v36801_v33, %v36800_v5  ;;  %v36818_v5 = vld [vmem:[#allocation139_spill] sm:$0xff] }
 0xc88   :  { %26993 = vmatpush1.bf16.msra.mxu1 %v32799_v16  ;;  %v36802_v16 = vand.u32 4294901760, %v36791_v14  ;;  %v36807_v14 = vand.u32 4294901760, %v36806_v30  ;;  %v36819_v33 = vand.u32 4294901760, %v36818_v5  ;;  %v36824_v30 = vld [vmem:[#allocation141_spill] sm:$0xff] }
 0xc89   :  { %26995 = vmatprep.subr.bf16.mxu1 %v32803_v43  ;;  %v36803_v43 = vand.u32 4294901760, %v33329_v36  ;;  %v36810_v36 = vand.u32 4294901760, %v33320_v25  ;;  %v36820_v25 = vld [vmem:[#allocation140_spill] sm:$0xff]  ;;  %v36833_v5 = vld [vmem:[#allocation77_spill] sm:$0xff] }
 0xc8a   :  { %26789 = vmatpush1.bf16.msra.mxu0 %v36759_v11 }
 0xc8b   :  { %26791 = vmatprep.subr.bf16.mxu0 %v33763_v47 }
 0xc8c   :  { %26997 = vmatpush1.bf16.msra.mxu1 %v32808_v46  ;;  %v33799_v46 = vpack.c.bf16 %v36809_v41, %v36807_v14  ;;  %v36825_v14 = vand.u32 4294901760, %v36824_v30  ;;  %v36827_v41 = vand.u32 4294901760, %v36826_v24  ;;  %v36838_v30 = vld [vmem:[#allocation154_spill] sm:$0xff]  ;;  %v36840_v24 = vld [vmem:[#allocation155_spill] sm:$0xff] }
 0xc8d   :  { %16596 = vmatmul.mubr.f32.vlgmr.msra.gmra.mrb[28].mxu0 %v36802_v16  ;;  %26999 = vmatprep.subr.bf16.mxu1 %v33409_v54  ;;  %v36815_v54 = vld [vmem:[#allocation138_spill] sm:$0xff]  ;;  %v36821_v16 = vand.u32 4294901760, %v36820_v25 }
 0xc8e   :  { %16604 = vmatprep.mubr.f32.mxu0 %v36803_v43  ;;  %26793 = vmatpush1.bf16.msra.mxu0 %v33772_v44  ;;  %v36816_v39 = vand.u32 4294901760, %v36815_v54 }
 0xc8f   :  { %26795 = vmatprep.subr.bf16.mxu0 %v33779_v32  ;;  %v33818_v43 = vpack.c.bf16 %v36821_v16, %v36819_v33  ;;  %v36834_v33 = vld [vmem:[#allocation150_spill] sm:$0xff]  ;;  %v36836_v16 = vld [vmem:[#allocation151_spill] sm:$0xff] }
 0xc90   :  { %27001 = vmatpush1.bf16.msra.mxu1 %v36811_v12  ;;  %v33810_v10 = vpack.c.bf16 %v36816_v39, %v36814_v13  ;;  %v36828_v12 = vld [vmem:[#allocation146_spill] sm:$0xff]  ;;  %v36830_v13 = vld [vmem:[#allocation147_spill] sm:$0xff]  ;;  %v36835_v25 = vand.u32 4294901760, %v36834_v33 }
 0xc91   :  { %16608 = vmatmul.mubr.f32.gmra.mrb[30].mxu0 %v36810_v36  ;;  %27003 = vmatprep.subr.bf16.mxu1 %v36817_v52  ;;  %v33827_v36 = vpack.c.bf16 %v36827_v41, %v36825_v14  ;;  %v36829_v3 = vand.u32 4294901760, %v36828_v12  ;;  %v36831_v54 = vand.u32 4294901760, %v36830_v13  ;;  %v36832_v52 = vld [vmem:[#allocation76_spill] sm:$0xff]  ;;  %v36839_v14 = vand.u32 4294901760, %v36838_v30  ;;  %v36843_v13 = vld [vmem:[#allocation79_spill] sm:$0xff]  ;;  %v36850_v30 = vld [vmem:[#allocation81_spill] sm:$0xff] }
 0xc92   :  { %26797 = vmatpush1.bf16.msra.mxu0 %v33791_v28  ;;  %16871 = vmatprep.mubr.f32.mxu0 %v36812_v1  ;;  %v36841_v41 = vand.u32 4294901760, %v36840_v24  ;;  %v36851_v24 = vand.u32 4294901760, %v36850_v30  ;;  %v36861_v30 = vand.u32 4294901760, %v36860_v21 }
 0xc93   :  { %26799 = vmatprep.subr.bf16.mxu0 %v33799_v46  ;;  %v33834_v39 = vpack.c.bf16 %v36831_v54, %v36829_v3  ;;  %v36842_v3 = vld [vmem:[#allocation78_spill] sm:$0xff]  ;;  %v36844_v54 = vld [vmem:[#allocation156_spill] sm:$0xff] }
 0xc94   :  { %27005 = vmatpush1.bf16.msra.mxu1 %v36822_v26  ;;  %v36837_v26 = vand.u32 4294901760, %v36836_v16  ;;  %v33850_v12 = vpack.c.bf16 %v36841_v41, %v36839_v14  ;;  %v36848_v16 = vld [vmem:[#allocation36_spill] sm:$0xff]  ;;  %v36852_v41 = vld [vmem:[#allocation169_spill] sm:$0xff] }
 0xc95   :  { %27007 = vmatprep.subr.bf16.mxu1 %v36823_v8 }
 0xc96   :  { %26801 = vmatpush1.bf16.msra.mxu0 %v33810_v10  ;;  %v33843_v8 = vpack.c.bf16 %v36837_v26, %v36835_v25  ;;  %v36849_v26 = vand.u32 4294901760, %v36848_v16 }
 0xc97   :  { %26803 = vmatprep.subr.bf16.mxu0 %v33818_v43 }
 0xc98   :  { %27009 = vmatpush1.bf16.msra.mxu1 %v36832_v52  ;;  %v36845_v52 = vand.u32 4294901760, %v36844_v54  ;;  %v33866_v14 = vpack.c.bf16 %v36851_v24, %v36849_v26  ;;  %v36863_v24 = vld [vmem:[#allocation60_spill] sm:$0xff] }
 0xc99   :  { %27011 = vmatprep.subr.bf16.mxu1 %v36833_v5  ;;  %v36846_v5 = vld [vmem:[#allocation157_spill] sm:$0xff] }
 0xc9a   :  { %26805 = vmatpush1.bf16.msra.mxu0 %v33827_v36  ;;  %v36847_v33 = vand.u32 4294901760, %v36846_v5  ;;  %v36857_v5 = vand.u32 4294901760, %v36856_v0 }
 0xc9b   :  { %26807 = vmatprep.subr.bf16.mxu0 %v33834_v39 }
 0xc9c   :  { %27013 = vmatpush1.bf16.msra.mxu1 %v36842_v3  ;;  %v33859_v25 = vpack.c.bf16 %v36847_v33, %v36845_v52  ;;  %v36853_v3 = vld [vmem:[#allocation170_spill] sm:$0xff]  ;;  %v36858_v33 = vld [vmem:[#allocation85_spill] sm:$0xff] }
 0xc9d   :  { %27015 = vmatprep.subr.bf16.mxu1 %v36843_v13  ;;  %v36854_v13 = vld [vmem:[#allocation50_spill] sm:$0xff]  ;;  %v36859_v16 = vand.u32 4294901760, %v36858_v33  ;;  %v36870_v33 = vld [vmem:[#allocation91_spill] sm:$0xff] }
 0xc9e   :  { %26809 = vmatpush1.bf16.msra.mxu0 %v33843_v8  ;;  %v36855_v54 = vand.u32 4294901760, %v36854_v13  ;;  %v36871_v21 = vand.u32 4294901760, %v36870_v33 }
 0xc9f   :  { %26811 = vmatprep.subr.bf16.mxu0 %v33850_v12  ;;  %v33882_v26 = vpack.c.bf16 %v36861_v30, %v36859_v16  ;;  %v36873_v30 = vld [vmem:[#allocation171_spill] sm:$0xff] }
 0xca0   :  { %27017 = vmatpush1.bf16.msra.mxu1 %v36852_v41  ;;  %v33875_v52 = vpack.c.bf16 %v36857_v5, %v36855_v54  ;;  %v36864_v41 = vand.u32 4294901760, %v36863_v24  ;;  %v36868_v54 = vld [vmem:[#allocation61_spill] sm:$0xff] }
 0xca1   :  { %27019 = vmatprep.subr.bf16.mxu1 %v36853_v3  ;;  %36862 = vst [vmem:[#allocation105_spill] sm:$0xff] %v33882_v26  ;;  %v36865_v3 = vld [vmem:[#allocation89_spill] sm:$0xff]  ;;  %v36869_v5 = vand.u32 4294901760, %v36868_v54 }
 0xca2   :  { %26813 = vmatpush1.bf16.msra.mxu0 %v33859_v25  ;;  %v36866_v0 = vand.u32 4294901760, %v36865_v3  ;;  %v36878_v3 = vand.u32 4294901760, %v36877_v61 }
 0xca3   :  { %26815 = vmatprep.subr.bf16.mxu0 %v33866_v14  ;;  %v33898_v16 = vpack.c.bf16 %v36871_v21, %v36869_v5  ;;  %v36885_v21 = vld [vmem:[#allocation173_spill] sm:$0xff] }
 0xca4   :  { %27021 = vmatpush1.bf16.msra.mxu1 %v33535_v27  ;;  %v33891_v13 = vpack.c.bf16 %v36866_v0, %v36864_v41  ;;  %v36874_v27 = vld [vmem:[#allocation172_spill] sm:$0xff]  ;;  %v36880_v0 = vld [vmem:[#allocation59_spill] sm:$0xff] }
 0xca5   :  { %27023 = vmatprep.subr.bf16.mxu1 %v33537_v4  ;;  %36872 = vst [vmem:[#allocation134_spill] sm:$0xff] %v33898_v16  ;;  %v36875_v4 = vld [vmem:[#allocation92_spill] sm:$0xff]  ;;  %v36881_v54 = vand.u32 4294901760, %v36880_v0 }
 0xca6   :  { %26817 = vmatpush1.bf16.msra.mxu0 %v33875_v52  ;;  %36867 = vst [vmem:[#allocation161_spill] sm:$0xff] %v33891_v13  ;;  %v36876_v24 = vand.u32 4294901760, %v36875_v4 }
 0xca7   :  { %26819 = vmatprep.subr.bf16.mxu0 %v33882_v26  ;;  %v36882_v26 = vld [vmem:[#allocation63_spill] sm:$0xff] }
 0xca8   :  { %27025 = vmatpush1.bf16.msra.mxu1 %v36873_v30  ;;  %v33907_v41 = vpack.c.bf16 %v36878_v3, %v36876_v24  ;;  %v36883_v33 = vand.u32 4294901760, %v36882_v26  ;;  %v36886_v30 = vld [vmem:[#allocation174_spill] sm:$0xff]  ;;  %v36892_v3 = vld [vmem:[#allocation53_spill] sm:$0xff] }
 0xca9   :  { %27027 = vmatprep.subr.bf16.mxu1 %v36874_v27  ;;  %v36887_v27 = vld [vmem:[#allocation96_spill] sm:$0xff]  ;;  %v36893_v0 = vand.u32 4294901760, %v36892_v3 }
 0xcaa   :  { %26821 = vmatpush1.bf16.msra.mxu0 %v33891_v13  ;;  %36879 = vst [vmem:[#allocation136_spill] sm:$0xff] %v33907_v41  ;;  %v33914_v5 = vpack.c.bf16 %v36883_v33, %v36881_v54  ;;  %v36888_v4 = vand.u32 4294901760, %v36887_v27  ;;  %v36889_v13 = vld [vmem:[#allocation97_spill] sm:$0xff]  ;;  %v36897_v33 = vld [vmem:[#allocation175_spill] sm:$0xff] }
 0xcab   :  { %26823 = vmatprep.subr.bf16.mxu0 %v33898_v16  ;;  %v36890_v61 = vand.u32 4294901760, %v36889_v13  ;;  %v36894_v16 = vld [vmem:[#allocation65_spill] sm:$0xff] }
 0xcac   :  { %36884 = vst [vmem:[#allocation72_spill] sm:$0xff] %v33914_v5  ;;  %27029 = vmatpush1.bf16.msra.mxu1 %v36885_v21  ;;  %v36895_v26 = vand.u32 4294901760, %v36894_v16  ;;  %v36898_v21 = vld [vmem:[#allocation40_spill] sm:$0xff] }
 0xcad   :  { %27031 = vmatprep.subr.bf16.mxu1 %v36886_v30  ;;  %v33923_v24 = vpack.c.bf16 %v36890_v61, %v36888_v4  ;;  %v36899_v30 = vld [vmem:[#allocation101_spill] sm:$0xff]  ;;  %v36904_v61 = vld [vmem:[#allocation106_spill] sm:$0xff] }
 0xcae   :  { %26825 = vmatpush1.bf16.msra.mxu0 %v33907_v41  ;;  %v33930_v54 = vpack.c.bf16 %v36895_v26, %v36893_v0  ;;  %v36900_v27 = vand.u32 4294901760, %v36899_v30  ;;  %v36901_v41 = vld [vmem:[#allocation102_spill] sm:$0xff]  ;;  %v36905_v3 = vand.u32 4294901760, %v36904_v61  ;;  %v36909_v26 = vld [vmem:[#allocation43_spill] sm:$0xff] }
 0xcaf   :  { %36891 = vst [vmem:[#allocation160_spill] sm:$0xff] %v33923_v24  ;;  %26827 = vmatprep.subr.bf16.mxu0 %v33914_v5  ;;  %v36902_v13 = vand.u32 4294901760, %v36901_v41  ;;  %v36906_v5 = vld [vmem:[#allocation52_spill] sm:$0xff] }
 0xcb0   :  { %36896 = vst [vmem:[#allocation137_spill] sm:$0xff] %v33930_v54  ;;  %27033 = vmatpush1.bf16.msra.mxu1 %v36897_v33  ;;  %v36907_v16 = vand.u32 4294901760, %v36906_v5  ;;  %v36910_v33 = vld [vmem:[#allocation143_spill] sm:$0xff] }
 0xcb1   :  { %27035 = vmatprep.subr.bf16.mxu1 %v36898_v21  ;;  %v33939_v4 = vpack.c.bf16 %v36902_v13, %v36900_v27  ;;  %v36911_v21 = vld [vmem:[#allocation67_spill] sm:$0xff]  ;;  %v36916_v13 = vld [vmem:[#allocation112_spill] sm:$0xff] }
 0xcb2   :  { %26829 = vmatpush1.bf16.msra.mxu0 %v33923_v24  ;;  %v33946_v0 = vpack.c.bf16 %v36907_v16, %v36905_v3  ;;  %v36912_v30 = vand.u32 4294901760, %v36911_v21  ;;  %v36913_v24 = vld [vmem:[#allocation107_spill] sm:$0xff]  ;;  %v36917_v61 = vand.u32 4294901760, %v36916_v13  ;;  %v36921_v16 = vld [vmem:[#allocation176_spill] sm:$0xff] }
 0xcb3   :  { %36903 = vst [vmem:[#allocation138_spill] sm:$0xff] %v33939_v4  ;;  %26831 = vmatprep.subr.bf16.mxu0 %v33930_v54  ;;  %v36914_v41 = vand.u32 4294901760, %v36913_v24  ;;  %v36918_v54 = vld [vmem:[#allocation54_spill] sm:$0xff] }
 0xcb4   :  { %36908 = vst [vmem:[#allocation73_spill] sm:$0xff] %v33946_v0  ;;  %27037 = vmatpush1.bf16.msra.mxu1 %v36909_v26  ;;  %v36919_v5 = vand.u32 4294901760, %v36918_v54  ;;  %v36922_v26 = vld [vmem:[#allocation177_spill] sm:$0xff] }
 0xcb5   :  { %27039 = vmatprep.subr.bf16.mxu1 %v36910_v33  ;;  %v33955_v27 = vpack.c.bf16 %v36914_v41, %v36912_v30  ;;  %v36923_v33 = vld [vmem:[#allocation113_spill] sm:$0xff] }
 0xcb6   :  { %26833 = vmatpush1.bf16.msra.mxu0 %v33939_v4  ;;  %v33962_v3 = vpack.c.bf16 %v36919_v5, %v36917_v61  ;;  %v36924_v21 = vand.u32 4294901760, %v36923_v33  ;;  %v36925_v4 = vld [vmem:[#allocation114_spill] sm:$0xff]  ;;  %v36927_v41 = vld [vmem:[#allocation49_spill] sm:$0xff] }
 0xcb7   :  { %36915 = vst [vmem:[#allocation139_spill] sm:$0xff] %v33955_v27  ;;  %26835 = vmatprep.subr.bf16.mxu0 %v33946_v0  ;;  %v36926_v24 = vand.u32 4294901760, %v36925_v4  ;;  %v36928_v13 = vand.u32 4294901760, %v36927_v41  ;;  %v36929_v0 = vld [vmem:[#allocation44_spill] sm:$0xff]  ;;  %v36931_v5 = vld [vmem:[#allocation178_spill] sm:$0xff] }
 0xcb8   :  { %36920 = vst [vmem:[#allocation140_spill] sm:$0xff] %v33962_v3  ;;  %27041 = vmatpush1.bf16.msra.mxu1 %v36921_v16  ;;  %v36930_v54 = vand.u32 4294901760, %v36929_v0  ;;  %v36932_v16 = vld [vmem:[#allocation124_spill] sm:$0xff] }
 0xcb9   :  { %27043 = vmatprep.subr.bf16.mxu1 %v36922_v26  ;;  %v33971_v30 = vpack.c.bf16 %v36926_v24, %v36924_v21  ;;  %v36933_v26 = vld [vmem:[#allocation39_spill] sm:$0xff]  ;;  %v36937_v24 = vld [vmem:[#allocation46_spill] sm:$0xff] }
 0xcba   :  { %26837 = vmatpush1.bf16.msra.mxu0 %v33955_v27  ;;  %v33978_v61 = vpack.c.bf16 %v36930_v54, %v36928_v13  ;;  %v36934_v33 = vand.u32 4294901760, %v36933_v26  ;;  %v36935_v27 = vld [vmem:[#allocation48_spill] sm:$0xff]  ;;  %v36938_v41 = vand.u32 4294901760, %v36937_v24  ;;  %v36941_v54 = vld [vmem:[#allocation127_spill] sm:$0xff]  ;;  %v36945_v26 = vld [vmem:[#allocation70_spill] sm:$0xff] }
 0xcbb   :  { %26839 = vmatprep.subr.bf16.mxu0 %v33962_v3  ;;  %v36936_v4 = vand.u32 4294901760, %v36935_v27  ;;  %v36939_v3 = vld [vmem:[#allocation42_spill] sm:$0xff]  ;;  %v36943_v27 = vld [vmem:[#allocation69_spill] sm:$0xff] }
 0xcbc   :  { %27045 = vmatpush1.bf16.msra.mxu1 %v36931_v5  ;;  %v36940_v0 = vand.u32 4294901760, %v36939_v3  ;;  %v36942_v5 = vld [vmem:[#allocation128_spill] sm:$0xff]  ;;  %v36948_v3 = vld [vmem:[#allocation162_spill] sm:$0xff] }
 0xcbd   :  { %27047 = vmatprep.subr.bf16.mxu1 %v36932_v16  ;;  %v33987_v21 = vpack.c.bf16 %v36936_v4, %v36934_v33  ;;  %v36944_v16 = vand.u32 4294901760, %v36943_v27  ;;  %v36946_v33 = vand.u32 4294901760, %v36945_v26  ;;  %v36949_v24 = vand.u32 4294901760, %v36948_v3  ;;  %v36955_v27 = vld [vmem:[#allocation165_spill] sm:$0xff]  ;;  %v36957_v26 = vld [vmem:[#allocation126_spill] sm:$0xff] }
 0xcbe   :  { %26841 = vmatpush1.bf16.msra.mxu0 %v33971_v30  ;;  %v33994_v13 = vpack.c.bf16 %v36940_v0, %v36938_v41  ;;  %v36950_v41 = vld [vmem:[#allocation163_spill] sm:$0xff]  ;;  %v36960_v3 = vld [vmem:[#allocation145_spill] sm:$0xff] }
 0xcbf   :  { %26843 = vmatprep.subr.bf16.mxu0 %v33978_v61  ;;  %17580 = vmatmul.mubr.f32.vlgmr.msra.gmra.mrb[28].mxu1 %v33708_v23  ;;  %v34005_v4 = vpack.c.bf16 %v36946_v33, %v36944_v16  ;;  %v36951_v0 = vand.u32 4294901760, %v36950_v41  ;;  %v36956_v16 = vand.u32 4294901760, %v36955_v27  ;;  %v36958_v33 = vand.u32 4294901760, %v36957_v26  ;;  %v36962_v41 = vld [vmem:[#allocation56_spill] sm:$0xff]  ;;  %v36968_v26 = vld [vmem:[#allocation158_spill] sm:$0xff] }
 0xcc0   :  { %17586 = vmatprep.mubr.f32.mxu1 %v33723_v2  ;;  %27049 = vmatpush1.bf16.msra.mxu1 %v36941_v54  ;;  %v36953_v54 = vld [vmem:[#allocation41_spill] sm:$0xff]  ;;  %v36966_v27 = vld [vmem:[#allocation164_spill] sm:$0xff] }
 0xcc1   :  { %27051 = vmatprep.subr.bf16.mxu1 %v36942_v5  ;;  %36947 = vst [vmem:[#allocation74_spill] sm:$0xff] %v34005_v4  ;;  %v34012_v23 = vpack.c.bf16 %v36951_v0, %v36949_v24  ;;  %v36954_v5 = vld [vmem:[#allocation144_spill] sm:$0xff]  ;;  %v34023_v2 = vpack.c.bf16 %v36958_v33, %v36956_v16  ;;  %v36963_v0 = vld [vmem:[#allocation149_spill] sm:$0xff]  ;;  %v36969_v33 = vld [vmem:[#allocation51_spill] sm:$0xff] }
 0xcc2   :  { %26845 = vmatpush1.bf16.msra.mxu0 %v33987_v21  ;;  %v36961_v24 = vld [vmem:[#allocation148_spill] sm:$0xff]  ;;  %v36967_v16 = vld [vmem:[#allocation153_spill] sm:$0xff] }
 0xcc3   :  { %26847 = vmatprep.subr.bf16.mxu0 %v33994_v13  ;;  %36952 = vst [vmem:[#allocation75_spill] sm:$0xff] %v34012_v23  ;;  %17588 = vmatmul.mubr.f32.gmra.mrb[30].mxu1 %v33721_v60  ;;  %36959 = vst [vmem:[#allocation141_spill] sm:$0xff] %v34023_v2  ;;  %v36987_v60 = vld [vmem:[#allocation55_spill] sm:$0xff] }
 0xcc4   :  { %27053 = vmatpush1.bf16.msra.mxu1 %v36953_v54  ;;  %17788 = vmatprep.mubr.f32.mxu1 %v33717_v38  ;;  %v36964_v54 = vld [vmem:[#allocation166_spill] sm:$0xff] }
 0xcc5   :  { %27055 = vmatprep.subr.bf16.mxu1 %v36954_v5  ;;  %v36965_v5 = vld [vmem:[#allocation152_spill] sm:$0xff] }
 0xcc6   :  { %26849 = vmatpush1.bf16.msra.mxu0 %v34005_v4  ;;  %v36993_v4 = vld [vmem:[#allocation71_spill] sm:$0xff] }
 0xcc7   :  { %26851 = vmatprep.subr.bf16.mxu0 %v34012_v23  ;;  %v36991_v23 = vld [vmem:[#allocation57_spill] sm:$0xff] }
 0xcc8   :  { %27057 = vmatpush1.bf16.msra.mxu1 %v36960_v3  ;;  %v36970_v3 = vld [vmem:[#allocation159_spill] sm:$0xff] }
 0xcc9   :  { %27059 = vmatprep.subr.bf16.mxu1 %v36961_v24  ;;  %v36971_v24 = vld [vmem:[#allocation45_spill] sm:$0xff] }
 0xcca   :  { %26853 = vmatpush1.bf16.msra.mxu0 %v34023_v2  ;;  %v36989_v2 = vld [vmem:[#allocation68_spill] sm:$0xff] }
 0xccb   :  { %26855 = vmatprep.subr.bf16.mxu0 %v36655_v59 }
 0xccc   :  { %27061 = vmatpush1.bf16.msra.mxu1 %v36963_v0  ;;  %v36972_v0 = vld [vmem:[#allocation90_spill] sm:$0xff] }
 0xccd   :  { %16873 = vmatmul.mubr.f32.vlgmr.msra.gmra.mrb[28].mxu0 %v36962_v41  ;;  %27063 = vmatprep.subr.bf16.mxu1 %v36965_v5  ;;  %v36974_v5 = vld [vmem:[#allocation94_spill] sm:$0xff] }
 0xcce   :  { %16879 = vmatprep.mubr.f32.mxu0 %v36964_v54  ;;  %26857 = vmatpush1.bf16.msra.mxu0 %v36656_v45 }
 0xccf   :  { %26859 = vmatprep.subr.bf16.mxu0 %v36657_v56 }
 0xcd0   :  { %27065 = vmatpush1.bf16.msra.mxu1 %v36967_v16  ;;  %v36975_v16 = vld [vmem:[#allocation95_spill] sm:$0xff] }
 0xcd1   :  { %16881 = vmatmul.mubr.f32.gmra.mrb[30].mxu0 %v36966_v27  ;;  %27067 = vmatprep.subr.bf16.mxu1 %v36968_v26  ;;  %v36976_v26 = vld [vmem:[#allocation64_spill] sm:$0xff] }
 0xcd2   :  { %26861 = vmatpush1.bf16.msra.mxu0 %v36658_v7  ;;  %17016 = vmatprep.mubr.f32.mxu0 %v36812_v1  ;;  %v36973_v1 = vld [vmem:[#allocation58_spill] sm:$0xff] }
 0xcd3   :  { %26863 = vmatprep.subr.bf16.mxu0 %v36660_v63 }
 0xcd4   :  { %27069 = vmatpush1.bf16.msra.mxu1 %v36969_v33  ;;  %v36977_v33 = vld [vmem:[#allocation100_spill] sm:$0xff] }
 0xcd5   :  { %27071 = vmatprep.subr.bf16.mxu1 %v36970_v3  ;;  %v36978_v3 = vld [vmem:[#allocation66_spill] sm:$0xff] }
 0xcd6   :  { %26865 = vmatpush1.bf16.msra.mxu0 %v36664_v62 }
 0xcd7   :  { %26867 = vmatprep.subr.bf16.mxu0 %v36666_v37 }
 0xcd8   :  { %27073 = vmatpush1.bf16.msra.mxu1 %v36971_v24  ;;  %v36979_v24 = vld [vmem:[#allocation108_spill] sm:$0xff] }
 0xcd9   :  { %27075 = vmatprep.subr.bf16.mxu1 %v36972_v0  ;;  %v36980_v0 = vld [vmem:[#allocation99_spill] sm:$0xff] }
 0xcda   :  { %26869 = vmatpush1.bf16.msra.mxu0 %v36672_v42 }
 0xcdb   :  { %26871 = vmatprep.subr.bf16.mxu0 %v36673_v34 }
 0xcdc   :  { %27077 = vmatpush1.bf16.msra.mxu1 %v36973_v1  ;;  %v36981_v1 = vld [vmem:[#allocation111_spill] sm:$0xff] }
 0xcdd   :  { %27079 = vmatprep.subr.bf16.mxu1 %v36974_v5  ;;  %v36982_v5 = vld [vmem:[#allocation103_spill] sm:$0xff] }
 0xcde   :  { %26873 = vmatpush1.bf16.msra.mxu0 %v36680_v55 }
 0xcdf   :  { %26875 = vmatprep.subr.bf16.mxu0 %v36684_v29 }
 0xce0   :  { %27081 = vmatpush1.bf16.msra.mxu1 %v36975_v16  ;;  %v36983_v16 = vld [vmem:[#allocation117_spill] sm:$0xff] }
 0xce1   :  { %27083 = vmatprep.subr.bf16.mxu1 %v36976_v26  ;;  %v36984_v26 = vld [vmem:[#allocation104_spill] sm:$0xff] }
 0xce2   :  { %26877 = vmatpush1.bf16.msra.mxu0 %v36691_v40 }
 0xce3   :  { %26879 = vmatprep.subr.bf16.mxu0 %v36693_v51 }
 0xce4   :  { %27085 = vmatpush1.bf16.msra.mxu1 %v36977_v33  ;;  %v36985_v33 = vld [vmem:[#allocation118_spill] sm:$0xff] }
 0xce5   :  { %27087 = vmatprep.subr.bf16.mxu1 %v36978_v3  ;;  %v36986_v3 = vld [vmem:[#allocation109_spill] sm:$0xff] }
 0xce6   :  { %26881 = vmatpush1.bf16.msra.mxu0 %v36703_v53 }
 0xce7   :  { %26883 = vmatprep.subr.bf16.mxu0 %v36705_v22 }
 0xce8   :  { %27089 = vmatpush1.bf16.msra.mxu1 %v36780_v6  ;;  %v36988_v6 = vld [vmem:[#allocation110_spill] sm:$0xff] }
 0xce9   :  { %27091 = vmatprep.subr.bf16.mxu1 %v36979_v24  ;;  %v36990_v24 = vld [vmem:[#allocation115_spill] sm:$0xff] }
 0xcea   :  { %26885 = vmatpush1.bf16.msra.mxu0 %v36715_v50 }
 0xceb   :  { %26887 = vmatprep.subr.bf16.mxu0 %v36980_v0 }
 0xcec   :  { %27093 = vmatpush1.bf16.msra.mxu1 %v36981_v1  ;;  %v36992_v1 = vld [vmem:[#allocation116_spill] sm:$0xff] }
 0xced   :  { %27095 = vmatprep.subr.bf16.mxu1 %v36983_v16  ;;  %v36994_v16 = vld [vmem:[#allocation167_spill] sm:$0xff] }
 0xcee   :  { %26889 = vmatpush1.bf16.msra.mxu0 %v36982_v5 }
 0xcef   :  { %26891 = vmatprep.subr.bf16.mxu0 %v36984_v26 }
 0xcf0   :  { %27097 = vmatpush1.bf16.msra.mxu1 %v36985_v33  ;;  %v36995_v33 = vld [vmem:[#allocation168_spill] sm:$0xff] }
 0xcf1   :  { %27099 = vmatprep.subr.bf16.mxu1 %v36987_v60  ;;  %v36997_v60 = vand.u32 4294901760, %v33713_v35 }
 0xcf2   :  { %26893 = vmatpush1.bf16.msra.mxu0 %v36986_v3 }
 0xcf3   :  { %26895 = vmatprep.subr.bf16.mxu0 %v36988_v6 }
 0xcf4   :  { %27101 = vmatpush1.bf16.msra.mxu1 %v36989_v2  ;;  %v36998_v2 = vand.u32 4294901760, %v33734_v18 }
 0xcf5   :  { %27103 = vmatprep.subr.bf16.mxu1 %v36991_v23  ;;  %v36996_v23 = vand.u32 4294901760, %v33717_v38  ;;  %v36999_v38 = vand.u32 4294901760, %v33730_v57 }
 0xcf6   :  { %26897 = vmatpush1.bf16.msra.mxu0 %v36990_v24 }
 0xcf7   :  { %26899 = vmatprep.subr.bf16.mxu0 %v36992_v1 }
 0xcf8   :  { %27105 = vmatpush1.bf16.msra.mxu1 %v36993_v4  ;;  %v18422_v4 = vld [vmem:[%s35517_s17 + $0x80] sm:$0xff] }
 0xcf9   :  { %27107 = vmatprep.subr.bf16.mxu1 %v36994_v16 }
 0xcfa   :  { %26901 = vmatpush1.bf16.msra.mxu0 %v36735_v58 }
 0xcfb   :  { %26903 = vmatprep.subr.bf16.mxu0 %v36736_v9 }
 0xcfc   :  { %27109 = vmatpush1.bf16.msra.mxu1 %v36995_v33 }
 0xcfd   :  { %27111 = vmatprep.subr.bf16.mxu1 %v36655_v59 }
 0xcfe   :  { %26905 = vmatpush1.bf16.msra.mxu0 %v36739_v19 }
 0xcff   :  { %26907 = vmatprep.subr.bf16.mxu0 %v36740_v31  ;;  %17791 = vmatmul.mubr.f32.vlgmr.msra.gmra.mrb[28].mxu1 %v33713_v35  ;;  %v18406_v35 = vld [vmem:[%s35517_s17] sm:$0xff] }
 0xd00   :  { %17798 = vmatprep.mubr.f32.mxu1 %v33734_v18  ;;  %27113 = vmatpush1.bf16.msra.mxu1 %v36656_v45  ;;  %v18489_v18 = vand.u32 4294901760, %v18422_v4 }
 0xd01   :  { %27115 = vmatprep.subr.bf16.mxu1 %v36657_v56 }
 0xd02   :  { %26909 = vmatpush1.bf16.msra.mxu0 %v36745_v48 }
 0xd03   :  { %26911 = vmatprep.subr.bf16.mxu0 %v36746_v17  ;;  %17801 = vmatmul.mubr.f32.gmra.mrb[30].mxu1 %v33730_v57  ;;  %v18407_v57 = vld [vmem:[%s35517_s17 + $0x8] sm:$0xff] }
 0xd04   :  { %27117 = vmatpush1.bf16.msra.mxu1 %v36658_v7  ;;  %17938 = vmatprep.mubr.f32.mxu1 %v36996_v23  ;;  %v34162_v23 = vsub.f32 %v18422_v4, %v18489_v18 }
 0xd05   :  { %27119 = vmatprep.subr.bf16.mxu1 %v36660_v63 }
 0xd06   :  { %26913 = vmatpush1.bf16.msra.mxu0 %v36751_v49 }
 0xd07   :  { %26915 = vmatprep.subr.bf16.mxu0 %v36752_v15 }
 0xd08   :  { %27121 = vmatpush1.bf16.msra.mxu1 %v36664_v62 }
 0xd09   :  { %27123 = vmatprep.subr.bf16.mxu1 %v36666_v37 }
 0xd0a   :  { %26917 = vmatpush1.bf16.msra.mxu0 %v36759_v11 }
 0xd0c   :  { %27125 = vmatpush1.bf16.msra.mxu1 %v36672_v42 }
 0xd0d   :  { %17018 = vmatmul.mubr.f32.vlgmr.msra.gmra.mrb[28].mxu0 %v36962_v41  ;;  %27127 = vmatprep.subr.bf16.mxu1 %v36673_v34  ;;  %v18424_v41 = vld [vmem:[%s35517_s17 + $0x90] sm:$0xff] }
 0xd0e   :  { %17024 = vmatprep.mubr.f32.mxu0 %v36964_v54  ;;  %v18425_v54 = vld [vmem:[%s35517_s17 + $0x98] sm:$0xff] }
 0xd0f   :  { %v18498_v16 = vand.u32 4294901760, %v18425_v54 }
 0xd10   :  { %27129 = vmatpush1.bf16.msra.mxu1 %v36680_v55 }
 0xd11   :  { %17026 = vmatmul.mubr.f32.gmra.mrb[30].mxu0 %v36966_v27  ;;  %27131 = vmatprep.subr.bf16.mxu1 %v36684_v29  ;;  %v18495_v27 = vand.u32 4294901760, %v18424_v41 }
 0xd13   :  { %v34180_v4 = vsub.f32 %v18424_v41, %v18495_v27 }
 0xd14   :  { %27133 = vmatpush1.bf16.msra.mxu1 %v36691_v40 }
 0xd15   :  { %27135 = vmatprep.subr.bf16.mxu1 %v36693_v51 }
 0xd18   :  { %27137 = vmatpush1.bf16.msra.mxu1 %v36703_v53 }
 0xd19   :  { %27139 = vmatprep.subr.bf16.mxu1 %v36705_v22 }
 0xd1c   :  { %27141 = vmatpush1.bf16.msra.mxu1 %v36715_v50 }
 0xd1d   :  { %27143 = vmatprep.subr.bf16.mxu1 %v36980_v0 }
 0xd20   :  { %27145 = vmatpush1.bf16.msra.mxu1 %v36982_v5 }
 0xd21   :  { %27147 = vmatprep.subr.bf16.mxu1 %v36984_v26 }
 0xd24   :  { %27149 = vmatpush1.bf16.msra.mxu1 %v36986_v3 }
 0xd25   :  { %27151 = vmatprep.subr.bf16.mxu1 %v36988_v6 }
 0xd28   :  { %27153 = vmatpush1.bf16.msra.mxu1 %v36990_v24 }
 0xd29   :  { %27155 = vmatprep.subr.bf16.mxu1 %v36992_v1 }
 0xd2c   :  { %27157 = vmatpush1.bf16.msra.mxu1 %v36735_v58  ;;  %v18415_v58 = vld [vmem:[%s35517_s17 + $0x48] sm:$0xff] }
 0xd2d   :  { %27159 = vmatprep.subr.bf16.mxu1 %v36736_v9 }
 0xd30   :  { %27161 = vmatpush1.bf16.msra.mxu1 %v36739_v19 }
 0xd31   :  { %27163 = vmatprep.subr.bf16.mxu1 %v36740_v31 }
 0xd34   :  { %27165 = vmatpush1.bf16.msra.mxu1 %v36745_v48 }
 0xd35   :  { %27167 = vmatprep.subr.bf16.mxu1 %v36746_v17 }
 0xd38   :  { %27169 = vmatpush1.bf16.msra.mxu1 %v36751_v49  ;;  %v34178_v49 = vpack.c.bf16 %v18498_v16, %v18495_v27 }
 0xd39   :  { %27171 = vmatprep.subr.bf16.mxu1 %v36752_v15 }
 0xd3a   :  { %37002 = vst [vmem:[#allocation147_spill] sm:$0xff] %v34178_v49 }
 0xd3c   :  { %27173 = vmatpush1.bf16.msra.mxu1 %v36759_v11  ;;  %v18409_v11 = vld [vmem:[%s35517_s17 + $0x18] sm:$0xff] }
 0xd3d   :  { %27175 = vmatprep.subr.bf16.mxu1 %v33763_v47  ;;  %v18423_v47 = vld [vmem:[%s35517_s17 + $0x88] sm:$0xff] }
 0xd3f   :  { %17942 = vmatmul.mubr.f32.vlgmr.msra.gmra.mrb[28].mxu1 %v36997_v60 }
 0xd40   :  { %17950 = vmatprep.mubr.f32.mxu1 %v36998_v2  ;;  %27177 = vmatpush1.bf16.msra.mxu1 %v33772_v44  ;;  %v18492_v44 = vand.u32 4294901760, %v18423_v47 }
 0xd41   :  { %27179 = vmatprep.subr.bf16.mxu1 %v33779_v32  ;;  %v18441_v32 = vand.u32 4294901760, %v18406_v35 }
 0xd42   :  { %v34160_v33 = vpack.c.bf16 %v18492_v44, %v18489_v18  ;;  %v34164_v60 = vsub.f32 %v18423_v47, %v18492_v44  ;;  %v35986_v47 = vand.u32 4294901760, %v34162_v23  ;;  %v34186_v44 = vsub.f32 %v18425_v54, %v18498_v16 }
 0xd43   :  { %17954 = vmatmul.mubr.f32.gmra.mrb[30].mxu1 %v36999_v38  ;;  %v34166_v2 = vsub.f32 %v18406_v35, %v18441_v32  ;;  %v18408_v38 = vld [vmem:[%s35517_s17 + $0x10] sm:$0xff] }
 0xd44   :  { %27181 = vmatpush1.bf16.msra.mxu1 %v33791_v28  ;;  %18217 = vmatprep.mubr.f32.mxu1 %v33710_v20  ;;  %v18444_v28 = vand.u32 4294901760, %v18407_v57  ;;  %37000 = vst [vmem:[#allocation142_spill] sm:$0xff] %v34160_v33  ;;  %v35992_v35 = vand.u32 4294901760, %v34164_v60  ;;  %v18447_v41 = vand.u32 4294901760, %v18408_v38  ;;  %v37004_v17 = vand.u32 4294901760, %v34186_v44 }
 0xd45   :  { %27183 = vmatprep.subr.bf16.mxu1 %v33799_v46  ;;  %v35991_v18 = vand.u32 4294901760, %v34166_v2  ;;  %27303 = vmatprep.subr.bf16.mxu0 %v34160_v33 }
 0xd46   :  { %v34174_v46 = vpack.c.bf16 %v18444_v28, %v18441_v32  ;;  %v34176_v15 = vsub.f32 %v18407_v57, %v18444_v28  ;;  %v35997_v32 = vand.u32 4294901760, %v34180_v4  ;;  %v18450_v28 = vand.u32 4294901760, %v18409_v11 }
 0xd47   :  { %v18690_v54 = vsub.f32 %v34164_v60, %v35992_v35  ;;  %v34212_v33 = vsub.f32 %v18408_v38, %v18447_v41  ;;  %v18427_v35 = vld [vmem:[%s35517_s17 + $0xa8] sm:$0xff]  ;;  %v18410_v38 = vld [vmem:[%s35517_s17 + $0x20] sm:$0xff] }
 0xd48   :  { %37001 = vst [vmem:[#allocation146_spill] sm:$0xff] %v34174_v46  ;;  %27185 = vmatpush1.bf16.msra.mxu1 %v33810_v10  ;;  %v35993_v57 = vand.u32 4294901760, %v34176_v15  ;;  %27305 = vmatpush3.bf16.msra.mxu0 %v34174_v46  ;;  %v18683_v10 = vsub.f32 %v34162_v23, %v35986_v47  ;;  %v18697_v47 = vsub.f32 %v34180_v4, %v35997_v32 }
 0xd49   :  { %27187 = vmatprep.subr.bf16.mxu1 %v33818_v43  ;;  %v18571_v43 = vsub.f32 %v34166_v2, %v35991_v18  ;;  %27307 = vmatprep.subr.bf16.mxu0 %v34178_v49  ;;  %v34210_v46 = vpack.c.bf16 %v18450_v28, %v18447_v41  ;;  %v18426_v18 = vld [vmem:[%s35517_s17 + $0xa0] sm:$0xff]  ;;  %v18704_v32 = vsub.f32 %v34186_v44, %v37004_v17  ;;  %v36002_v31 = vand.u32 4294901760, %v34212_v33  ;;  %v18411_v17 = vld [vmem:[%s35517_s17 + $0x28] sm:$0xff] }
 0xd4a   :  { %v18578_v16 = vsub.f32 %v34176_v15, %v35993_v57  ;;  %v18684_v27 = vand.u32 4294901760, %v18683_v10  ;;  %v18691_v57 = vand.u32 4294901760, %v18690_v54  ;;  %v18698_v48 = vand.u32 4294901760, %v18697_v47 }
 0xd4b   :  { %37003 = vst [vmem:[#allocation76_spill] sm:$0xff] %v34210_v46  ;;  %v18572_v49 = vand.u32 4294901760, %v18571_v43  ;;  %v34229_v19 = vsub.f32 %v18409_v11, %v18450_v28  ;;  %v18705_v10 = vand.u32 4294901760, %v18704_v32  ;;  %v18501_v54 = vand.u32 4294901760, %v18426_v18  ;;  %v18429_v32 = vld [vmem:[%s35517_s17 + $0xb8] sm:$0xff] }
 0xd4c   :  { %27189 = vmatpush1.bf16.msra.mxu1 %v33827_v36  ;;  %v18579_v41 = vand.u32 4294901760, %v18578_v16  ;;  %27309 = vmatpush3.bf16.msra.mxu0 %v34210_v46  ;;  %v34232_v36 = vpack.c.bf16 %v18691_v57, %v18684_v27  ;;  %v18504_v43 = vand.u32 4294901760, %v18427_v35  ;;  %v18453_v47 = vand.u32 4294901760, %v18410_v38  ;;  %v18428_v57 = vld [vmem:[%s35517_s17 + $0xb0] sm:$0xff] }
 0xd4d   :  { %27191 = vmatprep.subr.bf16.mxu1 %v33834_v39  ;;  %v18585_v39 = vsub.f32 %v34212_v33, %v36002_v31  ;;  %v36008_v11 = vand.u32 4294901760, %v34229_v19  ;;  %v34250_v28 = vpack.c.bf16 %v18705_v10, %v18698_v48  ;;  %v34254_v27 = vsub.f32 %v18426_v18, %v18501_v54 }
 0xd4e   :  { %37005 = vst [vmem:[#allocation77_spill] sm:$0xff] %v34232_v36  ;;  %v34237_v9 = vpack.c.bf16 %v18579_v41, %v18572_v49  ;;  %v34252_v49 = vpack.c.bf16 %v18504_v43, %v18501_v54  ;;  %v34256_v16 = vsub.f32 %v18427_v35, %v18504_v43  ;;  %v18456_v46 = vand.u32 4294901760, %v18411_v17 }
 0xd4f   :  { %37007 = vst [vmem:[#allocation151_spill] sm:$0xff] %v34250_v28  ;;  %37009 = vst [vmem:[#allocation155_spill] sm:$0xff] %v34254_v27  ;;  %v18586_v41 = vand.u32 4294901760, %v18585_v39  ;;  %v18592_v31 = vsub.f32 %v34229_v19, %v36008_v11  ;;  %v18507_v10 = vand.u32 4294901760, %v18428_v57  ;;  %v18510_v28 = vand.u32 4294901760, %v18429_v32 }
 0xd50   :  { %37006 = vst [vmem:[#allocation150_spill] sm:$0xff] %v34237_v9  ;;  %27193 = vmatpush1.bf16.msra.mxu1 %v33843_v8  ;;  %37008 = vst [vmem:[#allocation154_spill] sm:$0xff] %v34252_v49  ;;  %v34262_v9 = vsub.f32 %v18410_v38, %v18453_v47  ;;  %v36007_v8 = vand.u32 4294901760, %v34254_v27  ;;  %v36009_v48 = vand.u32 4294901760, %v34256_v16  ;;  %27311 = vmatprep.subr.bf16.mxu0 %v34252_v49  ;;  %v18412_v38 = vld [vmem:[%s35517_s17 + $0x30] sm:$0xff]  ;;  %v18431_v49 = vld [vmem:[%s35517_s17 + $0xc8] sm:$0xff] }
 0xd51   :  { %37010 = vst [vmem:[#allocation78_spill] sm:$0xff] %v34256_v16  ;;  %27195 = vmatprep.subr.bf16.mxu1 %v33850_v12  ;;  %v18593_v35 = vand.u32 4294901760, %v18592_v31  ;;  %v34267_v18 = vpack.c.bf16 %v18456_v46, %v18453_v47  ;;  %v34270_v54 = vsub.f32 %v18411_v17, %v18456_v46  ;;  %v34282_v39 = vpack.c.bf16 %v18510_v28, %v18507_v10  ;;  %v18413_v46 = vld [vmem:[%s35517_s17 + $0x38] sm:$0xff] }
 0xd52   :  { %37011 = vst [vmem:[#allocation79_spill] sm:$0xff] %v34262_v9  ;;  %v36010_v12 = vand.u32 4294901760, %v34262_v9  ;;  %v18711_v43 = vsub.f32 %v34254_v27, %v36007_v8  ;;  %v18718_v31 = vsub.f32 %v34256_v16, %v36009_v48  ;;  %v34284_v47 = vsub.f32 %v18428_v57, %v18507_v10  ;;  %v18430_v57 = vld [vmem:[%s35517_s17 + $0xc0] sm:$0xff] }
 0xd53   :  { %37012 = vst [vmem:[#allocation156_spill] sm:$0xff] %v34267_v18  ;;  %37013 = vst [vmem:[#allocation157_spill] sm:$0xff] %v34270_v54  ;;  %v34290_v17 = vpack.c.bf16 %v18593_v35, %v18586_v41  ;;  %v36015_v8 = vand.u32 4294901760, %v34270_v54  ;;  %v34296_v11 = vsub.f32 %v18429_v32, %v18510_v28  ;;  %27313 = vmatpush3.bf16.msra.mxu0 %v34267_v18  ;;  %v18459_v41 = vand.u32 4294901760, %v18412_v38  ;;  %v37019_v32 = vld [vmem:[#allocation105_spill] sm:$0xff] }
 0xd54   :  { %27197 = vmatpush1.bf16.msra.mxu1 %v33859_v25  ;;  %37014 = vst [vmem:[#allocation36_spill] sm:$0xff] %v34282_v39  ;;  %37015 = vst [vmem:[#allocation81_spill] sm:$0xff] %v34284_v47  ;;  %v18599_v25 = vsub.f32 %v34262_v9, %v36010_v12  ;;  %v18712_v10 = vand.u32 4294901760, %v18711_v43  ;;  %v18719_v48 = vand.u32 4294901760, %v18718_v31  ;;  %27315 = vmatprep.subr.bf16.mxu0 %v34282_v39  ;;  %v18462_v28 = vand.u32 4294901760, %v18413_v46 }
 0xd55   :  { %27199 = vmatprep.subr.bf16.mxu1 %v33866_v14  ;;  %37016 = vst [vmem:[#allocation169_spill] sm:$0xff] %v34290_v17  ;;  %37017 = vst [vmem:[#allocation170_spill] sm:$0xff] %v34296_v11  ;;  %v36020_v14 = vand.u32 4294901760, %v34284_v47  ;;  %v18606_v12 = vsub.f32 %v34270_v54, %v36015_v8  ;;  %v18513_v39 = vand.u32 4294901760, %v18430_v57  ;;  %v18414_v8 = vld [vmem:[%s35517_s17 + $0x40] sm:$0xff]  ;;  %v37020_v17 = vand.u32 4294901760, %v34296_v11 }
 0xd56   :  { %v18600_v35 = vand.u32 4294901760, %v18599_v25  ;;  %v34312_v43 = vpack.c.bf16 %v18719_v48, %v18712_v10  ;;  %v34317_v25 = vsub.f32 %v18412_v38, %v18459_v41  ;;  %v34326_v48 = vpack.c.bf16 %v18462_v28, %v18459_v41  ;;  %v37023_v41 = vld [vmem:[#allocation161_spill] sm:$0xff] }
 0xd57   :  { %v18725_v31 = vsub.f32 %v34284_v47, %v36020_v14  ;;  %v18607_v18 = vand.u32 4294901760, %v18606_v12  ;;  %v34328_v10 = vsub.f32 %v18413_v46, %v18462_v28  ;;  %v18516_v14 = vand.u32 4294901760, %v18431_v49  ;;  %v18432_v46 = vld [vmem:[%s35517_s17 + $0xd0] sm:$0xff] }
 0xd58   :  { %27201 = vmatpush1.bf16.msra.mxu1 %v33875_v52  ;;  %37018 = vst [vmem:[#allocation50_spill] sm:$0xff] %v34312_v43  ;;  %v18732_v52 = vsub.f32 %v34296_v11, %v37020_v17  ;;  %37021 = vst [vmem:[#allocation84_spill] sm:$0xff] %v34326_v48  ;;  %v36027_v38 = vand.u32 4294901760, %v34317_v25  ;;  %v34331_v36 = vsub.f32 %v18430_v57, %v18513_v39  ;;  %v18465_v17 = vand.u32 4294901760, %v18414_v8 }
 0xd59   :  { %27203 = vmatprep.subr.bf16.mxu1 %v37019_v32  ;;  %v18726_v43 = vand.u32 4294901760, %v18725_v31  ;;  %v34336_v32 = vpack.c.bf16 %v18607_v18, %v18600_v35  ;;  %v36028_v1 = vand.u32 4294901760, %v34328_v10  ;;  %27317 = vmatpush3.bf16.msra.mxu0 %v34326_v48  ;;  %v34347_v28 = vpack.c.bf16 %v18516_v14, %v18513_v39  ;;  %v37025_v31 = vld [vmem:[#allocation134_spill] sm:$0xff]  ;;  %v18433_v39 = vld [vmem:[%s35517_s17 + $0xd8] sm:$0xff] }
 0xd5a   :  { %v18733_v12 = vand.u32 4294901760, %v18732_v52  ;;  %v18613_v57 = vsub.f32 %v34317_v25, %v36027_v38  ;;  %v36031_v18 = vand.u32 4294901760, %v34331_v36  ;;  %v34350_v35 = vsub.f32 %v18431_v49, %v18516_v14 }
 0xd5b   :  { %37022 = vst [vmem:[#allocation85_spill] sm:$0xff] %v34336_v32  ;;  %37024 = vst [vmem:[#allocation86_spill] sm:$0xff] %v34347_v28  ;;  %v18620_v48 = vsub.f32 %v34328_v10, %v36028_v1  ;;  %v18468_v32 = vand.u32 4294901760, %v18415_v58  ;;  %27319 = vmatprep.subr.bf16.mxu0 %v34347_v28  ;;  %v18522_v6 = vand.u32 4294901760, %v18433_v39 }
 0xd5c   :  { %27205 = vmatpush1.bf16.msra.mxu1 %v37023_v41  ;;  %v34353_v52 = vpack.c.bf16 %v18733_v12, %v18726_v43  ;;  %v34358_v41 = vsub.f32 %v18414_v8, %v18465_v17  ;;  %v18614_v38 = vand.u32 4294901760, %v18613_v57  ;;  %v18739_v49 = vsub.f32 %v34331_v36, %v36031_v18  ;;  %v18416_v12 = vld [vmem:[%s35517_s17 + $0x50] sm:$0xff] }
 0xd5d   :  { %27207 = vmatprep.subr.bf16.mxu1 %v37025_v31  ;;  %v36036_v14 = vand.u32 4294901760, %v34350_v35  ;;  %v18519_v43 = vand.u32 4294901760, %v18432_v46  ;;  %v18621_v8 = vand.u32 4294901760, %v18620_v48  ;;  %v34371_v31 = vpack.c.bf16 %v18468_v32, %v18465_v17  ;;  %v37028_v57 = vld [vmem:[#allocation136_spill] sm:$0xff]  ;;  %v18417_v48 = vld [vmem:[%s35517_s17 + $0x58] sm:$0xff] }
 0xd5e   :  { %37026 = vst [vmem:[#allocation60_spill] sm:$0xff] %v34353_v52  ;;  %v36039_v1 = vand.u32 4294901760, %v34358_v41  ;;  %v34374_v52 = vsub.f32 %v18415_v58, %v18468_v32  ;;  %v18740_v24 = vand.u32 4294901760, %v18739_v49  ;;  %v37029_v17 = vld [vmem:[#allocation72_spill] sm:$0xff]  ;;  %v18471_v49 = vand.u32 4294901760, %v18416_v12 }
 0xd5f   :  { %37027 = vst [vmem:[#allocation89_spill] sm:$0xff] %v34371_v31  ;;  %v18746_v18 = vsub.f32 %v34350_v35, %v36036_v14  ;;  %v34380_v3 = vsub.f32 %v18432_v46, %v18519_v43  ;;  %v34386_v28 = vpack.c.bf16 %v18621_v8, %v18614_v38  ;;  %27321 = vmatpush3.bf16.msra.mxu0 %v34371_v31  ;;  %v18474_v8 = vand.u32 4294901760, %v18417_v48 }
 0xd60   :  { %27209 = vmatpush1.bf16.msra.mxu1 %v37028_v57  ;;  %v18627_v58 = vsub.f32 %v34358_v41, %v36039_v1  ;;  %v36040_v32 = vand.u32 4294901760, %v34374_v52  ;;  %v34393_v46 = vpack.c.bf16 %v18522_v6, %v18519_v43  ;;  %v34396_v26 = vsub.f32 %v18433_v39, %v18522_v6  ;;  %v18434_v1 = vld [vmem:[%s35517_s17 + $0xe0] sm:$0xff]  ;;  %v37032_v43 = vld [vmem:[#allocation160_spill] sm:$0xff] }
 0xd61   :  { %27211 = vmatprep.subr.bf16.mxu1 %v37029_v17  ;;  %37030 = vst [vmem:[#allocation61_spill] sm:$0xff] %v34386_v28  ;;  %v18747_v57 = vand.u32 4294901760, %v18746_v18  ;;  %v36044_v14 = vand.u32 4294901760, %v34380_v3  ;;  %v34401_v17 = vsub.f32 %v18416_v12, %v18471_v49  ;;  %v18435_v18 = vld [vmem:[%s35517_s17 + $0xe8] sm:$0xff]  ;;  %v18418_v12 = vld [vmem:[%s35517_s17 + $0x60] sm:$0xff]  ;;  %v34421_v28 = vpack.c.bf16 %v18474_v8, %v18471_v49 }
 0xd62   :  { %37031 = vst [vmem:[#allocation91_spill] sm:$0xff] %v34393_v46  ;;  %v18628_v5 = vand.u32 4294901760, %v18627_v58  ;;  %v18634_v38 = vsub.f32 %v34374_v52, %v36040_v32  ;;  %v36049_v58 = vand.u32 4294901760, %v34396_v26  ;;  %27323 = vmatprep.subr.bf16.mxu0 %v34393_v46  ;;  %v37034_v32 = vld [vmem:[#allocation137_spill] sm:$0xff]  ;;  %v18525_v0 = vand.u32 4294901760, %v18434_v1 }
 0xd63   :  { %v34410_v6 = vpack.c.bf16 %v18747_v57, %v18740_v24  ;;  %v18753_v39 = vsub.f32 %v34380_v3, %v36044_v14  ;;  %37035 = vst [vmem:[#allocation172_spill] sm:$0xff] %v34421_v28  ;;  %v36053_v24 = vand.u32 4294901760, %v34401_v17  ;;  %v34424_v57 = vsub.f32 %v18417_v48, %v18474_v8  ;;  %27325 = vmatpush3.bf16.msra.mxu0 %v34421_v28 }
 0xd64   :  { %27213 = vmatpush1.bf16.msra.mxu1 %v37032_v43  ;;  %v18635_v31 = vand.u32 4294901760, %v18634_v38  ;;  %v18419_v43 = vld [vmem:[%s35517_s17 + $0x68] sm:$0xff]  ;;  %v18528_v46 = vand.u32 4294901760, %v18435_v18  ;;  %v18477_v8 = vand.u32 4294901760, %v18418_v12  ;;  %v34443_v50 = vsub.f32 %v18434_v1, %v18525_v0 }
 0xd65   :  { %37033 = vst [vmem:[#allocation171_spill] sm:$0xff] %v34410_v6  ;;  %27215 = vmatprep.subr.bf16.mxu1 %v37034_v32  ;;  %v18754_v14 = vand.u32 4294901760, %v18753_v39  ;;  %v18760_v6 = vsub.f32 %v34396_v26, %v36049_v58  ;;  %v18436_v32 = vld [vmem:[%s35517_s17 + $0xf0] sm:$0xff]  ;;  %v18641_v48 = vsub.f32 %v34401_v17, %v36053_v24  ;;  %v36063_v38 = vand.u32 4294901760, %v34424_v57  ;;  %v37037_v39 = vld [vmem:[#allocation138_spill] sm:$0xff] }
 0xd66   :  { %v34435_v49 = vpack.c.bf16 %v18635_v31, %v18628_v5  ;;  %v34445_v22 = vsub.f32 %v18435_v18, %v18528_v46  ;;  %v18480_v53 = vand.u32 4294901760, %v18419_v43  ;;  %v18437_v5 = vld [vmem:[%s35517_s17 + $0xf8] sm:$0xff]  ;;  %v34454_v28 = vsub.f32 %v18418_v12, %v18477_v8 }
 0xd67   :  { %v18761_v58 = vand.u32 4294901760, %v18760_v6  ;;  %v37038_v31 = vld [vmem:[#allocation73_spill] sm:$0xff]  ;;  %v18642_v24 = vand.u32 4294901760, %v18641_v48  ;;  %v36062_v1 = vand.u32 4294901760, %v34443_v50  ;;  %v37040_v48 = vld [vmem:[#allocation139_spill] sm:$0xff]  ;;  %v34464_v55 = vpack.c.bf16 %v18528_v46, %v18525_v0  ;;  %v37041_v0 = vld [vmem:[#allocation140_spill] sm:$0xff] }
 0xd68   :  { %37036 = vst [vmem:[#allocation92_spill] sm:$0xff] %v34435_v49  ;;  %27217 = vmatpush1.bf16.msra.mxu1 %v37037_v39  ;;  %v18648_v49 = vsub.f32 %v34424_v57, %v36063_v38  ;;  %v18531_v39 = vand.u32 4294901760, %v18436_v32  ;;  %v36061_v18 = vand.u32 4294901760, %v34445_v22  ;;  %v34460_v51 = vsub.f32 %v18419_v43, %v18480_v53  ;;  %v18420_v43 = vld [vmem:[%s35517_s17 + $0x70] sm:$0xff] }
 0xd69   :  { %27219 = vmatprep.subr.bf16.mxu1 %v37038_v31  ;;  %v34456_v6 = vpack.c.bf16 %v18761_v58, %v18754_v14  ;;  %v36066_v29 = vand.u32 4294901760, %v34454_v28  ;;  %v18534_v31 = vand.u32 4294901760, %v18437_v5  ;;  %v18767_v12 = vsub.f32 %v34443_v50, %v36062_v1  ;;  %27327 = vmatprep.subr.bf16.mxu0 %v34464_v55 }
 0xd6a   :  { %v18649_v40 = vand.u32 4294901760, %v18648_v49  ;;  %v18774_v14 = vsub.f32 %v34445_v22, %v36061_v18  ;;  %v34472_v58 = vpack.c.bf16 %v18480_v53, %v18477_v8  ;;  %v18421_v49 = vld [vmem:[%s35517_s17 + $0x78] sm:$0xff]  ;;  %v36069_v18 = vand.u32 4294901760, %v34460_v51 }
 0xd6b   :  { %37039 = vst [vmem:[#allocation62_spill] sm:$0xff] %v34456_v6  ;;  %v34487_v53 = vpack.c.bf16 %v18534_v31, %v18531_v39  ;;  %v18768_v8 = vand.u32 4294901760, %v18767_v12  ;;  %v34489_v38 = vsub.f32 %v18436_v32, %v18531_v39  ;;  %v34491_v6 = vsub.f32 %v18437_v5, %v18534_v31 }
 0xd6c   :  { %27221 = vmatpush1.bf16.msra.mxu1 %v37040_v48  ;;  %v34481_v46 = vpack.c.bf16 %v18649_v40, %v18642_v24  ;;  %v18655_v48 = vsub.f32 %v34454_v28, %v36066_v29  ;;  %v18775_v1 = vand.u32 4294901760, %v18774_v14  ;;  %v18662_v40 = vsub.f32 %v34460_v51, %v36069_v18  ;;  %27329 = vmatpush3.bf16.msra.mxu0 %v34472_v58 }
 0xd6d   :  { %27223 = vmatprep.subr.bf16.mxu1 %v37041_v0  ;;  %v18483_v24 = vand.u32 4294901760, %v18420_v43  ;;  %v18486_v0 = vand.u32 4294901760, %v18421_v49  ;;  %v36068_v32 = vand.u32 4294901760, %v34489_v38  ;;  %v36067_v5 = vand.u32 4294901760, %v34491_v6  ;;  %27331 = vmatprep.subr.bf16.mxu0 %v34487_v53 }
 0xd6e   :  { %37042 = vst [vmem:[#allocation59_spill] sm:$0xff] %v34481_v46  ;;  %v18656_v34 = vand.u32 4294901760, %v18655_v48  ;;  %v34499_v29 = vpack.c.bf16 %v18775_v1, %v18768_v8  ;;  %v34506_v39 = vpack.c.bf16 %v34164_v60, %v34162_v23  ;;  %v18663_v31 = vand.u32 4294901760, %v18662_v40 }
 0xd6f   :  { %v34509_v12 = vpack.c.bf16 %v18486_v0, %v18483_v24  ;;  %v34511_v14 = vsub.f32 %v18420_v43, %v18483_v24  ;;  %v18781_v1 = vsub.f32 %v34489_v38, %v36068_v32  ;;  %v18788_v48 = vsub.f32 %v34491_v6, %v36067_v5 }
 0xd70   :  { %27225 = vmatpush1.bf16.msra.mxu1 %v33971_v30  ;;  %37043 = vst [vmem:[#allocation63_spill] sm:$0xff] %v34499_v29  ;;  %37044 = vst [vmem:[#allocation173_spill] sm:$0xff] %v34506_v39  ;;  %v34513_v30 = vsub.f32 %v18421_v49, %v18486_v0  ;;  %v34523_v8 = vpack.c.bf16 %v34176_v15, %v34166_v2  ;;  %v34532_v49 = vpack.c.bf16 %v34186_v44, %v34180_v4 }
 0xd71   :  { %27227 = vmatprep.subr.bf16.mxu1 %v33978_v61  ;;  %v34525_v61 = vpack.c.bf16 %v18663_v31, %v18656_v34  ;;  %v36072_v40 = vand.u32 4294901760, %v34511_v14  ;;  %27333 = vmatpush3.bf16.msra.mxu0 %v34509_v12  ;;  %v18782_v24 = vand.u32 4294901760, %v18781_v1  ;;  %v18789_v0 = vand.u32 4294901760, %v18788_v48 }
 0xd72   :  { %v36073_v43 = vand.u32 4294901760, %v34513_v30  ;;  %27367 = vmatprep.subr.bf16.mxu0 %v34506_v39  ;;  %v34538_v34 = vpack.c.bf16 %v34229_v19, %v34212_v33  ;;  %v34555_v18 = vpack.c.bf16 %v34270_v54, %v34262_v9  ;;  %v37048_v39 = vld [vmem:[#allocation75_spill] sm:$0xff]  ;;  %v37061_v54 = vld [vmem:[#allocation93_spill] sm:$0xff]  ;;  %v37063_v9 = vand.u32 4294901760, %v34328_v10 }
 0xd73   :  { %37045 = vst [vmem:[#allocation174_spill] sm:$0xff] %v34525_v61  ;;  %v18669_v31 = vsub.f32 %v34511_v14, %v36072_v40  ;;  %v34547_v32 = vpack.c.bf16 %v18789_v0, %v18782_v24  ;;  %v34563_v24 = vpack.c.bf16 %v34296_v11, %v34284_v47  ;;  %v34567_v0 = vpack.c.bf16 %v34328_v10, %v34317_v25  ;;  %v37058_v11 = vld [vmem:[#allocation87_spill] sm:$0xff]  ;;  %v37059_v47 = vld [vmem:[#allocation88_spill] sm:$0xff] }
 0xd74   :  { %27229 = vmatpush1.bf16.msra.mxu1 %v33987_v21  ;;  %v18676_v5 = vsub.f32 %v34513_v30, %v36073_v43  ;;  %v34551_v21 = vpack.c.bf16 %v34256_v16, %v34254_v27  ;;  %v34607_v43 = vpack.c.bf16 %v34491_v6, %v34489_v38  ;;  %v37065_v27 = vld [vmem:[#allocation98_spill] sm:$0xff]  ;;  %v37076_v10 = vand.u32 4294901760, %v34396_v26 }
 0xd75   :  { %27231 = vmatprep.subr.bf16.mxu1 %v33994_v13  ;;  %37046 = vst [vmem:[#allocation96_spill] sm:$0xff] %v34547_v32  ;;  %v18670_v1 = vand.u32 4294901760, %v18669_v31  ;;  %v37047_v13 = vld [vmem:[#allocation74_spill] sm:$0xff]  ;;  %v37050_v31 = vld [vmem:[#allocation141_spill] sm:$0xff] }
 0xd76   :  { %v18677_v48 = vand.u32 4294901760, %v18676_v5  ;;  %v34573_v5 = vpack.c.bf16 %v34350_v35, %v34331_v36 }
 0xd78   :  { %27233 = vmatpush1.bf16.msra.mxu1 %v37047_v13  ;;  %v34559_v40 = vpack.c.bf16 %v18677_v48, %v18670_v1  ;;  %v37051_v1 = vld [vmem:[#allocation130_spill] sm:$0xff]  ;;  %v37052_v48 = vld [vmem:[#allocation135_spill] sm:$0xff]  ;;  %v34585_v13 = vpack.c.bf16 %v34396_v26, %v34380_v3  ;;  %v37087_v26 = vld [vmem:[#allocation116_spill] sm:$0xff] }
 0xd79   :  { %27235 = vmatprep.subr.bf16.mxu1 %v37048_v39  ;;  %v34577_v39 = vpack.c.bf16 %v34374_v52, %v34358_v41 }
 0xd7a   :  { %37049 = vst [vmem:[#allocation97_spill] sm:$0xff] %v34559_v40 }
 0xd7c   :  { %27237 = vmatpush1.bf16.msra.mxu1 %v37050_v31  ;;  %v37053_v31 = vld [vmem:[#allocation131_spill] sm:$0xff] }
 0xd7d   :  { %27239 = vmatprep.subr.bf16.mxu1 %v36655_v59  ;;  %v34589_v59 = vpack.c.bf16 %v34424_v57, %v34401_v17 }
 0xd7f   :  { %18219 = vmatmul.mubr.f32.vlgmr.msra.gmra.mrb[28].mxu1 %v37051_v1 }
 0xd80   :  { %18225 = vmatprep.mubr.f32.mxu1 %v37052_v48  ;;  %27241 = vmatpush1.bf16.msra.mxu1 %v36656_v45  ;;  %v34597_v45 = vpack.c.bf16 %v34445_v22, %v34443_v50 }
 0xd81   :  { %27243 = vmatprep.subr.bf16.mxu1 %v36657_v56  ;;  %v34602_v56 = vpack.c.bf16 %v34460_v51, %v34454_v28 }
 0xd83   :  { %18227 = vmatmul.mubr.f32.gmra.mrb[30].mxu1 %v37053_v31 }
 0xd84   :  { %27245 = vmatpush1.bf16.msra.mxu1 %v36658_v7  ;;  %18362 = vmatprep.mubr.f32.mxu1 %v33710_v20  ;;  %v37055_v7 = vld [vmem:[#allocation80_spill] sm:$0xff]  ;;  %v37056_v20 = vld [vmem:[#allocation82_spill] sm:$0xff] }
 0xd85   :  { %27247 = vmatprep.subr.bf16.mxu1 %v36660_v63  ;;  %v34612_v63 = vpack.c.bf16 %v34513_v30, %v34511_v14 }
 0xd87   :  { %37054 = vst [vmem:[#allocation53_spill] sm:$0xff] %v34612_v63 }
 0xd88   :  { %27249 = vmatpush1.bf16.msra.mxu1 %v36664_v62  ;;  %v37057_v62 = vld [vmem:[#allocation83_spill] sm:$0xff] }
 0xd89   :  { %27251 = vmatprep.subr.bf16.mxu1 %v36666_v37  ;;  %v37060_v37 = vld [vmem:[#allocation47_spill] sm:$0xff] }
 0xd8c   :  { %27253 = vmatpush1.bf16.msra.mxu1 %v36672_v42  ;;  %v37062_v42 = vand.u32 4294901760, %v34317_v25  ;;  %v37073_v25 = vld [vmem:[#allocation103_spill] sm:$0xff] }
 0xd8d   :  { %27255 = vmatprep.subr.bf16.mxu1 %v37055_v7  ;;  %v37066_v7 = vld [vmem:[#allocation99_spill] sm:$0xff] }
 0xd8e   :  { %v34625_v16 = vpack.c.bf16 %v37063_v9, %v37062_v42  ;;  %v37074_v9 = vld [vmem:[#allocation104_spill] sm:$0xff] }
 0xd90   :  { %27257 = vmatpush1.bf16.msra.mxu1 %v37056_v20  ;;  %37064 = vst [vmem:[#allocation65_spill] sm:$0xff] %v34625_v16  ;;  %v37067_v20 = vand.u32 4294901760, %v34331_v36  ;;  %v37078_v36 = vand.u32 4294901760, %v34401_v17  ;;  %v37088_v17 = vand.u32 4294901760, %v34454_v28  ;;  %v37099_v28 = vld [vmem:[#allocation121_spill] sm:$0xff] }
 0xd91   :  { %27259 = vmatprep.subr.bf16.mxu1 %v37057_v62 }
 0xd94   :  { %27261 = vmatpush1.bf16.msra.mxu1 %v37058_v11  ;;  %v37068_v11 = vand.u32 4294901760, %v34350_v35  ;;  %v37079_v35 = vand.u32 4294901760, %v34424_v57  ;;  %v37089_v57 = vand.u32 4294901760, %v34460_v51  ;;  %v37100_v51 = vld [vmem:[#allocation122_spill] sm:$0xff] }
 0xd95   :  { %27263 = vmatprep.subr.bf16.mxu1 %v37059_v47  ;;  %v37070_v47 = vand.u32 4294901760, %v34358_v41  ;;  %v37081_v41 = vld [vmem:[#allocation109_spill] sm:$0xff] }
 0xd96   :  { %v34633_v62 = vpack.c.bf16 %v37068_v11, %v37067_v20  ;;  %v37083_v20 = vand.u32 4294901760, %v34443_v50  ;;  %v37084_v11 = vand.u32 4294901760, %v34445_v22  ;;  %v37094_v50 = vld [vmem:[#allocation119_spill] sm:$0xff]  ;;  %v37095_v22 = vld [vmem:[#allocation120_spill] sm:$0xff] }
 0xd98   :  { %27265 = vmatpush1.bf16.msra.mxu1 %v37060_v37  ;;  %37069 = vst [vmem:[#allocation175_spill] sm:$0xff] %v34633_v62 }
 0xd99   :  { %27267 = vmatprep.subr.bf16.mxu1 %v37061_v54  ;;  %v37071_v54 = vand.u32 4294901760, %v34374_v52  ;;  %v37082_v52 = vld [vmem:[#allocation110_spill] sm:$0xff] }
 0xd9b   :  { %v34639_v37 = vpack.c.bf16 %v37071_v54, %v37070_v47  ;;  %v34661_v47 = vpack.c.bf16 %v37084_v11, %v37083_v20  ;;  %v34669_v54 = vpack.c.bf16 %v37089_v57, %v37088_v17  ;;  %v37105_v20 = vld [vmem:[#allocation133_spill] sm:$0xff]  ;;  %v37112_v57 = vld [vmem:[#allocation60_spill] sm:$0xff] }
 0xd9c   :  { %27269 = vmatpush1.bf16.msra.mxu1 %v37065_v27  ;;  %v37075_v27 = vand.u32 4294901760, %v34380_v3  ;;  %v37086_v3 = vld [vmem:[#allocation115_spill] sm:$0xff]  ;;  %v37106_v11 = vld [vmem:[#allocation77_spill] sm:$0xff] }
 0xd9d   :  { %27271 = vmatprep.subr.bf16.mxu1 %v37066_v7  ;;  %37072 = vst [vmem:[#allocation40_spill] sm:$0xff] %v34639_v37  ;;  %v34653_v7 = vpack.c.bf16 %v37079_v35, %v37078_v36  ;;  %37085 = vst [vmem:[#allocation106_spill] sm:$0xff] %v34661_v47  ;;  %v37097_v36 = vand.u32 4294901760, %v34513_v30  ;;  %v37108_v30 = vld [vmem:[#allocation151_spill] sm:$0xff]  ;;  %v37111_v17 = vld [vmem:[#allocation85_spill] sm:$0xff] }
 0xd9e   :  { %v34647_v42 = vpack.c.bf16 %v37076_v10, %v37075_v27  ;;  %37090 = vst [vmem:[#allocation52_spill] sm:$0xff] %v34669_v54  ;;  %v37096_v10 = vand.u32 4294901760, %v34511_v14  ;;  %v37107_v14 = vld [vmem:[#allocation150_spill] sm:$0xff] }
 0xd9f   :  { %37080 = vst [vmem:[#allocation102_spill] sm:$0xff] %v34653_v7 }
 0xda0   :  { %27273 = vmatpush1.bf16.msra.mxu1 %v37073_v25  ;;  %37077 = vst [vmem:[#allocation101_spill] sm:$0xff] %v34647_v42  ;;  %v37091_v25 = vand.u32 4294901760, %v34489_v38  ;;  %v34683_v35 = vpack.c.bf16 %v37097_v36, %v37096_v10  ;;  %v37102_v38 = vld [vmem:[#allocation125_spill] sm:$0xff]  ;;  %v37119_v10 = vld [vmem:[#allocation38_spill] sm:$0xff] }
 0xda1   :  { %27275 = vmatprep.subr.bf16.mxu1 %v37074_v9  ;;  %v37092_v9 = vand.u32 4294901760, %v34491_v6  ;;  %v37103_v6 = vld [vmem:[#allocation129_spill] sm:$0xff] }
 0xda2   :  { %37098 = vst [vmem:[#allocation143_spill] sm:$0xff] %v34683_v35  ;;  %v37131_v35 = vld [vmem:[#allocation36_spill] sm:$0xff] }
 0xda3   :  { %v34675_v27 = vpack.c.bf16 %v37092_v9, %v37091_v25  ;;  %v37113_v25 = vld [vmem:[#allocation61_spill] sm:$0xff]  ;;  %v37114_v9 = vld [vmem:[#allocation171_spill] sm:$0xff] }
 0xda4   :  { %27277 = vmatpush1.bf16.msra.mxu1 %v37081_v41  ;;  %v37101_v41 = vld [vmem:[#allocation123_spill] sm:$0xff] }
 0xda5   :  { %27279 = vmatprep.subr.bf16.mxu1 %v37082_v52  ;;  %37093 = vst [vmem:[#allocation43_spill] sm:$0xff] %v34675_v27  ;;  %v37104_v52 = vld [vmem:[#allocation132_spill] sm:$0xff] }
 0xda8   :  { %27281 = vmatpush1.bf16.msra.mxu1 %v37086_v3  ;;  %v37109_v3 = vld [vmem:[#allocation169_spill] sm:$0xff] }
 0xda9   :  { %27283 = vmatprep.subr.bf16.mxu1 %v37087_v26  ;;  %v37110_v26 = vld [vmem:[#allocation50_spill] sm:$0xff] }
 0xdac   :  { %27285 = vmatpush1.bf16.msra.mxu1 %v37094_v50  ;;  %v37117_v50 = vld [vmem:[#allocation37_spill] sm:$0xff] }
 0xdad   :  { %27287 = vmatprep.subr.bf16.mxu1 %v37095_v22 }
 0xdb0   :  { %27289 = vmatpush1.bf16.msra.mxu1 %v37099_v28  ;;  %v37121_v28 = vld [vmem:[#allocation142_spill] sm:$0xff] }
 0xdb1   :  { %27291 = vmatprep.subr.bf16.mxu1 %v37100_v51 }
 0xdb4   :  { %27293 = vmatpush1.bf16.msra.mxu1 %v37101_v41 }
 0xdb5   :  { %27295 = vmatprep.subr.bf16.mxu1 %v37102_v38 }
 0xdb8   :  { %27297 = vmatpush1.bf16.msra.mxu1 %v37103_v6 }
 0xdb9   :  { %27299 = vmatprep.subr.bf16.mxu1 %v37104_v52 }
 0xdbc   :  { %27301 = vmatpush1.bf16.msra.mxu1 %v37105_v20 }
 0xdbd   :  { %27335 = vmatprep.subr.bf16.mxu1 %v37106_v11 }
 0xdbf   :  { %18364 = vmatmul.mubr.f32.vlgmr.msra.gmra.mrb[28].mxu1 %v37051_v1  ;;  %v37115_v1 = vld [vmem:[#allocation92_spill] sm:$0xff] }
 0xdc0   :  { %18370 = vmatprep.mubr.f32.mxu1 %v37052_v48  ;;  %27337 = vmatpush3.bf16.msra.mxu1 %v37107_v14  ;;  %v37116_v48 = vld [vmem:[#allocation62_spill] sm:$0xff] }
 0xdc1   :  { %27339 = vmatprep.subr.bf16.mxu1 %v37108_v30 }
 0xdc3   :  { %18372 = vmatmul.mubr.f32.gmra.mrb[30].mxu1 %v37053_v31  ;;  %v18378_v31 = vld [vmem:[#allocation23] sm:$0x3] }
 0xdc4   :  { %27341 = vmatpush3.bf16.msra.mxu1 %v37109_v3  ;;  %v34711_v22 = vrot.slane %v18378_v31, %v37117_v50  ;;  %v34715_v36 = vrot.slane %v18378_v31, %v37119_v10 }
 0xdc5   :  { %27343 = vmatprep.subr.bf16.mxu1 %v37110_v26 }
 0xdc6   :  { %37118 = vst [vmem:[#allocation67_spill] sm:$0xff] %v34711_v22  ;;  %37120 = vst [vmem:[#allocation107_spill] sm:$0xff] %v34715_v36 }
 0xdc8   :  { %27345 = vmatpush3.bf16.msra.mxu1 %v37111_v17 }
 0xdc9   :  { %27347 = vmatprep.subr.bf16.mxu1 %v37112_v57 }
 0xdcc   :  { %27349 = vmatpush3.bf16.msra.mxu1 %v37113_v25 }
 0xdcd   :  { %27351 = vmatprep.subr.bf16.mxu1 %v37114_v9 }
 0xdd0   :  { %27353 = vmatpush3.bf16.msra.mxu1 %v37115_v1  ;;  %v37128_v1 = vld [vmem:[#allocation76_spill] sm:$0xff] }
 0xdd1   :  { %27355 = vmatprep.subr.bf16.mxu1 %v37116_v48 }
 0xdd4   :  { %27357 = vmatpush3.bf16.msra.mxu1 %v34481_v46 }
 0xdd5   :  { %27359 = vmatprep.subr.bf16.mxu1 %v34499_v29 }
 0xdd8   :  { %27361 = vmatpush3.bf16.msra.mxu1 %v34525_v61 }
 0xdd9   :  { %27363 = vmatprep.subr.bf16.mxu1 %v34547_v32 }
 0xddc   :  { %27365 = vmatpush3.bf16.msra.mxu1 %v34559_v40 }
 0xddd   :  { %27399 = vmatprep.subr.bf16.mxu1 %v37121_v28 }
 0xde0   :  { %v17019_v51 = vpop.f32.mrb[28].mxu0 }
 0xde1   :  { %v18390_v41 = vadd.f32 %v34711_v22, %v17019_v51  ;;  %v17021_v38 = vpop.f32.mrb[29].mxu0 }
 0xde2   :  { %v18391_v6 = vadd.f32 %v34715_v36, %v17021_v38 }
 0xde3   :  { %v34720_v52 = vmax.f32 %v18390_v41, 0.0 }
 0xde4   :  { %v34722_v20 = vmax.f32 %v18391_v6, 0.0  ;;  %v17027_v32 = vpop.f32.mrb[30].mxu0 }
 0xde5   :  { %37122 = vst [vmem:[#allocation112_spill] sm:$0xff] %v34720_v52  ;;  %v34725_v50 = vand.u32 4294901760, %v34720_v52  ;;  %v18392_v40 = vadd.f32 %v34711_v22, %v17027_v32  ;;  %v17029_v31 = vpop.f32.mrb[31].mxu0 }
 0xde6   :  { %37123 = vst [vmem:[#allocation54_spill] sm:$0xff] %v34722_v20  ;;  %v34729_v10 = vand.u32 4294901760, %v34722_v20  ;;  %v18393_v61 = vadd.f32 %v34715_v36, %v17029_v31 }
 0xde7   :  { %v34734_v51 = vsub.f32 %v34720_v52, %v34725_v50  ;;  %v34736_v41 = vmax.f32 %v18392_v40, 0.0  ;;  %v37126_v52 = vld [vmem:[#allocation146_spill] sm:$0xff] }
 0xde8   :  { %v18537_v38 = vsub.f32 %v34722_v20, %v34729_v10  ;;  %v34740_v6 = vmax.f32 %v18393_v61, 0.0  ;;  %18792 = vmatprep.mubr.f32.mxu1 %v34729_v10  ;;  %v37127_v20 = vld [vmem:[#allocation147_spill] sm:$0xff] }
 0xde9   :  { %37124 = vst [vmem:[#allocation176_spill] sm:$0xff] %v34736_v41  ;;  %v18544_v32 = vand.u32 4294901760, %v34734_v51  ;;  %v34745_v22 = vand.u32 4294901760, %v34736_v41  ;;  %18794 = vmatmul.mubr.f32.vlgmr.msra.gmra.mrb[32].mxu1 %v34725_v50 }
 0xdea   :  { %37125 = vst [vmem:[#allocation177_spill] sm:$0xff] %v34740_v6  ;;  %v34749_v31 = vand.u32 4294901760, %v34740_v6  ;;  %27401 = vmatpush3.bf16.msra.mxu1 %v37126_v52  ;;  %v18538_v40 = vand.u32 4294901760, %v18537_v38 }
 0xdeb   :  { %v18545_v36 = vsub.f32 %v34734_v51, %v18544_v32  ;;  %v34755_v61 = vsub.f32 %v34736_v41, %v34745_v22  ;;  %27403 = vmatprep.subr.bf16.mxu1 %v37127_v20  ;;  %v37129_v41 = vld [vmem:[#allocation154_spill] sm:$0xff] }
 0xdec   :  { %v18552_v29 = vsub.f32 %v34740_v6, %v34749_v31  ;;  %18799 = vmatprep.mubr.f32.mxu1 %v34749_v31  ;;  %v18539_v46 = vsub.f32 %v18537_v38, %v18538_v40  ;;  %v37130_v6 = vld [vmem:[#allocation156_spill] sm:$0xff] }
 0xded   :  { %18801 = vmatmul.mubr.f32.gmra.mrb[34].mxu1 %v34745_v22  ;;  %v18559_v48 = vand.u32 4294901760, %v34755_v61  ;;  %v18546_v57 = vand.u32 4294901760, %v18545_v36  ;;  %v37138_v36 = vand.u32 4294901760, %v34164_v60  ;;  %v37144_v60 = vand.u32 4294901760, %v34186_v44 }
 0xdee   :  { %27405 = vmatpush3.bf16.msra.mxu1 %v37128_v1  ;;  %19052 = vmatprep.mubr.f32.mxu1 %v18538_v40  ;;  %v18540_v9 = vand.u32 4294901760, %v18539_v46  ;;  %v18553_v25 = vand.u32 4294901760, %v18552_v29  ;;  %v37132_v46 = vld [vmem:[#allocation84_spill] sm:$0xff] }
 0xdef   :  { %27407 = vmatprep.subr.bf16.mxu1 %v37129_v41  ;;  %v18560_v17 = vsub.f32 %v34755_v61, %v18559_v48 }
 0xdf0   :  { %18541 = vmatprep.mubr.f32.mxu0 %v18540_v9  ;;  %v18554_v26 = vsub.f32 %v18552_v29, %v18553_v25  ;;  %v37134_v9 = vld [vmem:[#allocation89_spill] sm:$0xff] }
 0xdf1   :  { %18547 = vmatmul.mubr.f32.vlgmr.msra.gmra.mrb[32].mxu0 %v18546_v57  ;;  %v18561_v40 = vand.u32 4294901760, %v18560_v17  ;;  %v37133_v57 = vld [vmem:[#allocation86_spill] sm:$0xff]  ;;  %v37137_v17 = vand.u32 4294901760, %v34162_v23  ;;  %v37143_v23 = vand.u32 4294901760, %v34180_v4  ;;  %v37149_v4 = vld [vmem:[#allocation155_spill] sm:$0xff] }
 0xdf2   :  { %27369 = vmatpush3.bf16.msra.mxu0 %v34523_v8  ;;  %27409 = vmatpush3.bf16.msra.mxu1 %v37130_v6  ;;  %v18555_v3 = vand.u32 4294901760, %v18554_v26  ;;  %v37135_v26 = vld [vmem:[#allocation91_spill] sm:$0xff]  ;;  %v37150_v44 = vand.u32 4294901760, %v37149_v4 }
 0xdf3   :  { %27371 = vmatprep.subr.bf16.mxu0 %v34532_v49  ;;  %27411 = vmatprep.subr.bf16.mxu1 %v37131_v35 }
 0xdf4   :  { %18556 = vmatprep.mubr.f32.mxu0 %v18555_v3  ;;  %v37136_v3 = vld [vmem:[#allocation172_spill] sm:$0xff] }
 0xdf5   :  { %18562 = vmatmul.mubr.f32.gmra.mrb[34].mxu0 %v18561_v40 }
 0xdf6   :  { %27373 = vmatpush3.bf16.msra.mxu0 %v34538_v34  ;;  %27413 = vmatpush3.bf16.msra.mxu1 %v37132_v46 }
 0xdf7   :  { %18936 = vmatprep.mubr.f32.mxu0 %v18537_v38  ;;  %27375 = vmatprep.subr.bf16.mxu0 %v34551_v21  ;;  %v34797_v38 = vpack.c.bf16 %v37138_v36, %v37137_v17  ;;  %v34814_v17 = vpack.c.bf16 %v37144_v60, %v37143_v23  ;;  %v37151_v36 = vld [vmem:[#allocation78_spill] sm:$0xff]  ;;  %v37159_v60 = vld [vmem:[#allocation81_spill] sm:$0xff] }
 0xdf8   :  { %27415 = vmatprep.subr.bf16.mxu1 %v37133_v57 }
 0xdf9   :  { %37139 = vst [vmem:[#allocation113_spill] sm:$0xff] %v34797_v38  ;;  %37145 = vst [vmem:[#allocation49_spill] sm:$0xff] %v34814_v17 }
 0xdfa   :  { %27377 = vmatpush3.bf16.msra.mxu0 %v34555_v18  ;;  %27417 = vmatpush3.bf16.msra.mxu1 %v37134_v9 }
 0xdfb   :  { %27379 = vmatprep.subr.bf16.mxu0 %v34563_v24  ;;  %27419 = vmatprep.subr.bf16.mxu1 %v37135_v26 }
 0xdfe   :  { %27381 = vmatpush3.bf16.msra.mxu0 %v34567_v0  ;;  %27421 = vmatpush3.bf16.msra.mxu1 %v37136_v3 }
 0xdff   :  { %27383 = vmatprep.subr.bf16.mxu0 %v34573_v5  ;;  %27423 = vmatprep.subr.bf16.mxu1 %v34464_v55 }
 0xe02   :  { %27385 = vmatpush3.bf16.msra.mxu0 %v34577_v39  ;;  %27425 = vmatpush3.bf16.msra.mxu1 %v34472_v58 }
 0xe03   :  { %27387 = vmatprep.subr.bf16.mxu0 %v34585_v13  ;;  %27427 = vmatprep.subr.bf16.mxu1 %v34487_v53 }
 0xe06   :  { %27389 = vmatpush3.bf16.msra.mxu0 %v34589_v59  ;;  %27429 = vmatpush3.bf16.msra.mxu1 %v34509_v12 }
 0xe07   :  { %27391 = vmatprep.subr.bf16.mxu0 %v34597_v45  ;;  %27463 = vmatprep.subr.bf16.mxu1 %v37121_v28 }
 0xe09   :  { %19056 = vmatmul.mubr.f32.vlgmr.msra.gmra.mrb[36].mxu1 %v18544_v32  ;;  %v37140_v32 = vand.u32 4294901760, %v34166_v2  ;;  %v37147_v2 = vand.u32 4294901760, %v34229_v19 }
 0xe0a   :  { %27393 = vmatpush3.bf16.msra.mxu0 %v34602_v56  ;;  %19063 = vmatprep.mubr.f32.mxu1 %v18553_v25  ;;  %v37141_v25 = vand.u32 4294901760, %v34176_v15  ;;  %v37146_v15 = vand.u32 4294901760, %v34212_v33  ;;  %v37156_v33 = vld [vmem:[#allocation157_spill] sm:$0xff] }
 0xe0b   :  { %27465 = vmatpush3.bf16.msra.mxu1 %v37126_v52  ;;  %27395 = vmatprep.subr.bf16.mxu0 %v34607_v43 }
 0xe0c   :  { %27467 = vmatprep.subr.bf16.mxu1 %v37127_v20  ;;  %v34806_v40 = vpack.c.bf16 %v37141_v25, %v37140_v32  ;;  %v37152_v32 = vand.u32 4294901760, %v37151_v36  ;;  %v37166_v36 = vld [vmem:[#allocation50_spill] sm:$0xff] }
 0xe0d   :  { %19067 = vmatmul.mubr.f32.gmra.mrb[38].mxu1 %v18559_v48  ;;  %v34823_v48 = vpack.c.bf16 %v37147_v2, %v37146_v15  ;;  %v37160_v15 = vand.u32 4294901760, %v37159_v60  ;;  %v37161_v2 = vld [vmem:[#allocation170_spill] sm:$0xff] }
 0xe0e   :  { %27397 = vmatpush3.bf16.msra.mxu0 %v34612_v63  ;;  %19344 = vmatprep.mubr.f32.mxu1 %v34729_v10  ;;  %37142 = vst [vmem:[#allocation114_spill] sm:$0xff] %v34806_v40  ;;  %v34831_v25 = vpack.c.bf16 %v37152_v32, %v37150_v44  ;;  %v37162_v4 = vand.u32 4294901760, %v37161_v2  ;;  %v37167_v32 = vld [vmem:[#allocation85_spill] sm:$0xff]  ;;  %v37175_v60 = vld [vmem:[#allocation174_spill] sm:$0xff] }
 0xe0f   :  { %27469 = vmatpush3.bf16.msra.mxu1 %v37128_v1  ;;  %27431 = vmatprep.subr.bf16.mxu0 %v34797_v38  ;;  %37148 = vst [vmem:[#allocation44_spill] sm:$0xff] %v34823_v48  ;;  %v37177_v2 = vld [vmem:[#allocation97_spill] sm:$0xff] }
 0xe10   :  { %27471 = vmatprep.subr.bf16.mxu1 %v37129_v41  ;;  %37153 = vst [vmem:[#allocation178_spill] sm:$0xff] %v34831_v25  ;;  %v34849_v44 = vpack.c.bf16 %v37162_v4, %v37160_v15  ;;  %v37176_v15 = vld [vmem:[#allocation96_spill] sm:$0xff]  ;;  %v37178_v4 = vld [vmem:[#allocation173_spill] sm:$0xff] }
 0xe11   :  { %18939 = vmatmul.mubr.f32.vlgmr.msra.gmra.mrb[36].mxu0 %v34734_v51  ;;  %v37157_v51 = vand.u32 4294901760, %v37156_v33  ;;  %v37172_v33 = vld [vmem:[#allocation62_spill] sm:$0xff] }
 0xe12   :  { %18945 = vmatprep.mubr.f32.mxu0 %v18552_v29  ;;  %27433 = vmatpush3.bf16.msra.mxu0 %v34806_v40  ;;  %v37154_v29 = vld [vmem:[#allocation79_spill] sm:$0xff]  ;;  %37163 = vst [vmem:[#allocation39_spill] sm:$0xff] %v34849_v44 }
 0xe13   :  { %27473 = vmatpush3.bf16.msra.mxu1 %v37130_v6  ;;  %27435 = vmatprep.subr.bf16.mxu0 %v34814_v17  ;;  %v37155_v19 = vand.u32 4294901760, %v37154_v29  ;;  %v37168_v29 = vld [vmem:[#allocation60_spill] sm:$0xff] }
 0xe14   :  { %27475 = vmatprep.subr.bf16.mxu1 %v37131_v35 }
 0xe15   :  { %18948 = vmatmul.mubr.f32.gmra.mrb[38].mxu0 %v34755_v61  ;;  %v34841_v23 = vpack.c.bf16 %v37157_v51, %v37155_v19  ;;  %v37165_v61 = vld [vmem:[#allocation169_spill] sm:$0xff]  ;;  %v37174_v51 = vld [vmem:[#allocation63_spill] sm:$0xff] }
 0xe16   :  { %27437 = vmatpush3.bf16.msra.mxu0 %v34823_v48  ;;  %19233 = vmatprep.mubr.f32.mxu0 %v34729_v10  ;;  %v37164_v10 = vld [vmem:[#allocation143_spill] sm:$0xff]  ;;  %v37169_v19 = vld [vmem:[#allocation61_spill] sm:$0xff] }
 0xe17   :  { %37158 = vst [vmem:[#allocation124_spill] sm:$0xff] %v34841_v23  ;;  %27477 = vmatpush3.bf16.msra.mxu1 %v37132_v46  ;;  %27439 = vmatprep.subr.bf16.mxu0 %v34831_v25 }
 0xe18   :  { %27479 = vmatprep.subr.bf16.mxu1 %v37133_v57 }
 0xe1a   :  { %27441 = vmatpush3.bf16.msra.mxu0 %v34841_v23 }
 0xe1b   :  { %27481 = vmatpush3.bf16.msra.mxu1 %v37134_v9  ;;  %27443 = vmatprep.subr.bf16.mxu0 %v34849_v44 }
 0xe1c   :  { %27483 = vmatprep.subr.bf16.mxu1 %v37135_v26 }
 0xe1e   :  { %27445 = vmatpush3.bf16.msra.mxu0 %v34625_v16 }
 0xe1f   :  { %27485 = vmatpush3.bf16.msra.mxu1 %v37136_v3  ;;  %27447 = vmatprep.subr.bf16.mxu0 %v34633_v62 }
 0xe20   :  { %27487 = vmatprep.subr.bf16.mxu1 %v34464_v55 }
 0xe22   :  { %27449 = vmatpush3.bf16.msra.mxu0 %v34639_v37 }
 0xe23   :  { %27489 = vmatpush3.bf16.msra.mxu1 %v34472_v58  ;;  %27451 = vmatprep.subr.bf16.mxu0 %v34647_v42 }
 0xe24   :  { %27491 = vmatprep.subr.bf16.mxu1 %v34487_v53 }
 0xe26   :  { %27453 = vmatpush3.bf16.msra.mxu0 %v34653_v7 }
 0xe27   :  { %27493 = vmatpush3.bf16.msra.mxu1 %v34509_v12  ;;  %27455 = vmatprep.subr.bf16.mxu0 %v34661_v47 }
 0xe28   :  { %27527 = vmatprep.subr.bf16.mxu1 %v37106_v11 }
 0xe2a   :  { %19346 = vmatmul.mubr.f32.vlgmr.msra.gmra.mrb[40].mxu1 %v34725_v50  ;;  %27457 = vmatpush3.bf16.msra.mxu0 %v34669_v54 }
 0xe2b   :  { %19351 = vmatprep.mubr.f32.mxu1 %v34749_v31  ;;  %27459 = vmatprep.subr.bf16.mxu0 %v34675_v27 }
 0xe2c   :  { %27529 = vmatpush3.bf16.msra.mxu1 %v37107_v14 }
 0xe2d   :  { %27531 = vmatprep.subr.bf16.mxu1 %v37108_v30 }
 0xe2e   :  { %19353 = vmatmul.mubr.f32.gmra.mrb[42].mxu1 %v34745_v22  ;;  %27461 = vmatpush3.bf16.msra.mxu0 %v37164_v10 }
 0xe2f   :  { %27495 = vmatprep.subr.bf16.mxu0 %v37121_v28 }
 0xe30   :  { %27533 = vmatpush3.bf16.msra.mxu1 %v37165_v61 }
 0xe31   :  { %19235 = vmatmul.mubr.f32.vlgmr.msra.gmra.mrb[40].mxu0 %v34725_v50  ;;  %27535 = vmatprep.subr.bf16.mxu1 %v37166_v36  ;;  %v37170_v50 = vld [vmem:[#allocation171_spill] sm:$0xff] }
 0xe32   :  { %19240 = vmatprep.mubr.f32.mxu0 %v34749_v31  ;;  %27497 = vmatpush3.bf16.msra.mxu0 %v37126_v52  ;;  %v37171_v31 = vld [vmem:[#allocation92_spill] sm:$0xff] }
 0xe33   :  { %27499 = vmatprep.subr.bf16.mxu0 %v37127_v20 }
 0xe34   :  { %27537 = vmatpush3.bf16.msra.mxu1 %v37167_v32 }
 0xe35   :  { %19242 = vmatmul.mubr.f32.gmra.mrb[42].mxu0 %v34745_v22  ;;  %27539 = vmatprep.subr.bf16.mxu1 %v37168_v29  ;;  %v37173_v22 = vld [vmem:[#allocation59_spill] sm:$0xff] }
 0xe36   :  { %27501 = vmatpush3.bf16.msra.mxu0 %v37128_v1 }
 0xe37   :  { %27503 = vmatprep.subr.bf16.mxu0 %v37129_v41 }
 0xe38   :  { %27541 = vmatpush3.bf16.msra.mxu1 %v37169_v19 }
 0xe39   :  { %27543 = vmatprep.subr.bf16.mxu1 %v37170_v50 }
 0xe3a   :  { %27505 = vmatpush3.bf16.msra.mxu0 %v37130_v6 }
 0xe3b   :  { %27507 = vmatprep.subr.bf16.mxu0 %v37131_v35 }
 0xe3c   :  { %27545 = vmatpush3.bf16.msra.mxu1 %v37171_v31 }
 0xe3d   :  { %27547 = vmatprep.subr.bf16.mxu1 %v37172_v33  ;;  %v37180_v33 = vld [vmem:[#allocation107_spill] sm:$0xff] }
 0xe3e   :  { %27509 = vmatpush3.bf16.msra.mxu0 %v37132_v46 }
 0xe3f   :  { %27511 = vmatprep.subr.bf16.mxu0 %v37133_v57 }
 0xe40   :  { %27549 = vmatpush3.bf16.msra.mxu1 %v37173_v22 }
 0xe41   :  { %27551 = vmatprep.subr.bf16.mxu1 %v37174_v51 }
 0xe42   :  { %27513 = vmatpush3.bf16.msra.mxu0 %v37134_v9 }
 0xe43   :  { %27515 = vmatprep.subr.bf16.mxu0 %v37135_v26 }
 0xe44   :  { %27553 = vmatpush3.bf16.msra.mxu1 %v37175_v60  ;;  %v37179_v60 = vld [vmem:[#allocation67_spill] sm:$0xff] }
 0xe45   :  { %27555 = vmatprep.subr.bf16.mxu1 %v37176_v15 }
 0xe46   :  { %27517 = vmatpush3.bf16.msra.mxu0 %v37136_v3 }
 0xe47   :  { %27519 = vmatprep.subr.bf16.mxu0 %v34464_v55 }
 0xe48   :  { %27557 = vmatpush3.bf16.msra.mxu1 %v37177_v2 }
 0xe49   :  { %27591 = vmatprep.subr.bf16.mxu1 %v37121_v28 }
 0xe4a   :  { %27521 = vmatpush3.bf16.msra.mxu0 %v34472_v58 }
 0xe4b   :  { %27523 = vmatprep.subr.bf16.mxu0 %v34487_v53 }
 0xe4e   :  { %27525 = vmatpush3.bf16.msra.mxu0 %v34509_v12 }
 0xe4f   :  { %27559 = vmatprep.subr.bf16.mxu0 %v37178_v4 }
 0xe92   :  { %v18365_v51 = vpop.f32.mrb[28].mxu1 }
 0xe93   :  { %v18394_v22 = vadd.f32 %v37179_v60, %v18365_v51  ;;  %v18367_v15 = vpop.f32.mrb[29].mxu1 }
 0xe94   :  { %v18395_v31 = vadd.f32 %v37180_v33, %v18367_v15 }
 0xe95   :  { %v34912_v50 = vmax.f32 %v18394_v22, 0.0 }
 0xe96   :  { %v34914_v19 = vmax.f32 %v18395_v31, 0.0  ;;  %v18373_v2 = vpop.f32.mrb[30].mxu1 }
 0xe97   :  { %37181 = vst [vmem:[#allocation48_spill] sm:$0xff] %v34912_v50  ;;  %v34917_v29 = vand.u32 4294901760, %v34912_v50  ;;  %v18396_v32 = vadd.f32 %v37179_v60, %v18373_v2  ;;  %v18375_v36 = vpop.f32.mrb[31].mxu1 }
 0xe98   :  { %37182 = vst [vmem:[#allocation46_spill] sm:$0xff] %v34914_v19  ;;  %v34921_v61 = vand.u32 4294901760, %v34914_v19  ;;  %v18397_v30 = vadd.f32 %v37180_v33, %v18375_v36 }
 0xe99   :  { %v34926_v51 = vsub.f32 %v34912_v50, %v34917_v29  ;;  %v34928_v22 = vmax.f32 %v18396_v32, 0.0 }
 0xe9a   :  { %v19455_v31 = vsub.f32 %v34914_v19, %v34921_v61  ;;  %v34932_v15 = vmax.f32 %v18397_v30, 0.0  ;;  %19710 = vmatprep.mubr.f32.mxu1 %v34921_v61 }
 0xe9b   :  { %37183 = vst [vmem:[#allocation42_spill] sm:$0xff] %v34928_v22  ;;  %v19462_v60 = vand.u32 4294901760, %v34926_v51  ;;  %v34937_v2 = vand.u32 4294901760, %v34928_v22  ;;  %19712 = vmatmul.mubr.f32.vlgmr.msra.gmra.mrb[44].mxu1 %v34917_v29 }
 0xe9c   :  { %37184 = vst [vmem:[#allocation127_spill] sm:$0xff] %v34932_v15  ;;  %v34941_v36 = vand.u32 4294901760, %v34932_v15  ;;  %27593 = vmatpush3.bf16.msra.mxu1 %v37126_v52  ;;  %v19456_v32 = vand.u32 4294901760, %v19455_v31 }
 0xe9d   :  { %37185 = vst [vmem:[#allocation128_spill] sm:$0xff] %v34937_v2  ;;  %v19463_v33 = vsub.f32 %v34926_v51, %v19462_v60  ;;  %v34947_v30 = vsub.f32 %v34928_v22, %v34937_v2  ;;  %27595 = vmatprep.subr.bf16.mxu1 %v37127_v20 }
 0xe9e   :  { %v34952_v19 = vsub.f32 %v34932_v15, %v34941_v36  ;;  %19717 = vmatprep.mubr.f32.mxu1 %v34941_v36  ;;  %v19457_v50 = vsub.f32 %v19455_v31, %v19456_v32 }
 0xe9f   :  { %19719 = vmatmul.mubr.f32.gmra.mrb[46].mxu1 %v34937_v2  ;;  %v19477_v14 = vand.u32 4294901760, %v34947_v30  ;;  %v19464_v4 = vand.u32 4294901760, %v19463_v33 }
 0xea0   :  { %27597 = vmatpush3.bf16.msra.mxu1 %v37128_v1  ;;  %19970 = vmatprep.mubr.f32.mxu1 %v19456_v32  ;;  %v19458_v11 = vand.u32 4294901760, %v19457_v50  ;;  %v19471_v22 = vand.u32 4294901760, %v34952_v19 }
 0xea1   :  { %27599 = vmatprep.subr.bf16.mxu1 %v37129_v41  ;;  %v19478_v10 = vsub.f32 %v34947_v30, %v19477_v14 }
 0xea2   :  { %19459 = vmatprep.mubr.f32.mxu0 %v19458_v11  ;;  %v19472_v15 = vsub.f32 %v34952_v19, %v19471_v22 }
 0xea3   :  { %19465 = vmatmul.mubr.f32.vlgmr.msra.gmra.mrb[44].mxu0 %v19464_v4  ;;  %v19479_v50 = vand.u32 4294901760, %v19478_v10 }
 0xea4   :  { %27561 = vmatpush3.bf16.msra.mxu0 %v34523_v8  ;;  %27601 = vmatpush3.bf16.msra.mxu1 %v37130_v6  ;;  %v19473_v2 = vand.u32 4294901760, %v19472_v15 }
 0xea5   :  { %27563 = vmatprep.subr.bf16.mxu0 %v34532_v49  ;;  %27603 = vmatprep.subr.bf16.mxu1 %v37131_v35 }
 0xea6   :  { %19474 = vmatprep.mubr.f32.mxu0 %v19473_v2 }
 0xea7   :  { %19480 = vmatmul.mubr.f32.gmra.mrb[46].mxu0 %v19479_v50  ;;  %v18439_v50 = vld [vmem:[%s35518_s18 + $0x8] sm:$0xff] }
 0xea8   :  { %27565 = vmatpush3.bf16.msra.mxu0 %v34538_v34  ;;  %27605 = vmatpush3.bf16.msra.mxu1 %v37132_v46 }
 0xea9   :  { %19854 = vmatprep.mubr.f32.mxu0 %v19455_v31  ;;  %27567 = vmatprep.subr.bf16.mxu0 %v34551_v21 }
 0xeaa   :  { %27607 = vmatprep.subr.bf16.mxu1 %v37133_v57 }
 0xeac   :  { %27569 = vmatpush3.bf16.msra.mxu0 %v34555_v18  ;;  %27609 = vmatpush3.bf16.msra.mxu1 %v37134_v9 }
 0xead   :  { %27571 = vmatprep.subr.bf16.mxu0 %v34563_v24  ;;  %27611 = vmatprep.subr.bf16.mxu1 %v37135_v26 }
 0xeb0   :  { %27573 = vmatpush3.bf16.msra.mxu0 %v34567_v0  ;;  %27613 = vmatpush3.bf16.msra.mxu1 %v37136_v3 }
 0xeb1   :  { %27575 = vmatprep.subr.bf16.mxu0 %v34573_v5  ;;  %27615 = vmatprep.subr.bf16.mxu1 %v34464_v55 }
 0xeb4   :  { %27577 = vmatpush3.bf16.msra.mxu0 %v34577_v39  ;;  %27617 = vmatpush3.bf16.msra.mxu1 %v34472_v58 }
 0xeb5   :  { %27579 = vmatprep.subr.bf16.mxu0 %v34585_v13  ;;  %27619 = vmatprep.subr.bf16.mxu1 %v34487_v53 }
 0xeb8   :  { %27581 = vmatpush3.bf16.msra.mxu0 %v34589_v59  ;;  %27621 = vmatpush3.bf16.msra.mxu1 %v34509_v12 }
 0xeb9   :  { %27583 = vmatprep.subr.bf16.mxu0 %v34597_v45  ;;  %27655 = vmatprep.subr.bf16.mxu1 %v37121_v28 }
 0xebb   :  { %19974 = vmatmul.mubr.f32.vlgmr.msra.gmra.mrb[48].mxu1 %v19462_v60 }
 0xebc   :  { %v24600_v11 = vpop.f32.mrb[32].mxu1  ;;  %27585 = vmatpush3.bf16.msra.mxu0 %v34602_v56  ;;  %19981 = vmatprep.mubr.f32.mxu1 %v19471_v22 }
 0xebd   :  { %v24601_v10 = vpop.f32.mrb[33].mxu1  ;;  %27657 = vmatpush3.bf16.msra.mxu1 %v37126_v52  ;;  %27587 = vmatprep.subr.bf16.mxu0 %v34607_v43 }
 0xebe   :  { %v24602_v4 = vadd.f32 %v24601_v10, %v24600_v11  ;;  %27659 = vmatprep.subr.bf16.mxu1 %v37127_v20 }
 0xebf   :  { %19985 = vmatmul.mubr.f32.gmra.mrb[50].mxu1 %v19477_v14 }
 0xec0   :  { %v24603_v31 = vpop.f32.mrb[34].mxu1  ;;  %27589 = vmatpush3.bf16.msra.mxu0 %v34612_v63  ;;  %20262 = vmatprep.mubr.f32.mxu1 %v34921_v61 }
 0xec1   :  { %v24604_v15 = vpop.f32.mrb[35].mxu1  ;;  %27661 = vmatpush3.bf16.msra.mxu1 %v37128_v1  ;;  %27623 = vmatprep.subr.bf16.mxu0 %v34797_v38 }
 0xec2   :  { %v24605_v60 = vadd.f32 %v24604_v15, %v24603_v31  ;;  %27663 = vmatprep.subr.bf16.mxu1 %v37129_v41 }
 0xec3   :  { %19857 = vmatmul.mubr.f32.vlgmr.msra.gmra.mrb[48].mxu0 %v34926_v51 }
 0xec4   :  { %v24562_v22 = vpop.f32.mrb[32].mxu0  ;;  %19863 = vmatprep.mubr.f32.mxu0 %v34952_v19  ;;  %27625 = vmatpush3.bf16.msra.mxu0 %v34806_v40 }
 0xec5   :  { %v24563_v14 = vpop.f32.mrb[33].mxu0  ;;  %27665 = vmatpush3.bf16.msra.mxu1 %v37130_v6  ;;  %27627 = vmatprep.subr.bf16.mxu0 %v34814_v17 }
 0xec6   :  { %v24564_v2 = vadd.f32 %v24563_v14, %v24562_v22  ;;  %27667 = vmatprep.subr.bf16.mxu1 %v37131_v35 }
 0xec7   :  { %19866 = vmatmul.mubr.f32.gmra.mrb[50].mxu0 %v34947_v30 }
 0xec8   :  { %v18796_v32 = vadd.f32 %v24602_v4, %v24564_v2  ;;  %v24565_v33 = vpop.f32.mrb[34].mxu0  ;;  %27629 = vmatpush3.bf16.msra.mxu0 %v34823_v48  ;;  %20151 = vmatprep.mubr.f32.mxu0 %v34921_v61  ;;  %v35013_v61 = vand.u32 4294901760, %v18439_v50  ;;  %v18438_v4 = vld [vmem:[%s35518_s18] sm:$0xff] }
 0xec9   :  { %v24566_v51 = vpop.f32.mrb[35].mxu0  ;;  %27669 = vmatpush3.bf16.msra.mxu1 %v37132_v46  ;;  %27631 = vmatprep.subr.bf16.mxu0 %v34831_v25  ;;  %v35041_v22 = vand.u32 4294901760, %v18438_v4 }
 0xeca   :  { %v24567_v19 = vadd.f32 %v24566_v51, %v24565_v33  ;;  %27671 = vmatprep.subr.bf16.mxu1 %v37133_v57  ;;  %37186 = vst [vmem:[#allocation69_spill] sm:$0xff] %v35013_v61  ;;  %v35020_v30 = vsub.f32 %v18439_v50, %v35013_v61  ;;  %v37191_v51 = vld [vmem:[#allocation128_spill] sm:$0xff]  ;;  %v37192_v50 = vld [vmem:[#allocation143_spill] sm:$0xff] }
 0xecb   :  { %37189 = vst [vmem:[#allocation163_spill] sm:$0xff] %v35041_v22 }
 0xecc   :  { %v18803_v11 = vadd.f32 %v24605_v60, %v24567_v19  ;;  %27633 = vmatpush3.bf16.msra.mxu0 %v34841_v23  ;;  %37187 = vst [vmem:[#allocation70_spill] sm:$0xff] %v35020_v30  ;;  %v35027_v10 = vand.u32 4294901760, %v35020_v30 }
 0xecd   :  { %27673 = vmatpush3.bf16.msra.mxu1 %v37134_v9  ;;  %27635 = vmatprep.subr.bf16.mxu0 %v34849_v44 }
 0xece   :  { %27675 = vmatprep.subr.bf16.mxu1 %v37135_v26  ;;  %37188 = vst [vmem:[#allocation162_spill] sm:$0xff] %v35027_v10  ;;  %v20374_v31 = vsub.f32 %v35020_v30, %v35027_v10 }
 0xed0   :  { %27637 = vmatpush3.bf16.msra.mxu0 %v34625_v16  ;;  %v35045_v2 = vand.u32 4294901760, %v20374_v31 }
 0xed1   :  { %27677 = vmatpush3.bf16.msra.mxu1 %v37136_v3  ;;  %27639 = vmatprep.subr.bf16.mxu0 %v34633_v62 }
 0xed2   :  { %27679 = vmatprep.subr.bf16.mxu1 %v34464_v55  ;;  %37190 = vst [vmem:[#allocation41_spill] sm:$0xff] %v35045_v2 }
 0xed4   :  { %27641 = vmatpush3.bf16.msra.mxu0 %v34639_v37 }
 0xed5   :  { %27681 = vmatpush3.bf16.msra.mxu1 %v34472_v58  ;;  %27643 = vmatprep.subr.bf16.mxu0 %v34647_v42 }
 0xed6   :  { %27683 = vmatprep.subr.bf16.mxu1 %v34487_v53 }
 0xed8   :  { %27645 = vmatpush3.bf16.msra.mxu0 %v34653_v7 }
 0xed9   :  { %27685 = vmatpush3.bf16.msra.mxu1 %v34509_v12  ;;  %27647 = vmatprep.subr.bf16.mxu0 %v34661_v47 }
 0xeda   :  { %20803 = vmatprep.subr.mxu1 %v35013_v61 }
 0xedc   :  { %v24676_v15 = vpop.f32.mrb[36].mxu1  ;;  %20264 = vmatmul.mubr.f32.vlgmr.msra.gmra.mrb[52].mxu1 %v34917_v29  ;;  %27649 = vmatpush3.bf16.msra.mxu0 %v34669_v54 }
 0xedd   :  { %v24677_v60 = vpop.f32.mrb[37].mxu1  ;;  %20269 = vmatprep.mubr.f32.mxu1 %v34941_v36  ;;  %27651 = vmatprep.subr.bf16.mxu0 %v34675_v27 }
 0xede   :  { %v24678_v14 = vadd.f32 %v24677_v60, %v24676_v15  ;;  %20805 = vmatpush1.msra.mxu1 %v35041_v22  ;;  %v37193_v15 = vmov 0.0  }
 0xedf   :  { %20896 = vmatprep.subr.mxu1 %v35045_v2 }
 0xee0   :  { %v24679_v33 = vpop.f32.mrb[38].mxu1  ;;  %20271 = vmatmul.mubr.f32.gmra.mrb[54].mxu1 %v37191_v51  ;;  %27653 = vmatpush3.bf16.msra.mxu0 %v37192_v50 }
 0xee1   :  { %v24680_v19 = vpop.f32.mrb[39].mxu1  ;;  %20283 = vmatprep.subr.mxu0 %v35013_v61  ;;  %20868 = vmatprep.mubr.f32.mxu1 %v37193_v15 }
 0xee2   :  { %v24681_v54 = vadd.f32 %v24680_v19, %v24679_v33 }
 0xee3   :  { %20153 = vmatmul.mubr.f32.vlgmr.msra.gmra.mrb[52].mxu0 %v34917_v29 }
 0xee4   :  { %v24638_v60 = vpop.f32.mrb[36].mxu0  ;;  %20158 = vmatprep.mubr.f32.mxu0 %v34941_v36  ;;  %20285 = vmatpush1.msra.mxu0 %v35041_v22 }
 0xee5   :  { %v24639_v31 = vpop.f32.mrb[37].mxu0  ;;  %20376 = vmatprep.subr.mxu0 %v35045_v2 }
 0xee6   :  { %v24640_v27 = vadd.f32 %v24639_v31, %v24638_v60 }
 0xee7   :  { %20160 = vmatmul.mubr.f32.gmra.mrb[54].mxu0 %v37191_v51  ;;  %v35060_v51 = vsub.f32 %v18438_v4, %v35041_v22 }
 0xee8   :  { %v18941_v47 = vadd.f32 %v24640_v27, %v18796_v32  ;;  %v24641_v7 = vpop.f32.mrb[38].mxu0  ;;  %20348 = vmatprep.mubr.f32.mxu0 %v37193_v15 }
 0xee9   :  { %v24642_v33 = vpop.f32.mrb[39].mxu0  ;;  %37194 = vst [vmem:[#allocation144_spill] sm:$0xff] %v35060_v51 }
 0xeea   :  { %v24643_v19 = vadd.f32 %v24642_v33, %v24641_v7  ;;  %v19058_v50 = vadd.f32 %v24678_v14, %v18941_v47 }
 0xeec   :  { %v18950_v42 = vadd.f32 %v24643_v19, %v18803_v11 }
 0xeee   :  { %v19069_v37 = vadd.f32 %v24681_v54, %v18950_v42  ;;  %v35064_v54 = vand.u32 4294901760, %v35060_v51 }
 0xef0   :  { %37195 = vst [vmem:[#allocation165_spill] sm:$0xff] %v35064_v54 }
 0xefd   :  { %v24752_v29 = vpop.f32.mrb[40].mxu1 }
 0xefe   :  { %v24753_v62 = vpop.f32.mrb[41].mxu1 }
 0xeff   :  { %v24754_v16 = vadd.f32 %v24753_v62, %v24752_v29  ;;  %v37197_v29 = vld [vmem:[#allocation173_spill] sm:$0xff] }
 0xf01   :  { %v24755_v36 = vpop.f32.mrb[42].mxu1 }
 0xf02   :  { %v24756_v44 = vpop.f32.mrb[43].mxu1 }
 0xf03   :  { %v24757_v23 = vadd.f32 %v24756_v44, %v24755_v36 }
 0xf04   :  { %v24714_v60 = vpop.f32.mrb[40].mxu0 }
 0xf05   :  { %v24715_v31 = vpop.f32.mrb[41].mxu0 }
 0xf06   :  { %v24716_v2 = vadd.f32 %v24715_v31, %v24714_v60 }
 0xf08   :  { %v19237_v27 = vadd.f32 %v24716_v2, %v19058_v50  ;;  %v24717_v32 = vpop.f32.mrb[42].mxu0  ;;  %v20380_v2 = vsub.f32 %v35060_v51, %v35064_v54 }
 0xf09   :  { %v24718_v25 = vpop.f32.mrb[43].mxu0 }
 0xf0a   :  { %v19348_v48 = vadd.f32 %v24754_v16, %v19237_v27  ;;  %v24719_v7 = vadd.f32 %v24718_v25, %v24717_v32  ;;  %v35069_v16 = vand.u32 4294901760, %v20380_v2 }
 0xf0c   :  { %v20277_v47 = vsel %vm1824_vm10, %v19348_v48, 0  ;;  %v19244_v42 = vadd.f32 %v24719_v7, %v19069_v37  ;;  %37196 = vst [vmem:[#allocation126_spill] sm:$0xff] %v35069_v16 }
 0xf0d   :  { %v20349_v62 = vand.u32 4294901760, %v20277_v47 }
 0xf0e   :  { %v19355_v11 = vadd.f32 %v24757_v23, %v19244_v42 }
 0xf0f   :  { %v20350_v44 = vsub.f32 %v20277_v47, %v20349_v62 }
 0xf10   :  { %v20280_v14 = vsel %vm1824_vm10, %v19355_v11, 0 }
 0xf11   :  { %v20351_v50 = vand.u32 4294901760, %v20350_v44  ;;  %v20360_v4 = vand.u32 4294901760, %v20280_v14 }
 0xf13   :  { %v20352_v33 = vsub.f32 %v20350_v44, %v20351_v50  ;;  %v20361_v19 = vsub.f32 %v20280_v14, %v20360_v4 }
 0xf15   :  { %v20353_v25 = vand.u32 4294901760, %v20352_v33  ;;  %v20362_v48 = vand.u32 4294901760, %v20361_v19 }
 0xf17   :  { %20354 = vmatmul.mubr.f32.vlgmr.msra.gmra.mrb[56].mxu0 %v20353_v25  ;;  %v20363_v37 = vsub.f32 %v20361_v19, %v20362_v48 }
 0xf18   :  { %20359 = vmatprep.mubr.f32.mxu0 %v37193_v15  ;;  %20382 = vmatpush1.msra.mxu0 %v35069_v16 }
 0xf19   :  { %v20364_v23 = vand.u32 4294901760, %v20363_v37  ;;  %20462 = vmatprep.subr.mxu0 %v35020_v30 }
 0xf1b   :  { %20365 = vmatmul.mubr.f32.gmra.mrb[58].mxu0 %v20364_v23 }
 0xf1c   :  { %20445 = vmatprep.mubr.f32.mxu0 %v37193_v15 }
 0xf1f   :  { %20447 = vmatmul.mubr.f32.vlgmr.msra.gmra.mrb[56].mxu0 %v20349_v62 }
 0xf20   :  { %20452 = vmatprep.mubr.f32.mxu0 %v37193_v15  ;;  %20465 = vmatpush1.msra.mxu0 %v35060_v51 }
 0xf21   :  { %20546 = vmatprep.subr.mxu0 %v35013_v61 }
 0xf23   :  { %20454 = vmatmul.mubr.f32.gmra.mrb[58].mxu0 %v20360_v4 }
 0xf24   :  { %20528 = vmatprep.mubr.f32.mxu0 %v37193_v15 }
 0xf27   :  { %20531 = vmatmul.mubr.f32.vlgmr.msra.gmra.mrb[56].mxu0 %v20350_v44 }
 0xf28   :  { %20536 = vmatprep.mubr.f32.mxu0 %v37193_v15  ;;  %20548 = vmatpush1.msra.mxu0 %v35041_v22 }
 0xf29   :  { %20633 = vmatprep.subr.mxu0 %v35027_v10 }
 0xf2b   :  { %20539 = vmatmul.mubr.f32.gmra.mrb[58].mxu0 %v20361_v19 }
 0xf2c   :  { %20611 = vmatprep.mubr.f32.mxu0 %v37193_v15 }
 0xf2f   :  { %20615 = vmatmul.mubr.f32.vlgmr.msra.gmra.mrb[56].mxu0 %v20351_v50 }
 0xf30   :  { %20620 = vmatprep.mubr.f32.mxu0 %v37193_v15  ;;  %20637 = vmatpush1.msra.mxu0 %v35064_v54 }
 0xf31   :  { %20716 = vmatprep.subr.mxu0 %v35013_v61 }
 0xf33   :  { %20624 = vmatmul.mubr.f32.gmra.mrb[58].mxu0 %v20362_v48 }
 0xf34   :  { %20700 = vmatprep.mubr.f32.mxu0 %v37193_v15 }
 0xf37   :  { %20702 = vmatmul.mubr.f32.vlgmr.msra.gmra.mrb[56].mxu0 %v20349_v62 }
 0xf38   :  { %20707 = vmatprep.mubr.f32.mxu0 %v37193_v15  ;;  %20718 = vmatpush1.msra.mxu0 %v35041_v22 }
 0xf39   :  { %27687 = vmatprep.subr.bf16.mxu0 %v37121_v28 }
 0xf3b   :  { %20709 = vmatmul.mubr.f32.gmra.mrb[58].mxu0 %v20360_v4 }
 0xf3c   :  { %20781 = vmatprep.mubr.f32.mxu0 %v37193_v15 }
 0xf3f   :  { %20783 = vmatmul.mubr.f32.vlgmr.msra.gmra.mrb[56].mxu0 %v20349_v62 }
 0xf40   :  { %20788 = vmatprep.mubr.f32.mxu0 %v37193_v15  ;;  %27689 = vmatpush3.bf16.msra.mxu0 %v37126_v52 }
 0xf41   :  { %27691 = vmatprep.subr.bf16.mxu0 %v37127_v20 }
 0xf43   :  { %20790 = vmatmul.mubr.f32.gmra.mrb[58].mxu0 %v20360_v4 }
 0xf44   :  { %27693 = vmatpush3.bf16.msra.mxu0 %v37128_v1 }
 0xf45   :  { %27695 = vmatprep.subr.bf16.mxu0 %v37129_v41 }
 0xf48   :  { %27697 = vmatpush3.bf16.msra.mxu0 %v37130_v6 }
 0xf49   :  { %27699 = vmatprep.subr.bf16.mxu0 %v37131_v35 }
 0xf4c   :  { %27701 = vmatpush3.bf16.msra.mxu0 %v37132_v46 }
 0xf4d   :  { %27703 = vmatprep.subr.bf16.mxu0 %v37133_v57 }
 0xf50   :  { %27705 = vmatpush3.bf16.msra.mxu0 %v37134_v9 }
 0xf51   :  { %27707 = vmatprep.subr.bf16.mxu0 %v37135_v26 }
 0xf54   :  { %27709 = vmatpush3.bf16.msra.mxu0 %v37136_v3 }
 0xf55   :  { %27711 = vmatprep.subr.bf16.mxu0 %v34464_v55 }
 0xf58   :  { %27713 = vmatpush3.bf16.msra.mxu0 %v34472_v58 }
 0xf59   :  { %27715 = vmatprep.subr.bf16.mxu0 %v34487_v53 }
 0xf5c   :  { %27717 = vmatpush3.bf16.msra.mxu0 %v34509_v12 }
 0xf5d   :  { %27751 = vmatprep.subr.bf16.mxu0 %v37197_v29 }
 0xf6e   :  { %v24828_v36 = vpop.f32.mrb[44].mxu1 }
 0xf6f   :  { %v24829_v60 = vpop.f32.mrb[45].mxu1 }
 0xf70   :  { %v24830_v31 = vadd.f32 %v24829_v60, %v24828_v36 }
 0xf72   :  { %v24831_v27 = vpop.f32.mrb[46].mxu1 }
 0xf73   :  { %v24832_v32 = vpop.f32.mrb[47].mxu1 }
 0xf74   :  { %v24833_v7 = vadd.f32 %v24832_v32, %v24831_v27 }
 0xf76   :  { %v24790_v47 = vpop.f32.mrb[44].mxu0 }
 0xf77   :  { %v24791_v42 = vpop.f32.mrb[45].mxu0 }
 0xf78   :  { %v24792_v62 = vadd.f32 %v24791_v42, %v24790_v47 }
 0xf7a   :  { %v19714_v11 = vadd.f32 %v24830_v31, %v24792_v62  ;;  %v24793_v44 = vpop.f32.mrb[46].mxu0 }
 0xf7b   :  { %v24794_v14 = vpop.f32.mrb[47].mxu0 }
 0xf7c   :  { %v24795_v2 = vadd.f32 %v24794_v14, %v24793_v44 }
 0xf7e   :  { %v19721_v50 = vadd.f32 %v24833_v7, %v24795_v2 }
 0xf8e   :  { %v24904_v4 = vpop.f32.mrb[48].mxu1 }
 0xf8f   :  { %v24905_v33 = vpop.f32.mrb[49].mxu1 }
 0xf90   :  { %v24906_v19 = vadd.f32 %v24905_v33, %v24904_v4 }
 0xf92   :  { %v24907_v25 = vpop.f32.mrb[50].mxu1 }
 0xf93   :  { %v24908_v48 = vpop.f32.mrb[51].mxu1 }
 0xf94   :  { %v24909_v37 = vadd.f32 %v24908_v48, %v24907_v25 }
 0xf96   :  { %v24866_v23 = vpop.f32.mrb[48].mxu0 }
 0xf97   :  { %v24867_v29 = vpop.f32.mrb[49].mxu0 }
 0xf98   :  { %v24868_v36 = vadd.f32 %v24867_v29, %v24866_v23 }
 0xf9a   :  { %v19859_v60 = vadd.f32 %v24868_v36, %v19714_v11  ;;  %v24869_v17 = vpop.f32.mrb[50].mxu0 }
 0xf9b   :  { %v24870_v27 = vpop.f32.mrb[51].mxu0 }
 0xf9c   :  { %v24871_v32 = vadd.f32 %v24870_v27, %v24869_v17  ;;  %v19976_v40 = vadd.f32 %v24906_v19, %v19859_v60 }
 0xf9e   :  { %v19868_v47 = vadd.f32 %v24871_v32, %v19721_v50 }
 0xfa0   :  { %v19987_v31 = vadd.f32 %v24909_v37, %v19868_v47 }
 0xfaf   :  { %v24980_v42 = vpop.f32.mrb[52].mxu1 }
 0xfb0   :  { %v24981_v62 = vpop.f32.mrb[53].mxu1 }
 0xfb1   :  { %v24982_v44 = vadd.f32 %v24981_v62, %v24980_v42 }
 0xfb3   :  { %v24983_v7 = vpop.f32.mrb[54].mxu1 }
 0xfb4   :  { %v24984_v14 = vpop.f32.mrb[55].mxu1 }
 0xfb5   :  { %v24985_v2 = vadd.f32 %v24984_v14, %v24983_v7  ;;  %v37201_v7 = vld [vmem:[#allocation169_spill] sm:$0xff]  ;;  %v37202_v14 = vld [vmem:[#allocation50_spill] sm:$0xff] }
 0xfb6   :  { %v24942_v4 = vpop.f32.mrb[52].mxu0 }
 0xfb7   :  { %v24943_v33 = vpop.f32.mrb[53].mxu0 }
 0xfb8   :  { %v24944_v38 = vadd.f32 %v24943_v33, %v24942_v4  ;;  %v37204_v4 = vld [vmem:[#allocation60_spill] sm:$0xff]  ;;  %v37205_v33 = vld [vmem:[#allocation61_spill] sm:$0xff] }
 0xfba   :  { %v20155_v25 = vadd.f32 %v24944_v38, %v19976_v40  ;;  %v24945_v48 = vpop.f32.mrb[54].mxu0  ;;  %v37198_v40 = vld [vmem:[#allocation77_spill] sm:$0xff] }
 0xfbb   :  { %v24946_v63 = vpop.f32.mrb[55].mxu0 }
 0xfbc   :  { %v20266_v29 = vadd.f32 %v24982_v44, %v20155_v25  ;;  %v24947_v11 = vadd.f32 %v24946_v63, %v24945_v48  ;;  %v37200_v44 = vld [vmem:[#allocation151_spill] sm:$0xff]  ;;  %v37207_v48 = vld [vmem:[#allocation92_spill] sm:$0xff] }
 0xfbd   :  { %v37206_v25 = vld [vmem:[#allocation171_spill] sm:$0xff] }
 0xfbe   :  { %v20797_v23 = vsel %vm1824_vm10, %v20266_v29, 0  ;;  %v20162_v17 = vadd.f32 %v24947_v11, %v19987_v31  ;;  %v37199_v31 = vld [vmem:[#allocation150_spill] sm:$0xff]  ;;  %v37209_v11 = vld [vmem:[#allocation59_spill] sm:$0xff] }
 0xfbf   :  { %v20869_v19 = vand.u32 4294901760, %v20797_v23  ;;  %v37208_v29 = vld [vmem:[#allocation62_spill] sm:$0xff] }
 0xfc0   :  { %v20273_v50 = vadd.f32 %v24985_v2, %v20162_v17  ;;  %v37203_v2 = vld [vmem:[#allocation85_spill] sm:$0xff]  ;;  %v37211_v17 = vld [vmem:[#allocation174_spill] sm:$0xff] }
 0xfc1   :  { %v20870_v37 = vsub.f32 %v20797_v23, %v20869_v19  ;;  %v37210_v23 = vld [vmem:[#allocation63_spill] sm:$0xff] }
 0xfc2   :  { %v20800_v36 = vsel %vm1824_vm10, %v20273_v50, 0  ;;  %v37213_v50 = vld [vmem:[#allocation97_spill] sm:$0xff] }
 0xfc3   :  { %v20871_v60 = vand.u32 4294901760, %v20870_v37  ;;  %v20880_v27 = vand.u32 4294901760, %v20800_v36 }
 0xfc5   :  { %v20872_v32 = vsub.f32 %v20870_v37, %v20871_v60  ;;  %v20881_v47 = vsub.f32 %v20800_v36, %v20880_v27  ;;  %v37214_v36 = vld [vmem:[#allocation112_spill] sm:$0xff] }
 0xfc7   :  { %v20873_v42 = vand.u32 4294901760, %v20872_v32  ;;  %v20882_v62 = vand.u32 4294901760, %v20881_v47  ;;  %v37216_v32 = vld [vmem:[#allocation54_spill] sm:$0xff] }
 0xfc9   :  { %20874 = vmatmul.mubr.f32.vlgmr.msra.gmra.mrb[56].mxu1 %v20873_v42  ;;  %v20883_v38 = vsub.f32 %v20881_v47, %v20882_v62 }
 0xfca   :  { %20879 = vmatprep.mubr.f32.mxu1 %v37193_v15  ;;  %20902 = vmatpush1.msra.mxu1 %v35069_v16 }
 0xfcb   :  { %v20884_v63 = vand.u32 4294901760, %v20883_v38  ;;  %20982 = vmatprep.subr.mxu1 %v35020_v30 }
 0xfcd   :  { %20885 = vmatmul.mubr.f32.gmra.mrb[58].mxu1 %v20884_v63 }
 0xfce   :  { %20965 = vmatprep.mubr.f32.mxu1 %v37193_v15 }
 0xfd1   :  { %20967 = vmatmul.mubr.f32.vlgmr.msra.gmra.mrb[56].mxu1 %v20869_v19 }
 0xfd2   :  { %20972 = vmatprep.mubr.f32.mxu1 %v37193_v15  ;;  %20985 = vmatpush1.msra.mxu1 %v35060_v51 }
 0xfd3   :  { %21066 = vmatprep.subr.mxu1 %v35013_v61 }
 0xfd5   :  { %20974 = vmatmul.mubr.f32.gmra.mrb[58].mxu1 %v20880_v27 }
 0xfd6   :  { %21048 = vmatprep.mubr.f32.mxu1 %v37193_v15 }
 0xfd9   :  { %21051 = vmatmul.mubr.f32.vlgmr.msra.gmra.mrb[56].mxu1 %v20870_v37 }
 0xfda   :  { %21056 = vmatprep.mubr.f32.mxu1 %v37193_v15  ;;  %21068 = vmatpush1.msra.mxu1 %v35041_v22 }
 0xfdb   :  { %21153 = vmatprep.subr.mxu1 %v35027_v10 }
 0xfdd   :  { %21059 = vmatmul.mubr.f32.gmra.mrb[58].mxu1 %v20881_v47 }
 0xfde   :  { %21131 = vmatprep.mubr.f32.mxu1 %v37193_v15 }
 0xfe1   :  { %21135 = vmatmul.mubr.f32.vlgmr.msra.gmra.mrb[56].mxu1 %v20871_v60 }
 0xfe2   :  { %21140 = vmatprep.mubr.f32.mxu1 %v37193_v15  ;;  %21157 = vmatpush1.msra.mxu1 %v35064_v54  ;;  %v37218_v54 = vld [vmem:[#allocation176_spill] sm:$0xff] }
 0xfe3   :  { %21236 = vmatprep.subr.mxu1 %v35013_v61 }
 0xfe5   :  { %21144 = vmatmul.mubr.f32.gmra.mrb[58].mxu1 %v20882_v62 }
 0xfe6   :  { %21220 = vmatprep.mubr.f32.mxu1 %v37193_v15 }
 0xfe9   :  { %21222 = vmatmul.mubr.f32.vlgmr.msra.gmra.mrb[56].mxu1 %v20869_v19 }
 0xfea   :  { %21227 = vmatprep.mubr.f32.mxu1 %v37193_v15  ;;  %21238 = vmatpush1.msra.mxu1 %v35041_v22 }
 0xfeb   :  { %27719 = vmatprep.subr.bf16.mxu1 %v37198_v40 }
 0xfed   :  { %21229 = vmatmul.mubr.f32.gmra.mrb[58].mxu1 %v20880_v27 }
 0xfee   :  { %21301 = vmatprep.mubr.f32.mxu1 %v37193_v15 }
 0xff1   :  { %21303 = vmatmul.mubr.f32.vlgmr.msra.gmra.mrb[56].mxu1 %v20869_v19  ;;  %v37212_v19 = vld [vmem:[#allocation96_spill] sm:$0xff] }
 0xff2   :  { %21308 = vmatprep.mubr.f32.mxu1 %v37193_v15  ;;  %27721 = vmatpush3.bf16.msra.mxu1 %v37199_v31 }
 0xff3   :  { %27723 = vmatprep.subr.bf16.mxu1 %v37200_v44 }
 0xff5   :  { %21310 = vmatmul.mubr.f32.gmra.mrb[58].mxu1 %v20880_v27 }
 0xff6   :  { %27725 = vmatpush3.bf16.msra.mxu1 %v37201_v7 }
 0xff7   :  { %27727 = vmatprep.subr.bf16.mxu1 %v37202_v14 }
 0xffa   :  { %27729 = vmatpush3.bf16.msra.mxu1 %v37203_v2 }
 0xffb   :  { %27731 = vmatprep.subr.bf16.mxu1 %v37204_v4 }
 0xffe   :  { %27733 = vmatpush3.bf16.msra.mxu1 %v37205_v33 }
 0xfff   :  { %27735 = vmatprep.subr.bf16.mxu1 %v37206_v25 }
0x1002   :  { %27737 = vmatpush3.bf16.msra.mxu1 %v37207_v48 }
0x1003   :  { %27739 = vmatprep.subr.bf16.mxu1 %v37208_v29 }
0x1006   :  { %27741 = vmatpush3.bf16.msra.mxu1 %v37209_v11 }
0x1007   :  { %27743 = vmatprep.subr.bf16.mxu1 %v37210_v23 }
0x100a   :  { %27745 = vmatpush3.bf16.msra.mxu1 %v37211_v17 }
0x100b   :  { %27747 = vmatprep.subr.bf16.mxu1 %v37212_v19 }
0x100e   :  { %27749 = vmatpush3.bf16.msra.mxu1 %v37213_v50 }
0x100f   :  { %27783 = vmatprep.subr.bf16.mxu1 %v37121_v28 }
0x1012   :  { %v20784_v37 = vpop.f32.mrb[56].mxu0 }
0x1013   :  { %v35148_v60 = vsub.f32 %v37214_v36, %v20784_v37  ;;  %v20786_v27 = vpop.f32.mrb[57].mxu0  ;;  %v37220_v37 = vld [vmem:[#allocation177_spill] sm:$0xff] }
0x1014   :  { %v35151_v47 = vsub.f32 %v37216_v32, %v20786_v27 }
0x1015   :  { %37215 = vst [vmem:[#allocation145_spill] sm:$0xff] %v35148_v60  ;;  %v21324_v42 = vmul.f32 %v35148_v60, %v35148_v60 }
0x1016   :  { %37217 = vst [vmem:[#allocation148_spill] sm:$0xff] %v35151_v47  ;;  %v21325_v62 = vmul.f32 %v35151_v47, %v35151_v47  ;;  %v20791_v38 = vpop.f32.mrb[58].mxu0 }
0x1017   :  { %v35157_v63 = vand.u32 4294901760, %v21324_v42  ;;  %v35160_v10 = vsub.f32 %v37218_v54, %v20791_v38  ;;  %v20793_v51 = vpop.f32.mrb[59].mxu0 }
0x1018   :  { %v35162_v30 = vand.u32 4294901760, %v21325_v62  ;;  %v35165_v36 = vsub.f32 %v37220_v37, %v20793_v51 }
0x1019   :  { %37219 = vst [vmem:[#allocation56_spill] sm:$0xff] %v35160_v10  ;;  %v35168_v27 = vsub.f32 %v21324_v42, %v35157_v63  ;;  %v21326_v32 = vmul.f32 %v35160_v10, %v35160_v10 }
0x101a   :  { %37221 = vst [vmem:[#allocation149_spill] sm:$0xff] %v35165_v36  ;;  %v21429_v47 = vsub.f32 %v21325_v62, %v35162_v30  ;;  %v21327_v60 = vmul.f32 %v35165_v36, %v35165_v36  ;;  %21684 = vmatprep.mubr.f32.mxu1 %v35162_v30 }
0x101b   :  { %v21436_v54 = vand.u32 4294901760, %v35168_v27  ;;  %v35177_v38 = vand.u32 4294901760, %v21326_v32  ;;  %21686 = vmatmul.mubr.f32.vlgmr.msra.gmra.mrb[60].mxu1 %v35157_v63 }
0x101c   :  { %v35180_v51 = vand.u32 4294901760, %v21327_v60  ;;  %27785 = vmatpush3.bf16.msra.mxu1 %v37126_v52  ;;  %v21430_v42 = vand.u32 4294901760, %v21429_v47 }
0x101d   :  { %v21437_v37 = vsub.f32 %v35168_v27, %v21436_v54  ;;  %v35185_v62 = vsub.f32 %v21326_v32, %v35177_v38  ;;  %27787 = vmatprep.subr.bf16.mxu1 %v37127_v20 }
0x101e   :  { %v21444_v36 = vsub.f32 %v21327_v60, %v35180_v51  ;;  %21691 = vmatprep.mubr.f32.mxu1 %v35180_v51  ;;  %v21431_v10 = vsub.f32 %v21429_v47, %v21430_v42 }
0x101f   :  { %21693 = vmatmul.mubr.f32.gmra.mrb[62].mxu1 %v35177_v38  ;;  %v21451_v16 = vand.u32 4294901760, %v35185_v62  ;;  %v21438_v61 = vand.u32 4294901760, %v21437_v37  ;;  %v37233_v37 = vld [vmem:[#allocation101_spill] sm:$0xff] }
0x1020   :  { %27789 = vmatpush3.bf16.msra.mxu1 %v37128_v1  ;;  %21944 = vmatprep.mubr.f32.mxu1 %v21430_v42  ;;  %v21432_v15 = vand.u32 4294901760, %v21431_v10  ;;  %v21445_v22 = vand.u32 4294901760, %v21444_v36  ;;  %v37223_v10 = vld [vmem:[#allocation113_spill] sm:$0xff] }
0x1021   :  { %27791 = vmatprep.subr.bf16.mxu1 %v37129_v41  ;;  %v21452_v32 = vsub.f32 %v35185_v62, %v21451_v16 }
0x1022   :  { %21433 = vmatprep.mubr.f32.mxu0 %v21432_v15  ;;  %v21446_v50 = vsub.f32 %v21444_v36, %v21445_v22  ;;  %v37225_v15 = vld [vmem:[#allocation49_spill] sm:$0xff] }
0x1023   :  { %21439 = vmatmul.mubr.f32.vlgmr.msra.gmra.mrb[60].mxu0 %v21438_v61  ;;  %v21453_v42 = vand.u32 4294901760, %v21452_v32  ;;  %v37222_v61 = vld [vmem:[#allocation53_spill] sm:$0xff]  ;;  %v37235_v32 = vld [vmem:[#allocation106_spill] sm:$0xff] }
0x1024   :  { %27753 = vmatpush3.bf16.msra.mxu0 %v34523_v8  ;;  %27793 = vmatpush3.bf16.msra.mxu1 %v37130_v6  ;;  %v21447_v60 = vand.u32 4294901760, %v21446_v50  ;;  %v37227_v50 = vld [vmem:[#allocation178_spill] sm:$0xff] }
0x1025   :  { %27755 = vmatprep.subr.bf16.mxu0 %v34532_v49  ;;  %27795 = vmatprep.subr.bf16.mxu1 %v37131_v35 }
0x1026   :  { %21448 = vmatprep.mubr.f32.mxu0 %v21447_v60  ;;  %v37236_v60 = vld [vmem:[#allocation52_spill] sm:$0xff] }
0x1027   :  { %21454 = vmatmul.mubr.f32.gmra.mrb[62].mxu0 %v21453_v42  ;;  %v37237_v42 = vld [vmem:[#allocation43_spill] sm:$0xff] }
0x1028   :  { %27757 = vmatpush3.bf16.msra.mxu0 %v34538_v34  ;;  %27797 = vmatpush3.bf16.msra.mxu1 %v37132_v46 }
0x1029   :  { %21828 = vmatprep.mubr.f32.mxu0 %v21429_v47  ;;  %27759 = vmatprep.subr.bf16.mxu0 %v34551_v21  ;;  %v37228_v47 = vld [vmem:[#allocation124_spill] sm:$0xff] }
0x102a   :  { %27799 = vmatprep.subr.bf16.mxu1 %v37133_v57 }
0x102c   :  { %27761 = vmatpush3.bf16.msra.mxu0 %v34555_v18  ;;  %27801 = vmatpush3.bf16.msra.mxu1 %v37134_v9 }
0x102d   :  { %27763 = vmatprep.subr.bf16.mxu0 %v34563_v24  ;;  %27803 = vmatprep.subr.bf16.mxu1 %v37135_v26 }
0x1030   :  { %27765 = vmatpush3.bf16.msra.mxu0 %v34567_v0  ;;  %27805 = vmatpush3.bf16.msra.mxu1 %v37136_v3 }
0x1031   :  { %27767 = vmatprep.subr.bf16.mxu0 %v34573_v5  ;;  %27807 = vmatprep.subr.bf16.mxu1 %v34464_v55 }
0x1034   :  { %27769 = vmatpush3.bf16.msra.mxu0 %v34577_v39  ;;  %27809 = vmatpush3.bf16.msra.mxu1 %v34472_v58 }
0x1035   :  { %27771 = vmatprep.subr.bf16.mxu0 %v34585_v13  ;;  %27811 = vmatprep.subr.bf16.mxu1 %v34487_v53 }
0x1038   :  { %27773 = vmatpush3.bf16.msra.mxu0 %v34589_v59  ;;  %27813 = vmatpush3.bf16.msra.mxu1 %v34509_v12 }
0x1039   :  { %27775 = vmatprep.subr.bf16.mxu0 %v34597_v45  ;;  %27847 = vmatprep.subr.bf16.mxu1 %v37121_v28 }
0x103b   :  { %21948 = vmatmul.mubr.f32.vlgmr.msra.gmra.mrb[64].mxu1 %v21436_v54  ;;  %v37231_v54 = vld [vmem:[#allocation175_spill] sm:$0xff] }
0x103c   :  { %27777 = vmatpush3.bf16.msra.mxu0 %v34602_v56  ;;  %21955 = vmatprep.mubr.f32.mxu1 %v21445_v22  ;;  %v37224_v22 = vld [vmem:[#allocation114_spill] sm:$0xff] }
0x103d   :  { %27849 = vmatpush3.bf16.msra.mxu1 %v37126_v52  ;;  %27779 = vmatprep.subr.bf16.mxu0 %v34607_v43 }
0x103e   :  { %27851 = vmatprep.subr.bf16.mxu1 %v37127_v20 }
0x103f   :  { %21959 = vmatmul.mubr.f32.gmra.mrb[66].mxu1 %v21451_v16  ;;  %v37226_v16 = vld [vmem:[#allocation44_spill] sm:$0xff] }
0x1040   :  { %27781 = vmatpush3.bf16.msra.mxu0 %v37222_v61  ;;  %22236 = vmatprep.mubr.f32.mxu1 %v35162_v30 }
0x1041   :  { %27853 = vmatpush3.bf16.msra.mxu1 %v37128_v1  ;;  %27815 = vmatprep.subr.bf16.mxu0 %v37223_v10 }
0x1042   :  { %27855 = vmatprep.subr.bf16.mxu1 %v37129_v41 }
0x1043   :  { %21831 = vmatmul.mubr.f32.vlgmr.msra.gmra.mrb[64].mxu0 %v35168_v27  ;;  %v37230_v27 = vld [vmem:[#allocation65_spill] sm:$0xff] }
0x1044   :  { %21837 = vmatprep.mubr.f32.mxu0 %v21444_v36  ;;  %27817 = vmatpush3.bf16.msra.mxu0 %v37224_v22  ;;  %v37229_v36 = vld [vmem:[#allocation39_spill] sm:$0xff] }
0x1045   :  { %27857 = vmatpush3.bf16.msra.mxu1 %v37130_v6  ;;  %27819 = vmatprep.subr.bf16.mxu0 %v37225_v15 }
0x1046   :  { %27859 = vmatprep.subr.bf16.mxu1 %v37131_v35 }
0x1047   :  { %21840 = vmatmul.mubr.f32.gmra.mrb[66].mxu0 %v35185_v62  ;;  %v37234_v62 = vld [vmem:[#allocation102_spill] sm:$0xff] }
0x1048   :  { %27821 = vmatpush3.bf16.msra.mxu0 %v37226_v16  ;;  %22125 = vmatprep.mubr.f32.mxu0 %v35162_v30  ;;  %v37232_v30 = vld [vmem:[#allocation40_spill] sm:$0xff] }
0x1049   :  { %27861 = vmatpush3.bf16.msra.mxu1 %v37132_v46  ;;  %27823 = vmatprep.subr.bf16.mxu0 %v37227_v50 }
0x104a   :  { %27863 = vmatprep.subr.bf16.mxu1 %v37133_v57 }
0x104c   :  { %27825 = vmatpush3.bf16.msra.mxu0 %v37228_v47 }
0x104d   :  { %27865 = vmatpush3.bf16.msra.mxu1 %v37134_v9  ;;  %27827 = vmatprep.subr.bf16.mxu0 %v37229_v36 }
0x104e   :  { %27867 = vmatprep.subr.bf16.mxu1 %v37135_v26 }
0x1050   :  { %27829 = vmatpush3.bf16.msra.mxu0 %v37230_v27 }
0x1051   :  { %27869 = vmatpush3.bf16.msra.mxu1 %v37136_v3  ;;  %27831 = vmatprep.subr.bf16.mxu0 %v37231_v54 }
0x1052   :  { %27871 = vmatprep.subr.bf16.mxu1 %v34464_v55 }
0x1054   :  { %27833 = vmatpush3.bf16.msra.mxu0 %v37232_v30 }
0x1055   :  { %27873 = vmatpush3.bf16.msra.mxu1 %v34472_v58  ;;  %27835 = vmatprep.subr.bf16.mxu0 %v37233_v37 }
0x1056   :  { %27875 = vmatprep.subr.bf16.mxu1 %v34487_v53 }
0x1058   :  { %27837 = vmatpush3.bf16.msra.mxu0 %v37234_v62  ;;  %v37238_v62 = vld [vmem:[#allocation143_spill] sm:$0xff] }
0x1059   :  { %27877 = vmatpush3.bf16.msra.mxu1 %v34509_v12  ;;  %27839 = vmatprep.subr.bf16.mxu0 %v37235_v32 }
0x105a   :  { %27911 = vmatprep.subr.bf16.mxu1 %v37198_v40  ;;  %v37239_v40 = vld [vmem:[#allocation97_spill] sm:$0xff] }
0x105c   :  { %22238 = vmatmul.mubr.f32.vlgmr.msra.gmra.mrb[68].mxu1 %v35157_v63  ;;  %27841 = vmatpush3.bf16.msra.mxu0 %v37236_v60 }
0x105d   :  { %22243 = vmatprep.mubr.f32.mxu1 %v35180_v51  ;;  %27843 = vmatprep.subr.bf16.mxu0 %v37237_v42 }
0x105e   :  { %27913 = vmatpush3.bf16.msra.mxu1 %v37199_v31  ;;  %v37240_v31 = vld [vmem:[#allocation173_spill] sm:$0xff] }
0x105f   :  { %27915 = vmatprep.subr.bf16.mxu1 %v37200_v44 }
0x1060   :  { %22245 = vmatmul.mubr.f32.gmra.mrb[70].mxu1 %v35177_v38  ;;  %27845 = vmatpush3.bf16.msra.mxu0 %v37238_v62 }
0x1061   :  { %27879 = vmatprep.subr.bf16.mxu0 %v37121_v28 }
0x1062   :  { %27917 = vmatpush3.bf16.msra.mxu1 %v37201_v7  ;;  %v37241_v7 = vld [vmem:[#allocation48_spill] sm:$0xff] }
0x1063   :  { %22127 = vmatmul.mubr.f32.vlgmr.msra.gmra.mrb[68].mxu0 %v35157_v63  ;;  %27919 = vmatprep.subr.bf16.mxu1 %v37202_v14 }
0x1064   :  { %22132 = vmatprep.mubr.f32.mxu0 %v35180_v51  ;;  %27881 = vmatpush3.bf16.msra.mxu0 %v37126_v52 }
0x1065   :  { %27883 = vmatprep.subr.bf16.mxu0 %v37127_v20 }
0x1066   :  { %27921 = vmatpush3.bf16.msra.mxu1 %v37203_v2 }
0x1067   :  { %22134 = vmatmul.mubr.f32.gmra.mrb[70].mxu0 %v35177_v38  ;;  %27923 = vmatprep.subr.bf16.mxu1 %v37204_v4  ;;  %v37243_v4 = vld [vmem:[#allocation46_spill] sm:$0xff]  ;;  %v37247_v38 = vld [vmem:[#allocation127_spill] sm:$0xff] }
0x1068   :  { %27885 = vmatpush3.bf16.msra.mxu0 %v37128_v1 }
0x1069   :  { %27887 = vmatprep.subr.bf16.mxu0 %v37129_v41 }
0x106a   :  { %27925 = vmatpush3.bf16.msra.mxu1 %v37205_v33 }
0x106b   :  { %27927 = vmatprep.subr.bf16.mxu1 %v37206_v25 }
0x106c   :  { %27889 = vmatpush3.bf16.msra.mxu0 %v37130_v6 }
0x106d   :  { %27891 = vmatprep.subr.bf16.mxu0 %v37131_v35 }
0x106e   :  { %27929 = vmatpush3.bf16.msra.mxu1 %v37207_v48 }
0x106f   :  { %27931 = vmatprep.subr.bf16.mxu1 %v37208_v29 }
0x1070   :  { %27893 = vmatpush3.bf16.msra.mxu0 %v37132_v46 }
0x1071   :  { %27895 = vmatprep.subr.bf16.mxu0 %v37133_v57 }
0x1072   :  { %27933 = vmatpush3.bf16.msra.mxu1 %v37209_v11 }
0x1073   :  { %27935 = vmatprep.subr.bf16.mxu1 %v37210_v23  ;;  %v37245_v23 = vld [vmem:[#allocation42_spill] sm:$0xff] }
0x1074   :  { %27897 = vmatpush3.bf16.msra.mxu0 %v37134_v9 }
0x1075   :  { %27899 = vmatprep.subr.bf16.mxu0 %v37135_v26 }
0x1076   :  { %27937 = vmatpush3.bf16.msra.mxu1 %v37211_v17 }
0x1077   :  { %27939 = vmatprep.subr.bf16.mxu1 %v37212_v19 }
0x1078   :  { %27901 = vmatpush3.bf16.msra.mxu0 %v37136_v3 }
0x1079   :  { %27903 = vmatprep.subr.bf16.mxu0 %v34464_v55 }
0x107a   :  { %27941 = vmatpush3.bf16.msra.mxu1 %v37239_v40 }
0x107b   :  { %27975 = vmatprep.subr.bf16.mxu1 %v37121_v28 }
0x107c   :  { %27905 = vmatpush3.bf16.msra.mxu0 %v34472_v58 }
0x107d   :  { %27907 = vmatprep.subr.bf16.mxu0 %v34487_v53 }
0x1080   :  { %27909 = vmatpush3.bf16.msra.mxu0 %v34509_v12 }
0x1081   :  { %27943 = vmatprep.subr.bf16.mxu0 %v37240_v31 }
0x10c4   :  { %v21304_v44 = vpop.f32.mrb[56].mxu1 }
0x10c5   :  { %v35298_v14 = vsub.f32 %v37241_v7, %v21304_v44  ;;  %v21306_v2 = vpop.f32.mrb[57].mxu1 }
0x10c6   :  { %v35301_v33 = vsub.f32 %v37243_v4, %v21306_v2 }
0x10c7   :  { %37242 = vst [vmem:[#allocation166_spill] sm:$0xff] %v35298_v14  ;;  %v21328_v25 = vmul.f32 %v35298_v14, %v35298_v14 }
0x10c8   :  { %37244 = vst [vmem:[#allocation152_spill] sm:$0xff] %v35301_v33  ;;  %v21329_v48 = vmul.f32 %v35301_v33, %v35301_v33  ;;  %v21311_v29 = vpop.f32.mrb[58].mxu1 }
0x10c9   :  { %v35307_v11 = vand.u32 4294901760, %v21328_v25  ;;  %v35310_v17 = vsub.f32 %v37245_v23, %v21311_v29  ;;  %v21313_v19 = vpop.f32.mrb[59].mxu1 }
0x10ca   :  { %v35312_v63 = vand.u32 4294901760, %v21329_v48  ;;  %v35315_v51 = vsub.f32 %v37247_v38, %v21313_v19 }
0x10cb   :  { %37246 = vst [vmem:[#allocation164_spill] sm:$0xff] %v35310_v17  ;;  %v35318_v40 = vsub.f32 %v21328_v25, %v35307_v11  ;;  %v21330_v31 = vmul.f32 %v35310_v17, %v35310_v17 }
0x10cc   :  { %37248 = vst [vmem:[#allocation153_spill] sm:$0xff] %v35315_v51  ;;  %v22347_v44 = vsub.f32 %v21329_v48, %v35312_v63  ;;  %v21331_v7 = vmul.f32 %v35315_v51, %v35315_v51  ;;  %22602 = vmatprep.mubr.f32.mxu1 %v35312_v63 }
0x10cd   :  { %v22354_v2 = vand.u32 4294901760, %v35318_v40  ;;  %v35327_v4 = vand.u32 4294901760, %v21330_v31  ;;  %22604 = vmatmul.mubr.f32.vlgmr.msra.gmra.mrb[72].mxu1 %v35307_v11 }
0x10ce   :  { %v35330_v29 = vand.u32 4294901760, %v21331_v7  ;;  %27977 = vmatpush3.bf16.msra.mxu1 %v37126_v52  ;;  %v22348_v25 = vand.u32 4294901760, %v22347_v44 }
0x10cf   :  { %v22355_v23 = vsub.f32 %v35318_v40, %v22354_v2  ;;  %v35335_v48 = vsub.f32 %v21330_v31, %v35327_v4  ;;  %27979 = vmatprep.subr.bf16.mxu1 %v37127_v20 }
0x10d0   :  { %v35339_v19 = vsub.f32 %v21331_v7, %v35330_v29  ;;  %22609 = vmatprep.mubr.f32.mxu1 %v35330_v29  ;;  %v22349_v38 = vsub.f32 %v22347_v44, %v22348_v25 }
0x10d1   :  { %22611 = vmatmul.mubr.f32.gmra.mrb[74].mxu1 %v35327_v4  ;;  %v22369_v51 = vand.u32 4294901760, %v35335_v48  ;;  %v22356_v31 = vand.u32 4294901760, %v22355_v23 }
0x10d2   :  { %27981 = vmatpush3.bf16.msra.mxu1 %v37128_v1  ;;  %22862 = vmatprep.mubr.f32.mxu1 %v22348_v25  ;;  %v22350_v17 = vand.u32 4294901760, %v22349_v38  ;;  %v22363_v33 = vand.u32 4294901760, %v35339_v19 }
0x10d3   :  { %27983 = vmatprep.subr.bf16.mxu1 %v37129_v41  ;;  %v22370_v14 = vsub.f32 %v35335_v48, %v22369_v51 }
0x10d4   :  { %22351 = vmatprep.mubr.f32.mxu0 %v22350_v17  ;;  %v22364_v7 = vsub.f32 %v35339_v19, %v22363_v33 }
0x10d5   :  { %22357 = vmatmul.mubr.f32.vlgmr.msra.gmra.mrb[72].mxu0 %v22356_v31  ;;  %v22371_v25 = vand.u32 4294901760, %v22370_v14 }
0x10d6   :  { %27945 = vmatpush3.bf16.msra.mxu0 %v34523_v8  ;;  %27985 = vmatpush3.bf16.msra.mxu1 %v37130_v6  ;;  %v22365_v62 = vand.u32 4294901760, %v22364_v7 }
0x10d7   :  { %27947 = vmatprep.subr.bf16.mxu0 %v34532_v49  ;;  %27987 = vmatprep.subr.bf16.mxu1 %v37131_v35 }
0x10d8   :  { %22366 = vmatprep.mubr.f32.mxu0 %v22365_v62 }
0x10d9   :  { %22372 = vmatmul.mubr.f32.gmra.mrb[74].mxu0 %v22371_v25 }
0x10da   :  { %27949 = vmatpush3.bf16.msra.mxu0 %v34538_v34  ;;  %27989 = vmatpush3.bf16.msra.mxu1 %v37132_v46 }
0x10db   :  { %22746 = vmatprep.mubr.f32.mxu0 %v22347_v44  ;;  %27951 = vmatprep.subr.bf16.mxu0 %v34551_v21 }
0x10dc   :  { %27991 = vmatprep.subr.bf16.mxu1 %v37133_v57 }
0x10de   :  { %27953 = vmatpush3.bf16.msra.mxu0 %v34555_v18  ;;  %27993 = vmatpush3.bf16.msra.mxu1 %v37134_v9 }
0x10df   :  { %27955 = vmatprep.subr.bf16.mxu0 %v34563_v24  ;;  %27995 = vmatprep.subr.bf16.mxu1 %v37135_v26 }
0x10e2   :  { %27957 = vmatpush3.bf16.msra.mxu0 %v34567_v0  ;;  %27997 = vmatpush3.bf16.msra.mxu1 %v37136_v3 }
0x10e3   :  { %27959 = vmatprep.subr.bf16.mxu0 %v34573_v5  ;;  %27999 = vmatprep.subr.bf16.mxu1 %v34464_v55 }
0x10e6   :  { %27961 = vmatpush3.bf16.msra.mxu0 %v34577_v39  ;;  %28001 = vmatpush3.bf16.msra.mxu1 %v34472_v58 }
0x10e7   :  { %27963 = vmatprep.subr.bf16.mxu0 %v34585_v13  ;;  %28003 = vmatprep.subr.bf16.mxu1 %v34487_v53 }
0x10ea   :  { %27965 = vmatpush3.bf16.msra.mxu0 %v34589_v59  ;;  %28005 = vmatpush3.bf16.msra.mxu1 %v34509_v12 }
0x10eb   :  { %27967 = vmatprep.subr.bf16.mxu0 %v34597_v45  ;;  %28039 = vmatprep.subr.bf16.mxu1 %v37121_v28  ;;  %v37249_v28 = vld [vmem:[#allocation102_spill] sm:$0xff] }
0x10ed   :  { %22866 = vmatmul.mubr.f32.vlgmr.msra.gmra.mrb[76].mxu1 %v22354_v2 }
0x10ee   :  { %v25056_v18 = vpop.f32.mrb[60].mxu1  ;;  %27969 = vmatpush3.bf16.msra.mxu0 %v34602_v56  ;;  %22873 = vmatprep.mubr.f32.mxu1 %v22363_v33 }
0x10ef   :  { %v25057_v8 = vpop.f32.mrb[61].mxu1  ;;  %28041 = vmatpush3.bf16.msra.mxu1 %v37126_v52  ;;  %27971 = vmatprep.subr.bf16.mxu0 %v34607_v43  ;;  %v37250_v52 = vld [vmem:[#allocation69_spill] sm:$0xff] }
0x10f0   :  { %v25058_v49 = vadd.f32 %v25057_v8, %v25056_v18  ;;  %28043 = vmatprep.subr.bf16.mxu1 %v37127_v20 }
0x10f1   :  { %22877 = vmatmul.mubr.f32.gmra.mrb[78].mxu1 %v22369_v51 }
0x10f2   :  { %v25059_v34 = vpop.f32.mrb[62].mxu1  ;;  %27973 = vmatpush3.bf16.msra.mxu0 %v37222_v61  ;;  %23154 = vmatprep.mubr.f32.mxu1 %v35312_v63 }
0x10f3   :  { %v25060_v21 = vpop.f32.mrb[63].mxu1  ;;  %28045 = vmatpush3.bf16.msra.mxu1 %v37128_v1  ;;  %28007 = vmatprep.subr.bf16.mxu0 %v37223_v10 }
0x10f4   :  { %v25061_v24 = vadd.f32 %v25060_v21, %v25059_v34  ;;  %28047 = vmatprep.subr.bf16.mxu1 %v37129_v41  ;;  %v37255_v34 = vld [vmem:[#allocation126_spill] sm:$0xff] }
0x10f5   :  { %22749 = vmatmul.mubr.f32.vlgmr.msra.gmra.mrb[76].mxu0 %v35318_v40 }
0x10f6   :  { %v25018_v0 = vpop.f32.mrb[60].mxu0  ;;  %22755 = vmatprep.mubr.f32.mxu0 %v35339_v19  ;;  %28009 = vmatpush3.bf16.msra.mxu0 %v37224_v22 }
0x10f7   :  { %v25019_v43 = vpop.f32.mrb[61].mxu0  ;;  %28049 = vmatpush3.bf16.msra.mxu1 %v37130_v6  ;;  %28011 = vmatprep.subr.bf16.mxu0 %v37225_v15  ;;  %v37252_v6 = vld [vmem:[#allocation41_spill] sm:$0xff] }
0x10f8   :  { %v25020_v5 = vadd.f32 %v25019_v43, %v25018_v0  ;;  %28051 = vmatprep.subr.bf16.mxu1 %v37131_v35  ;;  %v37257_v0 = vld [vmem:[#allocation144_spill] sm:$0xff]  ;;  %v37258_v43 = vld [vmem:[#allocation162_spill] sm:$0xff] }
0x10f9   :  { %22758 = vmatmul.mubr.f32.gmra.mrb[78].mxu0 %v35335_v48 }
0x10fa   :  { %v21441_v39 = vadd.f32 1e-05, %v25020_v5  ;;  %v25021_v13 = vpop.f32.mrb[62].mxu0  ;;  %28013 = vmatpush3.bf16.msra.mxu0 %v37226_v16  ;;  %23043 = vmatprep.mubr.f32.mxu0 %v35312_v63  ;;  %v37259_v5 = vld [vmem:[#allocation165_spill] sm:$0xff] }
0x10fb   :  { %v25022_v59 = vpop.f32.mrb[63].mxu0  ;;  %28053 = vmatpush3.bf16.msra.mxu1 %v37132_v46  ;;  %28015 = vmatprep.subr.bf16.mxu0 %v37227_v50  ;;  %v37253_v46 = vld [vmem:[#allocation143_spill] sm:$0xff] }
0x10fc   :  { %v21688_v45 = vadd.f32 %v25058_v49, %v21441_v39  ;;  %v25023_v56 = vadd.f32 %v25022_v59, %v25021_v13  ;;  %28055 = vmatprep.subr.bf16.mxu1 %v37133_v57 }
0x10fe   :  { %v21456_v1 = vadd.f32 1e-05, %v25023_v56  ;;  %28017 = vmatpush3.bf16.msra.mxu0 %v37228_v47 }
0x10ff   :  { %28057 = vmatpush3.bf16.msra.mxu1 %v37134_v9  ;;  %28019 = vmatprep.subr.bf16.mxu0 %v37229_v36  ;;  %v37254_v9 = vmov 0.0  }
0x1100   :  { %v21695_v35 = vadd.f32 %v25061_v24, %v21456_v1  ;;  %28059 = vmatprep.subr.bf16.mxu1 %v37135_v26  ;;  %v37256_v24 = vld [vmem:[#allocation70_spill] sm:$0xff] }
0x1102   :  { %28021 = vmatpush3.bf16.msra.mxu0 %v37230_v27 }
0x1103   :  { %28061 = vmatpush3.bf16.msra.mxu1 %v37136_v3  ;;  %28023 = vmatprep.subr.bf16.mxu0 %v37231_v54 }
0x1104   :  { %28063 = vmatprep.subr.bf16.mxu1 %v34464_v55 }
0x1106   :  { %28025 = vmatpush3.bf16.msra.mxu0 %v37232_v30 }
0x1107   :  { %28065 = vmatpush3.bf16.msra.mxu1 %v34472_v58  ;;  %28027 = vmatprep.subr.bf16.mxu0 %v37233_v37  ;;  %v37251_v58 = vld [vmem:[#allocation163_spill] sm:$0xff] }
0x1108   :  { %28067 = vmatprep.subr.bf16.mxu1 %v34487_v53 }
0x110a   :  { %28029 = vmatpush3.bf16.msra.mxu0 %v37249_v28 }
0x110b   :  { %28069 = vmatpush3.bf16.msra.mxu1 %v34509_v12  ;;  %28031 = vmatprep.subr.bf16.mxu0 %v37235_v32 }
0x110c   :  { %23699 = vmatprep.subr.mxu1 %v37250_v52 }
0x110e   :  { %v25132_v20 = vpop.f32.mrb[64].mxu1  ;;  %23156 = vmatmul.mubr.f32.vlgmr.msra.gmra.mrb[80].mxu1 %v35307_v11  ;;  %28033 = vmatpush3.bf16.msra.mxu0 %v37236_v60 }
0x110f   :  { %v25133_v55 = vpop.f32.mrb[65].mxu1  ;;  %23161 = vmatprep.mubr.f32.mxu1 %v35330_v29  ;;  %28035 = vmatprep.subr.bf16.mxu0 %v37237_v42 }
0x1110   :  { %v25134_v41 = vadd.f32 %v25133_v55, %v25132_v20  ;;  %23701 = vmatpush1.msra.mxu1 %v37251_v58 }
0x1111   :  { %23792 = vmatprep.subr.mxu1 %v37252_v6 }
0x1112   :  { %v25135_v53 = vpop.f32.mrb[66].mxu1  ;;  %23163 = vmatmul.mubr.f32.gmra.mrb[82].mxu1 %v35327_v4  ;;  %28037 = vmatpush3.bf16.msra.mxu0 %v37253_v46 }
0x1113   :  { %v25136_v12 = vpop.f32.mrb[67].mxu1  ;;  %23179 = vmatprep.subr.mxu0 %v37250_v52  ;;  %23764 = vmatprep.mubr.f32.mxu1 %v37254_v9 }
0x1114   :  { %v25137_v57 = vadd.f32 %v25136_v12, %v25135_v53 }
0x1115   :  { %23045 = vmatmul.mubr.f32.vlgmr.msra.gmra.mrb[80].mxu0 %v35307_v11 }
0x1116   :  { %v25094_v26 = vpop.f32.mrb[64].mxu0  ;;  %23050 = vmatprep.mubr.f32.mxu0 %v35330_v29  ;;  %23181 = vmatpush1.msra.mxu0 %v37251_v58 }
0x1117   :  { %v25095_v3 = vpop.f32.mrb[65].mxu0  ;;  %23272 = vmatprep.subr.mxu0 %v37252_v6 }
0x1118   :  { %v25096_v61 = vadd.f32 %v25095_v3, %v25094_v26 }
0x1119   :  { %23052 = vmatmul.mubr.f32.gmra.mrb[82].mxu0 %v35327_v4 }
0x111a   :  { %v21833_v10 = vadd.f32 %v25096_v61, %v21688_v45  ;;  %v25097_v22 = vpop.f32.mrb[66].mxu0  ;;  %23244 = vmatprep.mubr.f32.mxu0 %v37254_v9 }
0x111b   :  { %v25098_v15 = vpop.f32.mrb[67].mxu0 }
0x111c   :  { %v25099_v16 = vadd.f32 %v25098_v15, %v25097_v22  ;;  %v21950_v50 = vadd.f32 %v25134_v41, %v21833_v10 }
0x111e   :  { %v21842_v47 = vadd.f32 %v25099_v16, %v21695_v35 }
0x1120   :  { %v21961_v36 = vadd.f32 %v25137_v57, %v21842_v47 }
0x112f   :  { %v25208_v27 = vpop.f32.mrb[68].mxu1 }
0x1130   :  { %v25209_v54 = vpop.f32.mrb[69].mxu1 }
0x1131   :  { %v25210_v30 = vadd.f32 %v25209_v54, %v25208_v27 }
0x1133   :  { %v25211_v37 = vpop.f32.mrb[70].mxu1 }
0x1134   :  { %v25212_v62 = vpop.f32.mrb[71].mxu1 }
0x1135   :  { %v25213_v32 = vadd.f32 %v25212_v62, %v25211_v37 }
0x1136   :  { %v25170_v60 = vpop.f32.mrb[68].mxu0 }
0x1137   :  { %v25171_v42 = vpop.f32.mrb[69].mxu0 }
0x1138   :  { %v25172_v14 = vadd.f32 %v25171_v42, %v25170_v60 }
0x113a   :  { %v22129_v33 = vadd.f32 %v25172_v14, %v21950_v50  ;;  %v25173_v11 = vpop.f32.mrb[70].mxu0 }
0x113b   :  { %v25174_v17 = vpop.f32.mrb[71].mxu0 }
0x113c   :  { %v22240_v63 = vadd.f32 %v25210_v30, %v22129_v33  ;;  %v25175_v51 = vadd.f32 %v25174_v17, %v25173_v11 }
0x113e   :  { %28693 = vrsqrt.f32 %v22240_v63  ;;  %v22136_v40 = vadd.f32 %v25175_v51, %v21961_v36 }
0x1140   :  { %v22247_v44 = vadd.f32 %v25213_v32, %v22136_v40 }
0x1142   :  { %28695 = vrsqrt.f32 %v22247_v44 }
0x1148   :  { %v28694_v2 = vpop.eup %28693 }
0x1149   :  { %v23173_v4 = vsel %vm1824_vm10, %v28694_v2, 0 }
0x114a   :  { %v23245_v29 = vand.u32 4294901760, %v23173_v4 }
0x114c   :  { %v28696_v23 = vpop.eup %28695  ;;  %v23246_v48 = vsub.f32 %v23173_v4, %v23245_v29 }
0x114d   :  { %v23176_v19 = vsel %vm1824_vm10, %v28696_v23, 0 }
0x114e   :  { %v23247_v38 = vand.u32 4294901760, %v23246_v48  ;;  %v23256_v31 = vand.u32 4294901760, %v23176_v19 }
0x1150   :  { %v23248_v7 = vsub.f32 %v23246_v48, %v23247_v38  ;;  %v23257_v25 = vsub.f32 %v23176_v19, %v23256_v31 }
0x1152   :  { %v23249_v18 = vand.u32 4294901760, %v23248_v7  ;;  %v23258_v8 = vand.u32 4294901760, %v23257_v25 }
0x1154   :  { %23250 = vmatmul.mubr.f32.vlgmr.msra.gmra.mrb[84].mxu0 %v23249_v18  ;;  %v23259_v49 = vsub.f32 %v23257_v25, %v23258_v8 }
0x1155   :  { %23255 = vmatprep.mubr.f32.mxu0 %v37254_v9  ;;  %23278 = vmatpush1.msra.mxu0 %v37255_v34 }
0x1156   :  { %v23260_v21 = vand.u32 4294901760, %v23259_v49  ;;  %23358 = vmatprep.subr.mxu0 %v37256_v24 }
0x1158   :  { %23261 = vmatmul.mubr.f32.gmra.mrb[86].mxu0 %v23260_v21 }
0x1159   :  { %23341 = vmatprep.mubr.f32.mxu0 %v37254_v9 }
0x115c   :  { %23343 = vmatmul.mubr.f32.vlgmr.msra.gmra.mrb[84].mxu0 %v23245_v29 }
0x115d   :  { %23348 = vmatprep.mubr.f32.mxu0 %v37254_v9  ;;  %23361 = vmatpush1.msra.mxu0 %v37257_v0 }
0x115e   :  { %23442 = vmatprep.subr.mxu0 %v37250_v52 }
0x1160   :  { %23350 = vmatmul.mubr.f32.gmra.mrb[86].mxu0 %v23256_v31 }
0x1161   :  { %23424 = vmatprep.mubr.f32.mxu0 %v37254_v9 }
0x1164   :  { %23427 = vmatmul.mubr.f32.vlgmr.msra.gmra.mrb[84].mxu0 %v23246_v48 }
0x1165   :  { %23432 = vmatprep.mubr.f32.mxu0 %v37254_v9  ;;  %23444 = vmatpush1.msra.mxu0 %v37251_v58 }
0x1166   :  { %23529 = vmatprep.subr.mxu0 %v37258_v43 }
0x1168   :  { %23435 = vmatmul.mubr.f32.gmra.mrb[86].mxu0 %v23257_v25 }
0x1169   :  { %23507 = vmatprep.mubr.f32.mxu0 %v37254_v9 }
0x116c   :  { %23511 = vmatmul.mubr.f32.vlgmr.msra.gmra.mrb[84].mxu0 %v23247_v38 }
0x116d   :  { %23516 = vmatprep.mubr.f32.mxu0 %v37254_v9  ;;  %23533 = vmatpush1.msra.mxu0 %v37259_v5 }
0x116e   :  { %23612 = vmatprep.subr.mxu0 %v37250_v52 }
0x1170   :  { %23520 = vmatmul.mubr.f32.gmra.mrb[86].mxu0 %v23258_v8 }
0x1171   :  { %23596 = vmatprep.mubr.f32.mxu0 %v37254_v9 }
0x1174   :  { %23598 = vmatmul.mubr.f32.vlgmr.msra.gmra.mrb[84].mxu0 %v23245_v29 }
0x1175   :  { %23603 = vmatprep.mubr.f32.mxu0 %v37254_v9  ;;  %23614 = vmatpush1.msra.mxu0 %v37251_v58 }
0x1178   :  { %23605 = vmatmul.mubr.f32.gmra.mrb[86].mxu0 %v23256_v31 }
0x1179   :  { %23677 = vmatprep.mubr.f32.mxu0 %v37254_v9 }
0x117c   :  { %23679 = vmatmul.mubr.f32.vlgmr.msra.gmra.mrb[84].mxu0 %v23245_v29 }
0x117d   :  { %23684 = vmatprep.mubr.f32.mxu0 %v37254_v9 }
0x1180   :  { %23686 = vmatmul.mubr.f32.gmra.mrb[86].mxu0 %v23256_v31 }
0x11a0   :  { %v25284_v39 = vpop.f32.mrb[72].mxu1 }
0x11a1   :  { %v25285_v13 = vpop.f32.mrb[73].mxu1 }
0x11a2   :  { %v25286_v59 = vadd.f32 %v25285_v13, %v25284_v39 }
0x11a4   :  { %v25287_v45 = vpop.f32.mrb[74].mxu1 }
0x11a5   :  { %v25288_v56 = vpop.f32.mrb[75].mxu1 }
0x11a6   :  { %v25289_v1 = vadd.f32 %v25288_v56, %v25287_v45 }
0x11a8   :  { %v25246_v35 = vpop.f32.mrb[72].mxu0 }
0x11a9   :  { %v25247_v28 = vpop.f32.mrb[73].mxu0 }
0x11aa   :  { %v25248_v20 = vadd.f32 %v25247_v28, %v25246_v35  ;;  %v37262_v28 = vld [vmem:[#allocation145_spill] sm:$0xff] }
0x11ac   :  { %v22359_v55 = vadd.f32 1e-05, %v25248_v20  ;;  %v25249_v41 = vpop.f32.mrb[74].mxu0 }
0x11ad   :  { %v25250_v53 = vpop.f32.mrb[75].mxu0 }
0x11ae   :  { %v22606_v6 = vadd.f32 %v25286_v59, %v22359_v55  ;;  %v25251_v12 = vadd.f32 %v25250_v53, %v25249_v41  ;;  %v37263_v41 = vld [vmem:[#allocation148_spill] sm:$0xff] }
0x11b0   :  { %v22374_v46 = vadd.f32 1e-05, %v25251_v12 }
0x11b2   :  { %v22613_v57 = vadd.f32 %v25289_v1, %v22374_v46 }
0x11c0   :  { %v25360_v26 = vpop.f32.mrb[76].mxu1 }
0x11c1   :  { %v25361_v3 = vpop.f32.mrb[77].mxu1 }
0x11c2   :  { %v25362_v61 = vadd.f32 %v25361_v3, %v25360_v26  ;;  %v37264_v26 = vld [vmem:[#allocation56_spill] sm:$0xff] }
0x11c4   :  { %v25363_v10 = vpop.f32.mrb[78].mxu1 }
0x11c5   :  { %v25364_v22 = vpop.f32.mrb[79].mxu1 }
0x11c6   :  { %v25365_v15 = vadd.f32 %v25364_v22, %v25363_v10  ;;  %v37265_v22 = vld [vmem:[#allocation149_spill] sm:$0xff] }
0x11c8   :  { %v25322_v16 = vpop.f32.mrb[76].mxu0 }
0x11c9   :  { %v25323_v50 = vpop.f32.mrb[77].mxu0 }
0x11ca   :  { %v25324_v47 = vadd.f32 %v25323_v50, %v25322_v16 }
0x11cc   :  { %v22751_v36 = vadd.f32 %v25324_v47, %v22606_v6  ;;  %v25325_v27 = vpop.f32.mrb[78].mxu0 }
0x11cd   :  { %v25326_v54 = vpop.f32.mrb[79].mxu0 }
0x11ce   :  { %v25327_v30 = vadd.f32 %v25326_v54, %v25325_v27  ;;  %v22868_v37 = vadd.f32 %v25362_v61, %v22751_v36  ;;  %v37266_v54 = vld [vmem:[#allocation166_spill] sm:$0xff] }
0x11d0   :  { %v22760_v62 = vadd.f32 %v25327_v30, %v22613_v57 }
0x11d2   :  { %v22879_v32 = vadd.f32 %v25365_v15, %v22760_v62  ;;  %v37267_v62 = vld [vmem:[#allocation152_spill] sm:$0xff] }
0x11e1   :  { %v25436_v60 = vpop.f32.mrb[80].mxu1 }
0x11e2   :  { %v25437_v42 = vpop.f32.mrb[81].mxu1 }
0x11e3   :  { %v25438_v14 = vadd.f32 %v25437_v42, %v25436_v60 }
0x11e5   :  { %v25439_v33 = vpop.f32.mrb[82].mxu1 }
0x11e6   :  { %v25440_v11 = vpop.f32.mrb[83].mxu1 }
0x11e7   :  { %v25441_v17 = vadd.f32 %v25440_v11, %v25439_v33  ;;  %v37268_v11 = vld [vmem:[#allocation164_spill] sm:$0xff] }
0x11e8   :  { %v25398_v63 = vpop.f32.mrb[80].mxu0 }
0x11e9   :  { %v25399_v51 = vpop.f32.mrb[81].mxu0 }
0x11ea   :  { %v25400_v40 = vadd.f32 %v25399_v51, %v25398_v63 }
0x11ec   :  { %v23047_v44 = vadd.f32 %v25400_v40, %v22868_v37  ;;  %v25401_v2 = vpop.f32.mrb[82].mxu0  ;;  %v37269_v40 = vld [vmem:[#allocation153_spill] sm:$0xff] }
0x11ed   :  { %v25402_v4 = vpop.f32.mrb[83].mxu0 }
0x11ee   :  { %v23158_v29 = vadd.f32 %v25438_v14, %v23047_v44  ;;  %v25403_v23 = vadd.f32 %v25402_v4, %v25401_v2 }
0x11f0   :  { %28697 = vrsqrt.f32 %v23158_v29  ;;  %v23054_v48 = vadd.f32 %v25403_v23, %v22879_v32 }
0x11f2   :  { %v23165_v19 = vadd.f32 %v25441_v17, %v23054_v48 }
0x11f4   :  { %28699 = vrsqrt.f32 %v23165_v19 }
0x11fa   :  { %v28698_v38 = vpop.eup %28697 }
0x11fb   :  { %v23693_v31 = vsel %vm1824_vm10, %v28698_v38, 0 }
0x11fc   :  { %v23765_v7 = vand.u32 4294901760, %v23693_v31 }
0x11fe   :  { %v28700_v25 = vpop.eup %28699  ;;  %v23766_v18 = vsub.f32 %v23693_v31, %v23765_v7 }
0x11ff   :  { %v23696_v8 = vsel %vm1824_vm10, %v28700_v25, 0 }
0x1200   :  { %v23767_v49 = vand.u32 4294901760, %v23766_v18  ;;  %v23776_v21 = vand.u32 4294901760, %v23696_v8 }
0x1202   :  { %v23768_v39 = vsub.f32 %v23766_v18, %v23767_v49  ;;  %v23777_v13 = vsub.f32 %v23696_v8, %v23776_v21 }
0x1204   :  { %v23769_v59 = vand.u32 4294901760, %v23768_v39  ;;  %v23778_v45 = vand.u32 4294901760, %v23777_v13 }
0x1206   :  { %23770 = vmatmul.mubr.f32.vlgmr.msra.gmra.mrb[84].mxu1 %v23769_v59  ;;  %v23779_v56 = vsub.f32 %v23777_v13, %v23778_v45 }
0x1207   :  { %23775 = vmatprep.mubr.f32.mxu1 %v37254_v9  ;;  %23798 = vmatpush1.msra.mxu1 %v37255_v34  ;;  %v24220_v34 = vld [vmem:[#allocation25] sm:$0x3] }
0x1208   :  { %v23780_v1 = vand.u32 4294901760, %v23779_v56  ;;  %23878 = vmatprep.subr.mxu1 %v37256_v24  ;;  %v37260_v24 = vld [vmem:[#allocation37_spill] sm:$0xff] }
0x120a   :  { %23781 = vmatmul.mubr.f32.gmra.mrb[86].mxu1 %v23780_v1 }
0x120b   :  { %23861 = vmatprep.mubr.f32.mxu1 %v37254_v9 }
0x120e   :  { %23863 = vmatmul.mubr.f32.vlgmr.msra.gmra.mrb[84].mxu1 %v23765_v7 }
0x120f   :  { %23868 = vmatprep.mubr.f32.mxu1 %v37254_v9  ;;  %23881 = vmatpush1.msra.mxu1 %v37257_v0  ;;  %v24225_v0 = vrot.slane %v24220_v34, %v37260_v24 }
0x1210   :  { %23962 = vmatprep.subr.mxu1 %v37250_v52 }
0x1212   :  { %23870 = vmatmul.mubr.f32.gmra.mrb[86].mxu1 %v23776_v21 }
0x1213   :  { %23944 = vmatprep.mubr.f32.mxu1 %v37254_v9 }
0x1216   :  { %23947 = vmatmul.mubr.f32.vlgmr.msra.gmra.mrb[84].mxu1 %v23766_v18 }
0x1217   :  { %23952 = vmatprep.mubr.f32.mxu1 %v37254_v9  ;;  %23964 = vmatpush1.msra.mxu1 %v37251_v58 }
0x1218   :  { %24049 = vmatprep.subr.mxu1 %v37258_v43 }
0x121a   :  { %23955 = vmatmul.mubr.f32.gmra.mrb[86].mxu1 %v23777_v13 }
0x121b   :  { %24027 = vmatprep.mubr.f32.mxu1 %v37254_v9 }
0x121e   :  { %24031 = vmatmul.mubr.f32.vlgmr.msra.gmra.mrb[84].mxu1 %v23767_v49 }
0x121f   :  { %24036 = vmatprep.mubr.f32.mxu1 %v37254_v9  ;;  %24053 = vmatpush1.msra.mxu1 %v37259_v5  ;;  %v37261_v5 = vld [vmem:[#allocation38_spill] sm:$0xff] }
0x1220   :  { %24132 = vmatprep.subr.mxu1 %v37250_v52  ;;  %v24240_v52 = vld [vmem:[%s35520_s20] sm:$0x3]  ;;  %v24229_v35 = vrot.slane %v24220_v34, %v37261_v5  ;;  %s29129_s20 = smov [#allocation26]  }
0x1221   :  { %s24273_s29 = sshll.u32 %s29129_s20, 4  ;;  %s24274_s29 = int_to_ptr.vmem [resolvable:$true] %s24273_s29 }
0x1222   :  { %24040 = vmatmul.mubr.f32.gmra.mrb[86].mxu1 %v23778_v45  ;;  %s29065_s11 = scalar_lea.vmem %s24274_s29, 1024  ;;  %p29070_p9 = scmp.lt.s32.totalorder %s24274_s29, %s24274_s29 }
0x1223   :  { %24116 = vmatprep.mubr.f32.mxu1 %v37254_v9  ;;  %p29066_p8 = scmp.ne.s32.totalorder %s24274_s29, %s29065_s11  ;;  %p29071_p10 = scmp.lt.s32.totalorder %s29065_s11, %s29065_s11 }
0x1225   :  { %p29072_p11 = por %p29071_p10, %p29070_p9 }
0x1226   :  { %24118 = vmatmul.mubr.f32.vlgmr.msra.gmra.mrb[84].mxu1 %v23765_v7 }
0x1227   :  { %24123 = vmatprep.mubr.f32.mxu1 %v37254_v9  ;;  %24134 = vmatpush1.msra.mxu1 %v37251_v58  ;;  %v24245_v58 = vrot.slane %v24240_v52, %v37260_v24  ;;  %p29073_p12 = pnand %p29072_p11, %p29066_p8 }
0x122a   :  { %24125 = vmatmul.mubr.f32.gmra.mrb[86].mxu1 %v23776_v21 }
0x122b   :  { %24197 = vmatprep.mubr.f32.mxu1 %v37254_v9 }
0x122e   :  { %24199 = vmatmul.mubr.f32.vlgmr.msra.gmra.mrb[84].mxu1 %v23765_v7 }
0x122f   :  { %24204 = vmatprep.mubr.f32.mxu1 %v37254_v9  ;;  %v24249_v9 = vrot.slane %v24240_v52, %v37261_v5 }
0x1232   :  { %24206 = vmatmul.mubr.f32.gmra.mrb[86].mxu1 %v23776_v21 }
0x124f   :  { %v23680_v43 = vpop.f32.mrb[84].mxu0 }
0x1250   :  { %v24212_v20 = vmul.f32 %v23680_v43, %v37262_v28  ;;  %v23682_v55 = vpop.f32.mrb[85].mxu0 }
0x1251   :  { %v24213_v53 = vmul.f32 %v23682_v55, %v37263_v41 }
0x1252   :  { %v24232_v6 = vmul.f32 %v24225_v0, %v24212_v20 }
0x1253   :  { %v24233_v12 = vmul.f32 %v24229_v35, %v24213_v53  ;;  %v23687_v46 = vpop.f32.mrb[86].mxu0 }
0x1254   :  { %v24252_v57 = vadd.f32 %v24245_v58, %v24232_v6  ;;  %v24214_v3 = vmul.f32 %v23687_v46, %v37264_v26  ;;  %v23689_v61 = vpop.f32.mrb[87].mxu0 }
0x1255   :  { %v24253_v10 = vadd.f32 %v24249_v9, %v24233_v12  ;;  %v24215_v15 = vmul.f32 %v23689_v61, %v37265_v22 }
0x1256   :  { %24260 = vst [vmem:[#allocation26] sm:$0xff] %v24252_v57  ;;  %v24234_v16 = vmul.f32 %v24225_v0, %v24214_v3 }
0x1257   :  { %24261 = vst [vmem:[#allocation26 + $0x8] sm:$0xff] %v24253_v10  ;;  %v24235_v50 = vmul.f32 %v24229_v35, %v24215_v15 }
0x1258   :  { %v24254_v47 = vadd.f32 %v24245_v58, %v24234_v16 }
0x1259   :  { %v24255_v36 = vadd.f32 %v24249_v9, %v24235_v50 }
0x125a   :  { %24262 = vst [vmem:[#allocation26 + $0x10] sm:$0xff] %v24254_v47 }
0x125b   :  { %24263 = vst [vmem:[#allocation26 + $0x18] sm:$0xff] %v24255_v36 }
0x1301   :  { %v24200_v27 = vpop.f32.mrb[84].mxu1 }
0x1302   :  { %v24216_v30 = vmul.f32 %v24200_v27, %v37266_v54  ;;  %v24202_v37 = vpop.f32.mrb[85].mxu1 }
0x1303   :  { %v24217_v32 = vmul.f32 %v24202_v37, %v37267_v62 }
0x1304   :  { %v24236_v60 = vmul.f32 %v24225_v0, %v24216_v30 }
0x1305   :  { %v24237_v42 = vmul.f32 %v24229_v35, %v24217_v32  ;;  %v24207_v14 = vpop.f32.mrb[86].mxu1 }
0x1306   :  { %v24256_v33 = vadd.f32 %v24245_v58, %v24236_v60  ;;  %v24218_v17 = vmul.f32 %v24207_v14, %v37268_v11  ;;  %v24209_v63 = vpop.f32.mrb[87].mxu1 }
0x1307   :  { %v24257_v51 = vadd.f32 %v24249_v9, %v24237_v42  ;;  %v24219_v44 = vmul.f32 %v24209_v63, %v37269_v40 }
0x1308   :  { %24264 = vst [vmem:[#allocation26 + $0x20] sm:$0xff] %v24256_v33  ;;  %v24238_v2 = vmul.f32 %v24225_v0, %v24218_v17 }
0x1309   :  { %24265 = vst [vmem:[#allocation26 + $0x28] sm:$0xff] %v24257_v51  ;;  %v24239_v4 = vmul.f32 %v24229_v35, %v24219_v44 }
0x130a   :  { %v24258_v29 = vadd.f32 %v24245_v58, %v24238_v2 }
0x130b   :  { %v24259_v23 = vadd.f32 %v24249_v9, %v24239_v4 }
0x130c   :  { %24266 = vst [vmem:[#allocation26 + $0x30] sm:$0xff] %v24258_v29 }
0x130d   :  { %24267 = vst [vmem:[#allocation26 + $0x38] sm:$0xff] %v24259_v23 }
0x130e   :  { %29076 = shalt.err (!%p29073_p12)
}
0x130f   :  { %s29077_s24 = scalar_lea.hbm %s35521_s21, 1024 }
0x1310   :  { %p29078_p13 = scmp.ne.s32.totalorder %s35521_s21, %s29077_s24  ;;  %p29081_p0 = scmp.lt.u32.totalorder %s29077_s24, %s35521_s21 }
0x1312   :  { %p29083_p1 = pnand %p29081_p0, %p29078_p13 }
0x1314   :  { %29086 = shalt.err (!%p29083_p1)
}
0x1315   :  { %24279 = dma.vmem_to_hbm [thread:$0]  %s24274_s29, 1024, %s35521_s21, [#allocation4], %s29123_s12, %s29123_s12, %s29124_s26  }
0x1316   :  { %29103 = dma.done.wait [#allocation4], 1024  }
0x1317   :  { %29104 = vsyncadd [#allocation4], 4294966272 }
0x1318   :  { %24283 = vsyncpa [#allocation3], 1 }
0x1319   :  { %24284 = vsyncpa [#allocation6], 1 }
0x131a   :  { %24285 = vsyncpa [#allocation9], 1 }
0x131b   :  { %24286 = vsyncpa [#allocation12], 1 }
0x131c   :  { %24287 = vsyncpa [#allocation15], 1 }
0x131d   :  { %24288 = vsyncpa [#allocation18], 1 }
0x131e   :  { %24289 = vsyncpa [#allocation21], 1 }
0x131f   :  { %24290 = vsyncpa [#allocation24], 1 }
0x1320   :  { %24291 = vsyncpa [#allocation4], 1 }

</bundles_post_ra>
